<compile_context>
chip_gen: v5e
topology: v5e:2x2
jax: 0.10.0
libtpu: 0.0.40
codegen_flags: <defaults>
</compile_context>

<pallas_src>
import functools

import jax
import jax.numpy as jnp
from jax.experimental import pallas as pl
from jax.experimental.pallas import tpu as pltpu


def _conv3x3_taps(ref, stride, Ho, Wo):
    """Return the 9 (Ho*Wo, C) taps of a 3x3 conv over a 1-padded (Hp,Wp,C) ref."""
    C = ref.shape[-1]
    M = Ho * Wo
    taps = []
    for kh in range(3):
        if stride == 1:
            slab = ref[kh:kh + Ho, :, :]                       # (Ho, Wo+2, C)
            for kw in range(3):
                taps.append(slab[:, kw:kw + Wo, :].reshape(M, C))
        elif stride == 2:
            # one strided H pick per row, then 2 W-phase decimations shared by
            # the three kw offsets (instead of 9 strided W slices).
            slab = ref[pl.ds(kh, Ho, 2), :, :]                 # (Ho, Wp, C)
            even = slab[:, 0::2, :]
            odd = slab[:, 1::2, :]
            taps.append(even[:, 0:Wo, :].reshape(M, C))        # kw = 0
            taps.append(odd[:, 0:Wo, :].reshape(M, C))         # kw = 1
            taps.append(even[:, 1:1 + Wo, :].reshape(M, C))    # kw = 2
        else:
            for kw in range(3):
                t = ref[pl.ds(kh, Ho, stride), pl.ds(kw, Wo, stride), :]
                taps.append(t.reshape(M, C))
    return taps


def basic_block_kernel(x_ref, w1_ref, b1_ref, w2_ref, b2_ref, *rest,
                       stride, has_downsample, Ho, Wo):
    if has_downsample:
        wd_ref, bd_ref, out_ref, pad_ref = rest
    else:
        out_ref, pad_ref = rest

    M = Ho * Wo
    Cinp = x_ref.shape[-1]
    Cmidp = w1_ref.shape[-1]
    Coutp = w2_ref.shape[-1]

    # ---- conv1 (3x3, stride) as a single im2col matmul + bias + ReLU ------
    col1 = jnp.concatenate(_conv3x3_taps(x_ref, stride, Ho, Wo), axis=-1)
    acc1 = jnp.dot(col1, w1_ref[...], preferred_element_type=jnp.float32)
    out1 = jnp.maximum(acc1 + b1_ref[...], 0.0)                # (M, Cmidp) f32

    # ---- stage out1 into the zero-padded bf16 scratch for conv2 -----------
    # Interior is fully rewritten every grid step; only the 1-pixel border
    # needs zeroing (cheap, correct under megacore grid partitioning).
    zrow = jnp.zeros((1, Wo + 2, Cmidp), pad_ref.dtype)
    zcol = jnp.zeros((Ho + 2, 1, Cmidp), pad_ref.dtype)
    pad_ref[0:1, :, :] = zrow
    pad_ref[Ho + 1:Ho + 2, :, :] = zrow
    pad_ref[:, 0:1, :] = zcol
    pad_ref[:, Wo + 1:Wo + 2, :] = zcol
    pad_ref[1:1 + Ho, 1:1 + Wo, :] = (
        out1.reshape(Ho, Wo, Cmidp).astype(pad_ref.dtype))

    # ---- conv2 (3x3, stride 1) as a single im2col matmul + bias -----------
    col2 = jnp.concatenate(_conv3x3_taps(pad_ref, 1, Ho, Wo), axis=-1)
    acc2 = jnp.dot(col2, w2_ref[...], preferred_element_type=jnp.float32)
    out2 = acc2 + b2_ref[...]                                  # (M, Coutp) f32

    # ---- residual path ------------------------------------------------------
    if has_downsample:
        if stride == 1:
            rin = x_ref[1:1 + Ho, 1:1 + Wo, :]
        else:
            rin = x_ref[pl.ds(1, Ho, stride), pl.ds(1, Wo, stride), :]
        res = jnp.dot(rin.reshape(M, Cinp), wd_ref[...],
                      preferred_element_type=jnp.float32) + bd_ref[...]
    else:
        # identity shortcut (stride==1, Cin==Cout): residual is the input.
        res = x_ref[1:1 + Ho, 1:1 + Wo, :].reshape(M, Coutp).astype(jnp.float32)

    out = jnp.maximum(out2 + res, 0.0)
    out_ref[...] = out.reshape(Ho, Wo, Coutp).astype(out_ref.dtype)


# ------------------------------ wrapper --------------------------------------
def _round_up(x, m):
    return (x + m - 1) // m * m


def _fold_bn(gamma, beta, mean, var, eps=1e-5):
    scale = (gamma / jnp.sqrt(var + eps)).astype(jnp.float32)
    bias = (beta - mean * scale).astype(jnp.float32)
    return scale, bias


def _pad_axis(a, axis, new_size):
    pads = [(0, 0)] * a.ndim
    pads[axis] = (0, new_size - a.shape[axis])
    return jnp.pad(a, pads)


def basic_block_forward(x_nchw, params, stride):
    x = jnp.transpose(x_nchw, (0, 2, 3, 1))            # NCHW -> NHWC
    N, H, W, Cin = x.shape
    w1 = params["w1"]                                  # (3,3,Cin,Cmid)  HWIO
    w2 = params["w2"]                                  # (3,3,Cmid,Cout) HWIO
    Cmid, Cout = w1.shape[-1], w2.shape[-1]
    Ho = (H + 2 - 3) // stride + 1
    Wo = (W + 2 - 3) // stride + 1
    has_ds = (stride != 1) or (Cin != Cout)

    LANE = 128
    Cinp = _round_up(Cin, LANE)
    Cmidp = _round_up(Cmid, LANE)
    Coutp = _round_up(Cout, LANE)

    # Fold BN scale into the conv weights, pad channels to lane width,
    # pre-reshape to im2col layout (9*Cin, Cout), cast to bf16.
    s1, b1 = _fold_bn(params["bn1_gamma"], params["bn1_beta"],
                      params["bn1_mean"], params["bn1_var"])
    s2, b2 = _fold_bn(params["bn2_gamma"], params["bn2_beta"],
                      params["bn2_mean"], params["bn2_var"])
    w1f = (w1.astype(jnp.float32) * s1).astype(jnp.bfloat16)
    w2f = (w2.astype(jnp.float32) * s2).astype(jnp.bfloat16)
    w1m = _pad_axis(_pad_axis(w1f, 2, Cinp), 3, Cmidp).reshape(9 * Cinp, Cmidp)
    w2m = _pad_axis(_pad_axis(w2f, 2, Cmidp), 3, Coutp).reshape(9 * Cmidp, Coutp)
    b1p = _pad_axis(b1.reshape(1, Cmid), 1, Cmidp)
    b2p = _pad_axis(b2.reshape(1, Cout), 1, Coutp)

    # Input: pad spatially (+1 halo) and channels to lane width, cast to bf16.
    xp = jnp.pad(x, ((0, 0), (1, 1), (1, 1), (0, Cinp - Cin))).astype(jnp.bfloat16)
    Hp, Wp = H + 2, W + 2

    inputs = [xp, w1m, b1p, w2m, b2p]
    in_specs = [
        pl.BlockSpec((None, Hp, Wp, Cinp), lambda n: (n, 0, 0, 0)),
        pl.BlockSpec((9 * Cinp, Cmidp), lambda n: (0, 0)),
        pl.BlockSpec((1, Cmidp), lambda n: (0, 0)),
        pl.BlockSpec((9 * Cmidp, Coutp), lambda n: (0, 0)),
        pl.BlockSpec((1, Coutp), lambda n: (0, 0)),
    ]
    if has_ds:
        sd, bd = _fold_bn(params["bnd_gamma"], params["bnd_beta"],
                          params["bnd_mean"], params["bnd_var"])
        wdf = (params["wd"].astype(jnp.float32) * sd).astype(jnp.bfloat16)
        wdm = _pad_axis(_pad_axis(wdf, 0, Cinp), 1, Coutp)
        bdp = _pad_axis(bd.reshape(1, Cout), 1, Coutp)
        inputs += [wdm, bdp]
        in_specs += [pl.BlockSpec((Cinp, Coutp), lambda n: (0, 0)),
                     pl.BlockSpec((1, Coutp), lambda n: (0, 0))]

    kernel = functools.partial(basic_block_kernel, stride=stride,
                               has_downsample=has_ds, Ho=Ho, Wo=Wo)

    flops = 2 * N * Ho * Wo * (9 * Cinp * Cmidp + 9 * Cmidp * Coutp
                               + (Cinp * Coutp if has_ds else 0))
    bytes_accessed = int(xp.size * 2 + w1m.size * 2 + w2m.size * 2
                         + N * Ho * Wo * Coutp * 4)

    out_nhwc = pl.pallas_call(
        kernel,
        out_shape=jax.ShapeDtypeStruct((N, Ho, Wo, Coutp), jnp.float32),
        grid=(N,),
        in_specs=in_specs,
        # lane-dense output: last block dim is a multiple of 128 (unmasked vst)
        out_specs=pl.BlockSpec((None, Ho, Wo, Coutp), lambda n: (n, 0, 0, 0)),
        scratch_shapes=[pltpu.VMEM((Ho + 2, Wo + 2, Cmidp), jnp.bfloat16)],
        compiler_params=pltpu.CompilerParams(
            dimension_semantics=("parallel",)),
        cost_estimate=pl.CostEstimate(flops=flops, transcendentals=0,
                                      bytes_accessed=bytes_accessed),
    )(*inputs)

    out = out_nhwc[:, :, :, :Cout]                      # drop lane padding
    return jnp.transpose(out, (0, 3, 1, 2)).astype(x_nchw.dtype)


# ----------------------------- pure-JAX reference ----------------------------
def ref_basic_block(x_nchw, params, stride):
    x = jnp.transpose(x_nchw, (0, 2, 3, 1)).astype(jnp.float32)

    def conv(z, w, s, p):
        return jax.lax.conv_general_dilated(
            z, w, (s, s), [(p, p), (p, p)],
            dimension_numbers=("NHWC", "HWIO", "NHWC"))

    def bn(z, g, b, m, v, eps=1e-5):
        return (z - m) / jnp.sqrt(v + eps) * g + b

    out = conv(x, params["w1"], stride, 1)
    out = bn(out, params["bn1_gamma"], params["bn1_beta"],
             params["bn1_mean"], params["bn1_var"])
    out = jnp.maximum(out, 0.0)
    out = conv(out, params["w2"], 1, 1)
    out = bn(out, params["bn2_gamma"], params["bn2_beta"],
             params["bn2_mean"], params["bn2_var"])
    Cin, Cout = x.shape[-1], params["w2"].shape[-1]
    if stride != 1 or Cin != Cout:
        wd = params["wd"].reshape(1, 1, Cin, Cout)
        res = conv(x, wd, stride, 0)
        res = bn(res, params["bnd_gamma"], params["bnd_beta"],
                 params["bnd_mean"], params["bnd_var"])
    else:
        res = x
    out = jnp.maximum(out + res, 0.0)
    return jnp.transpose(out, (0, 3, 1, 2))


# --------------------------------- driver -------------------------------------
def _make_params(key, inplanes, planes):
    ks = jax.random.split(key, 16)
    return {
        # conv weights stored HWIO (kh, kw, in, out); PyTorch OIHW transposed.
        "w1": 0.1 * jax.random.normal(ks[0], (3, 3, inplanes, planes), jnp.float32),
        "w2": 0.1 * jax.random.normal(ks[1], (3, 3, planes, planes), jnp.float32),
        "wd": 0.1 * jax.random.normal(ks[2], (inplanes, planes), jnp.float32),
        "bn1_gamma": 1.0 + 0.1 * jax.random.normal(ks[3], (planes,), jnp.float32),
        "bn1_beta": 0.1 * jax.random.normal(ks[4], (planes,), jnp.float32),
        "bn1_mean": 0.05 * jax.random.normal(ks[5], (planes,), jnp.float32),
        "bn1_var": 1.0 + 0.1 * jax.nn.softplus(jax.random.normal(ks[6], (planes,), jnp.float32)),
        "bn2_gamma": 1.0 + 0.1 * jax.random.normal(ks[7], (planes,), jnp.float32),
        "bn2_beta": 0.1 * jax.random.normal(ks[8], (planes,), jnp.float32),
        "bn2_mean": 0.05 * jax.random.normal(ks[9], (planes,), jnp.float32),
        "bn2_var": 1.0 + 0.1 * jax.nn.softplus(jax.random.normal(ks[10], (planes,), jnp.float32)),
        "bnd_gamma": 1.0 + 0.1 * jax.random.normal(ks[11], (planes,), jnp.float32),
        "bnd_beta": 0.1 * jax.random.normal(ks[12], (planes,), jnp.float32),
        "bnd_mean": 0.05 * jax.random.normal(ks[13], (planes,), jnp.float32),
        "bnd_var": 1.0 + 0.1 * jax.nn.softplus(jax.random.normal(ks[14], (planes,), jnp.float32)),
    }


if __name__ == "__main__":
    key = jax.random.PRNGKey(0)
    N, H, W = 2, 16, 16
    configs = [
        (4, 8, 1),   # inplanes != planes -> downsample path (1x1 conv + BN)
        (8, 8, 1),   # identity-shortcut path
    ]
    for idx, (inplanes, planes, stride) in enumerate(configs):
        kp, kx = jax.random.split(jax.random.fold_in(key, idx))
        params = _make_params(kp, inplanes, planes)
        x = jax.random.normal(kx, (N, inplanes, H, W), jnp.float32)   # NCHW

        out = jax.block_until_ready(basic_block_forward(x, params, stride))
        ref = jax.block_until_ready(ref_basic_block(x, params, stride))

        Ho = (H + 2 - 3) // stride + 1
        Wo = (W + 2 - 3) // stride + 1
        assert out.shape == ref.shape == (N, planes, Ho, Wo), (out.shape, ref.shape)
        # bf16 taps/weights on the MXU with f32 accumulation -> loosened tol.
        assert jnp.allclose(out, ref, rtol=2e-2, atol=2e-2), (
            f"config {idx}: max abs err {float(jnp.max(jnp.abs(out - ref)))}")

    print("KERNEL_OK")
</pallas_src>

<mosaic_0001>
module attributes {stable_mosaic.version = 11 : i64} {
  func.func @basic_block_kernel(%arg0: i32, %arg1: memref<1x18x18x128xbf16, #tpu.memory_space<vmem>>, %arg2: memref<1152x128xbf16, #tpu.memory_space<vmem>>, %arg3: memref<1x128xf32, #tpu.memory_space<vmem>>, %arg4: memref<1152x128xbf16, #tpu.memory_space<vmem>>, %arg5: memref<1x128xf32, #tpu.memory_space<vmem>>, %arg6: memref<128x128xbf16, #tpu.memory_space<vmem>>, %arg7: memref<1x128xf32, #tpu.memory_space<vmem>>, %arg8: memref<1x16x16x128xf32, #tpu.memory_space<vmem>>, %arg9: memref<18x18x128xbf16, #tpu.memory_space<vmem>>) attributes {dimension_semantics = [#tpu.dimension_semantics<parallel>], iteration_bounds = array<i64: 2>, scalar_prefetch = 0 : i64, scratch_operands = 1 : i64, tpu.core_type = #tpu.core_type<tc>, window_params = [{transform_indices = @transform_0, window_bounds = array<i64: 1, 18, 18, 128>}, {pipeline_mode = #tpu.pipeline_mode<synchronous>, transform_indices = @transform_1, window_bounds = array<i64: 1152, 128>}, {pipeline_mode = #tpu.pipeline_mode<synchronous>, transform_indices = @transform_2, window_bounds = array<i64: 1, 128>}, {pipeline_mode = #tpu.pipeline_mode<synchronous>, transform_indices = @transform_3, window_bounds = array<i64: 1152, 128>}, {pipeline_mode = #tpu.pipeline_mode<synchronous>, transform_indices = @transform_4, window_bounds = array<i64: 1, 128>}, {pipeline_mode = #tpu.pipeline_mode<synchronous>, transform_indices = @transform_5, window_bounds = array<i64: 128, 128>}, {pipeline_mode = #tpu.pipeline_mode<synchronous>, transform_indices = @transform_6, window_bounds = array<i64: 1, 128>}, {transform_indices = @transform_7, window_bounds = array<i64: 1, 16, 16, 128>}]} {
    %c0 = arith.constant 0 : index
    %c0_0 = arith.constant 0 : index
    %c0_1 = arith.constant 0 : index
    %c0_2 = arith.constant 0 : index
    %0 = vector.load %arg1[%c0, %c0_0, %c0_1, %c0_2] : memref<1x18x18x128xbf16, #tpu.memory_space<vmem>>, vector<1x16x18x128xbf16>
    %1 = vector.shape_cast %0 : vector<1x16x18x128xbf16> to vector<16x18x128xbf16>
    %2 = vector.extract_strided_slice %1 {offsets = [0, 0, 0], sizes = [16, 16, 128], strides = [1, 1, 1]} : vector<16x18x128xbf16> to vector<16x16x128xbf16>
    %3 = vector.shape_cast %2 : vector<16x16x128xbf16> to vector<256x128xbf16>
    %4 = vector.extract_strided_slice %1 {offsets = [0, 1, 0], sizes = [16, 16, 128], strides = [1, 1, 1]} : vector<16x18x128xbf16> to vector<16x16x128xbf16>
    %5 = vector.shape_cast %4 : vector<16x16x128xbf16> to vector<256x128xbf16>
    %6 = vector.extract_strided_slice %1 {offsets = [0, 2, 0], sizes = [16, 16, 128], strides = [1, 1, 1]} : vector<16x18x128xbf16> to vector<16x16x128xbf16>
    %7 = vector.shape_cast %6 : vector<16x16x128xbf16> to vector<256x128xbf16>
    %c0_3 = arith.constant 0 : index
    %c1 = arith.constant 1 : index
    %c0_4 = arith.constant 0 : index
    %c0_5 = arith.constant 0 : index
    %8 = vector.load %arg1[%c0_3, %c1, %c0_4, %c0_5] : memref<1x18x18x128xbf16, #tpu.memory_space<vmem>>, vector<1x16x18x128xbf16>
    %9 = vector.shape_cast %8 : vector<1x16x18x128xbf16> to vector<16x18x128xbf16>
    %10 = vector.extract_strided_slice %9 {offsets = [0, 0, 0], sizes = [16, 16, 128], strides = [1, 1, 1]} : vector<16x18x128xbf16> to vector<16x16x128xbf16>
    %11 = vector.shape_cast %10 : vector<16x16x128xbf16> to vector<256x128xbf16>
    %12 = vector.extract_strided_slice %9 {offsets = [0, 1, 0], sizes = [16, 16, 128], strides = [1, 1, 1]} : vector<16x18x128xbf16> to vector<16x16x128xbf16>
    %13 = vector.shape_cast %12 : vector<16x16x128xbf16> to vector<256x128xbf16>
    %14 = vector.extract_strided_slice %9 {offsets = [0, 2, 0], sizes = [16, 16, 128], strides = [1, 1, 1]} : vector<16x18x128xbf16> to vector<16x16x128xbf16>
    %15 = vector.shape_cast %14 : vector<16x16x128xbf16> to vector<256x128xbf16>
    %c0_6 = arith.constant 0 : index
    %c2 = arith.constant 2 : index
    %c0_7 = arith.constant 0 : index
    %c0_8 = arith.constant 0 : index
    %16 = vector.load %arg1[%c0_6, %c2, %c0_7, %c0_8] : memref<1x18x18x128xbf16, #tpu.memory_space<vmem>>, vector<1x16x18x128xbf16>
    %17 = vector.shape_cast %16 : vector<1x16x18x128xbf16> to vector<16x18x128xbf16>
    %18 = vector.extract_strided_slice %17 {offsets = [0, 0, 0], sizes = [16, 16, 128], strides = [1, 1, 1]} : vector<16x18x128xbf16> to vector<16x16x128xbf16>
    %19 = vector.shape_cast %18 : vector<16x16x128xbf16> to vector<256x128xbf16>
    %20 = vector.extract_strided_slice %17 {offsets = [0, 1, 0], sizes = [16, 16, 128], strides = [1, 1, 1]} : vector<16x18x128xbf16> to vector<16x16x128xbf16>
    %21 = vector.shape_cast %20 : vector<16x16x128xbf16> to vector<256x128xbf16>
    %22 = vector.extract_strided_slice %17 {offsets = [0, 2, 0], sizes = [16, 16, 128], strides = [1, 1, 1]} : vector<16x18x128xbf16> to vector<16x16x128xbf16>
    %23 = vector.shape_cast %22 : vector<16x16x128xbf16> to vector<256x128xbf16>
    %24 = tpu.concatenate %3, %5, %7, %11, %13, %15, %19, %21, %23 in 1 : vector<256x128xbf16>, vector<256x128xbf16>, vector<256x128xbf16>, vector<256x128xbf16>, vector<256x128xbf16>, vector<256x128xbf16>, vector<256x128xbf16>, vector<256x128xbf16>, vector<256x128xbf16> -> vector<256x1152xbf16>
    %c0_9 = arith.constant 0 : index
    %c0_10 = arith.constant 0 : index
    %25 = vector.load %arg2[%c0_9, %c0_10] : memref<1152x128xbf16, #tpu.memory_space<vmem>>, vector<1152x128xbf16>
    %cst = arith.constant dense<0.000000e+00> : vector<256x128xf32>
    %26 = tpu.matmul %24, %25, %cst {dimension_numbers = #tpu.dot_dimension_numbers<[1], [0], [0], [1], [0, 0, 1, 1], [], []>} : vector<256x1152xbf16>, vector<1152x128xbf16>, vector<256x128xf32> -> vector<256x128xf32>
    %c0_11 = arith.constant 0 : index
    %c0_12 = arith.constant 0 : index
    %27 = vector.load %arg3[%c0_11, %c0_12] : memref<1x128xf32, #tpu.memory_space<vmem>>, vector<1x128xf32>
    %28 = vector.broadcast %27 : vector<1x128xf32> to vector<256x128xf32>
    %29 = arith.addf %26, %28 : vector<256x128xf32>
    %cst_13 = arith.constant 0.000000e+00 : f32
    %30 = vector.broadcast %cst_13 : f32 to vector<256x128xf32>
    %31 = arith.maximumf %29, %30 : vector<256x128xf32>
    %cst_14 = arith.constant 0.000000e+00 : bf16
    %32 = vector.broadcast %cst_14 : bf16 to vector<1x18x128xbf16>
    %cst_15 = arith.constant 0.000000e+00 : bf16
    %33 = vector.broadcast %cst_15 : bf16 to vector<18x1x128xbf16>
    %c0_16 = arith.constant 0 : index
    %c0_17 = arith.constant 0 : index
    %c0_18 = arith.constant 0 : index
    %34 = vector.load %arg9[%c0_16, %c0_17, %c0_18] : memref<18x18x128xbf16, #tpu.memory_space<vmem>>, vector<1x18x128xbf16>
    tpu.vector_store %arg9[%c0_16, %c0_17, %c0_18], %32 {strides = array<i32>} : memref<18x18x128xbf16, #tpu.memory_space<vmem>>, vector<1x18x128xbf16>,
    %c17 = arith.constant 17 : index
    %c0_19 = arith.constant 0 : index
    %c0_20 = arith.constant 0 : index
    %35 = vector.load %arg9[%c17, %c0_19, %c0_20] : memref<18x18x128xbf16, #tpu.memory_space<vmem>>, vector<1x18x128xbf16>
    tpu.vector_store %arg9[%c17, %c0_19, %c0_20], %32 {strides = array<i32>} : memref<18x18x128xbf16, #tpu.memory_space<vmem>>, vector<1x18x128xbf16>,
    %c0_21 = arith.constant 0 : index
    %c0_22 = arith.constant 0 : index
    %c0_23 = arith.constant 0 : index
    %36 = vector.load %arg9[%c0_21, %c0_22, %c0_23] : memref<18x18x128xbf16, #tpu.memory_space<vmem>>, vector<18x1x128xbf16>
    tpu.vector_store %arg9[%c0_21, %c0_22, %c0_23], %33 {strides = array<i32>} : memref<18x18x128xbf16, #tpu.memory_space<vmem>>, vector<18x1x128xbf16>,
    %c0_24 = arith.constant 0 : index
    %c17_25 = arith.constant 17 : index
    %c0_26 = arith.constant 0 : index
    %37 = vector.load %arg9[%c0_24, %c17_25, %c0_26] : memref<18x18x128xbf16, #tpu.memory_space<vmem>>, vector<18x1x128xbf16>
    tpu.vector_store %arg9[%c0_24, %c17_25, %c0_26], %33 {strides = array<i32>} : memref<18x18x128xbf16, #tpu.memory_space<vmem>>, vector<18x1x128xbf16>,
    %38 = vector.shape_cast %31 : vector<256x128xf32> to vector<16x16x128xf32>
    %39 = arith.truncf %38 : vector<16x16x128xf32> to vector<16x16x128xbf16>
    %c1_27 = arith.constant 1 : index
    %c1_28 = arith.constant 1 : index
    %c0_29 = arith.constant 0 : index
    %40 = vector.load %arg9[%c1_27, %c1_28, %c0_29] : memref<18x18x128xbf16, #tpu.memory_space<vmem>>, vector<16x16x128xbf16>
    tpu.vector_store %arg9[%c1_27, %c1_28, %c0_29], %39 {strides = array<i32>} : memref<18x18x128xbf16, #tpu.memory_space<vmem>>, vector<16x16x128xbf16>,
    %c0_30 = arith.constant 0 : index
    %c0_31 = arith.constant 0 : index
    %c0_32 = arith.constant 0 : index
    %41 = vector.load %arg9[%c0_30, %c0_31, %c0_32] : memref<18x18x128xbf16, #tpu.memory_space<vmem>>, vector<16x18x128xbf16>
    %42 = vector.extract_strided_slice %41 {offsets = [0, 0, 0], sizes = [16, 16, 128], strides = [1, 1, 1]} : vector<16x18x128xbf16> to vector<16x16x128xbf16>
    %43 = vector.shape_cast %42 : vector<16x16x128xbf16> to vector<256x128xbf16>
    %44 = vector.extract_strided_slice %41 {offsets = [0, 1, 0], sizes = [16, 16, 128], strides = [1, 1, 1]} : vector<16x18x128xbf16> to vector<16x16x128xbf16>
    %45 = vector.shape_cast %44 : vector<16x16x128xbf16> to vector<256x128xbf16>
    %46 = vector.extract_strided_slice %41 {offsets = [0, 2, 0], sizes = [16, 16, 128], strides = [1, 1, 1]} : vector<16x18x128xbf16> to vector<16x16x128xbf16>
    %47 = vector.shape_cast %46 : vector<16x16x128xbf16> to vector<256x128xbf16>
    %c1_33 = arith.constant 1 : index
    %c0_34 = arith.constant 0 : index
    %c0_35 = arith.constant 0 : index
    %48 = vector.load %arg9[%c1_33, %c0_34, %c0_35] : memref<18x18x128xbf16, #tpu.memory_space<vmem>>, vector<16x18x128xbf16>
    %49 = vector.extract_strided_slice %48 {offsets = [0, 0, 0], sizes = [16, 16, 128], strides = [1, 1, 1]} : vector<16x18x128xbf16> to vector<16x16x128xbf16>
    %50 = vector.shape_cast %49 : vector<16x16x128xbf16> to vector<256x128xbf16>
    %51 = vector.extract_strided_slice %48 {offsets = [0, 1, 0], sizes = [16, 16, 128], strides = [1, 1, 1]} : vector<16x18x128xbf16> to vector<16x16x128xbf16>
    %52 = vector.shape_cast %51 : vector<16x16x128xbf16> to vector<256x128xbf16>
    %53 = vector.extract_strided_slice %48 {offsets = [0, 2, 0], sizes = [16, 16, 128], strides = [1, 1, 1]} : vector<16x18x128xbf16> to vector<16x16x128xbf16>
    %54 = vector.shape_cast %53 : vector<16x16x128xbf16> to vector<256x128xbf16>
    %c2_36 = arith.constant 2 : index
    %c0_37 = arith.constant 0 : index
    %c0_38 = arith.constant 0 : index
    %55 = vector.load %arg9[%c2_36, %c0_37, %c0_38] : memref<18x18x128xbf16, #tpu.memory_space<vmem>>, vector<16x18x128xbf16>
    %56 = vector.extract_strided_slice %55 {offsets = [0, 0, 0], sizes = [16, 16, 128], strides = [1, 1, 1]} : vector<16x18x128xbf16> to vector<16x16x128xbf16>
    %57 = vector.shape_cast %56 : vector<16x16x128xbf16> to vector<256x128xbf16>
    %58 = vector.extract_strided_slice %55 {offsets = [0, 1, 0], sizes = [16, 16, 128], strides = [1, 1, 1]} : vector<16x18x128xbf16> to vector<16x16x128xbf16>
    %59 = vector.shape_cast %58 : vector<16x16x128xbf16> to vector<256x128xbf16>
    %60 = vector.extract_strided_slice %55 {offsets = [0, 2, 0], sizes = [16, 16, 128], strides = [1, 1, 1]} : vector<16x18x128xbf16> to vector<16x16x128xbf16>
    %61 = vector.shape_cast %60 : vector<16x16x128xbf16> to vector<256x128xbf16>
    %62 = tpu.concatenate %43, %45, %47, %50, %52, %54, %57, %59, %61 in 1 : vector<256x128xbf16>, vector<256x128xbf16>, vector<256x128xbf16>, vector<256x128xbf16>, vector<256x128xbf16>, vector<256x128xbf16>, vector<256x128xbf16>, vector<256x128xbf16>, vector<256x128xbf16> -> vector<256x1152xbf16>
    %c0_39 = arith.constant 0 : index
    %c0_40 = arith.constant 0 : index
    %63 = vector.load %arg4[%c0_39, %c0_40] : memref<1152x128xbf16, #tpu.memory_space<vmem>>, vector<1152x128xbf16>
    %cst_41 = arith.constant dense<0.000000e+00> : vector<256x128xf32>
    %64 = tpu.matmul %62, %63, %cst_41 {dimension_numbers = #tpu.dot_dimension_numbers<[1], [0], [0], [1], [0, 0, 1, 1], [], []>} : vector<256x1152xbf16>, vector<1152x128xbf16>, vector<256x128xf32> -> vector<256x128xf32>
    %c0_42 = arith.constant 0 : index
    %c0_43 = arith.constant 0 : index
    %65 = vector.load %arg5[%c0_42, %c0_43] : memref<1x128xf32, #tpu.memory_space<vmem>>, vector<1x128xf32>
    %66 = vector.broadcast %65 : vector<1x128xf32> to vector<256x128xf32>
    %67 = arith.addf %64, %66 : vector<256x128xf32>
    %c0_44 = arith.constant 0 : index
    %c1_45 = arith.constant 1 : index
    %c1_46 = arith.constant 1 : index
    %c0_47 = arith.constant 0 : index
    %68 = vector.load %arg1[%c0_44, %c1_45, %c1_46, %c0_47] : memref<1x18x18x128xbf16, #tpu.memory_space<vmem>>, vector<1x16x16x128xbf16>
    %69 = vector.shape_cast %68 : vector<1x16x16x128xbf16> to vector<16x16x128xbf16>
    %70 = vector.shape_cast %69 : vector<16x16x128xbf16> to vector<256x128xbf16>
    %c0_48 = arith.constant 0 : index
    %c0_49 = arith.constant 0 : index
    %71 = vector.load %arg6[%c0_48, %c0_49] : memref<128x128xbf16, #tpu.memory_space<vmem>>, vector<128x128xbf16>
    %cst_50 = arith.constant dense<0.000000e+00> : vector<256x128xf32>
    %72 = tpu.matmul %70, %71, %cst_50 {dimension_numbers = #tpu.dot_dimension_numbers<[1], [0], [0], [1], [0, 0, 1, 1], [], []>} : vector<256x128xbf16>, vector<128x128xbf16>, vector<256x128xf32> -> vector<256x128xf32>
    %c0_51 = arith.constant 0 : index
    %c0_52 = arith.constant 0 : index
    %73 = vector.load %arg7[%c0_51, %c0_52] : memref<1x128xf32, #tpu.memory_space<vmem>>, vector<1x128xf32>
    %74 = vector.broadcast %73 : vector<1x128xf32> to vector<256x128xf32>
    %75 = arith.addf %72, %74 : vector<256x128xf32>
    %76 = arith.addf %67, %75 : vector<256x128xf32>
    %cst_53 = arith.constant 0.000000e+00 : f32
    %77 = vector.broadcast %cst_53 : f32 to vector<256x128xf32>
    %78 = arith.maximumf %76, %77 : vector<256x128xf32>
    %79 = vector.shape_cast %78 : vector<256x128xf32> to vector<16x16x128xf32>
    %c0_54 = arith.constant 0 : index
    %c0_55 = arith.constant 0 : index
    %c0_56 = arith.constant 0 : index
    %c0_57 = arith.constant 0 : index
    %80 = vector.load %arg8[%c0_54, %c0_55, %c0_56, %c0_57] : memref<1x16x16x128xf32, #tpu.memory_space<vmem>>, vector<1x16x16x128xf32>
    %81 = vector.shape_cast %80 : vector<1x16x16x128xf32> to vector<16x16x128xf32>
    %82 = vector.shape_cast %79 : vector<16x16x128xf32> to vector<1x16x16x128xf32>
    tpu.vector_store %arg8[%c0_54, %c0_55, %c0_56, %c0_57], %82 {strides = array<i32>} : memref<1x16x16x128xf32, #tpu.memory_space<vmem>>, vector<1x16x16x128xf32>,
    return
  }
  func.func @transform_0(%arg0: i32) -> (i32, i32, i32, i32) {
    %c0_i32 = arith.constant 0 : i32
    %c0_i32_0 = arith.constant 0 : i32
    %c0_i32_1 = arith.constant 0 : i32
    %c0_i32_2 = arith.constant 0 : i32
    return %arg0, %c0_i32, %c0_i32_0, %c0_i32_1 : i32, i32, i32, i32
  }
  func.func @transform_1(%arg0: i32) -> (i32, i32) {
    %c0_i32 = arith.constant 0 : i32
    %c0_i32_0 = arith.constant 0 : i32
    %c0_i32_1 = arith.constant 0 : i32
    return %c0_i32, %c0_i32_0 : i32, i32
  }
  func.func @transform_2(%arg0: i32) -> (i32, i32) {
    %c0_i32 = arith.constant 0 : i32
    %c0_i32_0 = arith.constant 0 : i32
    %c0_i32_1 = arith.constant 0 : i32
    return %c0_i32, %c0_i32_0 : i32, i32
  }
  func.func @transform_3(%arg0: i32) -> (i32, i32) {
    %c0_i32 = arith.constant 0 : i32
    %c0_i32_0 = arith.constant 0 : i32
    %c0_i32_1 = arith.constant 0 : i32
    return %c0_i32, %c0_i32_0 : i32, i32
  }
  func.func @transform_4(%arg0: i32) -> (i32, i32) {
    %c0_i32 = arith.constant 0 : i32
    %c0_i32_0 = arith.constant 0 : i32
    %c0_i32_1 = arith.constant 0 : i32
    return %c0_i32, %c0_i32_0 : i32, i32
  }
  func.func @transform_5(%arg0: i32) -> (i32, i32) {
    %c0_i32 = arith.constant 0 : i32
    %c0_i32_0 = arith.constant 0 : i32
    %c0_i32_1 = arith.constant 0 : i32
    return %c0_i32, %c0_i32_0 : i32, i32
  }
  func.func @transform_6(%arg0: i32) -> (i32, i32) {
    %c0_i32 = arith.constant 0 : i32
    %c0_i32_0 = arith.constant 0 : i32
    %c0_i32_1 = arith.constant 0 : i32
    return %c0_i32, %c0_i32_0 : i32, i32
  }
  func.func @transform_7(%arg0: i32) -> (i32, i32, i32, i32) {
    %c0_i32 = arith.constant 0 : i32
    %c0_i32_0 = arith.constant 0 : i32
    %c0_i32_1 = arith.constant 0 : i32
    %c0_i32_2 = arith.constant 0 : i32
    return %arg0, %c0_i32, %c0_i32_0, %c0_i32_1 : i32, i32, i32, i32
  }
}

</mosaic_0001>

<bundles_post_ra>
// kernel: tpu_custom_call.1
= control target key start
LH: loop header
LB: loop body
LE: loop exit
PB: predicated region body
PF: predicated region fallthrough
CT: control target
= control target key end

     0   :  { %12 = vsyncpa [#allocation4], 0  ;;  %s15344_s0 = inlined_call_operand.vmem [shape: bf16[2,18,18,128], index: 0, kind: input, shape index: {}]   ;;  %s15345_s1 = inlined_call_operand.vmem [shape: bf16[1152,128], index: 1, kind: input, shape index: {}]   ;;  %s15346_s2 = inlined_call_operand.vmem [shape: f32[1,128], index: 2, kind: input, shape index: {}]   ;;  %s15347_s3 = inlined_call_operand.hbm [shape: bf16[1152,128], index: 3, kind: input, shape index: {}]   ;;  %s15348_s4 = inlined_call_operand.vmem [shape: f32[1,128], index: 4, kind: input, shape index: {}]   ;;  %s15349_s5 = inlined_call_operand.vmem [shape: bf16[128,128], index: 5, kind: input, shape index: {}]   ;;  %s15350_s6 = inlined_call_operand.vmem [shape: f32[1,128], index: 6, kind: input, shape index: {}]   ;;  %s15351_s7 = inlined_call_operand.hbm [shape: f32[2,16,16,128], index: 7, kind: output, shape index: {}]  }
   0x1   :  { %13 = vsyncpa [#allocation5], 0 }
   0x2   :  { %15 = vsyncpa [#allocation5 + $0x1], 0  ;;  %s10961_s24 = smov 0   ;;  %s10963_s25 = smov 0  }
   0x3   :  { %s10965_s26 = smov 0   ;;  %s10967_s27 = smov 0  }
   0x4 LB: > { %s10982_s28 = sadd.s32 4294967295, %s10913_s27   ;;  %s9230_s29 = sadd.s32 4294967294, %s10913_s27   ;;  %s10913_s27 = sphi %s10967_s27, %s15614_s27   ;;  %s10909_s26 = sphi %s10965_s26, %s15613_s26   ;;  %s10905_s25 = sphi %s10963_s25, %s15612_s25   ;;  %s10901_s24 = sphi %s10961_s24, %s15611_s24  }
   0x5   : > { %s10986_s30 = sadd.s32 1, %s10913_s27   ;;  %s180_s8 = sadd.s32 1, %s10909_s26 }
   0x6   : > { %s177_s9 = ssub.s32 %s10913_s27, %s10986_s30  ;;  %p190_p0 = scmp.ne.s32.totalorder %s10909_s26, %s10905_s25 }
   0x7   : > { %p178_p1 = scmp.eq.s32.totalorder %s177_s9, 0  ;;  %p191_p2 = scmp.eq.s32.totalorder %s10982_s28, 1 }
   0x8   : > { %p196_p3 = scmp.ne.s32.totalorder %s10905_s25, %s10901_s24  ;;  %p197_p4 = scmp.eq.s32.totalorder %s9230_s29, 1 }
   0x9   : > { %s10997_s10 = scalar_select %p178_p1, %s10909_s26, %s180_s8  }
   0xa   : > { %p10999_p5 = por %p191_p2, %p190_p0  ;;  %p11003_p6 = por %p197_p4, %p196_p3 }
   0xb   : > { %p9231_p7 = scmp.ge.s32.totalorder %s10913_s27, 1  ;;  %p204_p8 = scmp.lt.s32.totalorder %s10913_s27, 3 }
   0xc   : > { %p10763_p9 = scmp.eq.s32.totalorder %s10982_s28, 0  ;;  %s221_s15 = sshll.u32 %s15347_s3, 4  ;;  %s222_s15 = int_to_ptr.hbm [resolvable:$true] %s221_s15 }
   0xd   : > { %p205_p10 = pnand %p9231_p7, %p204_p8  ;;  %s10915_s16 = smov [#allocation3]  }
   0xe   : > { %s223_s17 = sshll.u32 %s10915_s16, 4  ;;  %s10916_s18 = smov 64   ;;  %s224_s17 = int_to_ptr.vmem [resolvable:$true] %s223_s17 }
   0xf   : > { %p10755_p11 = pneg %p205_p10  ;;  %s10917_s19 = smov 4  }
  0x10   : > { %256 = sbr.rel (%p205_p10) target bundleno = 1566 (0x61e), region = 48 }
  0x11   : > { %p10756_p12 = pnand %p10763_p9, %p10755_p11 }
  0x13   : > { %10758 = dma.hbm_to_vmem [thread:$0]  (!%p10756_p12), %s222_s15, 9216, %s224_s17, [#allocation4], %s10916_s18, %s10916_s18, %s10917_s19  }
  0x15   : > { %10892 = dma.done.wait (%p10763_p9), [#allocation4], 9216  }
  0x16   : > { %10894 = vsyncadd (%p10763_p9), [#allocation4], 4294958080  ;;  %p289_p13 = scmp.lt.s32.totalorder %s10982_s28, 1  ;;  %v10530_v0 = vld [vmem:[%s15345_s1 + $0x38] sm:$0xff]  ;;  %v10529_v3 = vld [vmem:[%s15345_s1 + $0x30] sm:$0xff]  ;;  %vm778_vm0 = vcmask 1042432  }
  0x17   : > { %v11027_v1 = vld [vmem:[%s15345_s1 + $0xb8] sm:$0xff]  ;;  %3235 = vmatpush.bf16.msra.mxu0 %v10530_v0  ;;  %10724 = vmatpush.bf16.msra.mxu3 %v10530_v0  ;;  %v11042_v4 = vld [vmem:[%s15345_s1 + $0xb0] sm:$0xff]  ;;  %v10528_v6 = vld [vmem:[%s15345_s1 + $0x28] sm:$0xff]  ;;  %vm779_vm1 = vcmask 1046532   ;;  %vm343_vm2 = vsmask.f32 3328 }
  0x18   : > { %s290_s20 = scalar_select %p289_p13, %s10982_s28, 1  ;;  %v11032_v2 = vld [vmem:[%s15345_s1 + $0x78] sm:$0xff]  ;;  %3413 = vmatpush.bf16.msra.mxu2 %v11027_v1  ;;  %v11047_v5 = vld [vmem:[%s15345_s1 + $0x70] sm:$0xff]  ;;  %v11062_v7 = vld [vmem:[%s15345_s1 + $0xa8] sm:$0xff]  ;;  %vm344_vm3 = vsmask.f32 7440 }
  0x19   : > { %3324 = vmatpush.bf16.msra.mxu1 %v11032_v2  ;;  %v11067_v8 = vld [vmem:[%s15345_s1 + $0x68] sm:$0xff]  ;;  %v10527_v12 = vld [vmem:[%s15345_s1 + $0x20] sm:$0xff]  ;;  %v10526_v23 = vld [vmem:[%s15345_s1 + $0x18] sm:$0xff]  ;;  %v15360_v36 = vmov 0  ;;  %vm4075_vm6 = vcmask 1040384   ;;  %vm4543_vm11 = vcmask 1043456  }
  0x1a   : > { %s10748_s13 = smul.u32 216, %s290_s20  ;;  %v11079_v15 = vld [vmem:[%s15345_s1 + $0xa0] sm:$0xff]  ;;  %v11095_v25 = vld [vmem:[%s15345_s1 + $0x98] sm:$0xff]  ;;  %v10525_v30 = vld [vmem:[%s15345_s1 + $0x10] sm:$0xff]  ;;  %vm4076_vm7 = vsmask.f32 256 }
  0x1b   : > { %3236 = vmatpush.bf16.msra.mxu0 %v10529_v3  ;;  %10725 = vmatpush.bf16.msra.mxu3 %v10529_v3  ;;  %v11084_v16 = vld [vmem:[%s15345_s1 + $0x60] sm:$0xff]  ;;  %v11100_v26 = vld [vmem:[%s15345_s1 + $0x58] sm:$0xff]  ;;  %v11108_v31 = vld [vmem:[%s15345_s1 + $0x90] sm:$0xff]  ;;  %vm4132_vm9 = vsmask.f32 7938  ;;  %s286_s14 = sand.u32 1, %s10905_s25  }
  0x1c   : > { %s11052_s22 = scalar_lea.vmem %s15344_s0, %s10748_s13  ;;  %3414 = vmatpush.bf16.msra.mxu2 %v11042_v4  ;;  %v11115_v35 = vld [vmem:[%s15345_s1 + $0x50] sm:$0xff]  ;;  %vm11117_vm4 = vmor %vm778_vm0, %vm779_vm1  ;;  %v10524_v43 = vld [vmem:[%s15345_s1 + $0x8] sm:$0xff]  ;;  %vm4220_vm13 = vsmask.f32 4368  ;;  %s9236_s13 = sshll.u32 %s286_s14, 8 }
  0x1d   : > { %3325 = vmatpush.bf16.msra.mxu1 %v11047_v5  ;;  %v295_v9 = vld [vmem:[%s11052_s22] sm:$0xf]  ;;  %v296_v10 = vld [vmem:[%s11052_s22 + $0x4] sm:$0xf]  ;;  %v297_v19 = vld [vmem:[%s11052_s22 + $0x8] sm:$0x1] }
  0x1e   : > { %v347_v11 = vshrl.u32 %v295_v9, 16  ;;  %v350_v13 = vshll.u32 %v295_v9, 16  ;;  %v356_v14 = vshll.u32 %v296_v10, 16  ;;  %v360_v18 = vshrl.u32 %v296_v10, 16  ;;  %v11122_v40 = vld [vmem:[%s11052_s22 + $0xc] sm:$0xf]  ;;  %vm11126_vm5 = vmor %vm343_vm2, %vm344_vm3 }
  0x1f   : > { %3237 = vmatpush.bf16.msra.mxu0 %v10528_v6  ;;  %10726 = vmatpush.bf16.msra.mxu3 %v10528_v6  ;;  %v783_v24 = vrot.slane %v296_v10, 5  ;;  %v366_v29 = vshll.u32 %v297_v19, 16  ;;  %v9238_v32 = vrot.slane %v295_v9, 9  ;;  %v786_v34 = vrot.slane %v297_v19, 5  ;;  %v11131_v42 = vld [vmem:[%s11052_s22 + $0x10] sm:$0xf]  ;;  %vm12434_vm8 = vmand %vm4075_vm6, %vm4076_vm7 }
  0x20   : > { %3415 = vmatpush.bf16.msra.mxu2 %v11062_v7  ;;  %v349_v17 = vrot.slane %v347_v11, 4  ;;  %v352_v20 = vrot.slane %v350_v13, 5  ;;  %v358_v21 = vrot.slane %v356_v14, 5  ;;  %v362_v22 = vrot.slane %v360_v18, 4  ;;  %v11147_v48 = vld [vmem:[%s15345_s1 + $0x88] sm:$0xff]  ;;  %v10523_v54 = vld [vmem:[%s15345_s1] sm:$0xff]  ;;  %vm12457_vm10 = vmand %vm4075_vm6, %vm4132_vm9 }
  0x21   : > { %3326 = vmatpush.bf16.msra.mxu1 %v11067_v8  ;;  %v785_v33 = vrot.slane %v783_v24, 4  ;;  %v15361_v36 = vsel %vm11117_vm4, 4294967295, %v15360_v36  ;;  %v368_v39 = vrot.slane %v366_v29, 5  ;;  %v784_v44 = vsel %vm11117_vm4, %v9238_v32, %v783_v24  ;;  %v11152_v49 = vld [vmem:[%s15345_s1 + $0x48] sm:$0xff]  ;;  %v11168_v59 = vld [vmem:[%s15345_s1 + $0x80] sm:$0xff]  ;;  %v10562_v3 = vld [vmem:[%s15345_s1 + $0x138] sm:$0xff] }
  0x22   : > { %v353_v27 = vor.u32 %v352_v20, %v349_v17  ;;  %v363_v28 = vor.u32 %v362_v22, %v358_v21  ;;  %15362 = vst [vmem:[#allocation9_spill] sm:$0xff] %v15361_v36  ;;  %v371_v46 = vshrl.u32 %v11122_v40, 16  ;;  %v374_v47 = vshll.u32 %v11122_v40, 16  ;;  %v11173_v60 = vld [vmem:[%s15345_s1 + $0x40] sm:$0xff]  ;;  %v300_v6 = vld [vmem:[%s11052_s22 + $0x14] sm:$0x1]  ;;  %vm12580_vm12 = vmand %vm4543_vm11, %vm4132_vm9 }
  0x23   : > { %3238 = vmatpush.bf16.msra.mxu0 %v10527_v12  ;;  %10727 = vmatpush.bf16.msra.mxu3 %v10527_v12  ;;  %v787_v45 = vsel %vm11117_vm4, %v785_v33, %v786_v34  ;;  %v380_v52 = vshll.u32 %v11131_v42, 16  ;;  %v384_v53 = vshrl.u32 %v11131_v42, 16  ;;  %v2207_v55 = vunpack.c.l.b16 %v784_v44  ;;  %v10475_v9 = vld [vmem:[%s11052_s22] sm:$0xff]  ;;  %v10487_v10 = vld [vmem:[%s11052_s22 + $0x90] sm:$0xff]  ;;  %vm12623_vm14 = vmor %vm4076_vm7, %vm4220_vm13  ;;  %s15104_s15 = scalar_lea.vmem [#allocation6], %s9236_s13  ;;  %s10867_s9 = scalar_lea.hbm %s15351_s7, 512 }
  0x24   : > { %3416 = vmatpush.bf16.msra.mxu2 %v11079_v15  ;;  %v354_v37 = vrot.slane %v353_v27, 4  ;;  %v364_v38 = vrot.slane %v363_v28, 4  ;;  %v2208_v56 = vunpack.c.l.b16 %v787_v45  ;;  %v373_v61 = vrot.slane %v371_v46, 4  ;;  %v10561_v22 = vld [vmem:[%s15345_s1 + $0x130] sm:$0xff]  ;;  %v301_v28 = vld [vmem:[%s11052_s22 + $0x18] sm:$0xf] }
  0x25   : > { %3327 = vmatpush.bf16.msra.mxu1 %v11084_v16  ;;  %v376_v62 = vrot.slane %v374_v47, 5  ;;  %v382_v63 = vrot.slane %v380_v52, 5  ;;  %v386_v0 = vrot.slane %v384_v53, 4  ;;  %v790_v13 = vrot.slane %v11131_v42, 5  ;;  %v10488_v52 = vld [vmem:[%s11052_s22 + $0x9c] sm:$0xff]  ;;  %s9153_s19 = sshll.u32 %s15104_s15, 4  ;;  %s9154_s19 = int_to_ptr.vmem [resolvable:$true] %s9153_s19 }
  0x26   : > { %v359_v50 = vsel %vm11126_vm5, %v354_v37, %v358_v21  ;;  %v369_v51 = vsel %vm11126_vm5, %v364_v38, %v368_v39  ;;  %v2239_v11 = vpack.c.b16 %v2208_v56, %v2207_v55  ;;  %v390_v18 = vshll.u32 %v300_v6, 16 }
  0x27   : > { %3239 = vmatpush.bf16.msra.mxu0 %v10526_v23  ;;  %10728 = vmatpush.bf16.msra.mxu3 %v10526_v23  ;;  %v2143_v57 = vunpack.c.l.b16 %v359_v50  ;;  %v2144_v58 = vunpack.c.l.b16 %v369_v51  ;;  %v377_v14 = vor.u32 %v376_v62, %v373_v61  ;;  %v387_v17 = vor.u32 %v386_v0, %v382_v63  ;;  %v303_v50 = vld [vmem:[%s11052_s22 + $0x20] sm:$0x1]  ;;  %v10476_v51 = vld [vmem:[%s11052_s22 + $0xc] sm:$0xff]  ;;  %v304_v62 = vld [vmem:[%s11052_s22 + $0x24] sm:$0xf] }
  0x28   : > { %3417 = vmatpush.bf16.msra.mxu2 %v11095_v25  ;;  %v9239_v19 = vrot.slane %v11122_v40, 9  ;;  %v792_v20 = vrot.slane %v790_v13, 4  ;;  %v793_v21 = vrot.slane %v300_v6, 5  ;;  %v392_v27 = vrot.slane %v390_v18, 5 }
  0x29   : > { %3328 = vmatpush.bf16.msra.mxu1 %v11100_v26  ;;  %v2175_v12 = vpack.c.b16 %v2144_v58, %v2143_v57  ;;  %v378_v23 = vrot.slane %v377_v14, 4  ;;  %v388_v24 = vrot.slane %v387_v17, 4  ;;  %v395_v32 = vshrl.u32 %v301_v28, 16 }
  0x2a   : > { %v791_v29 = vsel %vm11117_vm4, %v9239_v19, %v790_v13  ;;  %v398_v33 = vshll.u32 %v301_v28, 16  ;;  %v414_v57 = vshll.u32 %v303_v50, 16  ;;  %v9240_v58 = vrot.slane %v301_v28, 9  ;;  %v306_v28 = vld [vmem:[%s11052_s22 + $0x2c] sm:$0x1] }
  0x2b   : > { %3240 = vmatpush.bf16.msra.mxu0 %v10525_v30  ;;  %10729 = vmatpush.bf16.msra.mxu3 %v10525_v30  ;;  %v794_v30 = vsel %vm11117_vm4, %v792_v20, %v793_v21  ;;  %v383_v34 = vsel %vm11126_vm5, %v378_v23, %v382_v63  ;;  %v393_v37 = vsel %vm11126_vm5, %v388_v24, %v392_v27  ;;  %v2209_v39 = vunpack.c.l.b16 %v791_v29  ;;  %v10560_v63 = vld [vmem:[%s15345_s1 + $0x128] sm:$0xff] }
  0x2c   : > { %3418 = vmatpush.bf16.msra.mxu2 %v11108_v31  ;;  %v2210_v40 = vunpack.c.l.b16 %v794_v30  ;;  %v2145_v42 = vunpack.c.l.b16 %v383_v34  ;;  %v397_v44 = vrot.slane %v395_v32, 4  ;;  %v400_v45 = vrot.slane %v398_v33, 5  ;;  %v10489_v29 = vld [vmem:[%s11052_s22 + $0xa8] sm:$0xff] }
  0x2d   : > { %3329 = vmatpush.bf16.msra.mxu1 %v11115_v35  ;;  %v416_v6 = vrot.slane %v414_v57, 5 }
  0x2e   : > { %v2240_v53 = vpack.c.b16 %v2210_v40, %v2209_v39  ;;  %v401_v56 = vor.u32 %v400_v45, %v397_v44  ;;  %v9241_v39 = vrot.slane %v304_v62, 9  ;;  %v807_v40 = vrot.slane %v306_v28, 5  ;;  %v11233_v44 = vld [vmem:[%s11052_s22 + $0x30] sm:$0xf]  ;;  %v11236_v45 = vld [vmem:[%s11052_s22 + $0x34] sm:$0xf] }
  0x2f   : > { %3241 = vmatpush.bf16.msra.mxu0 %v10524_v43  ;;  %10730 = vmatpush.bf16.msra.mxu3 %v10524_v43  ;;  %v2146_v43 = vunpack.c.l.b16 %v393_v37  ;;  %v438_v37 = vshll.u32 %v306_v28, 16 }
  0x30   : > { %3419 = vmatpush.bf16.msra.mxu2 %v11147_v48  ;;  %v402_v0 = vrot.slane %v401_v56, 4 }
  0x31   : > { %3330 = vmatpush.bf16.msra.mxu1 %v11152_v49 }
  0x33   : > { %3242 = vmatpush.bf16.msra.mxu0 %v10523_v54  ;;  %10731 = vmatpush.bf16.msra.mxu3 %v10523_v54  ;;  %v2176_v54 = vpack.c.b16 %v2146_v43, %v2145_v42 }
  0x34   : > { %3420 = vmatpush.bf16.msra.mxu2 %v11168_v59 }
  0x35   : > { %3331 = vmatpush.bf16.msra.mxu1 %v11173_v60 }
  0x36   : > { %3243 = vmatmul.bf16.vlgmr.msra.gmra.mxu0 %v10475_v9  ;;  %3303 = vmatmul.bf16.vlgmr.msra.gmra.mxu3 %v10487_v10  ;;  %v305_v9 = vld [vmem:[%s11052_s22 + $0x28] sm:$0xf]  ;;  %v422_v10 = vshll.u32 %v304_v62, 16 }
  0x37   : > { %10732 = vmatpush.bf16.msrb.mxu3 %v11032_v2  ;;  %3591 = vmatpush.bf16.msrb.mxu0 %v10562_v3  ;;  %v302_v2 = vld [vmem:[%s11052_s22 + $0x1c] sm:$0xf]  ;;  %v428_v13 = vshll.u32 %v305_v9, 16  ;;  %v432_v14 = vshrl.u32 %v305_v9, 16  ;;  %v804_v30 = vrot.slane %v305_v9, 5 }
  0x38   : > { %3421 = vmatmul.bf16.vlgmr.msra.gmra.mxu2 %v2239_v11  ;;  %3332 = vmatmul.bf16.vlgmr.msra.gmra.mxu1 %v2175_v12  ;;  %v408_v38 = vshrl.u32 %v302_v2, 16  ;;  %v797_v55 = vrot.slane %v302_v2, 5  ;;  %v424_v21 = vrot.slane %v422_v10, 5 }
  0x39   : > { %v430_v24 = vrot.slane %v428_v13, 5  ;;  %v434_v27 = vrot.slane %v432_v14, 4  ;;  %v805_v56 = vsel %vm11117_vm4, %v9241_v39, %v804_v30  ;;  %v11280_v39 = vld [vmem:[%s11052_s22 + $0x3c] sm:$0xf] }
  0x3a   : > { %v410_v47 = vrot.slane %v408_v38, 4  ;;  %v799_v61 = vrot.slane %v797_v55, 4  ;;  %v798_v11 = vsel %vm11117_vm4, %v9240_v58, %v797_v55  ;;  %v11230_v38 = vld [vmem:[%s11052_s22 + $0x94] sm:$0xf]  ;;  %v456_v55 = vshrl.u32 %v11236_v45, 16 }
  0x3b   : > { %10733 = vmatpush.bf16.msrb.mxu3 %v11047_v5  ;;  %3592 = vmatpush.bf16.msrb.mxu0 %v10561_v22  ;;  %v404_v5 = vshll.u32 %v302_v2, 16  ;;  %v2211_v18 = vunpack.c.l.b16 %v798_v11  ;;  %v10477_v2 = vld [vmem:[%s11052_s22 + $0x18] sm:$0xff]  ;;  %v435_v34 = vor.u32 %v434_v27, %v430_v24 }
  0x3c   : > { %v458_v9 = vrot.slane %v456_v55, 4 }
  0x3d   : > { %v406_v46 = vrot.slane %v404_v5, 5  ;;  %v11227_v5 = vld [vmem:[%s11052_s22 + $0x90] sm:$0xf]  ;;  %v436_v43 = vrot.slane %v435_v34, 4 }
  0x3f   : > { %10734 = vmatpush.bf16.msrb.mxu3 %v11067_v8  ;;  %v411_v8 = vor.u32 %v410_v47, %v406_v46  ;;  %3593 = vmatpush.bf16.msrb.mxu0 %v10560_v63  ;;  %v407_v17 = vsel %vm11126_vm5, %v402_v0, %v406_v46  ;;  %v635_v46 = vshrl.u32 %v11227_v5, 16  ;;  %v638_v47 = vshll.u32 %v11227_v5, 16  ;;  %v11259_v63 = vld [vmem:[%s11052_s22 + $0x98] sm:$0x1] }
  0x40   : > { %v2147_v22 = vunpack.c.l.b16 %v407_v17  ;;  %v309_v17 = vld [vmem:[%s11052_s22 + $0x38] sm:$0x1] }
  0x41   : > { %v412_v3 = vrot.slane %v411_v8, 4  ;;  %v637_v58 = vrot.slane %v635_v46, 4  ;;  %v467_v46 = vshrl.u32 %v11280_v39, 16 }
  0x43   : > { %10735 = vmatpush.bf16.msrb.mxu3 %v11084_v16  ;;  %v800_v16 = vrot.slane %v303_v50, 5  ;;  %v644_v50 = vshll.u32 %v11230_v38, 16 }
  0x45   : > { %v801_v12 = vsel %vm11117_vm4, %v799_v61, %v800_v16  ;;  %v640_v61 = vrot.slane %v638_v47, 5  ;;  %v11255_v16 = vrot.slane %v644_v50, 5  ;;  %v470_v47 = vshll.u32 %v11280_v39, 16 }
  0x46   : > { %3248 = vmatmul.bf16.gmra.mxu0 %v10476_v51  ;;  %3308 = vmatmul.bf16.gmra.mxu3 %v10488_v52  ;;  %v2212_v19 = vunpack.c.l.b16 %v801_v12  ;;  %v648_v51 = vshrl.u32 %v11230_v38, 16  ;;  %v443_v52 = vshrl.u32 %v11233_v44, 16 }
  0x47   : > { %10736 = vmatpush.bf16.msrb.mxu3 %v11100_v26  ;;  %v419_v26 = vshrl.u32 %v304_v62, 16  ;;  %v641_v13 = vor.u32 %v640_v61, %v637_v58  ;;  %v11315_v61 = vld [vmem:[%s11052_s22 + $0xa4] sm:$0x1] }
  0x48   : > { %3426 = vmatmul.bf16.gmra.mxu2 %v2240_v53  ;;  %3337 = vmatmul.bf16.gmra.mxu1 %v2176_v54  ;;  %v446_v53 = vshll.u32 %v11233_v44, 16  ;;  %v452_v54 = vshll.u32 %v11236_v45, 16  ;;  %v650_v62 = vrot.slane %v648_v51, 4  ;;  %v445_v0 = vrot.slane %v443_v52, 4 }
  0x49   : > { %v421_v20 = vrot.slane %v419_v26, 4  ;;  %v2213_v26 = vunpack.c.l.b16 %v805_v56  ;;  %v642_v27 = vrot.slane %v641_v13, 4  ;;  %v312_v13 = vld [vmem:[%s11052_s22 + $0x44] sm:$0x1] }
  0x4a   : > { %v651_v14 = vor.u32 %v650_v62, %v11255_v16  ;;  %v472_v62 = vrot.slane %v470_v47, 5 }
  0x4b   : > { %10737 = vmatpush.bf16.msrb.mxu3 %v11115_v35  ;;  %v417_v35 = vsel %vm11126_vm5, %v412_v3, %v416_v6  ;;  %v425_v32 = vor.u32 %v424_v21, %v421_v20  ;;  %v448_v3 = vrot.slane %v446_v53, 5  ;;  %v11261_v6 = vrot.slane %v452_v54, 5 }
  0x4c   : > { %v2148_v23 = vunpack.c.l.b16 %v417_v35  ;;  %v10478_v35 = vld [vmem:[%s11052_s22 + $0x24] sm:$0xff]  ;;  %v652_v28 = vrot.slane %v651_v14, 4  ;;  %v10479_v14 = vld [vmem:[%s11052_s22 + $0x30] sm:$0xff] }
  0x4d   : > { %v426_v42 = vrot.slane %v425_v32, 4  ;;  %v449_v20 = vor.u32 %v448_v3, %v445_v0  ;;  %v459_v21 = vor.u32 %v458_v9, %v11261_v6 }
  0x4e   : > { %v2177_v33 = vpack.c.b16 %v2148_v23, %v2147_v22 }
  0x4f   : > { %10738 = vmatpush.bf16.msrb.mxu3 %v11152_v49  ;;  %v2241_v49 = vpack.c.b16 %v2212_v19, %v2211_v18  ;;  %v431_v57 = vsel %vm11126_vm5, %v426_v42, %v430_v24  ;;  %v10490_v18 = vld [vmem:[%s11052_s22 + $0xb4] sm:$0xff]  ;;  %v811_v19 = vrot.slane %v11236_v45, 5  ;;  %v462_v24 = vshll.u32 %v309_v17, 16 }
  0x50   : > { %v2149_v11 = vunpack.c.l.b16 %v431_v57  ;;  %v460_v34 = vrot.slane %v459_v21, 4  ;;  %v486_v21 = vshll.u32 %v312_v13, 16 }
  0x51   : > { %v813_v32 = vrot.slane %v811_v19, 4 }
  0x53   : > { %10739 = vmatpush.bf16.msrb.mxu3 %v11173_v60  ;;  %v806_v60 = vrot.slane %v804_v30, 4  ;;  %v11277_v30 = vld [vmem:[%s11052_s22 + $0xa0] sm:$0xf] }
  0x55   : > { %v808_v8 = vsel %vm11117_vm4, %v806_v60, %v807_v40  ;;  %v11283_v60 = vld [vmem:[%s11052_s22 + $0x40] sm:$0xf] }
  0x56   : > { %3253 = vmatmul.bf16.gmra.mxu0 %v10477_v2  ;;  %3313 = vmatmul.bf16.gmra.mxu3 %v10489_v29  ;;  %v2214_v10 = vunpack.c.l.b16 %v808_v8  ;;  %v9242_v2 = vrot.slane %v11233_v44, 9  ;;  %v11274_v29 = vld [vmem:[%s11052_s22 + $0x9c] sm:$0xf]  ;;  %v647_v44 = vsel %vm11126_vm5, %v642_v27, %v11255_v16  ;;  %v476_v50 = vshll.u32 %v11283_v60, 16 }
  0x57   : > { %10740 = vmatpush.bf16.msra.mxu3 %v11027_v1  ;;  %v440_v1 = vrot.slane %v438_v37, 5  ;;  %v464_v37 = vrot.slane %v462_v24, 5  ;;  %v659_v40 = vshrl.u32 %v11274_v29, 16  ;;  %v662_v42 = vshll.u32 %v11274_v29, 16 }
  0x58   : > { %3431 = vmatmul.bf16.gmra.mxu2 %v2241_v49  ;;  %3342 = vmatmul.bf16.gmra.mxu1 %v2177_v33  ;;  %v2242_v22 = vpack.c.b16 %v2214_v10, %v2213_v26  ;;  %v814_v49 = vrot.slane %v309_v17, 5  ;;  %v450_v33 = vrot.slane %v449_v20, 4  ;;  %v480_v51 = vshrl.u32 %v11283_v60, 16 }
  0x59   : > { %v465_v54 = vsel %vm11126_vm5, %v460_v34, %v464_v37  ;;  %v661_v55 = vrot.slane %v659_v40, 4  ;;  %v664_v56 = vrot.slane %v662_v42, 5  ;;  %v469_v16 = vrot.slane %v467_v46, 4  ;;  %v11334_v34 = vld [vmem:[%s11052_s22 + $0x48] sm:$0xf] }
  0x5a   : > { %v815_v52 = vsel %vm11117_vm4, %v813_v32, %v814_v49  ;;  %v455_v53 = vsel %vm11126_vm5, %v450_v33, %v11261_v6  ;;  %v11317_v0 = vrot.slane %v476_v50, 5  ;;  %v482_v3 = vrot.slane %v480_v51, 4  ;;  %v11337_v37 = vld [vmem:[%s11052_s22 + $0x4c] sm:$0xf] }
  0x5b   : > { %10741 = vmatpush.bf16.msra.mxu3 %v11042_v4  ;;  %v441_v4 = vsel %vm11126_vm5, %v436_v43, %v440_v1  ;;  %v668_v43 = vshll.u32 %v11277_v30, 16  ;;  %v672_v1 = vshrl.u32 %v11277_v30, 16  ;;  %v2216_v9 = vunpack.c.l.b16 %v815_v52 }
  0x5c   : > { %v2150_v12 = vunpack.c.l.b16 %v441_v4  ;;  %v2167_v4 = vunpack.c.l.b16 %v647_v44  ;;  %v2151_v26 = vunpack.c.l.b16 %v455_v53  ;;  %v2152_v10 = vunpack.c.l.b16 %v465_v54 }
  0x5d   : > { %v11311_v8 = vrot.slane %v668_v43, 5  ;;  %v674_v57 = vrot.slane %v672_v1, 4  ;;  %v9243_v27 = vrot.slane %v11280_v39, 9  ;;  %v488_v33 = vrot.slane %v486_v21, 5  ;;  %v10558_v39 = vld [vmem:[%s15345_s1 + $0x118] sm:$0xff] }
  0x5e   : > { %v2178_v23 = vpack.c.b16 %v2150_v12, %v2149_v11  ;;  %v665_v11 = vor.u32 %v664_v56, %v661_v55  ;;  %v2179_v20 = vpack.c.b16 %v2152_v10, %v2151_v26  ;;  %v491_v44 = vshrl.u32 %v11334_v34, 16  ;;  %v315_v10 = vld [vmem:[%s11052_s22 + $0x50] sm:$0x1] }
  0x5f   : > { %10742 = vmatpush.bf16.msra.mxu3 %v11062_v7  ;;  %v654_v7 = vshll.u32 %v11259_v63, 16  ;;  %v675_v12 = vor.u32 %v674_v57, %v11311_v8  ;;  %v500_v46 = vshll.u32 %v11337_v37, 16  ;;  %v504_v47 = vshrl.u32 %v11337_v37, 16 }
  0x63   : > { %10743 = vmatpush.bf16.msra.mxu3 %v11079_v15  ;;  %v656_v15 = vrot.slane %v654_v7, 5  ;;  %v818_v7 = vrot.slane %v11283_v60, 5 }
  0x65   : > { %v657_v45 = vsel %vm11126_vm5, %v652_v28, %v656_v15  ;;  %v11331_v28 = vld [vmem:[%s11052_s22 + $0xac] sm:$0xf]  ;;  %v820_v15 = vrot.slane %v818_v7, 4  ;;  %v819_v50 = vsel %vm11117_vm4, %v9243_v27, %v818_v7 }
  0x66   : > { %3258 = vmatmul.bf16.gmra.mxu0 %v10478_v35  ;;  %3318 = vmatmul.bf16.gmra.mxu3 %v10490_v18  ;;  %v2168_v58 = vunpack.c.l.b16 %v657_v45  ;;  %v473_v35 = vor.u32 %v472_v62, %v469_v16  ;;  %v483_v18 = vor.u32 %v482_v3, %v11317_v0  ;;  %v692_v40 = vshll.u32 %v11331_v28, 16 }
  0x67   : > { %10744 = vmatpush.bf16.msra.mxu3 %v11095_v25  ;;  %v10559_v25 = vld [vmem:[%s15345_s1 + $0x120] sm:$0xff]  ;;  %v696_v42 = vshrl.u32 %v11331_v28, 16  ;;  %v494_v45 = vshll.u32 %v11334_v34, 16  ;;  %v502_v62 = vrot.slane %v500_v46, 5  ;;  %v506_v3 = vrot.slane %v504_v47, 4 }
  0x68   : > { %3436 = vmatmul.bf16.gmra.mxu2 %v2242_v22  ;;  %3347 = vmatmul.bf16.gmra.mxu1 %v2178_v23  ;;  %v2187_v17 = vpack.c.b16 %v2168_v58, %v2167_v4  ;;  %v666_v22 = vrot.slane %v665_v11, 4  ;;  %v676_v23 = vrot.slane %v675_v12, 4  ;;  %v474_v32 = vrot.slane %v473_v35, 4  ;;  %v11365_v4 = vld [vmem:[%s11052_s22 + $0xb0] sm:$0x1] }
  0x69   : > { %3594 = vmatpush.bf16.msrb.mxu0 %v10559_v25  ;;  %v484_v49 = vrot.slane %v483_v18, 4  ;;  %v694_v55 = vrot.slane %v692_v40, 5  ;;  %v698_v56 = vrot.slane %v696_v42, 4  ;;  %v493_v58 = vrot.slane %v491_v44, 4 }
  0x6a   : > { %v671_v43 = vsel %vm11126_vm5, %v666_v22, %v11311_v8  ;;  %v496_v16 = vrot.slane %v494_v45, 5  ;;  %v507_v35 = vor.u32 %v506_v3, %v502_v62  ;;  %v510_v18 = vshll.u32 %v315_v10, 16 }
  0x6b   : > { %10745 = vmatpush.bf16.msra.mxu3 %v11108_v31  ;;  %v812_v31 = vsel %vm11117_vm4, %v9242_v2, %v811_v19  ;;  %v821_v2 = vrot.slane %v312_v13, 5  ;;  %v489_v52 = vsel %vm11126_vm5, %v484_v49, %v488_v33  ;;  %v2169_v8 = vunpack.c.l.b16 %v671_v43  ;;  %v11373_v33 = vld [vmem:[%s11052_s22 + $0xb4] sm:$0xf] }
  0x6c   : > { %v2215_v6 = vunpack.c.l.b16 %v812_v31  ;;  %v479_v31 = vsel %vm11126_vm5, %v474_v32, %v11317_v0  ;;  %v2154_v26 = vunpack.c.l.b16 %v489_v52  ;;  %v699_v12 = vor.u32 %v698_v56, %v694_v55 }
  0x6d   : > { %3595 = vmatpush.bf16.msrb.mxu0 %v10558_v39  ;;  %v822_v51 = vsel %vm11117_vm4, %v820_v15, %v821_v2  ;;  %v2153_v0 = vunpack.c.l.b16 %v479_v31  ;;  %v702_v13 = vshll.u32 %v11365_v4, 16  ;;  %v497_v7 = vor.u32 %v496_v16, %v493_v58 }
  0x6e   : > { %v2243_v19 = vpack.c.b16 %v2216_v9, %v2215_v6  ;;  %v2217_v6 = vunpack.c.l.b16 %v819_v50  ;;  %v2218_v9 = vunpack.c.l.b16 %v822_v51  ;;  %v700_v22 = vrot.slane %v699_v12, 4 }
  0x6f   : > { %10746 = vmatpush.bf16.msra.mxu3 %v11147_v48  ;;  %v678_v48 = vshll.u32 %v11315_v61, 16  ;;  %v828_v15 = vrot.slane %v315_v10, 5  ;;  %v498_v2 = vrot.slane %v497_v7, 4  ;;  %v508_v32 = vrot.slane %v507_v35, 4 }
  0x70   : > { %v512_v49 = vrot.slane %v510_v18, 5  ;;  %v707_v43 = vshrl.u32 %v11373_v33, 16 }
  0x71   : > { %v680_v24 = vrot.slane %v678_v48, 5  ;;  %v825_v48 = vrot.slane %v11337_v37, 5  ;;  %v11376_v37 = vld [vmem:[%s11052_s22 + $0xb8] sm:$0xf]  ;;  %v503_v44 = vsel %vm11126_vm5, %v498_v2, %v502_v62 }
  0x72   : > { %v513_v45 = vsel %vm11126_vm5, %v508_v32, %v512_v49  ;;  %v716_v46 = vshll.u32 %v11376_v37, 16  ;;  %v720_v47 = vshrl.u32 %v11376_v37, 16  ;;  %v2155_v58 = vunpack.c.l.b16 %v503_v44 }
  0x73   : > { %10747 = vmatpush.bf16.msra.mxu3 %v11168_v59  ;;  %v11328_v59 = vld [vmem:[%s11052_s22 + $0xa8] sm:$0xf]  ;;  %v681_v1 = vsel %vm11126_vm5, %v676_v23, %v680_v24  ;;  %v704_v23 = vrot.slane %v702_v13, 5  ;;  %v9244_v24 = vrot.slane %v11334_v34, 9  ;;  %v827_v27 = vrot.slane %v825_v48, 4 }
  0x74   : > { %v683_v60 = vshrl.u32 %v11328_v59, 16  ;;  %v686_v25 = vshll.u32 %v11328_v59, 16  ;;  %v2170_v57 = vunpack.c.l.b16 %v681_v1  ;;  %v11383_v34 = vld [vmem:[%s11052_s22 + $0x54] sm:$0xf]  ;;  %v710_v1 = vshll.u32 %v11373_v33, 16 }
  0x75   : > { %v826_v40 = vsel %vm11117_vm4, %v9244_v24, %v825_v48  ;;  %v829_v42 = vsel %vm11117_vm4, %v827_v27, %v828_v15  ;;  %v515_v50 = vshrl.u32 %v11383_v34, 16  ;;  %v518_v51 = vshll.u32 %v11383_v34, 16  ;;  %v10481_v48 = vld [vmem:[%s11052_s22 + $0x48] sm:$0xff] }
  0x76   : > { %3263 = vmatmul.bf16.gmra.mxu0 %v10479_v14  ;;  %3392 = vmatmul.bf16.vlgmr.msrb.gmra.mxu3 %v2187_v17  ;;  %v685_v53 = vrot.slane %v683_v60, 4  ;;  %v688_v54 = vrot.slane %v686_v25, 5  ;;  %v10480_v14 = vld [vmem:[%s11052_s22 + $0x3c] sm:$0xff]  ;;  %v2188_v17 = vpack.c.b16 %v2170_v57, %v2169_v8  ;;  %v705_v60 = vsel %vm11126_vm5, %v700_v22, %v704_v23  ;;  %v11386_v25 = vld [vmem:[%s11052_s22 + $0x58] sm:$0xf] }
  0x77   : > { %v524_v31 = vshll.u32 %v11386_v25, 16  ;;  %v528_v52 = vshrl.u32 %v11386_v25, 16  ;;  %v2220_v56 = vunpack.c.l.b16 %v829_v42  ;;  %v709_v8 = vrot.slane %v707_v43, 4  ;;  %v320_v42 = vld [vmem:[%s11052_s22 + $0x64] sm:$0xf] }
  0x78   : > { %3441 = vmatmul.bf16.gmra.mxu2 %v2243_v19  ;;  %3352 = vmatmul.bf16.gmra.mxu1 %v2179_v20  ;;  %v689_v11 = vor.u32 %v688_v54, %v685_v53  ;;  %v2244_v19 = vpack.c.b16 %v2218_v9, %v2217_v6  ;;  %v2180_v20 = vpack.c.b16 %v2154_v26, %v2153_v0  ;;  %v2172_v54 = vunpack.c.l.b16 %v705_v60  ;;  %v11405_v6 = vld [vmem:[%s11052_s22 + $0xbc] sm:$0x1] }
  0x79   : > { %v712_v57 = vrot.slane %v710_v1, 5  ;;  %v2156_v16 = vunpack.c.l.b16 %v513_v45  ;;  %v718_v62 = vrot.slane %v716_v46, 5  ;;  %v722_v3 = vrot.slane %v720_v47, 4  ;;  %v10554_v60 = vld [vmem:[%s15345_s1 + $0xf8] sm:$0xff] }
  0x7a   : > { %v690_v21 = vrot.slane %v689_v11, 4  ;;  %v517_v9 = vrot.slane %v515_v50, 4  ;;  %v520_v0 = vrot.slane %v518_v51, 5  ;;  %v526_v26 = vrot.slane %v524_v31, 5  ;;  %v318_v11 = vld [vmem:[%s11052_s22 + $0x5c] sm:$0x1]  ;;  %3502 = vmatpush.bf16.msrb.mxu3 %v10554_v60 }
  0x7b   : > { %v530_v10 = vrot.slane %v528_v52, 4  ;;  %v713_v13 = vor.u32 %v712_v57, %v709_v8  ;;  %v726_v7 = vshll.u32 %v11405_v6, 16  ;;  %v832_v35 = vrot.slane %v11386_v25, 5  ;;  %v10557_v25 = vld [vmem:[%s15345_s1 + $0x110] sm:$0xff] }
  0x7c   : > { %v695_v39 = vsel %vm11126_vm5, %v690_v21, %v694_v55  ;;  %v2219_v55 = vunpack.c.l.b16 %v826_v40  ;;  %v2181_v18 = vpack.c.b16 %v2156_v16, %v2155_v58  ;;  %v534_v21 = vshll.u32 %v318_v11, 16  ;;  %v319_v40 = vld [vmem:[%s11052_s22 + $0x60] sm:$0xf]  ;;  %3596 = vmatpush.bf16.msrb.mxu0 %v10557_v25 }
  0x7d   : > { %v2171_v53 = vunpack.c.l.b16 %v695_v39  ;;  %v714_v22 = vrot.slane %v713_v13, 4  ;;  %v728_v24 = vrot.slane %v726_v7, 5  ;;  %v9245_v27 = vrot.slane %v11383_v34, 9 }
  0x7e   : > { %v834_v15 = vrot.slane %v832_v35, 4  ;;  %v835_v2 = vrot.slane %v318_v11, 5  ;;  %v536_v39 = vrot.slane %v534_v21, 5  ;;  %v539_v47 = vshrl.u32 %v319_v40, 16 }
  0x7f   : > { %v2189_v12 = vpack.c.b16 %v2172_v54, %v2171_v53  ;;  %v719_v34 = vsel %vm11126_vm5, %v714_v22, %v718_v62  ;;  %v833_v1 = vsel %vm11117_vm4, %v9245_v27, %v832_v35  ;;  %v542_v50 = vshll.u32 %v319_v40, 16  ;;  %v10553_v54 = vld [vmem:[%s15345_s1 + $0xf0] sm:$0xff]  ;;  %v11444_v27 = vld [vmem:[%s11052_s22 + $0x6c] sm:$0xf] }
  0x80   : > { %v836_v44 = vsel %vm11117_vm4, %v834_v15, %v835_v2  ;;  %v548_v51 = vshll.u32 %v320_v42, 16  ;;  %v552_v31 = vshrl.u32 %v320_v42, 16  ;;  %v2173_v52 = vunpack.c.l.b16 %v719_v34  ;;  %3503 = vmatpush.bf16.msrb.mxu3 %v10553_v54  ;;  %v11447_v15 = vld [vmem:[%s11052_s22 + $0x70] sm:$0xf]  ;;  %v324_v54 = vld [vmem:[%s11052_s22 + $0x74] sm:$0x1] }
  0x81   : > { %v541_v58 = vrot.slane %v539_v47, 4  ;;  %v544_v16 = vrot.slane %v542_v50, 5  ;;  %v867_v13 = vrot.slane %v11230_v38, 5  ;;  %v9246_v7 = vrot.slane %v319_v40, 9  ;;  %v10552_v38 = vld [vmem:[%s15345_s1 + $0xe8] sm:$0xff] }
  0x82   : > { %v572_v40 = vshll.u32 %v11447_v15, 16 }
  0x83   : > { %v869_v21 = vrot.slane %v867_v13, 4 }
  0x84   : > { %3504 = vmatpush.bf16.msrb.mxu3 %v10552_v38  ;;  %v11491_v38 = vld [vmem:[%s11052_s22 + $0x78] sm:$0xf] }
  0x86   : > { %3268 = vmatmul.bf16.gmra.mxu0 %v10480_v14  ;;  %3397 = vmatmul.bf16.gmra.mxu3 %v2188_v17  ;;  %v2245_v14 = vpack.c.b16 %v2220_v56, %v2219_v55  ;;  %v723_v17 = vor.u32 %v722_v3, %v718_v62  ;;  %v2221_v55 = vunpack.c.l.b16 %v833_v1  ;;  %v2222_v56 = vunpack.c.l.b16 %v836_v44 }
  0x87   : > { %v550_v62 = vrot.slane %v548_v51, 5  ;;  %v554_v3 = vrot.slane %v552_v31, 4 }
  0x88   : > { %3446 = vmatmul.bf16.gmra.mxu2 %v2244_v19  ;;  %3357 = vmatmul.bf16.gmra.mxu1 %v2180_v20  ;;  %v521_v19 = vor.u32 %v520_v0, %v517_v9  ;;  %v531_v20 = vor.u32 %v530_v10, %v526_v26  ;;  %v724_v23 = vrot.slane %v723_v17, 4  ;;  %v321_v9 = vld [vmem:[%s11052_s22 + $0x68] sm:$0x1]  ;;  %v10482_v0 = vld [vmem:[%s11052_s22 + $0x54] sm:$0xff]  ;;  %v839_v10 = vrot.slane %v320_v42, 5 }
  0x89   : > { %v2246_v11 = vpack.c.b16 %v2222_v56, %v2221_v55  ;;  %v558_v17 = vshll.u32 %v321_v9, 16  ;;  %v576_v42 = vshrl.u32 %v11447_v15, 16  ;;  %v846_v55 = vrot.slane %v11447_v15, 5  ;;  %v11476_v56 = vld [vmem:[%s15346_s2] ss:$0 sm:$0xff] }
  0x8a   : > { %v522_v32 = vrot.slane %v521_v19, 4  ;;  %v532_v49 = vrot.slane %v531_v20, 4  ;;  %v729_v43 = vsel %vm11126_vm5, %v724_v23, %v728_v24  ;;  %v841_v35 = vrot.slane %v839_v10, 4 }
  0x8b   : > { %v2174_v53 = vunpack.c.l.b16 %v729_v43  ;;  %v870_v19 = vrot.slane %v11259_v63, 5  ;;  %v9250_v20 = vrot.slane %v11227_v5, 9  ;;  %v560_v24 = vrot.slane %v558_v17, 5 }
  0x8c   : > { %v527_v45 = vsel %vm11126_vm5, %v522_v32, %v526_v26  ;;  %v537_v46 = vsel %vm11126_vm5, %v532_v49, %v536_v39  ;;  %v840_v63 = vsel %vm11117_vm4, %v9246_v7, %v839_v10  ;;  %v563_v49 = vshrl.u32 %v11444_v27, 16 }
  0x8d   : > { %v2157_v8 = vunpack.c.l.b16 %v527_v45  ;;  %v2158_v57 = vunpack.c.l.b16 %v537_v46  ;;  %v2190_v26 = vpack.c.b16 %v2174_v53, %v2173_v52  ;;  %v868_v5 = vsel %vm11117_vm4, %v9250_v20, %v867_v13  ;;  %v10551_v45 = vld [vmem:[%s15345_s1 + $0xe0] sm:$0xff]  ;;  %v10556_v46 = vld [vmem:[%s15345_s1 + $0x108] sm:$0xff] }
  0x8e   : > { %v871_v32 = vsel %vm11117_vm4, %v869_v21, %v870_v19  ;;  %v566_v39 = vshll.u32 %v11444_v27, 16  ;;  %v2223_v34 = vunpack.c.l.b16 %v840_v63  ;;  %v2231_v1 = vunpack.c.l.b16 %v868_v5  ;;  %3505 = vmatpush.bf16.msrb.mxu3 %v10551_v45  ;;  %3597 = vmatpush.bf16.msrb.mxu0 %v10556_v46  ;;  %v10578_v19 = vld [vmem:[%s15345_s1 + $0x1b8] sm:$0xff] }
  0x8f   : > { %v2232_v44 = vunpack.c.l.b16 %v871_v32  ;;  %v565_v51 = vrot.slane %v563_v49, 4  ;;  %v574_v52 = vrot.slane %v572_v40, 5  ;;  %v578_v53 = vrot.slane %v576_v42, 4  ;;  %3769 = vmatpush.bf16.msrb.mxu2 %v10578_v19 }
  0x90   : > { %v568_v31 = vrot.slane %v566_v39, 5  ;;  %v848_v13 = vrot.slane %v846_v55, 4  ;;  %v877_v7 = vrot.slane %v11315_v61, 5  ;;  %v587_v32 = vshrl.u32 %v11491_v38, 16 }
  0x91   : > { %v579_v10 = vor.u32 %v578_v53, %v574_v52  ;;  %v590_v49 = vshll.u32 %v11491_v38, 16 }
  0x93   : > { %v580_v20 = vrot.slane %v579_v10, 4 }
  0x96   : > { %3273 = vmatmul.bf16.gmra.mxu0 %v10481_v48  ;;  %3402 = vmatmul.bf16.gmra.mxu3 %v2189_v12  ;;  %v2182_v12 = vpack.c.b16 %v2158_v57, %v2157_v8  ;;  %v545_v48 = vor.u32 %v544_v16, %v541_v58  ;;  %v10483_v8 = vld [vmem:[%s11052_s22 + $0x60] sm:$0xff]  ;;  %v2251_v57 = vpack.c.b16 %v2232_v44, %v2231_v1  ;;  %v874_v58 = vrot.slane %v11277_v30, 5 }
  0x97   : > { %v9251_v30 = vrot.slane %v11274_v29, 9  ;;  %v11496_v29 = vld [vmem:[%s11052_s22 + $0x7c] sm:$0xf] }
  0x98   : > { %3451 = vmatmul.bf16.gmra.mxu2 %v2245_v14  ;;  %3362 = vmatmul.bf16.gmra.mxu1 %v2181_v18  ;;  %v555_v14 = vor.u32 %v554_v3, %v550_v62  ;;  %v842_v18 = vrot.slane %v321_v9, 5  ;;  %v546_v22 = vrot.slane %v545_v48, 4  ;;  %v569_v9 = vor.u32 %v568_v31, %v565_v51 }
  0x99   : > { %v849_v48 = vrot.slane %v324_v54, 5  ;;  %v876_v17 = vrot.slane %v874_v58, 4  ;;  %v596_v40 = vshll.u32 %v11496_v29, 16  ;;  %v600_v42 = vshrl.u32 %v11496_v29, 16 }
  0x9a   : > { %v556_v23 = vrot.slane %v555_v14, 4  ;;  %v843_v2 = vsel %vm11117_vm4, %v841_v35, %v842_v18  ;;  %v551_v60 = vsel %vm11126_vm5, %v546_v22, %v550_v62  ;;  %v570_v35 = vrot.slane %v569_v9, 4  ;;  %v10550_v18 = vld [vmem:[%s15345_s1 + $0xd8] sm:$0xff] }
  0x9b   : > { %v2224_v43 = vunpack.c.l.b16 %v843_v2  ;;  %v2159_v47 = vunpack.c.l.b16 %v551_v60  ;;  %3506 = vmatpush.bf16.msrb.mxu3 %v10550_v18  ;;  %v878_v15 = vsel %vm11117_vm4, %v876_v17, %v877_v7  ;;  %v589_v31 = vrot.slane %v587_v32, 4  ;;  %v10569_v17 = vld [vmem:[%s15345_s1 + $0x170] sm:$0xff] }
  0x9c   : > { %v561_v25 = vsel %vm11126_vm5, %v556_v23, %v560_v24  ;;  %v850_v24 = vsel %vm11117_vm4, %v848_v13, %v849_v48  ;;  %v575_v5 = vsel %vm11126_vm5, %v570_v35, %v574_v52  ;;  %v2234_v46 = vunpack.c.l.b16 %v878_v15  ;;  %v10575_v15 = vld [vmem:[%s15345_s1 + $0x1a0] sm:$0xff] }
  0x9d   : > { %v2160_v50 = vunpack.c.l.b16 %v561_v25  ;;  %v2247_v62 = vpack.c.b16 %v2224_v43, %v2223_v34  ;;  %v10570_v34 = vld [vmem:[%s15345_s1 + $0x178] sm:$0xff]  ;;  %v2226_v44 = vunpack.c.l.b16 %v850_v24  ;;  %v592_v52 = vrot.slane %v590_v49, 5 }
  0x9e   : > { %3680 = vmatpush.bf16.msrb.mxu1 %v10570_v34  ;;  %v11523_v53 = vrot.slane %v596_v40, 5  ;;  %v881_v9 = vrot.slane %v11331_v28, 5  ;;  %v10576_v28 = vld [vmem:[%s15345_s1 + $0x1a8] sm:$0xff]  ;;  %v9248_v7 = vrot.slane %v11491_v38, 9  ;;  %v10555_v38 = vld [vmem:[%s15345_s1 + $0x100] sm:$0xff] }
  0x9f   : > { %v2183_v3 = vpack.c.b16 %v2160_v50, %v2159_v47  ;;  %v10549_v47 = vld [vmem:[%s15345_s1 + $0xd0] sm:$0xff]  ;;  %v2161_v50 = vunpack.c.l.b16 %v575_v5  ;;  %v11565_v5 = vld [vmem:[%s11052_s22 + $0x88] sm:$0xf]  ;;  %3598 = vmatpush.bf16.msrb.mxu0 %v10555_v38 }
  0xa0   : > { %3507 = vmatpush.bf16.msrb.mxu3 %v10549_v47  ;;  %v620_v47 = vshll.u32 %v11565_v5, 16 }
  0xa2   : > { %3681 = vmatpush.bf16.msrb.mxu1 %v10569_v17 }
  0xa6   : > { %3278 = vmatmul.bf16.gmra.mxu0 %v10482_v0  ;;  %3407 = vmatmul.bf16.gmra.mxu3 %v2190_v26 }
  0xa8   : > { %3456 = vmatmul.bf16.gmra.mxu2 %v2246_v11  ;;  %3367 = vmatmul.bf16.gmra.mxu1 %v2182_v12  ;;  %v582_v11 = vshll.u32 %v324_v54, 16  ;;  %v9247_v12 = vrot.slane %v11444_v27, 9  ;;  %v875_v27 = vsel %vm11117_vm4, %v9251_v30, %v874_v58  ;;  %v602_v54 = vrot.slane %v600_v42, 4 }
  0xa9   : > { %v2233_v45 = vunpack.c.l.b16 %v875_v27  ;;  %v853_v58 = vrot.slane %v11496_v29, 5  ;;  %v884_v29 = vrot.slane %v11365_v4, 5  ;;  %v10568_v4 = vld [vmem:[%s15345_s1 + $0x168] sm:$0xff] }
  0xaa   : > { %v584_v21 = vrot.slane %v582_v11, 5  ;;  %v847_v23 = vsel %vm11117_vm4, %v9247_v12, %v846_v55  ;;  %v10577_v55 = vld [vmem:[%s15345_s1 + $0x1b0] sm:$0xff]  ;;  %v593_v12 = vor.u32 %v592_v52, %v589_v31  ;;  %3682 = vmatpush.bf16.msrb.mxu1 %v10568_v4  ;;  %v10574_v31 = vld [vmem:[%s15345_s1 + $0x198] sm:$0xff] }
  0xab   : > { %v2225_v43 = vunpack.c.l.b16 %v847_v23  ;;  %3770 = vmatpush.bf16.msrb.mxu2 %v10577_v55  ;;  %v855_v35 = vrot.slane %v853_v58, 4  ;;  %v10548_v23 = vld [vmem:[%s15345_s1 + $0xc8] sm:$0xff]  ;;  %v854_v49 = vsel %vm11117_vm4, %v9248_v7, %v853_v58  ;;  %v10547_v58 = vld [vmem:[%s15345_s1 + $0xc0] sm:$0xff]  ;;  %v860_v7 = vrot.slane %v11565_v5, 5 }
  0xac   : > { %v585_v25 = vsel %vm11126_vm5, %v580_v20, %v584_v21  ;;  %v9252_v20 = vrot.slane %v11328_v59, 9  ;;  %v883_v21 = vrot.slane %v881_v9, 4  ;;  %v11554_v59 = vld [vmem:[%s11052_s22 + $0x84] sm:$0xf]  ;;  %3508 = vmatpush.bf16.msrb.mxu3 %v10548_v23  ;;  %v2227_v52 = vunpack.c.l.b16 %v854_v49  ;;  %v10586_v49 = vld [vmem:[%s15345_s1 + $0x1f8] sm:$0xff] }
  0xad   : > { %v2162_v51 = vunpack.c.l.b16 %v585_v25  ;;  %v2248_v10 = vpack.c.b16 %v2226_v44, %v2225_v43  ;;  %v611_v43 = vshrl.u32 %v11554_v59, 16 }
  0xae   : > { %v885_v25 = vsel %vm11117_vm4, %v883_v21, %v884_v29 }
  0xaf   : > { %v2184_v11 = vpack.c.b16 %v2162_v51, %v2161_v50  ;;  %3771 = vmatpush.bf16.msrb.mxu2 %v10576_v28  ;;  %v624_v50 = vshrl.u32 %v11565_v5, 16  ;;  %v10567_v51 = vld [vmem:[%s15345_s1 + $0x160] sm:$0xff] }
  0xb0   : > { %3683 = vmatpush.bf16.msrb.mxu1 %v10567_v51  ;;  %3509 = vmatpush.bf16.msrb.mxu3 %v10547_v58 }
  0xb3   : > { %v3244_v16 = vpop.f32.mrf.mxu0  ;;  %3772 = vmatpush.bf16.msrb.mxu2 %v10575_v15  ;;  %v862_v15 = vrot.slane %v860_v7, 4 }
  0xb4   : > { %v3245_v0 = vadd.f32 %v11476_v56, %v3244_v16 }
  0xb5   : > { %v3333_v26 = vpop.f32.mrf.mxu1 }
  0xb6   : > { %v3334_v14 = vadd.f32 %v3333_v26, %v3245_v0  ;;  %3283 = vmatmul.bf16.gmra.mxu0 %v10483_v8  ;;  %3481 = vmatmul.bf16.vlgmr.msra.gmra.mxu3 %v2251_v57  ;;  %v327_v57 = vld [vmem:[%s11052_s22 + $0x80] sm:$0x1] }
  0xb7   : > { %v606_v30 = vshll.u32 %v327_v57, 16  ;;  %v856_v18 = vrot.slane %v327_v57, 5  ;;  %v2236_v57 = vunpack.c.l.b16 %v885_v25  ;;  %3773 = vmatpush.bf16.msrb.mxu2 %v10574_v31  ;;  %3858 = vmatpush.bf16.msra.mxu3 %v10586_v49 }
  0xb8   : > { %3461 = vmatmul.bf16.gmra.mxu2 %v2247_v62  ;;  %3372 = vmatmul.bf16.gmra.mxu1 %v2183_v3  ;;  %v10484_v62 = vld [vmem:[%s11052_s22 + $0x6c] sm:$0xff]  ;;  %v2252_v3 = vpack.c.b16 %v2234_v46, %v2233_v45 }
  0xb9   : > { %v11493_v22 = vpop.f32.mrf.mxu3  ;;  %v608_v27 = vrot.slane %v606_v30, 5  ;;  %v10485_v30 = vld [vmem:[%s11052_s22 + $0x78] sm:$0xff] }
  0xbb   : > { %v3422_v61 = vpop.f32.mrf.mxu2  ;;  %v3246_v2 = vpop.f32.mrf.mxu0 }
  0xbc   : > { %v11506_v63 = vadd.f32 %v3422_v61, %v3334_v14  ;;  %v3247_v39 = vadd.f32 %v11476_v56, %v3246_v2  ;;  %v603_v14 = vor.u32 %v602_v54, %v11523_v53  ;;  %v594_v61 = vrot.slane %v593_v12, 4  ;;  %v10573_v12 = vld [vmem:[%s15345_s1 + $0x190] sm:$0xff] }
  0xbd   : > { %v3335_v60 = vpop.f32.mrf.mxu1  ;;  %3774 = vmatpush.bf16.msrb.mxu2 %v10573_v12 }
  0xbe   : > { %v3336_v1 = vadd.f32 %v3335_v60, %v3247_v39  ;;  %v604_v24 = vrot.slane %v603_v14, 4  ;;  %v857_v39 = vsel %vm11117_vm4, %v855_v35, %v856_v18  ;;  %v882_v60 = vsel %vm11117_vm4, %v9252_v20, %v881_v9 }
  0xbf   : > { %v599_v34 = vsel %vm11126_vm5, %v594_v61, %v11523_v53  ;;  %v2228_v54 = vunpack.c.l.b16 %v857_v39  ;;  %v2235_v55 = vunpack.c.l.b16 %v882_v60  ;;  %v888_v20 = vrot.slane %v11376_v37, 5 }
  0xc0   : > { %v609_v46 = vsel %vm11126_vm5, %v604_v24, %v608_v27  ;;  %v10565_v24 = vld [vmem:[%s15345_s1 + $0x150] sm:$0xff]  ;;  %v10572_v27 = vld [vmem:[%s15345_s1 + $0x188] sm:$0xff]  ;;  %v9249_v37 = vrot.slane %v11554_v59, 9  ;;  %v891_v60 = vrot.slane %v11405_v6, 5 }
  0xc1   : > { %v11528_v8 = vpop.f32.mrf.mxu3  ;;  %v2249_v17 = vpack.c.b16 %v2228_v54, %v2227_v52  ;;  %v2253_v28 = vpack.c.b16 %v2236_v57, %v2235_v55  ;;  %v890_v39 = vrot.slane %v888_v20, 4  ;;  %3775 = vmatpush.bf16.msrb.mxu2 %v10572_v27 }
  0xc2   : > { %v861_v6 = vsel %vm11117_vm4, %v9249_v37, %v860_v7 }
  0xc3   : > { %v3424_v16 = vpop.f32.mrf.mxu2  ;;  %v3249_v26 = vpop.f32.mrf.mxu0 }
  0xc4   : > { %v11534_v0 = vadd.f32 %v3424_v16, %v3336_v1  ;;  %v3250_v13 = vadd.f32 %v11476_v56, %v3249_v26  ;;  %v614_v1 = vshll.u32 %v11554_v59, 16  ;;  %v2163_v16 = vunpack.c.l.b16 %v599_v34 }
  0xc5   : > { %v3338_v48 = vpop.f32.mrf.mxu1  ;;  %v11596_v26 = vrot.slane %v620_v47, 5 }
  0xc6   : > { %v3339_v19 = vadd.f32 %v3338_v48, %v3250_v13  ;;  %3288 = vmatmul.bf16.gmra.mxu0 %v10484_v62  ;;  %3486 = vmatmul.bf16.gmra.mxu3 %v2252_v3  ;;  %v2164_v62 = vunpack.c.l.b16 %v609_v46  ;;  %v613_v3 = vrot.slane %v611_v43, 4  ;;  %v616_v9 = vrot.slane %v614_v1, 5  ;;  %v330_v48 = vld [vmem:[%s11052_s22 + $0x8c] sm:$0x1]  ;;  %v11630_v43 = vld [vmem:[%s11052_s22 + $0x10] sm:$0xf] }
  0xc7   : > { %v630_v38 = vshll.u32 %v330_v48, 16  ;;  %v863_v5 = vrot.slane %v330_v48, 5  ;;  %v10571_v1 = vld [vmem:[%s15345_s1 + $0x180] sm:$0xff]  ;;  %v952_v54 = vshll.u32 %v11630_v43, 16  ;;  %v956_v55 = vshrl.u32 %v11630_v43, 16 }
  0xc8   : > { %3466 = vmatmul.bf16.gmra.mxu2 %v2248_v10  ;;  %3377 = vmatmul.bf16.gmra.mxu1 %v2184_v11  ;;  %v626_v10 = vrot.slane %v624_v50, 4  ;;  %v10566_v11 = vld [vmem:[%s15345_s1 + $0x158] sm:$0xff]  ;;  %v617_v21 = vor.u32 %v616_v9, %v613_v3  ;;  %v10563_v3 = vld [vmem:[%s15345_s1 + $0x140] sm:$0xff]  ;;  %v2229_v9 = vunpack.c.l.b16 %v861_v6  ;;  %v1376_v49 = vrot.slane %v11630_v43, 5 }
  0xc9   : > { %v11562_v2 = vpop.f32.mrf.mxu3  ;;  %3684 = vmatpush.bf16.msrb.mxu1 %v10566_v11  ;;  %v632_v34 = vrot.slane %v630_v38, 5  ;;  %v864_v46 = vsel %vm11117_vm4, %v862_v15, %v863_v5  ;;  %3776 = vmatpush.bf16.msrb.mxu2 %v10571_v1  ;;  %v954_v7 = vrot.slane %v952_v54, 5 }
  0xca   : > { %v627_v23 = vor.u32 %v626_v10, %v11596_v26  ;;  %v618_v25 = vrot.slane %v617_v21, 4  ;;  %v2230_v10 = vunpack.c.l.b16 %v864_v46  ;;  %v1378_v1 = vrot.slane %v1376_v49, 4 }
  0xcb   : > { %v3427_v32 = vpop.f32.mrf.mxu2  ;;  %v3251_v42 = vpop.f32.mrf.mxu0 }
  0xcc   : > { %v11575_v40 = vadd.f32 %v3427_v32, %v3339_v19  ;;  %v3252_v44 = vadd.f32 %v11476_v56, %v3251_v42  ;;  %v2185_v19 = vpack.c.b16 %v2164_v62, %v2163_v16  ;;  %v9253_v32 = vrot.slane %v11373_v33, 9  ;;  %v11627_v42 = vld [vmem:[%s11052_s22 + $0xc] sm:$0xf] }
  0xcd   : > { %v3340_v45 = vpop.f32.mrf.mxu1  ;;  %v628_v59 = vrot.slane %v627_v23, 4  ;;  %3685 = vmatpush.bf16.msrb.mxu1 %v10565_v24  ;;  %v10564_v33 = vld [vmem:[%s15345_s1 + $0x148] sm:$0xff]  ;;  %v943_v50 = vshrl.u32 %v11627_v42, 16  ;;  %v946_v51 = vshll.u32 %v11627_v42, 16  ;;  %v623_v16 = vsel %vm11126_vm5, %v618_v25, %v11596_v26  ;;  %v10594_v26 = vld [vmem:[%s15345_s1 + $0x238] sm:$0xff] }
  0xce   : > { %v3341_v53 = vadd.f32 %v3340_v45, %v3252_v44  ;;  %v889_v47 = vsel %vm11117_vm4, %v9253_v32, %v888_v20  ;;  %3947 = vmatpush.bf16.msra.mxu0 %v10594_v26 }
  0xcf   : > { %v633_v62 = vsel %vm11126_vm5, %v628_v59, %v632_v34  ;;  %v2237_v11 = vunpack.c.l.b16 %v889_v47  ;;  %v11675_v34 = vld [vmem:[%s11052_s22 + $0x18] sm:$0xf] }
  0xd1   : > { %v11604_v13 = vpop.f32.mrf.mxu3  ;;  %3686 = vmatpush.bf16.msrb.mxu1 %v10564_v33  ;;  %v9302_v33 = vrot.slane %v11627_v42, 9 }
  0xd3   : > { %v3429_v14 = vpop.f32.mrf.mxu2  ;;  %v3254_v18 = vpop.f32.mrf.mxu0 }
  0xd4   : > { %v11609_v35 = vadd.f32 %v3429_v14, %v3341_v53  ;;  %v3255_v29 = vadd.f32 %v11476_v56, %v3254_v18  ;;  %v892_v53 = vsel %vm11117_vm4, %v890_v39, %v891_v60  ;;  %v945_v14 = vrot.slane %v943_v50, 4 }
  0xd5   : > { %v3343_v61 = vpop.f32.mrf.mxu1  ;;  %v2238_v48 = vunpack.c.l.b16 %v892_v53  ;;  %v958_v18 = vrot.slane %v956_v55, 4  ;;  %3687 = vmatpush.bf16.msrb.mxu1 %v10563_v3  ;;  %v967_v50 = vshrl.u32 %v11675_v34, 16 }
  0xd6   : > { %v3344_v4 = vadd.f32 %v3343_v61, %v3255_v29  ;;  %3293 = vmatmul.bf16.gmra.mxu0 %v10485_v30  ;;  %3491 = vmatmul.bf16.gmra.mxu3 %v2253_v28  ;;  %v948_v30 = vrot.slane %v946_v51, 5  ;;  %v2166_v28 = vunpack.c.l.b16 %v633_v62  ;;  %v10486_v29 = vld [vmem:[%s11052_s22 + $0x84] sm:$0xff]  ;;  %v2250_v61 = vpack.c.b16 %v2230_v10, %v2229_v9 }
  0xd7   : > { %v2254_v23 = vpack.c.b16 %v2238_v48, %v2237_v11  ;;  %v970_v51 = vshll.u32 %v11675_v34, 16  ;;  %v969_v11 = vrot.slane %v967_v50, 4 }
  0xd8   : > { %3471 = vmatmul.bf16.gmra.mxu2 %v2249_v17  ;;  %3382 = vmatmul.bf16.gmra.mxu1 %v2185_v19  ;;  %v2165_v17 = vunpack.c.l.b16 %v623_v16  ;;  %v9256_v19 = vld [vmem:[%s11052_s22 + $0x14] sm:$0x1]  ;;  %v949_v38 = vor.u32 %v948_v30, %v945_v14  ;;  %v1377_v16 = vsel %vm11117_vm4, %v9302_v33, %v1376_v49  ;;  %v3305_v33 = vadd.f32 %v11476_v56, %v11493_v22 }
  0xd9   : > { %v11638_v44 = vpop.f32.mrf.mxu3  ;;  %v962_v15 = vshll.u32 %v9256_v19, 16  ;;  %v1379_v6 = vrot.slane %v9256_v19, 5  ;;  %v2399_v48 = vunpack.c.l.b16 %v1377_v16 }
  0xda   : > { %v2186_v37 = vpack.c.b16 %v2166_v28, %v2165_v17  ;;  %v950_v60 = vrot.slane %v949_v38, 4  ;;  %v9259_v17 = vld [vmem:[%s11052_s22 + $0x20] sm:$0x1] }
  0xdb   : > { %v3432_v45 = vpop.f32.mrf.mxu2  ;;  %v3256_v52 = vpop.f32.mrf.mxu0  ;;  %v964_v59 = vrot.slane %v962_v15, 5  ;;  %v1380_v62 = vsel %vm11117_vm4, %v1378_v1, %v1379_v6  ;;  %v9303_v1 = vrot.slane %v11675_v34, 9 }
  0xdc   : > { %v11648_v31 = vadd.f32 %v3432_v45, %v3344_v4  ;;  %v3257_v57 = vadd.f32 %v11476_v56, %v3256_v52  ;;  %v959_v4 = vor.u32 %v958_v18, %v954_v7  ;;  %v11679_v45 = vld [vmem:[%s11052_s22 + $0x1c] sm:$0xf]  ;;  %v955_v43 = vsel %vm11126_vm5, %v950_v60, %v954_v7  ;;  %v10491_v18 = vld [vmem:[%s11052_s22 + $0xc] sm:$0xff] }
  0xdd   : > { %v3345_v58 = vpop.f32.mrf.mxu1  ;;  %v976_v54 = vshll.u32 %v11679_v45, 16  ;;  %v980_v55 = vshrl.u32 %v11679_v45, 16  ;;  %v2335_v3 = vunpack.c.l.b16 %v955_v43  ;;  %v2400_v14 = vunpack.c.l.b16 %v1380_v62 }
  0xde   : > { %v3346_v12 = vadd.f32 %v3345_v58, %v3257_v57  ;;  %v960_v25 = vrot.slane %v959_v4, 4 }
  0xdf   : > { %v978_v30 = vrot.slane %v976_v54, 5  ;;  %v982_v26 = vrot.slane %v980_v55, 4  ;;  %v2431_v38 = vpack.c.b16 %v2400_v14, %v2399_v48 }
  0xe0   : > { %v965_v42 = vsel %vm11126_vm5, %v960_v25, %v964_v59  ;;  %v11711_v59 = vld [vmem:[%s11052_s22 + $0x24] sm:$0xf] }
  0xe1   : > { %v11667_v20 = vpop.f32.mrf.mxu3  ;;  %v2336_v10 = vunpack.c.l.b16 %v965_v42  ;;  %v991_v42 = vshrl.u32 %v11711_v59, 16  ;;  %v994_v54 = vshll.u32 %v11711_v59, 16 }
  0xe3   : > { %v3434_v21 = vpop.f32.mrf.mxu2  ;;  %v3259_v27 = vpop.f32.mrf.mxu0  ;;  %v2367_v19 = vpack.c.b16 %v2336_v10, %v2335_v3  ;;  %v993_v48 = vrot.slane %v991_v42, 4  ;;  %v996_v14 = vrot.slane %v994_v54, 5  ;;  %v9304_v42 = vrot.slane %v11711_v59, 9 }
  0xe4   : > { %v11670_v24 = vadd.f32 %v3434_v21, %v3346_v12  ;;  %v3260_v5 = vadd.f32 %v11476_v56, %v3259_v27  ;;  %v972_v12 = vrot.slane %v970_v51, 5  ;;  %v983_v27 = vor.u32 %v982_v26, %v978_v30 }
  0xe5   : > { %v3348_v32 = vpop.f32.mrf.mxu1 }
  0xe6   : > { %v3349_v39 = vadd.f32 %v3348_v32, %v3260_v5  ;;  %3298 = vmatmul.bf16.gmra.mxu0 %v10486_v29  ;;  %3496 = vmatmul.bf16.gmra.mxu3 %v2254_v23  ;;  %v973_v21 = vor.u32 %v972_v12, %v969_v11  ;;  %v10507_v23 = vld [vmem:[%s11052_s22 + $0x18] sm:$0xff]  ;;  %v1383_v5 = vrot.slane %v11679_v45, 5  ;;  %v984_v60 = vrot.slane %v983_v27, 4 }
  0xe7   : > { %v1386_v45 = vrot.slane %v9259_v17, 5  ;;  %v10492_v27 = vld [vmem:[%s11052_s22 + $0x18] sm:$0xff] }
  0xe8   : > { %3476 = vmatmul.bf16.gmra.mxu2 %v2250_v61  ;;  %3387 = vmatmul.bf16.gmra.mxu1 %v2186_v37  ;;  %v986_v37 = vshll.u32 %v9259_v17, 16  ;;  %v974_v49 = vrot.slane %v973_v21, 4  ;;  %v1385_v6 = vrot.slane %v1383_v5, 4  ;;  %v1384_v3 = vsel %vm11117_vm4, %v9303_v1, %v1383_v5  ;;  %v9262_v21 = vld [vmem:[%s11052_s22 + $0x2c] sm:$0x1] }
  0xe9   : > { %v11681_v46 = vpop.f32.mrf.mxu3  ;;  %v2401_v26 = vunpack.c.l.b16 %v1384_v3 }
  0xea   : > { %v988_v25 = vrot.slane %v986_v37, 5 }
  0xeb   : > { %v3437_v47 = vpop.f32.mrf.mxu2  ;;  %v3261_v53 = vpop.f32.mrf.mxu0 }
  0xec   : > { %v11687_v52 = vadd.f32 %v3437_v47, %v3349_v39  ;;  %v3262_v57 = vadd.f32 %v11476_v56, %v3261_v53  ;;  %v10585_v39 = vld [vmem:[%s15345_s1 + $0x1f0] sm:$0xff]  ;;  %v11717_v47 = vld [vmem:[%s11052_s22 + $0x28] sm:$0xf]  ;;  %v979_v53 = vsel %vm11126_vm5, %v974_v49, %v978_v30  ;;  %v989_v34 = vsel %vm11126_vm5, %v984_v60, %v988_v25 }
  0xed   : > { %v3350_v58 = vpop.f32.mrf.mxu1  ;;  %3859 = vmatpush.bf16.msra.mxu3 %v10585_v39  ;;  %v2337_v10 = vunpack.c.l.b16 %v979_v53  ;;  %v2338_v12 = vunpack.c.l.b16 %v989_v34  ;;  %v10593_v30 = vld [vmem:[%s15345_s1 + $0x230] sm:$0xff]  ;;  %v1010_v60 = vshll.u32 %v9262_v21, 16  ;;  %v3310_v53 = vadd.f32 %v11476_v56, %v11562_v2 }
  0xee   : > { %v3351_v9 = vadd.f32 %v3350_v58, %v3262_v57  ;;  %v1000_v57 = vshll.u32 %v11717_v47, 16  ;;  %v1004_v58 = vshrl.u32 %v11717_v47, 16  ;;  %3948 = vmatpush.bf16.msra.mxu0 %v10593_v30  ;;  %v11757_v34 = vld [vmem:[%s11052_s22 + $0x34] sm:$0xf] }
  0xef   : > { %v2368_v37 = vpack.c.b16 %v2338_v12, %v2337_v10  ;;  %v1024_v10 = vshll.u32 %v11757_v34, 16 }
  0xf1   : > { %v11699_v28 = vpop.f32.mrf.mxu3 }
  0xf3   : > { %v3439_v7 = vpop.f32.mrf.mxu2  ;;  %v3264_v61 = vpop.f32.mrf.mxu0 }
  0xf4   : > { %v11702_v29 = vadd.f32 %v3439_v7, %v3351_v9  ;;  %v3265_v4 = vadd.f32 %v11476_v56, %v3264_v61  ;;  %v1387_v9 = vsel %vm11117_vm4, %v1385_v6, %v1386_v45  ;;  %v1002_v7 = vrot.slane %v1000_v57, 5 }
  0xf5   : > { %v3353_v15 = vpop.f32.mrf.mxu1  ;;  %v2402_v17 = vunpack.c.l.b16 %v1387_v9 }
  0xf6   : > { %v3354_v32 = vadd.f32 %v3353_v15, %v3265_v4  ;;  %3510 = vmatmul.bf16.vlgmr.msrb.gmra.mxu3 %v10491_v18  ;;  %3599 = vmatmul.bf16.vlgmr.msrb.gmra.mxu0 %v2367_v19  ;;  %v1006_v18 = vrot.slane %v1004_v58, 4  ;;  %v3307_v19 = vadd.f32 %v11476_v56, %v11528_v8  ;;  %v997_v4 = vor.u32 %v996_v14, %v993_v48 }
  0xf7   : > { %v2432_v49 = vpack.c.b16 %v2402_v17, %v2401_v26 }
  0xf8   : > { %3777 = vmatmul.bf16.vlgmr.msrb.gmra.mxu2 %v10507_v23  ;;  %3688 = vmatmul.bf16.vlgmr.msrb.gmra.mxu1 %v2431_v38  ;;  %v1007_v39 = vor.u32 %v1006_v18, %v1002_v7  ;;  %v998_v6 = vrot.slane %v997_v4, 4  ;;  %v9265_v4 = vld [vmem:[%s11052_s22 + $0x38] sm:$0x1] }
  0xf9   : > { %v3393_v43 = vpop.f32.mrf.mxu3 }
  0xfa   : > { %v11719_v50 = vadd.f32 %v3393_v43, %v3305_v33  ;;  %v1390_v33 = vrot.slane %v11717_v47, 5  ;;  %v1008_v45 = vrot.slane %v1007_v39, 4  ;;  %v1012_v43 = vrot.slane %v1010_v60, 5  ;;  %v10493_v39 = vld [vmem:[%s11052_s22 + $0x24] sm:$0xff] }
  0xfb   : > { %v3442_v51 = vpop.f32.mrf.mxu2  ;;  %v3266_v22 = vpop.f32.mrf.mxu0 }
  0xfc   : > { %v11725_v55 = vadd.f32 %v3442_v51, %v3354_v32  ;;  %v3267_v16 = vadd.f32 %v11476_v56, %v3266_v22  ;;  %v10508_v32 = vld [vmem:[%s11052_s22 + $0x24] sm:$0xff]  ;;  %v11751_v51 = vld [vmem:[%s11052_s22 + $0x30] sm:$0xf]  ;;  %v1392_v54 = vrot.slane %v1390_v33, 4  ;;  %v1393_v22 = vrot.slane %v9262_v21, 5 }
  0xfd   : > { %v3355_v62 = vpop.f32.mrf.mxu1  ;;  %v1018_v3 = vshll.u32 %v11751_v51, 16  ;;  %v1013_v59 = vsel %vm11126_vm5, %v1008_v45, %v1012_v43  ;;  %v1391_v14 = vsel %vm11117_vm4, %v9304_v42, %v1390_v33  ;;  %v1034_v43 = vshll.u32 %v9265_v4, 16 }
  0xfe   : > { %v3356_v11 = vadd.f32 %v3355_v62, %v3267_v16  ;;  %v1003_v16 = vsel %vm11126_vm5, %v998_v6, %v1002_v7  ;;  %v1015_v62 = vshrl.u32 %v11751_v51, 16  ;;  %v1394_v30 = vsel %vm11117_vm4, %v1392_v54, %v1393_v22 }
  0xff   : > { %v2339_v26 = vunpack.c.l.b16 %v1003_v16  ;;  %v2340_v7 = vunpack.c.l.b16 %v1013_v59  ;;  %v2403_v21 = vunpack.c.l.b16 %v1391_v14  ;;  %v1036_v16 = vrot.slane %v1034_v43, 5 }
 0x100   : > { %v1017_v18 = vrot.slane %v1015_v62, 4  ;;  %v11791_v62 = vld [vmem:[%s11052_s22 + $0x3c] sm:$0xf]  ;;  %v1400_v59 = vrot.slane %v9265_v4, 5 }
 0x101   : > { %v3395_v61 = vpop.f32.mrf.mxu3  ;;  %v2369_v60 = vpack.c.b16 %v2340_v7, %v2339_v26  ;;  %v1042_v26 = vshll.u32 %v11791_v62, 16 }
 0x102   : > { %v11742_v23 = vadd.f32 %v3395_v61, %v3307_v19  ;;  %v1020_v19 = vrot.slane %v1018_v3, 5  ;;  %v2404_v61 = vunpack.c.l.b16 %v1394_v30  ;;  %v3315_v3 = vadd.f32 %v11476_v56, %v11638_v44 }
 0x103   : > { %v3444_v38 = vpop.f32.mrf.mxu2  ;;  %v3269_v5 = vpop.f32.mrf.mxu0  ;;  %v1039_v30 = vshrl.u32 %v11791_v62, 16 }
 0x104   : > { %v11745_v15 = vadd.f32 %v3444_v38, %v3356_v11  ;;  %v3270_v25 = vadd.f32 %v11476_v56, %v3269_v5  ;;  %v1028_v11 = vshrl.u32 %v11757_v34, 16  ;;  %v1026_v38 = vrot.slane %v1024_v10, 5  ;;  %v11797_v10 = vld [vmem:[%s11052_s22 + $0x40] sm:$0xf] }
 0x105   : > { %v3358_v8 = vpop.f32.mrf.mxu1  ;;  %v2433_v6 = vpack.c.b16 %v2404_v61, %v2403_v21  ;;  %v1048_v7 = vshll.u32 %v11797_v10, 16 }
 0x106   : > { %v3359_v1 = vadd.f32 %v3358_v8, %v3270_v25  ;;  %3515 = vmatmul.bf16.gmra.mxu3 %v10492_v27  ;;  %3604 = vmatmul.bf16.gmra.mxu0 %v2368_v37  ;;  %v1030_v27 = vrot.slane %v1028_v11, 4  ;;  %v3312_v37 = vadd.f32 %v11476_v56, %v11604_v13  ;;  %v1021_v25 = vor.u32 %v1020_v19, %v1017_v18 }
 0x107   : > { %v1397_v13 = vrot.slane %v11757_v34, 5  ;;  %v1052_v18 = vshrl.u32 %v11797_v10, 16 }
 0x108   : > { %3782 = vmatmul.bf16.gmra.mxu2 %v10508_v32  ;;  %3693 = vmatmul.bf16.gmra.mxu1 %v2432_v49  ;;  %v1031_v45 = vor.u32 %v1030_v27, %v1026_v38  ;;  %v1022_v22 = vrot.slane %v1021_v25, 4 }
 0x109   : > { %v3398_v47 = vpop.f32.mrf.mxu3  ;;  %v1399_v34 = vrot.slane %v1397_v13, 4 }
 0x10a   : > { %v11759_v57 = vadd.f32 %v3398_v47, %v3310_v53  ;;  %v10584_v47 = vld [vmem:[%s15345_s1 + $0x1e8] sm:$0xff]  ;;  %v1027_v14 = vsel %vm11126_vm5, %v1022_v22, %v1026_v38 }
 0x10b   : > { %v3447_v58 = vpop.f32.mrf.mxu2  ;;  %v3271_v2 = vpop.f32.mrf.mxu0  ;;  %3860 = vmatpush.bf16.msra.mxu3 %v10584_v47  ;;  %v1401_v38 = vsel %vm11117_vm4, %v1399_v34, %v1400_v59  ;;  %v2341_v27 = vunpack.c.l.b16 %v1027_v14 }
 0x10c   : > { %v11765_v9 = vadd.f32 %v3447_v58, %v3359_v1  ;;  %v3272_v12 = vadd.f32 %v11476_v56, %v3271_v2  ;;  %v10509_v1 = vld [vmem:[%s11052_s22 + $0x30] sm:$0xff]  ;;  %v1032_v58 = vrot.slane %v1031_v45, 4  ;;  %v9305_v2 = vrot.slane %v11751_v51, 9  ;;  %v9268_v45 = vld [vmem:[%s11052_s22 + $0x44] sm:$0x1] }
 0x10d   : > { %v3360_v48 = vpop.f32.mrf.mxu1  ;;  %v2406_v25 = vunpack.c.l.b16 %v1401_v38  ;;  %v1058_v34 = vshll.u32 %v9268_v45, 16 }
 0x10e   : > { %v3361_v17 = vadd.f32 %v3360_v48, %v3272_v12  ;;  %v1037_v51 = vsel %vm11126_vm5, %v1032_v58, %v1036_v16  ;;  %v1398_v61 = vsel %vm11117_vm4, %v9305_v2, %v1397_v13  ;;  %v10494_v13 = vld [vmem:[%s11052_s22 + $0x30] sm:$0xff]  ;;  %v10510_v16 = vld [vmem:[%s11052_s22 + $0x3c] sm:$0xff] }
 0x10f   : > { %v2342_v4 = vunpack.c.l.b16 %v1037_v51  ;;  %v3320_v51 = vadd.f32 %v11476_v56, %v11681_v46 }
 0x111   : > { %v3400_v5 = vpop.f32.mrf.mxu3 }
 0x112   : > { %v11779_v32 = vadd.f32 %v3400_v5, %v3312_v37  ;;  %v1041_v5 = vrot.slane %v1039_v30, 4 }
 0x113   : > { %v3449_v49 = vpop.f32.mrf.mxu2  ;;  %v3274_v33 = vpop.f32.mrf.mxu0 }
 0x114   : > { %v11782_v8 = vadd.f32 %v3449_v49, %v3361_v17  ;;  %v3275_v53 = vadd.f32 %v11476_v56, %v3274_v33  ;;  %v1044_v49 = vrot.slane %v1042_v26, 5  ;;  %v1050_v33 = vrot.slane %v1048_v7, 5 }
 0x115   : > { %v3363_v42 = vpop.f32.mrf.mxu1  ;;  %v1060_v26 = vrot.slane %v1058_v34, 5  ;;  %v9306_v7 = vrot.slane %v11791_v62, 9 }
 0x116   : > { %v3364_v54 = vadd.f32 %v3363_v42, %v3275_v53  ;;  %3520 = vmatmul.bf16.gmra.mxu3 %v10493_v39  ;;  %3609 = vmatmul.bf16.gmra.mxu0 %v2369_v60  ;;  %v10592_v39 = vld [vmem:[%s15345_s1 + $0x228] sm:$0xff]  ;;  %v2405_v60 = vunpack.c.l.b16 %v1398_v61  ;;  %v1045_v22 = vor.u32 %v1044_v49, %v1041_v5 }
 0x117   : > { %3949 = vmatpush.bf16.msra.mxu0 %v10592_v39 }
 0x118   : > { %3787 = vmatmul.bf16.gmra.mxu2 %v10509_v1  ;;  %3698 = vmatmul.bf16.gmra.mxu1 %v2433_v6  ;;  %v1054_v1 = vrot.slane %v1052_v18, 4  ;;  %v3317_v6 = vadd.f32 %v11476_v56, %v11667_v20  ;;  %v1046_v14 = vrot.slane %v1045_v22, 4 }
 0x119   : > { %v3403_v11 = vpop.f32.mrf.mxu3 }
 0x11a   : > { %v11799_v12 = vadd.f32 %v3403_v11, %v3315_v3  ;;  %v2434_v3 = vpack.c.b16 %v2406_v25, %v2405_v60  ;;  %v1055_v2 = vor.u32 %v1054_v1, %v1050_v33  ;;  %v1404_v11 = vrot.slane %v11797_v10, 5 }
 0x11b   : > { %v3452_v48 = vpop.f32.mrf.mxu2  ;;  %v3276_v44 = vpop.f32.mrf.mxu0 }
 0x11c   : > { %v11805_v17 = vadd.f32 %v3452_v48, %v3364_v54  ;;  %v3277_v19 = vadd.f32 %v11476_v56, %v3276_v44  ;;  %v2370_v54 = vpack.c.b16 %v2342_v4, %v2341_v27  ;;  %v1056_v30 = vrot.slane %v1055_v2, 4  ;;  %v11831_v44 = vld [vmem:[%s11052_s22 + $0x48] sm:$0xf]  ;;  %v9271_v2 = vld [vmem:[%s11052_s22 + $0x50] sm:$0x1] }
 0x11d   : > { %v3365_v21 = vpop.f32.mrf.mxu1  ;;  %v1406_v18 = vrot.slane %v1404_v11, 4  ;;  %v1051_v27 = vsel %vm11126_vm5, %v1046_v14, %v1050_v33  ;;  %v1066_v4 = vshll.u32 %v11831_v44, 16  ;;  %v1405_v33 = vsel %vm11117_vm4, %v9306_v7, %v1404_v11  ;;  %v10495_v11 = vld [vmem:[%s11052_s22 + $0x3c] sm:$0xff] }
 0x11e   : > { %v3366_v37 = vadd.f32 %v3365_v21, %v3277_v19  ;;  %v1407_v19 = vrot.slane %v9268_v45, 5  ;;  %v11837_v21 = vld [vmem:[%s11052_s22 + $0x4c] sm:$0xf]  ;;  %v1061_v62 = vsel %vm11126_vm5, %v1056_v30, %v1060_v26 }
 0x11f   : > { %v1072_v49 = vshll.u32 %v11837_v21, 16  ;;  %v1076_v39 = vshrl.u32 %v11837_v21, 16 }
 0x120   : > { %v1408_v1 = vsel %vm11117_vm4, %v1406_v18, %v1407_v19  ;;  %v1082_v19 = vshll.u32 %v9271_v2, 16 }
 0x121   : > { %v3405_v43 = vpop.f32.mrf.mxu3  ;;  %v2408_v22 = vunpack.c.l.b16 %v1408_v1 }
 0x122   : > { %v11822_v53 = vadd.f32 %v3405_v43, %v3317_v6  ;;  %v2343_v6 = vunpack.c.l.b16 %v1051_v27  ;;  %v2344_v43 = vunpack.c.l.b16 %v1061_v62  ;;  %v1084_v62 = vrot.slane %v1082_v19, 5 }
 0x123   : > { %v3454_v42 = vpop.f32.mrf.mxu2  ;;  %v3279_v58 = vpop.f32.mrf.mxu0 }
 0x124   : > { %v11825_v47 = vadd.f32 %v3454_v42, %v3366_v37  ;;  %v3280_v59 = vadd.f32 %v11476_v56, %v3279_v58  ;;  %v1063_v37 = vshrl.u32 %v11831_v44, 16  ;;  %v1074_v58 = vrot.slane %v1072_v49, 5  ;;  %v11871_v49 = vld [vmem:[%s11052_s22 + $0x54] sm:$0xf] }
 0x125   : > { %v3368_v20 = vpop.f32.mrf.mxu1 }
 0x126   : > { %v3369_v48 = vadd.f32 %v3368_v20, %v3280_v59  ;;  %3525 = vmatmul.bf16.gmra.mxu3 %v10494_v13  ;;  %3614 = vmatmul.bf16.gmra.mxu0 %v2370_v54  ;;  %v1065_v42 = vrot.slane %v1063_v37, 4  ;;  %v1068_v13 = vrot.slane %v1066_v4, 5  ;;  %v2407_v54 = vunpack.c.l.b16 %v1405_v33  ;;  %v10583_v4 = vld [vmem:[%s15345_s1 + $0x1e0] sm:$0xff] }
 0x127   : > { %3861 = vmatpush.bf16.msra.mxu3 %v10583_v4 }
 0x128   : > { %3792 = vmatmul.bf16.gmra.mxu2 %v10510_v16  ;;  %3703 = vmatmul.bf16.gmra.mxu1 %v2434_v3  ;;  %v1078_v16 = vrot.slane %v1076_v39, 4  ;;  %v3322_v3 = vadd.f32 %v11476_v56, %v11699_v28  ;;  %v1069_v14 = vor.u32 %v1068_v13, %v1065_v42  ;;  %v2435_v7 = vpack.c.b16 %v2408_v22, %v2407_v54 }
 0x129   : > { %v3408_v10 = vpop.f32.mrf.mxu3 }
 0x12a   : > { %v11839_v61 = vadd.f32 %v3408_v10, %v3320_v51  ;;  %v10511_v51 = vld [vmem:[%s11052_s22 + $0x48] sm:$0xff]  ;;  %v1079_v18 = vor.u32 %v1078_v16, %v1074_v58  ;;  %v1070_v37 = vrot.slane %v1069_v14, 4 }
 0x12b   : > { %v3457_v38 = vpop.f32.mrf.mxu2  ;;  %v3281_v46 = vpop.f32.mrf.mxu0 }
 0x12c   : > { %v11845_v5 = vadd.f32 %v3457_v38, %v3369_v48  ;;  %v3282_v60 = vadd.f32 %v11476_v56, %v3281_v46  ;;  %v2371_v48 = vpack.c.b16 %v2344_v43, %v2343_v6  ;;  %v1411_v38 = vrot.slane %v11837_v21, 5 }
 0x12d   : > { %v3370_v25 = vpop.f32.mrf.mxu1  ;;  %v1080_v46 = vrot.slane %v1079_v18, 4  ;;  %v1075_v6 = vsel %vm11126_vm5, %v1070_v37, %v1074_v58  ;;  %v1090_v43 = vshll.u32 %v11871_v49, 16  ;;  %v10496_v37 = vld [vmem:[%s11052_s22 + $0x48] sm:$0xff] }
 0x12e   : > { %v3371_v45 = vadd.f32 %v3370_v25, %v3282_v60  ;;  %v1413_v39 = vrot.slane %v1411_v38, 4  ;;  %v1414_v60 = vrot.slane %v9271_v2, 5  ;;  %v11875_v25 = vld [vmem:[%s11052_s22 + $0x58] sm:$0xf] }
 0x12f   : > { %v1085_v13 = vsel %vm11126_vm5, %v1080_v46, %v1084_v62  ;;  %v1096_v54 = vshll.u32 %v11875_v25, 16  ;;  %v1100_v22 = vshrl.u32 %v11875_v25, 16  ;;  %v1092_v14 = vrot.slane %v1090_v43, 5 }
 0x130   : > { %v1415_v2 = vsel %vm11117_vm4, %v1413_v39, %v1414_v60  ;;  %v10512_v39 = vld [vmem:[%s11052_s22 + $0x54] sm:$0xff]  ;;  %v1418_v43 = vrot.slane %v11875_v25, 5 }
 0x131   : > { %v3410_v34 = vpop.f32.mrf.mxu3  ;;  %v1098_v18 = vrot.slane %v1096_v54, 5  ;;  %v1102_v19 = vrot.slane %v1100_v22, 4  ;;  %v11914_v22 = vld [vmem:[%s11052_s22 + $0x60] sm:$0xf] }
 0x132   : > { %v11859_v59 = vadd.f32 %v3410_v34, %v3322_v3  ;;  %v2345_v34 = vunpack.c.l.b16 %v1075_v6 }
 0x133   : > { %v3459_v20 = vpop.f32.mrf.mxu2  ;;  %v3284_v26 = vpop.f32.mrf.mxu0 }
 0x134   : > { %v11862_v30 = vadd.f32 %v3459_v20, %v3371_v45  ;;  %v3285_v10 = vadd.f32 %v11476_v56, %v3284_v26  ;;  %v9307_v56 = vrot.slane %v11831_v44, 9  ;;  %v1087_v45 = vshrl.u32 %v11871_v49, 16  ;;  %v10591_v26 = vld [vmem:[%s15345_s1 + $0x220] sm:$0xff] }
 0x135   : > { %v3373_v28 = vpop.f32.mrf.mxu1  ;;  %3950 = vmatpush.bf16.msra.mxu0 %v10591_v26 }
 0x136   : > { %v3374_v27 = vadd.f32 %v3373_v28, %v3285_v10  ;;  %3530 = vmatmul.bf16.gmra.mxu3 %v10495_v11  ;;  %3619 = vmatmul.bf16.gmra.mxu0 %v2371_v48  ;;  %v1412_v3 = vsel %vm11117_vm4, %v9307_v56, %v1411_v38  ;;  %v2346_v11 = vunpack.c.l.b16 %v1085_v13  ;;  %v1089_v48 = vrot.slane %v1087_v45, 4  ;;  %v9274_v10 = vld [vmem:[%s11052_s22 + $0x5c] sm:$0x1] }
 0x138   : > { %3797 = vmatmul.bf16.gmra.mxu2 %v10511_v51  ;;  %3708 = vmatmul.bf16.gmra.mxu1 %v2435_v7  ;;  %v2409_v51 = vunpack.c.l.b16 %v1412_v3  ;;  %v2410_v7 = vunpack.c.l.b16 %v1415_v2  ;;  %v2372_v4 = vpack.c.b16 %v2346_v11, %v2345_v34  ;;  %v1093_v46 = vor.u32 %v1092_v14, %v1089_v48  ;;  %v11918_v2 = vld [vmem:[%s11052_s22 + $0x64] sm:$0xf] }
 0x139   : > { %v3482_v21 = vpop.f32.mrf.mxu3  ;;  %v1421_v3 = vrot.slane %v9274_v10, 5  ;;  %v1111_v48 = vshrl.u32 %v11914_v22, 16  ;;  %v1114_v14 = vshll.u32 %v11914_v22, 16 }
 0x13a   : > { %v11878_v1 = vadd.f32 %v3482_v21, %v11719_v50  ;;  %v11893_v50 = vld [vmem:[%s15346_s2] ss:$0 sm:$0xff]  ;;  %v2436_v60 = vpack.c.b16 %v2410_v7, %v2409_v51  ;;  %v1103_v21 = vor.u32 %v1102_v19, %v1098_v18  ;;  %v1120_v7 = vshll.u32 %v11918_v2, 16 }
 0x13b   : > { %v3462_v33 = vpop.f32.mrf.mxu2  ;;  %v3286_v44 = vpop.f32.mrf.mxu0  ;;  %v1124_v19 = vshrl.u32 %v11918_v2, 16 }
 0x13c   : > { %v11884_v42 = vadd.f32 %v3462_v33, %v3374_v27  ;;  %v3287_v58 = vadd.f32 %v11893_v50, %v3286_v44  ;;  %v1106_v33 = vshll.u32 %v9274_v10, 16  ;;  %v1104_v13 = vrot.slane %v1103_v21, 4 }
 0x13d   : > { %v3375_v16 = vpop.f32.mrf.mxu1  ;;  %v1122_v21 = vrot.slane %v1120_v7, 5  ;;  %v10582_v7 = vld [vmem:[%s15345_s1 + $0x1d8] sm:$0xff] }
 0x13e   : > { %v3376_v20 = vadd.f32 %v3375_v16, %v3287_v58  ;;  %v1108_v54 = vrot.slane %v1106_v33, 5  ;;  %v9308_v58 = vrot.slane %v11871_v49, 9  ;;  %v1420_v16 = vrot.slane %v1418_v43, 4  ;;  %3862 = vmatpush.bf16.msra.mxu3 %v10582_v7  ;;  %v9280_v7 = vld [vmem:[%s11052_s22 + $0x74] sm:$0x1] }
 0x13f   : > { %v1126_v33 = vrot.slane %v1124_v19, 4 }
 0x140   : > { %v1109_v49 = vsel %vm11126_vm5, %v1104_v13, %v1108_v54 }
 0x141   : > { %v3484_v28 = vpop.f32.mrf.mxu3 }
 0x142   : > { %v11905_v27 = vadd.f32 %v3484_v28, %v11742_v23  ;;  %v1094_v23 = vrot.slane %v1093_v46, 4  ;;  %v1422_v28 = vsel %vm11117_vm4, %v1420_v16, %v1421_v3  ;;  %v1113_v46 = vrot.slane %v1111_v48, 4  ;;  %v10513_v3 = vld [vmem:[%s11052_s22 + $0x60] sm:$0xff] }
 0x143   : > { %v3464_v38 = vpop.f32.mrf.mxu2  ;;  %v3289_v56 = vpop.f32.mrf.mxu0 }
 0x144   : > { %v11908_v62 = vadd.f32 %v3464_v38, %v3376_v20  ;;  %v3290_v6 = vadd.f32 %v11893_v50, %v3289_v56  ;;  %v1099_v11 = vsel %vm11126_vm5, %v1094_v23, %v1098_v18  ;;  %v1419_v18 = vsel %vm11117_vm4, %v9308_v58, %v1418_v43  ;;  %v10497_v43 = vld [vmem:[%s11052_s22 + $0x54] sm:$0xff] }
 0x145   : > { %v3378_v45 = vpop.f32.mrf.mxu1  ;;  %v2347_v38 = vunpack.c.l.b16 %v1099_v11  ;;  %v1116_v56 = vrot.slane %v1114_v14, 5 }
 0x146   : > { %v3379_v44 = vadd.f32 %v3378_v45, %v3290_v6  ;;  %3535 = vmatmul.bf16.gmra.mxu3 %v10496_v37  ;;  %3624 = vmatmul.bf16.gmra.mxu0 %v2372_v4  ;;  %v2348_v4 = vunpack.c.l.b16 %v1109_v49  ;;  %v9277_v6 = vld [vmem:[%s11052_s22 + $0x68] sm:$0x1] }
 0x147   : > { %v1117_v54 = vor.u32 %v1116_v56, %v1113_v46  ;;  %v1130_v11 = vshll.u32 %v9277_v6, 16 }
 0x148   : > { %3802 = vmatmul.bf16.gmra.mxu2 %v10512_v39  ;;  %3713 = vmatmul.bf16.gmra.mxu1 %v2436_v60  ;;  %v2411_v39 = vunpack.c.l.b16 %v1419_v18  ;;  %v2412_v60 = vunpack.c.l.b16 %v1422_v28  ;;  %v2373_v13 = vpack.c.b16 %v2348_v4, %v2347_v38  ;;  %v9309_v18 = vrot.slane %v11914_v22, 9 }
 0x149   : > { %v3487_v34 = vpop.f32.mrf.mxu3  ;;  %v1428_v38 = vrot.slane %v9277_v6, 5 }
 0x14a   : > { %v11921_v25 = vadd.f32 %v3487_v34, %v11759_v57  ;;  %v2437_v34 = vpack.c.b16 %v2412_v60, %v2411_v39 }
 0x14b   : > { %v3467_v20 = vpop.f32.mrf.mxu2  ;;  %v3291_v51 = vpop.f32.mrf.mxu0 }
 0x14c   : > { %v11927_v26 = vadd.f32 %v3467_v20, %v3379_v44  ;;  %v3292_v57 = vadd.f32 %v11893_v50, %v3291_v51  ;;  %v1127_v20 = vor.u32 %v1126_v33, %v1122_v21  ;;  %v1425_v51 = vrot.slane %v11918_v2, 5 }
 0x14d   : > { %v3380_v10 = vpop.f32.mrf.mxu1 }
 0x14e   : > { %v3381_v37 = vadd.f32 %v3380_v10, %v3292_v57  ;;  %v1128_v19 = vrot.slane %v1127_v20, 4  ;;  %v1132_v57 = vrot.slane %v1130_v11, 5  ;;  %v11952_v10 = vld [vmem:[%s11052_s22 + $0x6c] sm:$0xf]  ;;  %v1427_v28 = vrot.slane %v1425_v51, 4  ;;  %v10590_v11 = vld [vmem:[%s15345_s1 + $0x218] sm:$0xff] }
 0x14f   : > { %v1135_v39 = vshrl.u32 %v11952_v10, 16  ;;  %v1138_v60 = vshll.u32 %v11952_v10, 16  ;;  %3951 = vmatpush.bf16.msra.mxu0 %v10590_v11 }
 0x150   : > { %v1133_v6 = vsel %vm11126_vm5, %v1128_v19, %v1132_v57 }
 0x151   : > { %v3489_v45 = vpop.f32.mrf.mxu3  ;;  %v1140_v20 = vrot.slane %v1138_v60, 5 }
 0x152   : > { %v11940_v23 = vadd.f32 %v3489_v45, %v11779_v32  ;;  %v1118_v32 = vrot.slane %v1117_v54, 4 }
 0x153   : > { %v3469_v44 = vpop.f32.mrf.mxu2  ;;  %v3294_v16 = vpop.f32.mrf.mxu0 }
 0x154   : > { %v11943_v58 = vadd.f32 %v3469_v44, %v3381_v37  ;;  %v3295_v48 = vadd.f32 %v11893_v50, %v3294_v16  ;;  %v11956_v37 = vld [vmem:[%s11052_s22 + $0x70] sm:$0xf]  ;;  %v1123_v56 = vsel %vm11126_vm5, %v1118_v32, %v1122_v21  ;;  %v1426_v21 = vsel %vm11117_vm4, %v9309_v18, %v1425_v51  ;;  %v10498_v18 = vld [vmem:[%s11052_s22 + $0x60] sm:$0xff] }
 0x155   : > { %v3383_v14 = vpop.f32.mrf.mxu1  ;;  %v1144_v45 = vshll.u32 %v11956_v37, 16  ;;  %v1148_v44 = vshrl.u32 %v11956_v37, 16  ;;  %v2349_v54 = vunpack.c.l.b16 %v1123_v56  ;;  %v10514_v56 = vld [vmem:[%s11052_s22 + $0x6c] sm:$0xff] }
 0x156   : > { %v3384_v49 = vadd.f32 %v3383_v14, %v3295_v48  ;;  %3540 = vmatmul.bf16.gmra.mxu3 %v10497_v43  ;;  %3629 = vmatmul.bf16.gmra.mxu0 %v2373_v13  ;;  %v1429_v13 = vsel %vm11117_vm4, %v1427_v28, %v1428_v38  ;;  %v2413_v48 = vunpack.c.l.b16 %v1426_v21 }
 0x157   : > { %v2414_v14 = vunpack.c.l.b16 %v1429_v13  ;;  %v1150_v32 = vrot.slane %v1148_v44, 4  ;;  %v1432_v44 = vrot.slane %v11956_v37, 5  ;;  %v11990_v13 = vld [vmem:[%s11052_s22 + $0x78] sm:$0xf] }
 0x158   : > { %3807 = vmatmul.bf16.gmra.mxu2 %v10513_v3  ;;  %3718 = vmatmul.bf16.gmra.mxu1 %v2437_v34  ;;  %v2350_v3 = vunpack.c.l.b16 %v1133_v6  ;;  %v1137_v34 = vrot.slane %v1135_v39, 4 }
 0x159   : > { %v3492_v2 = vpop.f32.mrf.mxu3  ;;  %v2438_v39 = vpack.c.b16 %v2414_v14, %v2413_v48  ;;  %v1159_v14 = vshrl.u32 %v11990_v13, 16 }
 0x15a   : > { %v11959_v46 = vadd.f32 %v3492_v2, %v11799_v12  ;;  %v2374_v28 = vpack.c.b16 %v2350_v3, %v2349_v54  ;;  %v1141_v38 = vor.u32 %v1140_v20, %v1137_v34  ;;  %v9310_v54 = vrot.slane %v11952_v10, 9  ;;  %v11994_v34 = vld [vmem:[%s11052_s22 + $0x7c] sm:$0xf] }
 0x15b   : > { %v3472_v4 = vpop.f32.mrf.mxu2  ;;  %v3296_v22 = vpop.f32.mrf.mxu0  ;;  %v1435_v3 = vrot.slane %v9280_v7, 5 }
 0x15c   : > { %v11965_v33 = vadd.f32 %v3472_v4, %v3384_v49  ;;  %v3297_v12 = vadd.f32 %v11893_v50, %v3296_v22  ;;  %v1146_v49 = vrot.slane %v1144_v45, 5  ;;  %v1154_v22 = vshll.u32 %v9280_v7, 16 }
 0x15d   : > { %v3385_v43 = vpop.f32.mrf.mxu1  ;;  %v1168_v7 = vshll.u32 %v11994_v34, 16 }
 0x15e   : > { %v3386_v16 = vadd.f32 %v3385_v43, %v3297_v12  ;;  %v1151_v60 = vor.u32 %v1150_v32, %v1146_v49  ;;  %v1156_v21 = vrot.slane %v1154_v22, 5  ;;  %v1162_v32 = vshll.u32 %v11990_v13, 16 }
 0x160   : > { %v1152_v43 = vrot.slane %v1151_v60, 4  ;;  %v1161_v60 = vrot.slane %v1159_v14, 4  ;;  %v1164_v22 = vrot.slane %v1162_v32, 5 }
 0x161   : > { %v3494_v51 = vpop.f32.mrf.mxu3 }
 0x162   : > { %v11981_v57 = vadd.f32 %v3494_v51, %v11822_v53  ;;  %v1142_v53 = vrot.slane %v1141_v38, 4  ;;  %v1157_v10 = vsel %vm11126_vm5, %v1152_v43, %v1156_v21  ;;  %v9283_v43 = vld [vmem:[%s11052_s22 + $0x80] sm:$0x1] }
 0x163   : > { %v3474_v19 = vpop.f32.mrf.mxu2  ;;  %v3299_v4 = vpop.f32.mrf.mxu0 }
 0x164   : > { %v11984_v2 = vadd.f32 %v3474_v19, %v3386_v16  ;;  %v3300_v6 = vadd.f32 %v11893_v50, %v3299_v4  ;;  %v1434_v16 = vrot.slane %v1432_v44, 4  ;;  %v1147_v48 = vsel %vm11126_vm5, %v1142_v53, %v1146_v49 }
 0x165   : > { %v3388_v45 = vpop.f32.mrf.mxu1  ;;  %v1433_v49 = vsel %vm11117_vm4, %v9310_v54, %v1432_v44  ;;  %v2351_v4 = vunpack.c.l.b16 %v1147_v48  ;;  %v10499_v44 = vld [vmem:[%s11052_s22 + $0x6c] sm:$0xff]  ;;  %v10515_v48 = vld [vmem:[%s11052_s22 + $0x78] sm:$0xff] }
 0x166   : > { %v3389_v12 = vadd.f32 %v3388_v45, %v3300_v6  ;;  %3545 = vmatmul.bf16.gmra.mxu3 %v10498_v18  ;;  %3634 = vmatmul.bf16.gmra.mxu0 %v2374_v28  ;;  %v1172_v18 = vshrl.u32 %v11994_v34, 16  ;;  %v1436_v38 = vsel %vm11117_vm4, %v1434_v16, %v1435_v3  ;;  %v2415_v6 = vunpack.c.l.b16 %v1433_v49 }
 0x167   : > { %v2416_v45 = vunpack.c.l.b16 %v1436_v38  ;;  %v12027_v38 = vld [vmem:[%s11052_s22 + $0x84] sm:$0xf] }
 0x168   : > { %3812 = vmatmul.bf16.gmra.mxu2 %v10514_v56  ;;  %3723 = vmatmul.bf16.gmra.mxu1 %v2438_v39  ;;  %v2352_v39 = vunpack.c.l.b16 %v1157_v10  ;;  %v1174_v53 = vrot.slane %v1172_v18, 4 }
 0x169   : > { %v3497_v20 = vpop.f32.mrf.mxu3  ;;  %v2439_v14 = vpack.c.b16 %v2416_v45, %v2415_v6 }
 0x16a   : > { %v11997_v37 = vadd.f32 %v3497_v20, %v11839_v61  ;;  %v2375_v54 = vpack.c.b16 %v2352_v39, %v2351_v4  ;;  %v9311_v4 = vrot.slane %v11990_v13, 9  ;;  %v1442_v39 = vrot.slane %v9283_v43, 5 }
 0x16b   : > { %v3477_v11 = vpop.f32.mrf.mxu2  ;;  %v3301_v19 = vpop.f32.mrf.mxu0 }
 0x16c   : > { %v12003_v51 = vadd.f32 %v3477_v11, %v3389_v12  ;;  %v3302_v61 = vadd.f32 %v11893_v50, %v3301_v19  ;;  %v1170_v12 = vrot.slane %v1168_v7, 5  ;;  %v1165_v11 = vor.u32 %v1164_v22, %v1161_v60  ;;  %v12031_v60 = vld [vmem:[%s11052_s22 + $0x88] sm:$0xf] }
 0x16d   : > { %v3390_v28 = vpop.f32.mrf.mxu1  ;;  %v1178_v19 = vshll.u32 %v9283_v43, 16  ;;  %v1439_v7 = vrot.slane %v11994_v34, 5  ;;  %v1192_v43 = vshll.u32 %v12031_v60, 16 }
 0x16e   : > { %v3391_v56 = vadd.f32 %v3390_v28, %v3302_v61  ;;  %v1175_v32 = vor.u32 %v1174_v53, %v1170_v12  ;;  %v1166_v18 = vrot.slane %v1165_v11, 4  ;;  %v10658_v61 = vld [vmem:[#allocation3 + $0x78] sm:$0xff]  ;;  %v1183_v53 = vshrl.u32 %v12027_v38, 16 }
 0x16f   : > { %v1180_v49 = vrot.slane %v1178_v19, 5  ;;  %7679 = vmatpush.bf16.msra.mxu2 %v10658_v61 }
 0x170   : > { %v1176_v28 = vrot.slane %v1175_v32, 4  ;;  %v1171_v45 = vsel %vm11126_vm5, %v1166_v18, %v1170_v12  ;;  %v1185_v18 = vrot.slane %v1183_v53, 4 }
 0x171   : > { %v3499_v50 = vpop.f32.mrf.mxu3 }
 0x172   : > { %v12016_v20 = vadd.f32 %v3499_v50, %v11859_v59  ;;  %v10581_v59 = vld [vmem:[%s15345_s1 + $0x1d0] sm:$0xff]  ;;  %v1186_v50 = vshll.u32 %v12027_v38, 16  ;;  %v1181_v13 = vsel %vm11126_vm5, %v1176_v28, %v1180_v49  ;;  %v1194_v49 = vrot.slane %v1192_v43, 5 }
 0x173   : > { %v3479_v21 = vpop.f32.mrf.mxu2  ;;  %v3600_v3 = vpop.f32.mrf.mxu0  ;;  %3863 = vmatpush.bf16.msra.mxu3 %v10581_v59  ;;  %v2354_v19 = vunpack.c.l.b16 %v1181_v13  ;;  %v10516_v13 = vld [vmem:[%s11052_s22 + $0x84] sm:$0xff] }
 0x174   : > { %v12019_v16 = vadd.f32 %v3479_v21, %v3391_v56  ;;  %v1441_v56 = vrot.slane %v1439_v7, 4  ;;  %v1188_v59 = vrot.slane %v1186_v50, 5 }
 0x175   : > { %v3689_v10 = vpop.f32.mrf.mxu1 }
 0x176   : > { %3550 = vmatmul.bf16.gmra.mxu3 %v10499_v44  ;;  %3639 = vmatmul.bf16.gmra.mxu0 %v2375_v54  ;;  %v1196_v44 = vshrl.u32 %v12031_v60, 16  ;;  %v10650_v54 = vld [vmem:[#allocation3 + $0x38] sm:$0xff]  ;;  %v1443_v12 = vsel %vm11117_vm4, %v1441_v56, %v1442_v39  ;;  %v1189_v53 = vor.u32 %v1188_v59, %v1185_v18  ;;  %v9312_v59 = vrot.slane %v12027_v38, 9 }
 0x177   : > { %7590 = vmatpush.bf16.msra.mxu1 %v10650_v54  ;;  %v2418_v28 = vunpack.c.l.b16 %v1443_v12 }
 0x178   : > { %3817 = vmatmul.bf16.gmra.mxu2 %v10515_v48  ;;  %3728 = vmatmul.bf16.gmra.mxu1 %v2439_v14  ;;  %v1440_v48 = vsel %vm11117_vm4, %v9311_v4, %v1439_v7  ;;  %v2353_v14 = vunpack.c.l.b16 %v1171_v45  ;;  %v9286_v4 = vld [vmem:[%s11052_s22 + $0x8c] sm:$0x1] }
 0x179   : > { %v3511_v34 = vpop.f32.mrf.mxu3  ;;  %v2417_v61 = vunpack.c.l.b16 %v1440_v48  ;;  %v1202_v48 = vshll.u32 %v9286_v4, 16 }
 0x17a   : > { %v3512_v22 = vadd.f32 %v3511_v34, %v11506_v63  ;;  %v1198_v34 = vrot.slane %v1196_v44, 4 }
 0x17b   : > { %v3778_v6 = vpop.f32.mrf.mxu2  ;;  %v3602_v21 = vpop.f32.mrf.mxu0  ;;  %v2440_v54 = vpack.c.b16 %v2418_v28, %v2417_v61  ;;  %v12063_v61 = vld [vmem:[%s11052_s22 + $0x94] sm:$0xf] }
 0x17c   : > { %v3601_v11 = vadd.f32 %v3600_v3, %v3512_v22  ;;  %v10589_v3 = vld [vmem:[%s15345_s1 + $0x210] sm:$0xff]  ;;  %v2376_v22 = vpack.c.b16 %v2354_v19, %v2353_v14  ;;  %v1204_v14 = vrot.slane %v1202_v48, 5  ;;  %v1216_v38 = vshll.u32 %v12063_v61, 16 }
 0x17d   : > { %v3691_v63 = vpop.f32.mrf.mxu1  ;;  %3952 = vmatpush.bf16.msra.mxu0 %v10589_v3  ;;  %v12057_v19 = vld [vmem:[%s11052_s22 + $0x90] sm:$0xf] }
 0x17e   : > { %v3690_v32 = vadd.f32 %v3689_v10, %v3601_v11  ;;  %v10500_v10 = vld [vmem:[%s11052_s22 + $0x78] sm:$0xff]  ;;  %v1199_v11 = vor.u32 %v1198_v34, %v1194_v49 }
 0x180   : > { %v12049_v7 = vadd.f32 %v3778_v6, %v3690_v32  ;;  %v1446_v6 = vrot.slane %v12031_v60, 5  ;;  %v1190_v32 = vrot.slane %v1189_v53, 4 }
 0x181   : > { %v3513_v56 = vpop.f32.mrf.mxu3 }
 0x182   : > { %15365 = vst [vmem:[#allocation10_spill] sm:$0xff] %v12049_v7  ;;  %v3514_v39 = vadd.f32 %v3513_v56, %v11534_v0  ;;  %v1200_v0 = vrot.slane %v1199_v11, 4  ;;  %v1448_v3 = vrot.slane %v1446_v6, 4  ;;  %v1195_v34 = vsel %vm11126_vm5, %v1190_v32, %v1194_v49 }
 0x183   : > { %v3780_v45 = vpop.f32.mrf.mxu2  ;;  %v3605_v50 = vpop.f32.mrf.mxu0  ;;  %v1207_v56 = vshrl.u32 %v12057_v19, 16 }
 0x184   : > { %v3603_v12 = vadd.f32 %v3602_v21, %v3514_v39  ;;  %v1449_v21 = vrot.slane %v9286_v4, 5  ;;  %v1210_v39 = vshll.u32 %v12057_v19, 16  ;;  %v1220_v4 = vshrl.u32 %v12063_v61, 16 }
 0x185   : > { %v3694_v43 = vpop.f32.mrf.mxu1  ;;  %v1209_v48 = vrot.slane %v1207_v56, 4 }
 0x186   : > { %v3692_v44 = vadd.f32 %v3691_v63, %v3603_v12  ;;  %3555 = vmatmul.bf16.gmra.mxu3 %v10500_v10  ;;  %3644 = vmatmul.bf16.gmra.mxu0 %v2376_v22  ;;  %v1205_v22 = vsel %vm11126_vm5, %v1200_v0, %v1204_v14  ;;  %v1450_v49 = vsel %vm11117_vm4, %v1448_v3, %v1449_v21  ;;  %v1212_v12 = vrot.slane %v1210_v39, 5 }
 0x187   : > { %v2356_v11 = vunpack.c.l.b16 %v1205_v22  ;;  %v2420_v32 = vunpack.c.l.b16 %v1450_v49  ;;  %v1218_v0 = vrot.slane %v1216_v38, 5  ;;  %v1222_v14 = vrot.slane %v1220_v4, 4 }
 0x188   : > { %3822 = vmatmul.bf16.gmra.mxu2 %v10516_v13  ;;  %3733 = vmatmul.bf16.gmra.mxu1 %v2440_v54  ;;  %v12059_v18 = vadd.f32 %v3780_v45, %v3692_v44  ;;  %v2355_v13 = vunpack.c.l.b16 %v1195_v34  ;;  %v1213_v3 = vor.u32 %v1212_v12, %v1209_v48  ;;  %v1453_v38 = vrot.slane %v12063_v61, 5 }
 0x189   : > { %v3516_v28 = vpop.f32.mrf.mxu3  ;;  %v1223_v56 = vor.u32 %v1222_v14, %v1218_v0  ;;  %v9313_v61 = vrot.slane %v12057_v19, 9 }
 0x18a   : > { %15366 = vst [vmem:[#allocation11_spill] sm:$0xff] %v12059_v18  ;;  %v3517_v60 = vadd.f32 %v3516_v28, %v11575_v40  ;;  %v1447_v40 = vsel %vm11117_vm4, %v9312_v59, %v1446_v6  ;;  %v10501_v6 = vld [vmem:[%s11052_s22 + $0x84] sm:$0xff]  ;;  %v2377_v59 = vpack.c.b16 %v2356_v11, %v2355_v13  ;;  %v1214_v4 = vrot.slane %v1213_v3, 4  ;;  %v12095_v11 = vld [vmem:[%s11052_s22 + $0xa0] sm:$0xf] }
 0x18b   : > { %v3783_v63 = vpop.f32.mrf.mxu2  ;;  %v3607_v10 = vpop.f32.mrf.mxu0  ;;  %v2419_v44 = vunpack.c.l.b16 %v1447_v40  ;;  %v10657_v40 = vld [vmem:[#allocation3 + $0x70] sm:$0xff]  ;;  %v1224_v49 = vrot.slane %v1223_v56, 4 }
 0x18c   : > { %v3606_v45 = vadd.f32 %v3605_v50, %v3517_v60  ;;  %v9289_v50 = vld [vmem:[%s11052_s22 + $0x98] sm:$0x1]  ;;  %7680 = vmatpush.bf16.msra.mxu2 %v10657_v40 }
 0x18d   : > { %v3696_v53 = vpop.f32.mrf.mxu1  ;;  %v2441_v34 = vpack.c.b16 %v2420_v32, %v2419_v44  ;;  %v1226_v39 = vshll.u32 %v9289_v50, 16  ;;  %v1219_v32 = vsel %vm11126_vm5, %v1214_v4, %v1218_v0 }
 0x18e   : > { %v3695_v54 = vadd.f32 %v3694_v43, %v3606_v45  ;;  %v10517_v43 = vld [vmem:[%s11052_s22 + $0x90] sm:$0xff] }
 0x18f   : > { %v1228_v13 = vrot.slane %v1226_v39, 5 }
 0x190   : > { %v12078_v28 = vadd.f32 %v3783_v63, %v3695_v54  ;;  %v12089_v54 = vld [vmem:[%s11052_s22 + $0x9c] sm:$0xf] }
 0x191   : > { %v3518_v60 = vpop.f32.mrf.mxu3  ;;  %v1231_v14 = vshrl.u32 %v12089_v54, 16  ;;  %v1229_v19 = vsel %vm11126_vm5, %v1224_v49, %v1228_v13  ;;  %v9292_v13 = vld [vmem:[%s11052_s22 + $0xa4] sm:$0x1] }
 0x192   : > { %v3519_v18 = vadd.f32 %v3518_v60, %v11609_v35  ;;  %v10580_v35 = vld [vmem:[%s15345_s1 + $0x1c8] sm:$0xff]  ;;  %v2358_v39 = vunpack.c.l.b16 %v1229_v19 }
 0x193   : > { %v3785_v7 = vpop.f32.mrf.mxu2  ;;  %v3610_v21 = vpop.f32.mrf.mxu0  ;;  %3864 = vmatpush.bf16.msra.mxu3 %v10580_v35 }
 0x194   : > { %v3608_v22 = vadd.f32 %v3607_v10, %v3519_v18  ;;  %v1455_v10 = vrot.slane %v1453_v38, 4 }
 0x195   : > { %v3699_v45 = vpop.f32.mrf.mxu1 }
 0x196   : > { %v3697_v63 = vadd.f32 %v3696_v53, %v3608_v22  ;;  %3560 = vmatmul.bf16.gmra.mxu3 %v10501_v6  ;;  %3649 = vmatmul.bf16.gmra.mxu0 %v2377_v59  ;;  %v1456_v53 = vrot.slane %v9289_v50, 5  ;;  %v1240_v50 = vshll.u32 %v12095_v11, 16  ;;  %v1244_v6 = vshrl.u32 %v12095_v11, 16  ;;  %v10649_v59 = vld [vmem:[#allocation3 + $0x30] sm:$0xff] }
 0x197   : > { %7591 = vmatpush.bf16.msra.mxu1 %v10649_v59  ;;  %v1233_v22 = vrot.slane %v1231_v14, 4  ;;  %v10518_v14 = vld [vmem:[%s11052_s22 + $0x9c] sm:$0xff]  ;;  %v1250_v59 = vshll.u32 %v9292_v13, 16 }
 0x198   : > { %3827 = vmatmul.bf16.gmra.mxu2 %v10517_v43  ;;  %3738 = vmatmul.bf16.gmra.mxu1 %v2441_v34  ;;  %v12091_v18 = vadd.f32 %v3785_v7, %v3697_v63  ;;  %v1234_v7 = vshll.u32 %v12089_v54, 16  ;;  %v1454_v43 = vsel %vm11117_vm4, %v9313_v61, %v1453_v38  ;;  %v1457_v0 = vsel %vm11117_vm4, %v1455_v10, %v1456_v53 }
 0x199   : > { %v3521_v48 = vpop.f32.mrf.mxu3  ;;  %v2357_v34 = vunpack.c.l.b16 %v1219_v32  ;;  %v2421_v4 = vunpack.c.l.b16 %v1454_v43  ;;  %v2422_v35 = vunpack.c.l.b16 %v1457_v0  ;;  %v1242_v40 = vrot.slane %v1240_v50, 5 }
 0x19a   : > { %v3522_v12 = vadd.f32 %v3521_v48, %v11648_v31  ;;  %v1236_v63 = vrot.slane %v1234_v7, 5  ;;  %v1246_v49 = vrot.slane %v1244_v6, 4  ;;  %v1252_v0 = vrot.slane %v1250_v59, 5 }
 0x19b   : > { %v3788_v44 = vpop.f32.mrf.mxu2  ;;  %v3612_v60 = vpop.f32.mrf.mxu0  ;;  %v2378_v53 = vpack.c.b16 %v2358_v39, %v2357_v34  ;;  %v2442_v7 = vpack.c.b16 %v2422_v35, %v2421_v4  ;;  %v12121_v34 = vld [vmem:[%s11052_s22 + $0xa8] sm:$0xf]  ;;  %v9314_v39 = vrot.slane %v12089_v54, 9 }
 0x19c   : > { %v3611_v3 = vadd.f32 %v3610_v21, %v3522_v12  ;;  %v10588_v21 = vld [vmem:[%s15345_s1 + $0x208] sm:$0xff]  ;;  %v1237_v12 = vor.u32 %v1236_v63, %v1233_v22  ;;  %v1247_v19 = vor.u32 %v1246_v49, %v1242_v40  ;;  %v1255_v35 = vshrl.u32 %v12121_v34, 16 }
 0x19d   : > { %v3701_v31 = vpop.f32.mrf.mxu1  ;;  %3953 = vmatpush.bf16.msra.mxu0 %v10588_v21  ;;  %v12127_v63 = vld [vmem:[%s11052_s22 + $0xac] sm:$0xf]  ;;  %v1258_v49 = vshll.u32 %v12121_v34, 16 }
 0x19e   : > { %v3700_v56 = vadd.f32 %v3699_v45, %v3611_v3  ;;  %v10502_v45 = vld [vmem:[%s11052_s22 + $0x90] sm:$0xff]  ;;  %v1238_v43 = vrot.slane %v1237_v12, 4  ;;  %v1264_v54 = vshll.u32 %v12127_v63, 16 }
 0x1a0   : > { %v12113_v38 = vadd.f32 %v3788_v44, %v3700_v56  ;;  %v1460_v44 = vrot.slane %v12095_v11, 5  ;;  %v1243_v4 = vsel %vm11126_vm5, %v1238_v43, %v1242_v40 }
 0x1a1   : > { %v3523_v61 = vpop.f32.mrf.mxu3 }
 0x1a2   : > { %v3524_v10 = vadd.f32 %v3523_v61, %v11670_v24  ;;  %v1248_v24 = vrot.slane %v1247_v19, 4  ;;  %v1462_v22 = vrot.slane %v1460_v44, 4  ;;  %v1260_v19 = vrot.slane %v1258_v49, 5 }
 0x1a3   : > { %v3790_v48 = vpop.f32.mrf.mxu2  ;;  %v3615_v32 = vpop.f32.mrf.mxu0 }
 0x1a4   : > { %v3613_v3 = vadd.f32 %v3612_v60, %v3524_v10  ;;  %v1463_v60 = vrot.slane %v9292_v13, 5  ;;  %v1253_v10 = vsel %vm11126_vm5, %v1248_v24, %v1252_v0  ;;  %v1268_v13 = vshrl.u32 %v12127_v63, 16 }
 0x1a5   : > { %v3704_v50 = vpop.f32.mrf.mxu1 }
 0x1a6   : > { %v3702_v6 = vadd.f32 %v3701_v31, %v3613_v3  ;;  %3565 = vmatmul.bf16.gmra.mxu3 %v10502_v45  ;;  %3654 = vmatmul.bf16.gmra.mxu0 %v2378_v53  ;;  %v1464_v40 = vsel %vm11117_vm4, %v1462_v22, %v1463_v60  ;;  %v1270_v43 = vrot.slane %v1268_v13, 4 }
 0x1a7   : > { %v2424_v3 = vunpack.c.l.b16 %v1464_v40  ;;  %v10656_v40 = vld [vmem:[#allocation3 + $0x68] sm:$0xff] }
 0x1a8   : > { %3832 = vmatmul.bf16.gmra.mxu2 %v10518_v14  ;;  %3743 = vmatmul.bf16.gmra.mxu1 %v2442_v7  ;;  %v12123_v56 = vadd.f32 %v3790_v48, %v3702_v6  ;;  %v2359_v48 = vunpack.c.l.b16 %v1243_v4  ;;  %v2360_v14 = vunpack.c.l.b16 %v1253_v10  ;;  %v1257_v7 = vrot.slane %v1255_v35, 4 }
 0x1a9   : > { %v3526_v21 = vpop.f32.mrf.mxu3  ;;  %v1266_v6 = vrot.slane %v1264_v54, 5  ;;  %7681 = vmatpush.bf16.msra.mxu2 %v10656_v40 }
 0x1aa   : > { %v3527_v11 = vadd.f32 %v3526_v21, %v11687_v52  ;;  %v1461_v52 = vsel %vm11117_vm4, %v9314_v39, %v1460_v44  ;;  %v10503_v44 = vld [vmem:[%s11052_s22 + $0x9c] sm:$0xff]  ;;  %v2379_v39 = vpack.c.b16 %v2360_v14, %v2359_v48  ;;  %v1261_v60 = vor.u32 %v1260_v19, %v1257_v7  ;;  %v12156_v14 = vld [vmem:[%s11052_s22 + $0xb8] sm:$0xf] }
 0x1ab   : > { %v3793_v31 = vpop.f32.mrf.mxu2  ;;  %v3617_v61 = vpop.f32.mrf.mxu0  ;;  %v2423_v59 = vunpack.c.l.b16 %v1461_v52  ;;  %v1271_v35 = vor.u32 %v1270_v43, %v1266_v6  ;;  %v10579_v52 = vld [vmem:[%s15345_s1 + $0x1c0] sm:$0xff] }
 0x1ac   : > { %v3616_v45 = vadd.f32 %v3615_v32, %v3527_v11  ;;  %v9295_v32 = vld [vmem:[%s11052_s22 + $0xb0] sm:$0x1]  ;;  %v10519_v11 = vld [vmem:[%s11052_s22 + $0xa8] sm:$0xff]  ;;  %3865 = vmatpush.bf16.msra.mxu3 %v10579_v52 }
 0x1ad   : > { %v3706_v53 = vpop.f32.mrf.mxu1  ;;  %v2443_v4 = vpack.c.b16 %v2424_v3, %v2423_v59  ;;  %v1274_v49 = vshll.u32 %v9295_v32, 16  ;;  %v1272_v48 = vrot.slane %v1271_v35, 4  ;;  %v1470_v7 = vrot.slane %v9295_v32, 5 }
 0x1ae   : > { %v3705_v12 = vadd.f32 %v3704_v50, %v3616_v45  ;;  %v1262_v45 = vrot.slane %v1261_v60, 4 }
 0x1b0   : > { %v12142_v24 = vadd.f32 %v3793_v31, %v3705_v12  ;;  %v1467_v31 = vrot.slane %v12127_v63, 5  ;;  %v1276_v12 = vrot.slane %v1274_v49, 5  ;;  %v9315_v63 = vrot.slane %v12121_v34, 9 }
 0x1b1   : > { %v3528_v0 = vpop.f32.mrf.mxu3 }
 0x1b2   : > { %v3529_v21 = vadd.f32 %v3528_v0, %v11702_v29  ;;  %v12150_v29 = vld [vmem:[%s11052_s22 + $0xb4] sm:$0xf]  ;;  %v1277_v32 = vsel %vm11126_vm5, %v1272_v48, %v1276_v12 }
 0x1b3   : > { %v3795_v22 = vpop.f32.mrf.mxu2  ;;  %v3620_v50 = vpop.f32.mrf.mxu0  ;;  %v1279_v59 = vshrl.u32 %v12150_v29, 16  ;;  %v1282_v3 = vshll.u32 %v12150_v29, 16 }
 0x1b4   : > { %v3618_v10 = vadd.f32 %v3617_v61, %v3529_v21  ;;  %v1267_v21 = vsel %vm11126_vm5, %v1262_v45, %v1266_v6 }
 0x1b5   : > { %v3709_v54 = vpop.f32.mrf.mxu1  ;;  %v2361_v6 = vunpack.c.l.b16 %v1267_v21  ;;  %v1281_v35 = vrot.slane %v1279_v59, 4  ;;  %v1284_v49 = vrot.slane %v1282_v3, 5 }
 0x1b6   : > { %v3707_v13 = vadd.f32 %v3706_v53, %v3618_v10  ;;  %3570 = vmatmul.bf16.gmra.mxu3 %v10503_v44  ;;  %3659 = vmatmul.bf16.gmra.mxu0 %v2379_v39  ;;  %v1469_v53 = vrot.slane %v1467_v31, 4  ;;  %v1288_v44 = vshll.u32 %v12156_v14, 16  ;;  %v1292_v39 = vshrl.u32 %v12156_v14, 16 }
 0x1b8   : > { %3837 = vmatmul.bf16.gmra.mxu2 %v10519_v11  ;;  %3748 = vmatmul.bf16.gmra.mxu1 %v2443_v4  ;;  %v12158_v61 = vadd.f32 %v3795_v22, %v3707_v13  ;;  %v10648_v22 = vld [vmem:[#allocation3 + $0x28] sm:$0xff]  ;;  %v1471_v4 = vsel %vm11117_vm4, %v1469_v53, %v1470_v7  ;;  %v2362_v13 = vunpack.c.l.b16 %v1277_v32  ;;  %v1290_v45 = vrot.slane %v1288_v44, 5  ;;  %v10520_v44 = vld [vmem:[%s11052_s22 + $0xb4] sm:$0xff] }
 0x1b9   : > { %v3531_v19 = vpop.f32.mrf.mxu3  ;;  %7592 = vmatpush.bf16.msra.mxu1 %v10648_v22  ;;  %v1294_v52 = vrot.slane %v1292_v39, 4  ;;  %v2426_v48 = vunpack.c.l.b16 %v1471_v4  ;;  %v1285_v53 = vor.u32 %v1284_v49, %v1281_v35  ;;  %v1474_v32 = vrot.slane %v12156_v14, 5  ;;  %v12192_v49 = vld [vmem:[%s11052_s22 + $0xc0] sm:$0xf] }
 0x1ba   : > { %v3532_v43 = vadd.f32 %v3531_v19, %v11725_v55  ;;  %v1468_v55 = vsel %vm11117_vm4, %v9315_v63, %v1467_v31  ;;  %v9298_v31 = vld [vmem:[%s11052_s22 + $0xbc] sm:$0x1]  ;;  %v10504_v19 = vld [vmem:[%s11052_s22 + $0xa8] sm:$0xff]  ;;  %v9316_v4 = vrot.slane %v12150_v29, 9  ;;  %v1306_v29 = vshll.u32 %v12192_v49, 16 }
 0x1bb   : > { %v3798_v0 = vpop.f32.mrf.mxu2  ;;  %v3622_v34 = vpop.f32.mrf.mxu0  ;;  %v2425_v40 = vunpack.c.l.b16 %v1468_v55  ;;  %v1295_v3 = vor.u32 %v1294_v52, %v1290_v45  ;;  %v1477_v35 = vrot.slane %v9298_v31, 5 }
 0x1bc   : > { %v3621_v60 = vadd.f32 %v3620_v50, %v3532_v43  ;;  %v10587_v50 = vld [vmem:[%s15345_s1 + $0x200] sm:$0xff]  ;;  %v1298_v43 = vshll.u32 %v9298_v31, 16  ;;  %v1475_v31 = vsel %vm11117_vm4, %v9316_v4, %v1474_v32  ;;  %v9301_v4 = vld [vmem:[%s11052_s22 + $0xc8] sm:$0x1] }
 0x1bd   : > { %v12170_v11 = vpop.f32.mrf.mxu1  ;;  %3954 = vmatpush.bf16.msra.mxu0 %v10587_v50  ;;  %v2444_v39 = vpack.c.b16 %v2426_v48, %v2425_v40  ;;  %v1303_v40 = vshrl.u32 %v12192_v49, 16 }
 0x1be   : > { %v3710_v10 = vadd.f32 %v3709_v54, %v3621_v60  ;;  %v2380_v54 = vpack.c.b16 %v2362_v13, %v2361_v6  ;;  %v1286_v60 = vrot.slane %v1285_v53, 4  ;;  %v1300_v55 = vrot.slane %v1298_v43, 5 }
 0x1bf   : > { %v1476_v6 = vrot.slane %v1474_v32, 4  ;;  %v2427_v43 = vunpack.c.l.b16 %v1475_v31  ;;  %v1308_v32 = vrot.slane %v1306_v29, 5 }
 0x1c0   : > { %v12180_v12 = vadd.f32 %v3798_v0, %v3710_v10  ;;  %v12195_v10 = vld [vmem:[%s11052_s22 + $0xc4] sm:$0xf]  ;;  %v1291_v14 = vsel %vm11126_vm5, %v1286_v60, %v1290_v45 }
 0x1c1   : > { %v3533_v63 = vpop.f32.mrf.mxu3  ;;  %v1312_v45 = vshll.u32 %v12195_v10, 16 }
 0x1c2   : > { %v3534_v7 = vadd.f32 %v3533_v63, %v11745_v15  ;;  %v1296_v15 = vrot.slane %v1295_v3, 4  ;;  %v1478_v63 = vsel %vm11117_vm4, %v1476_v6, %v1477_v35 }
 0x1c3   : > { %v12184_v59 = vpop.f32.mrf.mxu2  ;;  %v3625_v21 = vpop.f32.mrf.mxu0  ;;  %v1314_v60 = vrot.slane %v1312_v45, 5  ;;  %v1481_v45 = vrot.slane %v12195_v10, 5 }
 0x1c4   : > { %v12188_v0 = vadd.f32 %v3622_v34, %v3534_v7  ;;  %v1301_v50 = vsel %vm11126_vm5, %v1296_v15, %v1300_v55 }
 0x1c5   : > { %v3714_v22 = vpop.f32.mrf.mxu1  ;;  %v2364_v3 = vunpack.c.l.b16 %v1301_v50 }
 0x1c6   : > { %3575 = vmatmul.bf16.gmra.mxu3 %v10504_v19  ;;  %3664 = vmatmul.bf16.gmra.mxu0 %v2380_v54  ;;  %v2363_v19 = vunpack.c.l.b16 %v1291_v14  ;;  %v10521_v14 = vld [vmem:[%s11052_s22 + $0xc0] sm:$0xff] }
 0x1c8   : > { %3842 = vmatmul.bf16.gmra.mxu2 %v10520_v44  ;;  %3753 = vmatmul.bf16.gmra.mxu1 %v2444_v39  ;;  %v2428_v44 = vunpack.c.l.b16 %v1478_v63  ;;  %v1305_v39 = vrot.slane %v1303_v40, 4  ;;  %v1322_v40 = vshll.u32 %v9301_v4, 16 }
 0x1c9   : > { %v3536_v13 = vpop.f32.mrf.mxu3 }
 0x1ca   : > { %v3537_v34 = vadd.f32 %v3536_v13, %v11765_v9  ;;  %v1316_v9 = vshrl.u32 %v12195_v10, 16  ;;  %v2381_v13 = vpack.c.b16 %v2364_v3, %v2363_v19  ;;  %v2445_v50 = vpack.c.b16 %v2428_v44, %v2427_v43 }
 0x1cb   : > { %v3803_v52 = vpop.f32.mrf.mxu2  ;;  %v3627_v48 = vpop.f32.mrf.mxu0  ;;  %v1309_v31 = vor.u32 %v1308_v32, %v1305_v39  ;;  %v9317_v3 = vrot.slane %v12192_v49, 9  ;;  %v1483_v43 = vrot.slane %v1481_v45, 4  ;;  %v1484_v44 = vrot.slane %v9301_v4, 5  ;;  %v9319_v39 = vld [vmem:[%s11052_s22 + $0x1c] sm:$0xf] }
 0x1cc   : > { %v3626_v53 = vadd.f32 %v3625_v21, %v3537_v34  ;;  %v1318_v15 = vrot.slane %v1316_v9, 4  ;;  %v10505_v21 = vld [vmem:[%s11052_s22 + $0xb4] sm:$0xff]  ;;  %v1545_v49 = vshll.u32 %v9319_v39, 16 }
 0x1cd   : > { %v12210_v7 = vpop.f32.mrf.mxu1  ;;  %v12224_v9 = vld [vmem:[%s11052_s22 + $0x18] sm:$0xf] }
 0x1ce   : > { %v3715_v54 = vadd.f32 %v3714_v22, %v3626_v53  ;;  %v1319_v63 = vor.u32 %v1318_v15, %v1314_v60  ;;  %v1310_v53 = vrot.slane %v1309_v31, 4  ;;  %v1536_v32 = vshrl.u32 %v12224_v9, 16  ;;  %v10647_v4 = vld [vmem:[#allocation3 + $0x20] sm:$0xff] }
 0x1cf   : > { %v1539_v10 = vshll.u32 %v12224_v9, 16  ;;  %7593 = vmatpush.bf16.msra.mxu1 %v10647_v4 }
 0x1d0   : > { %v12212_v55 = vadd.f32 %v3803_v52, %v3715_v54  ;;  %v1320_v19 = vrot.slane %v1319_v63, 4  ;;  %v1324_v54 = vrot.slane %v1322_v40, 5  ;;  %v1482_v63 = vsel %vm11117_vm4, %v9317_v3, %v1481_v45 }
 0x1d1   : > { %v3538_v6 = vpop.f32.mrf.mxu3  ;;  %v1538_v40 = vrot.slane %v1536_v32, 4 }
 0x1d2   : > { %15367 = vst [vmem:[#allocation12_spill] sm:$0xff] %v12212_v55  ;;  %v3539_v35 = vadd.f32 %v3538_v6, %v11782_v8  ;;  %v10655_v8 = vld [vmem:[#allocation3 + $0x60] sm:$0xff]  ;;  %v1547_v55 = vrot.slane %v1545_v49, 5 }
 0x1d3   : > { %v12217_v34 = vpop.f32.mrf.mxu2  ;;  %v3630_v22 = vpop.f32.mrf.mxu0  ;;  %7682 = vmatpush.bf16.msra.mxu2 %v10655_v8  ;;  %v1541_v8 = vrot.slane %v1539_v10, 5 }
 0x1d4   : > { %15368 = vst [vmem:[#allocation13_spill] sm:$0xff] %v12217_v34  ;;  %v12220_v29 = vadd.f32 %v3627_v48, %v3539_v35 }
 0x1d5   : > { %v3719_v52 = vpop.f32.mrf.mxu1  ;;  %v1542_v45 = vor.u32 %v1541_v8, %v1538_v40  ;;  %v9322_v8 = vld [vmem:[%s11052_s22 + $0x28] sm:$0xf] }
 0x1d6   : > { %3580 = vmatmul.bf16.gmra.mxu3 %v10505_v21  ;;  %3669 = vmatmul.bf16.gmra.mxu0 %v2381_v13  ;;  %v1315_v21 = vsel %vm11126_vm5, %v1310_v53, %v1314_v60  ;;  %v1325_v13 = vsel %vm11126_vm5, %v1320_v19, %v1324_v54  ;;  %v2429_v54 = vunpack.c.l.b16 %v1482_v63  ;;  %v9366_v63 = vrot.slane %v12224_v9, 9 }
 0x1d7   : > { %v2365_v53 = vunpack.c.l.b16 %v1315_v21  ;;  %v2366_v19 = vunpack.c.l.b16 %v1325_v13  ;;  %v10522_v21 = vld [vmem:[%s11052_s22 + $0xcc] sm:$0xff] }
 0x1d8   : > { %3847 = vmatmul.bf16.gmra.mxu2 %v10521_v14  ;;  %3758 = vmatmul.bf16.gmra.mxu1 %v2445_v50  ;;  %v1549_v14 = vshrl.u32 %v9319_v39, 16 }
 0x1d9   : > { %v3541_v48 = vpop.f32.mrf.mxu3 }
 0x1da   : > { %v3542_v15 = vadd.f32 %v3541_v48, %v11805_v17  ;;  %v1485_v17 = vsel %vm11117_vm4, %v1483_v43, %v1484_v44  ;;  %v10506_v43 = vld [vmem:[%s11052_s22 + $0xc0] sm:$0xff]  ;;  %v2382_v44 = vpack.c.b16 %v2366_v19, %v2365_v53 }
 0x1db   : > { %v3808_v6 = vpop.f32.mrf.mxu2  ;;  %v3632_v35 = vpop.f32.mrf.mxu0  ;;  %v2430_v48 = vunpack.c.l.b16 %v1485_v17  ;;  %v9321_v17 = vld [vmem:[%s11052_s22 + $0x24] sm:$0xf] }
 0x1dc   : > { %v3631_v50 = vadd.f32 %v3630_v22, %v3542_v15  ;;  %v1551_v22 = vrot.slane %v1549_v14, 4  ;;  %v1560_v19 = vshrl.u32 %v9321_v17, 16 }
 0x1dd   : > { %v12235_v31 = vpop.f32.mrf.mxu1  ;;  %v2446_v13 = vpack.c.b16 %v2430_v48, %v2429_v54  ;;  %v1563_v54 = vshll.u32 %v9321_v17, 16 }
 0x1de   : > { %15369 = vst [vmem:[#allocation14_spill] sm:$0xff] %v12235_v31  ;;  %v3720_v60 = vadd.f32 %v3719_v52, %v3631_v50  ;;  %v9320_v31 = vld [vmem:[%s11052_s22 + $0x20] sm:$0x1]  ;;  %v1969_v52 = vrot.slane %v9319_v39, 5  ;;  %v1552_v4 = vor.u32 %v1551_v22, %v1547_v55  ;;  %v1543_v50 = vrot.slane %v1542_v45, 4 }
 0x1df   : > { %v1555_v49 = vshll.u32 %v9320_v31, 16  ;;  %v1569_v22 = vshll.u32 %v9322_v8, 16  ;;  %v1573_v45 = vshrl.u32 %v9322_v8, 16 }
 0x1e0   : > { %v12241_v15 = vadd.f32 %v3808_v6, %v3720_v60  ;;  %v1553_v39 = vrot.slane %v1552_v4, 4  ;;  %v1548_v53 = vsel %vm11126_vm5, %v1543_v50, %v1547_v55  ;;  %v1562_v4 = vrot.slane %v1560_v19, 4 }
 0x1e1   : > { %v3543_v34 = vpop.f32.mrf.mxu3  ;;  %v1557_v40 = vrot.slane %v1555_v49, 5  ;;  %v1565_v49 = vrot.slane %v1563_v54, 5 }
 0x1e2   : > { %15370 = vst [vmem:[#allocation15_spill] sm:$0xff] %v12241_v15  ;;  %v3544_v3 = vadd.f32 %v3543_v34, %v11825_v47  ;;  %v1971_v47 = vrot.slane %v1969_v52, 4  ;;  %v1972_v34 = vrot.slane %v9320_v31, 5 }
 0x1e3   : > { %v12246_v32 = vpop.f32.mrf.mxu2  ;;  %v3635_v10 = vpop.f32.mrf.mxu0 }
 0x1e4   : > { %15371 = vst [vmem:[#allocation16_spill] sm:$0xff] %v12246_v32  ;;  %v12249_v14 = vadd.f32 %v3632_v35, %v3544_v3  ;;  %v1970_v35 = vsel %vm11117_vm4, %v9366_v63, %v1969_v52  ;;  %v1973_v31 = vsel %vm11117_vm4, %v1971_v47, %v1972_v34  ;;  %v2527_v52 = vunpack.c.l.b16 %v1548_v53  ;;  %v9323_v47 = vld [vmem:[%s11052_s22 + $0x2c] sm:$0x1] }
 0x1e5   : > { %v3724_v6 = vpop.f32.mrf.mxu1  ;;  %v1571_v63 = vrot.slane %v1569_v22, 5 }
 0x1e6   : > { %15372 = vst [vmem:[#allocation17_spill] sm:$0xff] %v12249_v14  ;;  %3585 = vmatmul.bf16.gmra.mxu3 %v10506_v43  ;;  %3674 = vmatmul.bf16.gmra.mxu0 %v2382_v44  ;;  %v1558_v43 = vsel %vm11126_vm5, %v1553_v39, %v1557_v40  ;;  %v1566_v14 = vor.u32 %v1565_v49, %v1562_v4 }
 0x1e7   : > { %v2528_v50 = vunpack.c.l.b16 %v1558_v43  ;;  %v9324_v43 = vld [vmem:[%s11052_s22 + $0x30] sm:$0xf] }
 0x1e8   : > { %3852 = vmatmul.bf16.gmra.mxu2 %v10522_v21  ;;  %3763 = vmatmul.bf16.gmra.mxu1 %v2446_v13  ;;  %v2591_v21 = vunpack.c.l.b16 %v1970_v35  ;;  %v2592_v13 = vunpack.c.l.b16 %v1973_v31  ;;  %v1579_v35 = vshll.u32 %v9323_v47, 16  ;;  %v1567_v31 = vrot.slane %v1566_v14, 4 }
 0x1e9   : > { %v3546_v60 = vpop.f32.mrf.mxu3  ;;  %v2559_v39 = vpack.c.b16 %v2528_v50, %v2527_v52  ;;  %v1587_v14 = vshll.u32 %v9324_v43, 16 }
 0x1ea   : > { %v3547_v9 = vadd.f32 %v3546_v60, %v11845_v5  ;;  %v1575_v60 = vrot.slane %v1573_v45, 4  ;;  %v2623_v32 = vpack.c.b16 %v2592_v13, %v2591_v21  ;;  %v1581_v45 = vrot.slane %v1579_v35, 5  ;;  %v9325_v21 = vld [vmem:[%s11052_s22 + $0x34] sm:$0xf] }
 0x1eb   : > { %v3813_v48 = vpop.f32.mrf.mxu2  ;;  %v3637_v3 = vpop.f32.mrf.mxu0  ;;  %v1572_v13 = vsel %vm11126_vm5, %v1567_v31, %v1571_v63  ;;  %v1593_v49 = vshll.u32 %v9325_v21, 16 }
 0x1ec   : > { %v3636_v44 = vadd.f32 %v3635_v10, %v3547_v9  ;;  %v1576_v53 = vor.u32 %v1575_v60, %v1571_v63 }
 0x1ed   : > { %v12263_v55 = vpop.f32.mrf.mxu1 }
 0x1ee   : > { %v3725_v5 = vadd.f32 %v3724_v6, %v3636_v44  ;;  %v1976_v6 = vrot.slane %v9322_v8, 5  ;;  %v1577_v22 = vrot.slane %v1576_v53, 4  ;;  %v10654_v44 = vld [vmem:[#allocation3 + $0x58] sm:$0xff] }
 0x1ef   : > { %7683 = vmatpush.bf16.msra.mxu2 %v10654_v44  ;;  %v9326_v44 = vld [vmem:[%s11052_s22 + $0x38] sm:$0x1] }
 0x1f0   : > { %v12266_v34 = vadd.f32 %v3813_v48, %v3725_v5  ;;  %v9367_v48 = vrot.slane %v9321_v17, 9  ;;  %v1582_v4 = vsel %vm11126_vm5, %v1577_v22, %v1581_v45  ;;  %v1597_v5 = vshrl.u32 %v9325_v21, 16 }
 0x1f1   : > { %v3548_v15 = vpop.f32.mrf.mxu3  ;;  %v2530_v53 = vunpack.c.l.b16 %v1582_v4  ;;  %v1595_v22 = vrot.slane %v1593_v49, 5 }
 0x1f2   : > { %15373 = vst [vmem:[#allocation18_spill] sm:$0xff] %v12266_v34  ;;  %v3549_v10 = vadd.f32 %v3548_v15, %v11862_v30  ;;  %v1978_v30 = vrot.slane %v1976_v6, 4  ;;  %v1979_v15 = vrot.slane %v9323_v47, 5  ;;  %v1977_v8 = vsel %vm11117_vm4, %v9367_v48, %v1976_v6  ;;  %v10646_v47 = vld [vmem:[#allocation3 + $0x18] sm:$0xff] }
 0x1f3   : > { %v12269_v40 = vpop.f32.mrf.mxu2  ;;  %v3640_v19 = vpop.f32.mrf.mxu0  ;;  %v2593_v35 = vunpack.c.l.b16 %v1977_v8  ;;  %7594 = vmatpush.bf16.msra.mxu1 %v10646_v47  ;;  %v1599_v45 = vrot.slane %v1597_v5, 4  ;;  %v9327_v47 = vld [vmem:[%s11052_s22 + $0x3c] sm:$0xf] }
 0x1f4   : > { %15374 = vst [vmem:[#allocation19_spill] sm:$0xff] %v12269_v40  ;;  %v12271_v54 = vadd.f32 %v3637_v3, %v3549_v10  ;;  %v1584_v3 = vshrl.u32 %v9324_v43, 16  ;;  %v1980_v60 = vsel %vm11117_vm4, %v1978_v30, %v1979_v15 }
 0x1f5   : > { %v3729_v9 = vpop.f32.mrf.mxu1  ;;  %v2594_v48 = vunpack.c.l.b16 %v1980_v60  ;;  %v1600_v8 = vor.u32 %v1599_v45, %v1595_v22 }
 0x1f6   : > { %3866 = vmatmul.bf16.vlgmr.msra.gmra.mxu3 %v2559_v39  ;;  %3955 = vmatmul.bf16.vlgmr.msra.gmra.mxu0 %v2623_v32  ;;  %v2529_v39 = vunpack.c.l.b16 %v1572_v13  ;;  %v1586_v6 = vrot.slane %v1584_v3, 4  ;;  %v1603_v3 = vshll.u32 %v9326_v44, 16 }
 0x1f7   : > { %v2624_v15 = vpack.c.b16 %v2594_v48, %v2593_v35  ;;  %v1601_v5 = vrot.slane %v1600_v8, 4  ;;  %v1611_v35 = vshll.u32 %v9327_v47, 16 }
 0x1f8   : > { %v2560_v40 = vpack.c.b16 %v2530_v53, %v2529_v39  ;;  %v1605_v60 = vrot.slane %v1603_v3, 5 }
 0x1f9   : > { %v3551_v52 = vpop.f32.mrf.mxu3  ;;  %v1613_v3 = vrot.slane %v1611_v35, 5 }
 0x1fa   : > { %v3552_v17 = vadd.f32 %v3551_v52, %v11884_v42  ;;  %v1589_v42 = vrot.slane %v1587_v14, 5 }
 0x1fb   : > { %v3818_v32 = vpop.f32.mrf.mxu2  ;;  %v3642_v50 = vpop.f32.mrf.mxu0 }
 0x1fc   : > { %v3641_v63 = vadd.f32 %v3640_v19, %v3552_v17  ;;  %v1590_v30 = vor.u32 %v1589_v42, %v1586_v6 }
 0x1fd   : > { %v12284_v10 = vpop.f32.mrf.mxu1 }
 0x1fe   : > { %v3730_v31 = vadd.f32 %v3729_v9, %v3641_v63  ;;  %v1983_v9 = vrot.slane %v9325_v21, 5  ;;  %v1591_v49 = vrot.slane %v1590_v30, 4 }
 0x200   : > { %v12287_v52 = vadd.f32 %v3818_v32, %v3730_v31  ;;  %v9368_v32 = vrot.slane %v9324_v43, 9  ;;  %v1985_v63 = vrot.slane %v1983_v9, 4  ;;  %v1596_v53 = vsel %vm11126_vm5, %v1591_v49, %v1595_v22 }
 0x201   : > { %v3553_v34 = vpop.f32.mrf.mxu3  ;;  %v2531_v30 = vunpack.c.l.b16 %v1596_v53 }
 0x202   : > { %15375 = vst [vmem:[#allocation20_spill] sm:$0xff] %v12287_v52  ;;  %v3554_v19 = vadd.f32 %v3553_v34, %v11908_v62  ;;  %v1986_v62 = vrot.slane %v9326_v44, 5  ;;  %v9328_v34 = vld [vmem:[%s11052_s22 + $0x40] sm:$0xf]  ;;  %v1984_v21 = vsel %vm11117_vm4, %v9368_v32, %v1983_v9 }
 0x203   : > { %v12290_v13 = vpop.f32.mrf.mxu2  ;;  %v3645_v14 = vpop.f32.mrf.mxu0  ;;  %v1617_v42 = vshll.u32 %v9328_v34, 16  ;;  %v1621_v31 = vshrl.u32 %v9328_v34, 16 }
 0x204   : > { %15376 = vst [vmem:[#allocation21_spill] sm:$0xff] %v12290_v13  ;;  %v12292_v17 = vadd.f32 %v3642_v50, %v3554_v19  ;;  %v1608_v50 = vshrl.u32 %v9327_v47, 16  ;;  %v1987_v45 = vsel %vm11117_vm4, %v1985_v63, %v1986_v62 }
 0x205   : > { %v3734_v4 = vpop.f32.mrf.mxu1  ;;  %v2596_v9 = vunpack.c.l.b16 %v1987_v45  ;;  %v1619_v49 = vrot.slane %v1617_v42, 5  ;;  %v1623_v32 = vrot.slane %v1621_v31, 4  ;;  %v9330_v45 = vld [vmem:[%s11052_s22 + $0x48] sm:$0xf] }
 0x206   : > { %3871 = vmatmul.bf16.gmra.mxu3 %v2560_v40  ;;  %3960 = vmatmul.bf16.gmra.mxu0 %v2624_v15  ;;  %v1606_v40 = vsel %vm11126_vm5, %v1601_v5, %v1605_v60  ;;  %v2595_v15 = vunpack.c.l.b16 %v1984_v21  ;;  %v1610_v8 = vrot.slane %v1608_v50, 4  ;;  %v9329_v5 = vld [vmem:[%s11052_s22 + $0x44] sm:$0x1] }
 0x207   : > { %v2532_v19 = vunpack.c.l.b16 %v1606_v40  ;;  %v1624_v53 = vor.u32 %v1623_v32, %v1619_v49  ;;  %v1627_v21 = vshll.u32 %v9329_v5, 16 }
 0x208   : > { %v1614_v13 = vor.u32 %v1613_v3, %v1610_v8  ;;  %v2625_v63 = vpack.c.b16 %v2596_v9, %v2595_v15 }
 0x209   : > { %v3556_v39 = vpop.f32.mrf.mxu3  ;;  %v2561_v52 = vpack.c.b16 %v2532_v19, %v2531_v30  ;;  %v1625_v42 = vrot.slane %v1624_v53, 4  ;;  %v1629_v31 = vrot.slane %v1627_v21, 5  ;;  %v1993_v30 = vrot.slane %v9329_v5, 5  ;;  %v9331_v19 = vld [vmem:[%s11052_s22 + $0x4c] sm:$0xf] }
 0x20a   : > { %v3557_v6 = vadd.f32 %v3556_v39, %v11927_v26  ;;  %v1615_v40 = vrot.slane %v1614_v13, 4  ;;  %v1635_v13 = vshll.u32 %v9330_v45, 16  ;;  %v1645_v9 = vshrl.u32 %v9331_v19, 16 }
 0x20b   : > { %v3823_v43 = vpop.f32.mrf.mxu2  ;;  %v3647_v48 = vpop.f32.mrf.mxu0  ;;  %v1630_v3 = vsel %vm11126_vm5, %v1625_v42, %v1629_v31 }
 0x20c   : > { %v3646_v44 = vadd.f32 %v3645_v14, %v3557_v6  ;;  %v1620_v8 = vsel %vm11126_vm5, %v1615_v40, %v1619_v49  ;;  %v2534_v53 = vunpack.c.l.b16 %v1630_v3  ;;  %v1647_v31 = vrot.slane %v1645_v9, 4 }
 0x20d   : > { %v12305_v22 = vpop.f32.mrf.mxu1 }
 0x20e   : > { %v3735_v26 = vadd.f32 %v3734_v4, %v3646_v44  ;;  %v1990_v4 = vrot.slane %v9328_v34, 5  ;;  %v10653_v44 = vld [vmem:[#allocation3 + $0x50] sm:$0xff] }
 0x20f   : > { %7684 = vmatpush.bf16.msra.mxu2 %v10653_v44  ;;  %v9332_v44 = vld [vmem:[%s11052_s22 + $0x50] sm:$0x1] }
 0x210   : > { %v12308_v60 = vadd.f32 %v3823_v43, %v3735_v26  ;;  %v9369_v43 = vrot.slane %v9327_v47, 9  ;;  %v1641_v26 = vshll.u32 %v9331_v19, 16 }
 0x211   : > { %v3558_v39 = vpop.f32.mrf.mxu3 }
 0x212   : > { %15377 = vst [vmem:[#allocation22_spill] sm:$0xff] %v12308_v60  ;;  %v3559_v14 = vadd.f32 %v3558_v39, %v11943_v58  ;;  %v1992_v58 = vrot.slane %v1990_v4, 4  ;;  %v1991_v34 = vsel %vm11117_vm4, %v9369_v43, %v1990_v4  ;;  %v10645_v39 = vld [vmem:[#allocation3 + $0x10] sm:$0xff]  ;;  %v1643_v42 = vrot.slane %v1641_v26, 5 }
 0x213   : > { %v12311_v62 = vpop.f32.mrf.mxu2  ;;  %v3650_v50 = vpop.f32.mrf.mxu0  ;;  %v2597_v21 = vunpack.c.l.b16 %v1991_v34  ;;  %7595 = vmatpush.bf16.msra.mxu1 %v10645_v39  ;;  %v9333_v39 = vld [vmem:[%s11052_s22 + $0x54] sm:$0xf] }
 0x214   : > { %15378 = vst [vmem:[#allocation23_spill] sm:$0xff] %v12311_v62  ;;  %v12313_v35 = vadd.f32 %v3647_v48, %v3559_v14  ;;  %v1632_v48 = vshrl.u32 %v9330_v45, 16  ;;  %v1994_v5 = vsel %vm11117_vm4, %v1992_v58, %v1993_v30  ;;  %v1648_v34 = vor.u32 %v1647_v31, %v1643_v42 }
 0x215   : > { %v3739_v6 = vpop.f32.mrf.mxu1  ;;  %v2598_v43 = vunpack.c.l.b16 %v1994_v5 }
 0x216   : > { %3876 = vmatmul.bf16.gmra.mxu3 %v2561_v52  ;;  %3965 = vmatmul.bf16.gmra.mxu0 %v2625_v63  ;;  %v2533_v63 = vunpack.c.l.b16 %v1620_v8  ;;  %v1634_v4 = vrot.slane %v1632_v48, 4  ;;  %v1651_v48 = vshll.u32 %v9332_v44, 16  ;;  %v1649_v9 = vrot.slane %v1648_v34, 4 }
 0x217   : > { %v2626_v30 = vpack.c.b16 %v2598_v43, %v2597_v21  ;;  %v1659_v21 = vshll.u32 %v9333_v39, 16 }
 0x218   : > { %v2562_v62 = vpack.c.b16 %v2534_v53, %v2533_v63  ;;  %v1653_v5 = vrot.slane %v1651_v48, 5 }
 0x219   : > { %v3561_v15 = vpop.f32.mrf.mxu3  ;;  %v1661_v48 = vrot.slane %v1659_v21, 5 }
 0x21a   : > { %v3562_v52 = vadd.f32 %v3561_v15, %v11965_v33  ;;  %v1637_v33 = vrot.slane %v1635_v13, 5 }
 0x21b   : > { %v3828_v47 = vpop.f32.mrf.mxu2  ;;  %v3652_v32 = vpop.f32.mrf.mxu0 }
 0x21c   : > { %v3651_v49 = vadd.f32 %v3650_v50, %v3562_v52  ;;  %v1638_v58 = vor.u32 %v1637_v33, %v1634_v4 }
 0x21d   : > { %v12326_v14 = vpop.f32.mrf.mxu1 }
 0x21e   : > { %v3740_v40 = vadd.f32 %v3739_v6, %v3651_v49  ;;  %v1997_v6 = vrot.slane %v9331_v19, 5  ;;  %v1639_v26 = vrot.slane %v1638_v58, 4 }
 0x220   : > { %v12329_v15 = vadd.f32 %v3828_v47, %v3740_v40  ;;  %v9370_v47 = vrot.slane %v9330_v45, 9  ;;  %v1999_v49 = vrot.slane %v1997_v6, 4  ;;  %v1644_v53 = vsel %vm11126_vm5, %v1639_v26, %v1643_v42 }
 0x221   : > { %v3563_v60 = vpop.f32.mrf.mxu3  ;;  %v2535_v58 = vunpack.c.l.b16 %v1644_v53 }
 0x222   : > { %15379 = vst [vmem:[#allocation24_spill] sm:$0xff] %v12329_v15  ;;  %v3564_v50 = vadd.f32 %v3563_v60, %v11984_v2  ;;  %v2000_v2 = vrot.slane %v9332_v44, 5  ;;  %v9334_v60 = vld [vmem:[%s11052_s22 + $0x58] sm:$0xf]  ;;  %v1998_v19 = vsel %vm11117_vm4, %v9370_v47, %v1997_v6 }
 0x223   : > { %v12332_v8 = vpop.f32.mrf.mxu2  ;;  %v3655_v13 = vpop.f32.mrf.mxu0  ;;  %v1665_v33 = vshll.u32 %v9334_v60, 16  ;;  %v1669_v40 = vshrl.u32 %v9334_v60, 16 }
 0x224   : > { %15380 = vst [vmem:[#allocation25_spill] sm:$0xff] %v12332_v8  ;;  %v12334_v52 = vadd.f32 %v3652_v32, %v3564_v50  ;;  %v1656_v32 = vshrl.u32 %v9333_v39, 16  ;;  %v2001_v31 = vsel %vm11117_vm4, %v1999_v49, %v2000_v2 }
 0x225   : > { %v3744_v3 = vpop.f32.mrf.mxu1  ;;  %v2600_v6 = vunpack.c.l.b16 %v2001_v31  ;;  %v1667_v26 = vrot.slane %v1665_v33, 5  ;;  %v1671_v47 = vrot.slane %v1669_v40, 4  ;;  %v10652_v31 = vld [vmem:[#allocation3 + $0x48] sm:$0xff] }
 0x226   : > { %3881 = vmatmul.bf16.gmra.mxu3 %v2562_v62  ;;  %3970 = vmatmul.bf16.gmra.mxu0 %v2626_v30  ;;  %v1654_v62 = vsel %vm11126_vm5, %v1649_v9, %v1653_v5  ;;  %v2599_v30 = vunpack.c.l.b16 %v1998_v19  ;;  %v1658_v34 = vrot.slane %v1656_v32, 4  ;;  %v9335_v9 = vld [vmem:[%s11052_s22 + $0x5c] sm:$0x1] }
 0x227   : > { %v2536_v50 = vunpack.c.l.b16 %v1654_v62  ;;  %v1672_v53 = vor.u32 %v1671_v47, %v1667_v26  ;;  %v1675_v19 = vshll.u32 %v9335_v9, 16  ;;  %7685 = vmatpush.bf16.msra.mxu2 %v10652_v31 }
 0x228   : > { %v1662_v15 = vor.u32 %v1661_v48, %v1658_v34 }
 0x229   : > { %v3566_v63 = vpop.f32.mrf.mxu3  ;;  %v2563_v8 = vpack.c.b16 %v2536_v50, %v2535_v58  ;;  %v1673_v33 = vrot.slane %v1672_v53, 4  ;;  %v1677_v40 = vrot.slane %v1675_v19, 5  ;;  %v12358_v58 = vld [vmem:[%s11052_s22 + $0x60] sm:$0xf]  ;;  %v12361_v50 = vld [vmem:[%s11052_s22 + $0x64] sm:$0xf] }
 0x22a   : > { %v3567_v4 = vadd.f32 %v3566_v63, %v12003_v51  ;;  %v1663_v62 = vrot.slane %v1662_v15, 4  ;;  %v1680_v34 = vshrl.u32 %v12358_v58, 16  ;;  %v1683_v48 = vshll.u32 %v12358_v58, 16 }
 0x22b   : > { %v3833_v45 = vpop.f32.mrf.mxu2  ;;  %v3657_v43 = vpop.f32.mrf.mxu0  ;;  %v1693_v47 = vshrl.u32 %v12361_v50, 16 }
 0x22c   : > { %v3656_v44 = vadd.f32 %v3655_v13, %v3567_v4  ;;  %v2627_v13 = vpack.c.b16 %v2600_v6, %v2599_v30 }
 0x22d   : > { %v12347_v42 = vpop.f32.mrf.mxu1  ;;  %v1695_v31 = vrot.slane %v1693_v47, 4  ;;  %v12388_v47 = vld [vmem:[%s11052_s22 + $0x6c] sm:$0xf] }
 0x22e   : > { %v3745_v51 = vadd.f32 %v3744_v3, %v3656_v44  ;;  %v2004_v3 = vrot.slane %v9334_v60, 5  ;;  %v2007_v44 = vrot.slane %v9335_v9, 5  ;;  %v1668_v60 = vsel %vm11126_vm5, %v1663_v62, %v1667_v26  ;;  %v10644_v9 = vld [vmem:[#allocation3 + $0x8] sm:$0xff] }
 0x22f   : > { %v1689_v26 = vshll.u32 %v12361_v50, 16  ;;  %7596 = vmatpush.bf16.msra.mxu1 %v10644_v9  ;;  %v1682_v62 = vrot.slane %v1680_v34, 4  ;;  %v2011_v34 = vrot.slane %v12361_v50, 5  ;;  %v1707_v50 = vshll.u32 %v12388_v47, 16 }
 0x230   : > { %v12350_v5 = vadd.f32 %v3833_v45, %v3745_v51  ;;  %v9371_v45 = vrot.slane %v9333_v39, 9 }
 0x231   : > { %v3568_v63 = vpop.f32.mrf.mxu3 }
 0x232   : > { %v3569_v49 = vadd.f32 %v3568_v63, %v12019_v16  ;;  %v2006_v16 = vrot.slane %v2004_v3, 4  ;;  %v2005_v15 = vsel %vm11117_vm4, %v9371_v45, %v2004_v3  ;;  %v1685_v45 = vrot.slane %v1683_v48, 5 }
 0x233   : > { %v12353_v2 = vpop.f32.mrf.mxu2  ;;  %v3660_v32 = vpop.f32.mrf.mxu0  ;;  %v2601_v53 = vunpack.c.l.b16 %v2005_v15 }
 0x234   : > { %v12355_v21 = vadd.f32 %v3657_v43, %v3569_v49  ;;  %v1678_v43 = vsel %vm11126_vm5, %v1673_v33, %v1677_v40  ;;  %v2008_v6 = vsel %vm11117_vm4, %v2006_v16, %v2007_v44  ;;  %v2537_v49 = vunpack.c.l.b16 %v1668_v60  ;;  %v9338_v33 = vld [vmem:[%s11052_s22 + $0x68] sm:$0x1] }
 0x235   : > { %v3749_v4 = vpop.f32.mrf.mxu1  ;;  %v2602_v3 = vunpack.c.l.b16 %v2008_v6  ;;  %v1691_v40 = vrot.slane %v1689_v26, 5  ;;  %v1686_v15 = vor.u32 %v1685_v45, %v1682_v62 }
 0x236   : > { %3886 = vmatmul.bf16.gmra.mxu3 %v2563_v8  ;;  %3975 = vmatmul.bf16.gmra.mxu0 %v2627_v13  ;;  %v2538_v13 = vunpack.c.l.b16 %v1678_v43  ;;  %v1699_v43 = vshll.u32 %v9338_v33, 16 }
 0x237   : > { %v1696_v6 = vor.u32 %v1695_v31, %v1691_v40 }
 0x238   : > { %v1701_v9 = vrot.slane %v1699_v43, 5  ;;  %v1709_v43 = vrot.slane %v1707_v50, 5 }
 0x239   : > { %v3571_v30 = vpop.f32.mrf.mxu3 }
 0x23a   : > { %v3572_v8 = vadd.f32 %v3571_v30, %v11878_v1  ;;  %v2564_v30 = vpack.c.b16 %v2538_v13, %v2537_v49  ;;  %v9372_v49 = vrot.slane %v12358_v58, 9  ;;  %v2013_v13 = vrot.slane %v2011_v34, 4 }
 0x23b   : > { %v3838_v39 = vpop.f32.mrf.mxu2  ;;  %v3662_v51 = vpop.f32.mrf.mxu0 }
 0x23c   : > { %v3661_v63 = vadd.f32 %v3660_v32, %v3572_v8  ;;  %v2628_v8 = vpack.c.b16 %v2602_v3, %v2601_v53  ;;  %v2014_v53 = vrot.slane %v9338_v33, 5  ;;  %v2012_v33 = vsel %vm11117_vm4, %v9372_v49, %v2011_v34 }
 0x23d   : > { %v12376_v1 = vpop.f32.mrf.mxu1 }
 0x23e   : > { %15381 = vst [vmem:[#allocation26_spill] sm:$0xff] %v12376_v1  ;;  %v3750_v19 = vadd.f32 %v3749_v4, %v3661_v63  ;;  %v12391_v63 = vld [vmem:[%s11052_s22 + $0x70] sm:$0xf] }
 0x23f   : > { %v1713_v3 = vshll.u32 %v12391_v63, 16  ;;  %v1717_v62 = vshrl.u32 %v12391_v63, 16 }
 0x240   : > { %v12379_v16 = vadd.f32 %v3838_v39, %v3750_v19  ;;  %v1687_v39 = vrot.slane %v1686_v15, 4  ;;  %v1704_v19 = vshrl.u32 %v12388_v47, 16 }
 0x241   : > { %v3573_v44 = vpop.f32.mrf.mxu3 }
 0x242   : > { %15382 = vst [vmem:[#allocation27_spill] sm:$0xff] %v12379_v16  ;;  %v3574_v32 = vadd.f32 %v3573_v44, %v11905_v27  ;;  %v1697_v27 = vrot.slane %v1696_v6, 4  ;;  %v1692_v44 = vsel %vm11126_vm5, %v1687_v39, %v1691_v40  ;;  %v1706_v15 = vrot.slane %v1704_v19, 4 }
 0x243   : > { %v12382_v60 = vpop.f32.mrf.mxu2  ;;  %v3665_v4 = vpop.f32.mrf.mxu0  ;;  %v1719_v40 = vrot.slane %v1717_v62, 4  ;;  %v10918_v62 = vmov 0  }
 0x244   : > { %15383 = vst [vmem:[#allocation28_spill] sm:$0xff] %v12382_v60  ;;  %v12385_v48 = vadd.f32 %v3662_v51, %v3574_v32  ;;  %v1702_v58 = vsel %vm11126_vm5, %v1697_v27, %v1701_v9  ;;  %v2015_v32 = vsel %vm11117_vm4, %v2013_v13, %v2014_v53  ;;  %v12410_v60 = vrot.slane %v1713_v3, 5 }
 0x245   : > { %v3754_v26 = vpop.f32.mrf.mxu1  ;;  %v2540_v16 = vunpack.c.l.b16 %v1702_v58  ;;  %v2603_v9 = vunpack.c.l.b16 %v2012_v33  ;;  %v2604_v27 = vunpack.c.l.b16 %v2015_v32  ;;  %v1710_v34 = vor.u32 %v1709_v43, %v1706_v15  ;;  %4068 = vst [vmem:[#allocation2] sm:$0xf] %v10918_v62  ;;  %v10651_v43 = vld [vmem:[#allocation3 + $0x40] sm:$0xff] }
 0x246   : > { %15384 = vst [vmem:[#allocation29_spill] sm:$0xff] %v12385_v48  ;;  %3891 = vmatmul.bf16.gmra.mxu3 %v2564_v30  ;;  %3980 = vmatmul.bf16.gmra.mxu0 %v2628_v8 }
 0x247   : > { %v2629_v50 = vpack.c.b16 %v2604_v27, %v2603_v9  ;;  %4069 = vst [vmem:[#allocation2 + $0x4] sm:$0xf] %v10918_v62  ;;  %v1711_v58 = vrot.slane %v1710_v34, 4  ;;  %7686 = vmatpush.bf16.msra.mxu2 %v10651_v43  ;;  %v12451_v43 = vld [vmem:[%s11052_s22 + $0x80] sm:$0x1] }
 0x248   : > { %4070 = vst [vmem:[#allocation2 + $0x8] sm:$0x1] %v10918_v62 }
 0x249   : > { %v3576_v51 = vpop.f32.mrf.mxu3  ;;  %4072 = vst [vmem:[#allocation2 + $0xcc] sm:$0xf] %v10918_v62 }
 0x24a   : > { %v3577_v45 = vadd.f32 %v3576_v51, %v11921_v25  ;;  %v2539_v25 = vunpack.c.l.b16 %v1692_v44  ;;  %v9341_v51 = vld [vmem:[%s11052_s22 + $0x74] sm:$0x1]  ;;  %v12420_v44 = vld [vmem:[%s11052_s22 + $0x78] sm:$0xf]  ;;  %4073 = vst [vmem:[#allocation2 + $0xd0] sm:$0xf] %v10918_v62 }
 0x24b   : > { %v3843_v31 = vpop.f32.mrf.mxu2  ;;  %v3667_v30 = vpop.f32.mrf.mxu0  ;;  %v1723_v49 = vshll.u32 %v9341_v51, 16  ;;  %v1731_v15 = vshll.u32 %v12420_v44, 16  ;;  %4074 = vst [vmem:[#allocation2 + $0xd4] sm:$0x1] %v10918_v62 }
 0x24c   : > { %v3666_v8 = vadd.f32 %v3665_v4, %v3577_v45  ;;  %v1720_v4 = vor.u32 %v1719_v40, %v12410_v60  ;;  %v2565_v19 = vpack.c.b16 %v2540_v16, %v2539_v25  ;;  %v12426_v16 = vld [vmem:[%s11052_s22 + $0x7c] sm:$0xf]  ;;  %v2021_v25 = vrot.slane %v9341_v51, 5  ;;  %v4078_v27 = vld [vmem:[#allocation2] sm:$0x1] }
 0x24d   : > { %v12407_v6 = vpop.f32.mrf.mxu1  ;;  %v1725_v33 = vrot.slane %v1723_v49, 5  ;;  %v1737_v40 = vshll.u32 %v12426_v16, 16  ;;  %v1716_v51 = vsel %vm11126_vm5, %v1711_v58, %v12410_v60  ;;  %v4079_v60 = vsel %vm12434_vm8, 0, %v4078_v27 }
 0x24e   : > { %15385 = vst [vmem:[#allocation30_spill] sm:$0xff] %v12407_v6  ;;  %v3755_v39 = vadd.f32 %v3754_v26, %v3666_v8  ;;  %v2018_v26 = vrot.slane %v12391_v63, 5  ;;  %v1721_v32 = vrot.slane %v1720_v4, 4  ;;  %v1728_v8 = vshrl.u32 %v12420_v44, 16 }
 0x24f   : > { %4080 = vst [vmem:[#allocation2] sm:$0x1] %v4079_v60  ;;  %v1747_v27 = vshll.u32 %v12451_v43, 16 }
 0x250   : > { %v12412_v1 = vadd.f32 %v3843_v31, %v3755_v39  ;;  %v2020_v63 = vrot.slane %v2018_v26, 4  ;;  %v15389_v39 = vmov 0  ;;  %v1730_v4 = vrot.slane %v1728_v8, 4 }
 0x251   : > { %v3578_v13 = vpop.f32.mrf.mxu3  ;;  %v15390_v39 = vsel %vm12434_vm8, 4294967295, %v15389_v39 }
 0x252   : > { %15386 = vst [vmem:[#allocation31_spill] sm:$0xff] %v12412_v1  ;;  %v3579_v53 = vadd.f32 %v3578_v13, %v11940_v23  ;;  %v9373_v23 = vrot.slane %v12388_v47, 9  ;;  %v1741_v47 = vshrl.u32 %v12426_v16, 16  ;;  %v2022_v62 = vsel %vm11117_vm4, %v2020_v63, %v2021_v25 }
 0x253   : > { %v12416_v3 = vpop.f32.mrf.mxu2  ;;  %v3670_v45 = vpop.f32.mrf.mxu0  ;;  %15391 = vst [vmem:[#allocation34_spill] sm:$0xff] %v15390_v39 }
 0x254   : > { %15387 = vst [vmem:[#allocation32_spill] sm:$0xff] %v12416_v3  ;;  %v12422_v31 = vadd.f32 %v3667_v30, %v3579_v53  ;;  %v2019_v13 = vsel %vm11117_vm4, %v9373_v23, %v2018_v26  ;;  %v1733_v53 = vrot.slane %v1731_v15, 5  ;;  %v15392_v26 = vmov 0  ;;  %v4134_v23 = vld [vmem:[#allocation2 + $0x8] sm:$0x1] }
 0x255   : > { %v3759_v30 = vpop.f32.mrf.mxu1  ;;  %v15393_v26 = vsel %vm12457_vm10, 4294967295, %v15392_v26  ;;  %v2606_v15 = vunpack.c.l.b16 %v2022_v62 }
 0x256   : > { %15388 = vst [vmem:[#allocation33_spill] sm:$0xff] %v12422_v31  ;;  %3896 = vmatmul.bf16.gmra.mxu3 %v2565_v19  ;;  %3985 = vmatmul.bf16.gmra.mxu0 %v2629_v50  ;;  %v1726_v50 = vsel %vm11126_vm5, %v1721_v32, %v1725_v33  ;;  %v2541_v33 = vunpack.c.l.b16 %v1716_v51  ;;  %v2605_v32 = vunpack.c.l.b16 %v2019_v13  ;;  %v1734_v25 = vor.u32 %v1733_v53, %v1730_v4 }
 0x257   : > { %15394 = vst [vmem:[#allocation35_spill] sm:$0xff] %v15393_v26  ;;  %v2542_v8 = vunpack.c.l.b16 %v1726_v50  ;;  %v2025_v13 = vrot.slane %v12426_v16, 5  ;;  %v4657_v16 = vld [vmem:[#allocation2] sm:$0xf] }
 0x258   : > { %v2630_v62 = vpack.c.b16 %v2606_v15, %v2605_v32  ;;  %v1735_v60 = vrot.slane %v1734_v25, 4  ;;  %v4709_v32 = vshll.u32 %v4657_v16, 16  ;;  %v10643_v25 = vld [vmem:[#allocation3] sm:$0xff] }
 0x259   : > { %v3581_v9 = vpop.f32.mrf.mxu3  ;;  %v2566_v53 = vpack.c.b16 %v2542_v8, %v2541_v33  ;;  %v2028_v33 = vrot.slane %v12451_v43, 5  ;;  %7597 = vmatpush.bf16.msra.mxu1 %v10643_v25 }
 0x25a   : > { %v3582_v34 = vadd.f32 %v3581_v9, %v11959_v46  ;;  %v12453_v46 = vrot.slane %v1737_v40, 5  ;;  %v1743_v9 = vrot.slane %v1741_v47, 4  ;;  %v4135_v47 = vsel %vm12457_vm10, 0, %v4134_v23 }
 0x25b   : > { %v3848_v49 = vpop.f32.mrf.mxu2  ;;  %v3672_v19 = vpop.f32.mrf.mxu0  ;;  %4136 = vst [vmem:[#allocation2 + $0x8] sm:$0x1] %v4135_v47  ;;  %v12482_v47 = vld [vmem:[%s11052_s22 + $0x88] sm:$0xf] }
 0x25c   : > { %v3671_v58 = vadd.f32 %v3670_v45, %v3582_v34  ;;  %v4081_v45 = vld [vmem:[#allocation2 + $0xc] sm:$0x1]  ;;  %v1744_v51 = vor.u32 %v1743_v9, %v12453_v46  ;;  %v9374_v9 = vrot.slane %v12420_v44, 9  ;;  %v1740_v44 = vsel %vm11126_vm5, %v1735_v60, %v12453_v46 }
 0x25d   : > { %v4082_v40 = vsel %vm12434_vm8, 0, %v4081_v45  ;;  %v12470_v50 = vpop.f32.mrf.mxu1  ;;  %v12477_v45 = vld [vmem:[%s11052_s22 + $0x84] sm:$0xf] }
 0x25e   : > { %v3760_v63 = vadd.f32 %v3759_v30, %v3671_v58  ;;  %4083 = vst [vmem:[#allocation2 + $0xc] sm:$0x1] %v4082_v40  ;;  %v4658_v58 = vld [vmem:[#allocation2 + $0x4] sm:$0xf] }
 0x25f   : > { %15396 = vst [vmem:[#allocation37_spill] sm:$0xff] %v12470_v50  ;;  %v1745_v50 = vrot.slane %v1744_v51, 4  ;;  %v4715_v8 = vshll.u32 %v4658_v58, 16  ;;  %v4719_v15 = vshrl.u32 %v4658_v58, 16  ;;  %v4137_v51 = vld [vmem:[#allocation2 + $0x14] sm:$0x1] }
 0x260   : > { %v12466_v34 = vadd.f32 %v3848_v49, %v3760_v63  ;;  %v1749_v63 = vrot.slane %v1747_v27, 5  ;;  %v1755_v27 = vshll.u32 %v12477_v45, 16 }
 0x261   : > { %v3583_v30 = vpop.f32.mrf.mxu3  ;;  %v4717_v60 = vrot.slane %v4715_v8, 5  ;;  %v4721_v58 = vrot.slane %v4719_v15, 4 }
 0x262   : > { %15395 = vst [vmem:[#allocation36_spill] sm:$0xff] %v12466_v34  ;;  %v3584_v4 = vadd.f32 %v3583_v30, %v11981_v57  ;;  %v2027_v34 = vrot.slane %v2025_v13, 4  ;;  %v4706_v57 = vshrl.u32 %v4657_v16, 16  ;;  %v1761_v30 = vshll.u32 %v12482_v47, 16  ;;  %v4659_v46 = vld [vmem:[#allocation2 + $0x8] sm:$0x1] }
 0x263   : > { %v3675_v23 = vpop.f32.mrf.mxu0  ;;  %v12473_v49 = vpop.f32.mrf.mxu2  ;;  %v4711_v16 = vrot.slane %v4709_v32, 5  ;;  %v4725_v1 = vshll.u32 %v4659_v46, 16  ;;  %v1757_v25 = vrot.slane %v1755_v27, 5  ;;  %v12507_v27 = vld [vmem:[%s11052_s22 + $0x90] sm:$0xf] }
 0x264   : > { %15397 = vst [vmem:[#allocation38_spill] sm:$0xff] %v12473_v49  ;;  %v12479_v40 = vadd.f32 %v3672_v19, %v3584_v4  ;;  %v1752_v19 = vshrl.u32 %v12477_v45, 16  ;;  %v1765_v4 = vshrl.u32 %v12482_v47, 16  ;;  %v4708_v43 = vrot.slane %v4706_v57, 4  ;;  %v10595_v57 = vld [vmem:[#allocation2] sm:$0xff] }
 0x265   : > { %v2029_v3 = vsel %vm11117_vm4, %v2027_v34, %v2028_v33  ;;  %v3764_v8 = vpop.f32.mrf.mxu1  ;;  %v12501_v15 = vrot.slane %v1761_v30, 5  ;;  %7598 = vmatmul.bf16.vlgmr.msra.gmra.mxu1 %v10595_v57  ;;  %v4727_v34 = vrot.slane %v4725_v1, 5  ;;  %v2543_v33 = vunpack.c.l.b16 %v1740_v44  ;;  %v12512_v1 = vld [vmem:[%s11052_s22 + $0x94] sm:$0xf] }
 0x266   : > { %15398 = vst [vmem:[#allocation39_spill] sm:$0xff] %v12479_v40  ;;  %3901 = vmatmul.bf16.gmra.mxu3 %v2566_v53  ;;  %3990 = vmatmul.bf16.gmra.mxu0 %v2630_v62  ;;  %v2026_v53 = vsel %vm11117_vm4, %v9374_v9, %v2025_v13  ;;  %v4138_v62 = vsel %vm12457_vm10, 0, %v4137_v51  ;;  %v1750_v40 = vsel %vm11126_vm5, %v1745_v50, %v1749_v63  ;;  %v1754_v9 = vrot.slane %v1752_v19, 4 }
 0x267   : > { %4139 = vst [vmem:[#allocation2 + $0x14] sm:$0x1] %v4138_v62  ;;  %v4712_v32 = vor.u32 %v4711_v16, %v4708_v43  ;;  %v4722_v51 = vor.u32 %v4721_v58, %v4717_v60  ;;  %v1767_v31 = vrot.slane %v1765_v4, 4  ;;  %v9347_v62 = vld [vmem:[%s11052_s22 + $0x8c] sm:$0x1]  ;;  %v2544_v46 = vunpack.c.l.b16 %v1750_v40 }
 0x268   : > { %v1758_v58 = vor.u32 %v1757_v25, %v1754_v9  ;;  %v1771_v44 = vshll.u32 %v9347_v62, 16  ;;  %v2032_v40 = vrot.slane %v12482_v47, 5  ;;  %v1779_v9 = vshll.u32 %v12507_v27, 16 }
 0x269   : > { %v3586_v49 = vpop.f32.mrf.mxu3  ;;  %v4713_v50 = vrot.slane %v4712_v32, 4  ;;  %v4723_v43 = vrot.slane %v4722_v51, 4  ;;  %v2567_v51 = vpack.c.b16 %v2544_v46, %v2543_v33  ;;  %v1789_v47 = vshrl.u32 %v12512_v1, 16 }
 0x26a   : > { %v3587_v13 = vadd.f32 %v3586_v49, %v11997_v37  ;;  %v2607_v37 = vunpack.c.l.b16 %v2026_v53  ;;  %v2608_v49 = vunpack.c.l.b16 %v2029_v3  ;;  %v4084_v53 = vld [vmem:[#allocation2 + $0x18] sm:$0x1] }
 0x26b   : > { %v3677_v6 = vpop.f32.mrf.mxu0  ;;  %v3853_v16 = vpop.f32.mrf.mxu2  ;;  %v4718_v19 = vsel %vm11126_vm5, %v4713_v50, %v4717_v60  ;;  %v4728_v4 = vsel %vm11126_vm5, %v4723_v43, %v4727_v34  ;;  %v4085_v60 = vsel %vm12434_vm8, 0, %v4084_v53  ;;  %v9375_v43 = vrot.slane %v12477_v45, 9 }
 0x26c   : > { %v3676_v63 = vadd.f32 %v3675_v23, %v3587_v13  ;;  %v6498_v57 = vunpack.c.l.b16 %v4718_v19  ;;  %v1768_v23 = vor.u32 %v1767_v31, %v12501_v15  ;;  %v6499_v3 = vunpack.c.l.b16 %v4728_v4  ;;  %4086 = vst [vmem:[#allocation2 + $0x18] sm:$0x1] %v4085_v60 }
 0x26d   : > { %v1776_v13 = vshrl.u32 %v12507_v27, 16  ;;  %v1785_v31 = vshll.u32 %v12512_v1, 16  ;;  %v2631_v34 = vpack.c.b16 %v2608_v49, %v2607_v37  ;;  %v2034_v4 = vrot.slane %v2032_v40, 4  ;;  %v4140_v37 = vld [vmem:[#allocation2 + $0x20] sm:$0x1] }
 0x26e   : > { %v3765_v30 = vadd.f32 %v3764_v8, %v3676_v63  ;;  %v6530_v8 = vpack.c.b16 %v6499_v3, %v6498_v57  ;;  %v1759_v63 = vrot.slane %v1758_v58, 4  ;;  %v1769_v19 = vrot.slane %v1768_v23, 4  ;;  %v9350_v3 = vld [vmem:[%s11052_s22 + $0x98] sm:$0x1] }
 0x26f   : > { %v2035_v53 = vrot.slane %v9347_v62, 5  ;;  %v1778_v46 = vrot.slane %v1776_v13, 4  ;;  %v1781_v57 = vrot.slane %v1779_v9, 5  ;;  %v12529_v60 = vrot.slane %v1785_v31, 5 }
 0x270   : > { %v12516_v32 = vadd.f32 %v3853_v16, %v3765_v30  ;;  %v1773_v30 = vrot.slane %v1771_v44, 5  ;;  %7687 = vmatmul.bf16.vlgmr.msra.gmra.mxu2 %v6530_v8  ;;  %v2033_v45 = vsel %vm11117_vm4, %v9375_v43, %v2032_v40  ;;  %v4141_v49 = vsel %vm12457_vm10, 0, %v4140_v37  ;;  %v15401_v8 = vld [vmem:[#allocation10_spill] sm:$0xff] }
 0x271   : > { %v3588_v25 = vpop.f32.mrf.mxu3  ;;  %v2036_v62 = vsel %vm11117_vm4, %v2034_v4, %v2035_v53  ;;  %v1782_v58 = vor.u32 %v1781_v57, %v1778_v46  ;;  %v1795_v23 = vshll.u32 %v9350_v3, 16  ;;  %v2039_v44 = vrot.slane %v12512_v1, 5  ;;  %4142 = vst [vmem:[#allocation2 + $0x20] sm:$0x1] %v4141_v49 }
 0x272   : > { %15399 = vst [vmem:[#allocation40_spill] sm:$0xff] %v12516_v32  ;;  %v3589_v50 = vadd.f32 %v3588_v25, %v12016_v20  ;;  %v1791_v32 = vrot.slane %v1789_v47, 4  ;;  %v1764_v20 = vsel %vm11126_vm5, %v1759_v63, %v12501_v15  ;;  %v2609_v15 = vunpack.c.l.b16 %v2033_v45  ;;  %v12545_v25 = vld [vmem:[%s11052_s22 + $0x9c] sm:$0xf] }
 0x273   : > { %v3956_v16 = vpop.f32.mrf.mxu0  ;;  %v2545_v9 = vunpack.c.l.b16 %v1764_v20  ;;  %v1800_v47 = vshrl.u32 %v12545_v25, 16  ;;  %v2610_v43 = vunpack.c.l.b16 %v2036_v62  ;;  %v1783_v4 = vrot.slane %v1782_v58, 4  ;;  %v4087_v62 = vld [vmem:[#allocation2 + $0x24] sm:$0x1] }
 0x274   : > { %v12526_v33 = vadd.f32 %v3677_v6, %v3589_v50  ;;  %v1774_v6 = vsel %vm11126_vm5, %v1769_v19, %v1773_v30  ;;  %v1792_v40 = vor.u32 %v1791_v32, %v12529_v60  ;;  %v1803_v50 = vshll.u32 %v12545_v25, 16 }
 0x275   : > { %v2546_v1 = vunpack.c.l.b16 %v1774_v6  ;;  %v9376_v19 = vrot.slane %v12507_v27, 9  ;;  %v1797_v53 = vrot.slane %v1795_v23, 5  ;;  %v2041_v46 = vrot.slane %v2039_v44, 4 }
 0x276   : > { %15400 = vst [vmem:[#allocation41_spill] sm:$0xff] %v12526_v33  ;;  %3906 = vmatmul.bf16.gmra.mxu3 %v2567_v51  ;;  %3995 = vmatmul.bf16.gmra.mxu0 %v2631_v34  ;;  %v12548_v51 = vld [vmem:[%s11052_s22 + $0xa0] sm:$0xf]  ;;  %v1793_v57 = vrot.slane %v1792_v40, 4  ;;  %v2042_v20 = vrot.slane %v9350_v3, 5  ;;  %v1802_v45 = vrot.slane %v1800_v47, 4  ;;  %v2632_v48 = vpack.c.b16 %v2610_v43, %v2609_v15 }
 0x277   : > { %v1809_v34 = vshll.u32 %v12548_v51, 16  ;;  %v1813_v32 = vshrl.u32 %v12548_v51, 16  ;;  %v1805_v37 = vrot.slane %v1803_v50, 5  ;;  %v2568_v6 = vpack.c.b16 %v2546_v1, %v2545_v9  ;;  %v12559_v33 = vld [vmem:[%s11052_s22 + $0xa4] sm:$0x1]  ;;  %v15402_v47 = vld [vmem:[#allocation11_spill] sm:$0xff] }
 0x278   : > { %v4088_v58 = vsel %vm12434_vm8, 0, %v4087_v62  ;;  %v1788_v23 = vsel %vm11126_vm5, %v1783_v4, %v12529_v60  ;;  %v1798_v40 = vsel %vm11126_vm5, %v1793_v57, %v1797_v53  ;;  %v2043_v9 = vsel %vm11117_vm4, %v2041_v46, %v2042_v20  ;;  %v4545_v57 = vld [vmem:[#allocation2 + $0xc] sm:$0xf] }
 0x279   : > { %v3867_v13 = vpop.f32.mrf.mxu3  ;;  %4089 = vst [vmem:[#allocation2 + $0x24] sm:$0x1] %v4088_v58  ;;  %v1819_v43 = vshll.u32 %v12559_v33, 16  ;;  %v2046_v53 = vrot.slane %v12548_v51, 5  ;;  %v12584_v20 = vunpack.c.l.b16 %v1788_v23 }
 0x27a   : > { %v3868_v31 = vadd.f32 %v3867_v13, %v15401_v8  ;;  %v12556_v13 = vrot.slane %v1809_v34, 5  ;;  %v1815_v8 = vrot.slane %v1813_v32, 4  ;;  %v10690_v34 = vld [vmem:[#allocation3 + $0x178] sm:$0xff] }
 0x27b   : > { %v3958_v63 = vpop.f32.mrf.mxu0  ;;  %8035 = vmatpush.bf16.msrb.mxu2 %v10690_v34  ;;  %v1821_v51 = vrot.slane %v1819_v43, 5 }
 0x27c   : > { %v3957_v30 = vadd.f32 %v3956_v16, %v3868_v31  ;;  %v2040_v16 = vsel %vm11117_vm4, %v9376_v19, %v2039_v44  ;;  %v1806_v31 = vor.u32 %v1805_v37, %v1802_v45  ;;  %v10666_v44 = vld [vmem:[#allocation3 + $0xb8] sm:$0xff]  ;;  %v1816_v1 = vor.u32 %v1815_v8, %v12556_v13 }
 0x27d   : > { %v2611_v32 = vunpack.c.l.b16 %v2040_v16  ;;  %7768 = vmatpush.bf16.msrb.mxu3 %v10666_v44  ;;  %v12586_v45 = vunpack.c.l.b16 %v1798_v40  ;;  %v2612_v37 = vunpack.c.l.b16 %v2043_v9  ;;  %v9377_v16 = vrot.slane %v12545_v25, 9  ;;  %v10674_v25 = vld [vmem:[#allocation3 + $0xf8] sm:$0xff] }
 0x27e   : > { %v4036_v49 = vmax.f32 %v3957_v30, 0.0  ;;  %v1817_v62 = vrot.slane %v1816_v1, 4  ;;  %v2048_v40 = vrot.slane %v2046_v53, 4  ;;  %v12613_v1 = vld [vmem:[%s11052_s22 + $0xac] sm:$0xf]  ;;  %7857 = vmatpush.bf16.msrb.mxu0 %v10674_v25 }
 0x27f   : > { %v2047_v25 = vsel %vm11117_vm4, %v9377_v16, %v2046_v53 }
 0x280   : > { %v4188_v27 = vpack.c.bf16 %v4036_v49, %v4036_v49  ;;  %v1807_v49 = vrot.slane %v1806_v31, 4  ;;  %v12600_v31 = vpack.c.b16 %v2612_v37, %v2611_v32  ;;  %v4549_v37 = vld [vmem:[#allocation2 + $0x14] sm:$0x1] }
 0x281   : > { %v3869_v3 = vpop.f32.mrf.mxu3 }
 0x282   : > { %v4223_v15 = vshrl.u32 %v4188_v27, 16  ;;  %v3870_v50 = vadd.f32 %v3869_v3, %v15402_v47  ;;  %v4226_v30 = vshll.u32 %v4188_v27, 16  ;;  %v4143_v27 = vld [vmem:[#allocation2 + $0x2c] sm:$0x1]  ;;  %v1812_v47 = vsel %vm11126_vm5, %v1807_v49, %v12556_v13 }
 0x283   : > { %v3961_v19 = vpop.f32.mrf.mxu0  ;;  %v4144_v23 = vsel %vm12457_vm10, 0, %v4143_v27 }
 0x284   : > { %v12575_v60 = vrot.slane %v4223_v15, 7  ;;  %v3959_v4 = vadd.f32 %v3958_v63, %v3870_v50  ;;  %v10682_v15 = vld [vmem:[#allocation3 + $0x138] sm:$0xff]  ;;  %v12606_v50 = vld [vmem:[%s11052_s22 + $0xa8] sm:$0xf]  ;;  %4145 = vst [vmem:[#allocation2 + $0x2c] sm:$0x1] %v4144_v23 }
 0x285   : > { %7946 = vmatpush.bf16.msrb.mxu1 %v10682_v15  ;;  %v1824_v32 = vshrl.u32 %v12606_v50, 16  ;;  %v1827_v13 = vshll.u32 %v12606_v50, 16  ;;  %v4090_v15 = vld [vmem:[#allocation2 + $0x30] sm:$0x1] }
 0x286   : > { %v4228_v8 = vor.u32 %v4226_v30, %v12575_v60  ;;  %v4037_v63 = vmax.f32 %v3959_v4, 0.0  ;;  %3911 = vmatmul.bf16.gmra.mxu3 %v2568_v6  ;;  %4000 = vmatmul.bf16.gmra.mxu0 %v2632_v48  ;;  %v12596_v6 = vadd.f32 %v12170_v11, %v12188_v0  ;;  %v1822_v11 = vsel %vm11126_vm5, %v1817_v62, %v1821_v51 }
 0x287   : > { %v2049_v0 = vrot.slane %v12559_v33, 5  ;;  %v1833_v30 = vshll.u32 %v12613_v1, 16  ;;  %v1826_v62 = vrot.slane %v1824_v32, 4  ;;  %v1829_v51 = vrot.slane %v1827_v13, 5 }
 0x288   : > { %v4546_v58 = vsel %vm12580_vm12, %v4228_v8, %v4545_v57  ;;  %v4189_v3 = vpack.c.bf16 %v4037_v63, %v4037_v63  ;;  %v12619_v8 = vunpack.c.l.b16 %v1812_v47  ;;  %v12628_v63 = vld [vmem:[%s11052_s22 + $0xb0] sm:$0x1]  ;;  %v4229_v23 = vrot.slane %v12575_v60, 4 }
 0x289   : > { %4547 = vst [vmem:[#allocation2 + $0xc] sm:$0xf] %v4546_v58  ;;  %v3872_v48 = vpop.f32.mrf.mxu3  ;;  %v12630_v27 = vrot.slane %v1833_v30, 5  ;;  %v1830_v47 = vor.u32 %v1829_v51, %v1826_v62  ;;  %v12643_v53 = vunpack.c.l.b16 %v1822_v11  ;;  %v2050_v16 = vsel %vm11117_vm4, %v2048_v40, %v2049_v0  ;;  %v4552_v0 = vld [vmem:[#allocation2 + $0x18] sm:$0xf] }
 0x28a   : > { %v4231_v44 = vshrl.u32 %v4189_v3, 16  ;;  %v3873_v34 = vadd.f32 %v3872_v48, %v12078_v28  ;;  %v1837_v28 = vshrl.u32 %v12613_v1, 16  ;;  %v4234_v57 = vshll.u32 %v4189_v3, 16 }
 0x28b   : > { %v3963_v43 = vpop.f32.mrf.mxu0  ;;  %v12653_v40 = vadd.f32 %v12184_v59, %v12596_v6  ;;  %v2570_v59 = vpack.c.b16 %v12643_v53, %v12619_v8  ;;  %v4146_v6 = vld [vmem:[#allocation2 + $0x38] sm:$0x1] }
 0x28c   : > { %v4233_v4 = vrot.slane %v4231_v44, 7  ;;  %v3962_v49 = vadd.f32 %v3961_v19, %v3873_v34  ;;  %v1839_v58 = vrot.slane %v1837_v28, 4  ;;  %v1843_v34 = vshll.u32 %v12628_v63, 16 }
 0x28d   : > { %v4091_v28 = vsel %vm12434_vm8, 0, %v4090_v15 }
 0x28e   : > { %v4236_v3 = vor.u32 %v4234_v57, %v4233_v4  ;;  %v4238_v48 = vrot.slane %v4233_v4, 4  ;;  %v4038_v19 = vmax.f32 %v3962_v49, 0.0  ;;  %v1840_v44 = vor.u32 %v1839_v58, %v12630_v27  ;;  %4092 = vst [vmem:[#allocation2 + $0x30] sm:$0x1] %v4091_v28 }
 0x28f   : > { %v1831_v58 = vrot.slane %v1830_v47, 4  ;;  %v1845_v15 = vrot.slane %v1843_v34, 5 }
 0x290   : > { %v4237_v32 = vsel %vm12623_vm14, %v4229_v23, %v4236_v3  ;;  %v4550_v13 = vsel %vm12434_vm8, %v4238_v48, %v4549_v37  ;;  %v4190_v30 = vpack.c.bf16 %v4038_v19, %v4038_v19  ;;  %v4660_v60 = vld [vmem:[#allocation2 + $0xc] sm:$0xf]  ;;  %v2053_v37 = vrot.slane %v12613_v1, 5 }
 0x291   : > { %4548 = vst [vmem:[#allocation2 + $0x10] sm:$0xf] %v4237_v32  ;;  %v3874_v4 = vpop.f32.mrf.mxu3  ;;  %v4730_v57 = vshrl.u32 %v4660_v60, 16  ;;  %v4733_v49 = vshll.u32 %v4660_v60, 16  ;;  %v1841_v19 = vrot.slane %v1840_v44, 4  ;;  %v15407_v60 = vpack.c.b16 %v12586_v45, %v12584_v20 }
 0x292   : > { %4551 = vst [vmem:[#allocation2 + $0x14] sm:$0x1] %v4550_v13  ;;  %v4240_v62 = vshrl.u32 %v4190_v30, 16  ;;  %v3875_v51 = vadd.f32 %v3874_v4, %v12091_v18  ;;  %v4243_v32 = vshll.u32 %v4190_v30, 16  ;;  %v2613_v13 = vunpack.c.l.b16 %v2047_v25 }
 0x293   : > { %v3966_v23 = vpop.f32.mrf.mxu0  ;;  %v4732_v3 = vrot.slane %v4730_v57, 4  ;;  %v4735_v48 = vrot.slane %v4733_v49, 5  ;;  %v2614_v18 = vunpack.c.l.b16 %v2050_v16  ;;  %v1846_v25 = vsel %vm11126_vm5, %v1841_v19, %v1845_v15 }
 0x294   : > { %v12649_v11 = vrot.slane %v4240_v62, 7  ;;  %v3964_v9 = vadd.f32 %v3963_v43, %v3875_v51  ;;  %v1836_v43 = vsel %vm11126_vm5, %v1831_v58, %v12630_v27  ;;  %v12668_v34 = vrot.slane %v2053_v37, 4 }
 0x295   : > { %v4736_v44 = vor.u32 %v4735_v48, %v4732_v3  ;;  %v4147_v27 = vsel %vm12457_vm10, 0, %v4146_v6  ;;  %v12677_v16 = vpack.c.b16 %v2614_v18, %v2613_v13  ;;  %v12683_v62 = vunpack.c.l.b16 %v1836_v43  ;;  %v12694_v13 = vld [vmem:[%s11052_s22 + $0xb4] sm:$0xf] }
 0x296   : > { %v4245_v47 = vor.u32 %v4243_v32, %v12649_v11  ;;  %v4039_v1 = vmax.f32 %v3964_v9, 0.0  ;;  %3916 = vmatmul.bf16.gmra.mxu3 %v15407_v60  ;;  %4005 = vmatmul.bf16.gmra.mxu0 %v12600_v31  ;;  %v9378_v9 = vrot.slane %v12606_v50, 9  ;;  %v4246_v20 = vrot.slane %v12649_v11, 4  ;;  %4148 = vst [vmem:[#allocation2 + $0x38] sm:$0x1] %v4147_v27 }
 0x297   : > { %v4737_v3 = vrot.slane %v4736_v44, 4  ;;  %v12687_v32 = vunpack.c.l.b16 %v1846_v25  ;;  %v4556_v60 = vld [vmem:[#allocation2 + $0x20] sm:$0x1]  ;;  %v2056_v6 = vrot.slane %v12628_v63, 5  ;;  %v1851_v25 = vshll.u32 %v12694_v13, 16 }
 0x298   : > { %v4553_v45 = vsel %vm12580_vm12, %v4245_v47, %v4552_v0  ;;  %v4191_v31 = vpack.c.bf16 %v4039_v1, %v4039_v1  ;;  %v10596_v30 = vld [vmem:[#allocation2 + $0xc] sm:$0xff]  ;;  %v12691_v0 = vsel %vm11117_vm4, %v9378_v9, %v2053_v37  ;;  %v1848_v1 = vshrl.u32 %v12694_v13, 16  ;;  %v12702_v27 = vld [vmem:[%s11052_s22 + $0xb8] sm:$0xf] }
 0x299   : > { %v12673_v28 = vld [vmem:[#allocation2 + $0x10] sm:$0xf]  ;;  %4554 = vst [vmem:[#allocation2 + $0x18] sm:$0xf] %v4553_v45  ;;  %v3877_v4 = vpop.f32.mrf.mxu3  ;;  %v12679_v50 = vld [vmem:[#allocation2 + $0x14] sm:$0x1]  ;;  %7603 = vmatmul.bf16.gmra.mxu1 %v10596_v30 }
 0x29a   : > { %v4739_v57 = vshll.u32 %v12673_v28, 16  ;;  %v4743_v49 = vshrl.u32 %v12673_v28, 16  ;;  %v4248_v51 = vshrl.u32 %v4191_v31, 16  ;;  %v3878_v58 = vadd.f32 %v3877_v4, %v12113_v38 }
 0x29b   : > { %v4749_v48 = vshll.u32 %v12679_v50, 16  ;;  %v3968_v19 = vpop.f32.mrf.mxu0  ;;  %v4251_v47 = vshll.u32 %v4191_v31, 16 }
 0x29c   : > { %v4741_v15 = vrot.slane %v4739_v57, 5  ;;  %v4745_v11 = vrot.slane %v4743_v49, 4  ;;  %v4250_v18 = vrot.slane %v4248_v51, 7  ;;  %v3967_v38 = vadd.f32 %v3966_v23, %v3878_v58  ;;  %v4093_v23 = vld [vmem:[#allocation2 + $0x3c] sm:$0x1] }
 0x29d   : > { %v4751_v9 = vrot.slane %v4749_v48, 5  ;;  %v1850_v57 = vrot.slane %v1848_v1, 4  ;;  %v1853_v49 = vrot.slane %v1851_v25, 5 }
 0x29e   : > { %v4742_v44 = vsel %vm11126_vm5, %v4737_v3, %v4741_v15  ;;  %v4746_v43 = vor.u32 %v4745_v11, %v4741_v15  ;;  %v4253_v45 = vor.u32 %v4251_v47, %v4250_v18  ;;  %v4255_v30 = vrot.slane %v4250_v18, 4 }
 0x29f   : > { %v4040_v37 = vmax.f32 %v3967_v38, 0.0  ;;  %v6500_v31 = vunpack.c.l.b16 %v4742_v44  ;;  %v4094_v15 = vsel %vm12434_vm8, 0, %v4093_v23  ;;  %v1857_v38 = vshll.u32 %v12702_v27, 16  ;;  %v10689_v23 = vld [vmem:[#allocation3 + $0x170] sm:$0xff] }
 0x2a0   : > { %v4747_v4 = vrot.slane %v4746_v43, 4  ;;  %v4254_v51 = vsel %vm12623_vm14, %v4246_v20, %v4253_v45  ;;  %v4557_v63 = vsel %vm12434_vm8, %v4255_v30, %v4556_v60  ;;  %v4663_v3 = vld [vmem:[#allocation2 + $0x18] sm:$0xf]  ;;  %v12715_v60 = vld [vmem:[%s11052_s22 + $0xbc] sm:$0x1]  ;;  %v1854_v43 = vor.u32 %v1853_v49, %v1850_v57  ;;  %v10665_v45 = vld [vmem:[#allocation3 + $0xb0] sm:$0xff]  ;;  %8036 = vmatpush.bf16.msrb.mxu2 %v10689_v23 }
 0x2a1   : > { %v4192_v58 = vpack.c.bf16 %v4040_v37, %v4040_v37  ;;  %4555 = vst [vmem:[#allocation2 + $0x1c] sm:$0xf] %v4254_v51  ;;  %v3879_v48 = vpop.f32.mrf.mxu3  ;;  %v4754_v18 = vshrl.u32 %v4663_v3, 16  ;;  %v4757_v47 = vshll.u32 %v4663_v3, 16  ;;  %v2057_v30 = vsel %vm11117_vm4, %v12668_v34, %v2056_v6  ;;  %7769 = vmatpush.bf16.msrb.mxu3 %v10665_v45 }
 0x2a2   : > { %v4752_v11 = vsel %vm11126_vm5, %v4747_v4, %v4751_v9  ;;  %4558 = vst [vmem:[#allocation2 + $0x20] sm:$0x1] %v4557_v63  ;;  %v3880_v20 = vadd.f32 %v3879_v48, %v12123_v56  ;;  %v2615_v37 = vunpack.c.l.b16 %v12691_v0  ;;  %v4559_v48 = vld [vmem:[#allocation2 + $0x24] sm:$0xf]  ;;  %v1859_v49 = vrot.slane %v1857_v38, 5 }
 0x2a3   : > { %v4257_v1 = vshrl.u32 %v4192_v58, 16  ;;  %v6501_v44 = vunpack.c.l.b16 %v4752_v11  ;;  %v3971_v25 = vpop.f32.mrf.mxu0  ;;  %v4756_v9 = vrot.slane %v4754_v18, 4  ;;  %v4759_v4 = vrot.slane %v4757_v47, 5  ;;  %4095 = vst [vmem:[#allocation2 + $0x3c] sm:$0x1] %v4094_v15 }
 0x2a4   : > { %v4260_v63 = vshll.u32 %v4192_v58, 16  ;;  %v3969_v56 = vadd.f32 %v3968_v19, %v3880_v20  ;;  %v1861_v11 = vshrl.u32 %v12702_v27, 16  ;;  %v1867_v34 = vshll.u32 %v12715_v60, 16  ;;  %v4149_v18 = vld [vmem:[#allocation2 + $0x44] sm:$0x1] }
 0x2a5   : > { %v12721_v51 = vrot.slane %v4257_v1, 7  ;;  %v6531_v3 = vpack.c.b16 %v6501_v44, %v6500_v31  ;;  %v4760_v57 = vor.u32 %v4759_v4, %v4756_v9  ;;  %v2616_v19 = vunpack.c.l.b16 %v2057_v30 }
 0x2a6   : > { %v4041_v6 = vmax.f32 %v3969_v56, 0.0  ;;  %3921 = vmatmul.bf16.gmra.mxu3 %v2570_v59  ;;  %4010 = vmatmul.bf16.gmra.mxu0 %v12677_v16  ;;  %v1855_v31 = vrot.slane %v1854_v43, 4  ;;  %v1863_v47 = vrot.slane %v1861_v11, 4  ;;  %v9379_v38 = vrot.slane %v12694_v13, 9 }
 0x2a7   : > { %v4262_v0 = vor.u32 %v4260_v63, %v12721_v51  ;;  %v4263_v58 = vrot.slane %v12721_v51, 4  ;;  %7692 = vmatmul.bf16.gmra.mxu2 %v6531_v3  ;;  %v4761_v15 = vrot.slane %v4760_v57, 4  ;;  %v4150_v8 = vsel %vm12457_vm10, 0, %v4149_v18  ;;  %v10673_v63 = vld [vmem:[#allocation3 + $0xf0] sm:$0xff] }
 0x2a8   : > { %v4193_v20 = vpack.c.bf16 %v4041_v6, %v4041_v6  ;;  %v10597_v44 = vld [vmem:[#allocation2 + $0x18] sm:$0xff]  ;;  %v1869_v53 = vrot.slane %v1867_v34, 5  ;;  %v2571_v16 = vpack.c.b16 %v12687_v32, %v12683_v62  ;;  %v1864_v9 = vor.u32 %v1863_v47, %v1859_v49  ;;  %v10681_v34 = vld [vmem:[#allocation3 + $0x130] sm:$0xff]  ;;  %4151 = vst [vmem:[#allocation2 + $0x44] sm:$0x1] %v4150_v8  ;;  %7858 = vmatpush.bf16.msrb.mxu0 %v10673_v63 }
 0x2a9   : > { %v4560_v1 = vsel %vm12580_vm12, %v4262_v0, %v4559_v48  ;;  %v12734_v45 = vld [vmem:[#allocation2 + $0x1c] sm:$0xf]  ;;  %v3882_v59 = vpop.f32.mrf.mxu3  ;;  %v12740_v43 = vld [vmem:[#allocation2 + $0x20] sm:$0x1]  ;;  %7608 = vmatmul.bf16.gmra.mxu1 %v10597_v44  ;;  %v1860_v56 = vsel %vm11126_vm5, %v1855_v31, %v1859_v49  ;;  %v12748_v48 = vpack.c.b16 %v2616_v19, %v2615_v37  ;;  %v4096_v63 = vld [vmem:[#allocation2 + $0x48] sm:$0x1] }
 0x2aa   : > { %4561 = vst [vmem:[#allocation2 + $0x24] sm:$0xf] %v4560_v1  ;;  %v4763_v13 = vshll.u32 %v12734_v45, 16  ;;  %v4767_v30 = vshrl.u32 %v12734_v45, 16  ;;  %v4265_v4 = vshrl.u32 %v4193_v20, 16  ;;  %v3883_v23 = vadd.f32 %v3882_v59, %v12142_v24  ;;  %7947 = vmatpush.bf16.msrb.mxu1 %v10681_v34 }
 0x2ab   : > { %v4773_v51 = vshll.u32 %v12740_v43, 16  ;;  %v3973_v3 = vpop.f32.mrf.mxu0  ;;  %v1865_v0 = vrot.slane %v1864_v9, 4  ;;  %v4268_v18 = vshll.u32 %v4193_v20, 16  ;;  %v2060_v24 = vrot.slane %v12702_v27, 5  ;;  %v4563_v1 = vld [vmem:[#allocation2 + $0x2c] sm:$0x1] }
 0x2ac   : > { %v4765_v57 = vrot.slane %v4763_v13, 5  ;;  %v4769_v11 = vrot.slane %v4767_v30, 4  ;;  %v4267_v6 = vrot.slane %v4265_v4, 7  ;;  %v3972_v47 = vadd.f32 %v3971_v25, %v3883_v23  ;;  %v4152_v62 = vld [vmem:[#allocation2 + $0x50] sm:$0x1] }
 0x2ad   : > { %v1870_v37 = vsel %vm11126_vm5, %v1865_v0, %v1869_v53  ;;  %v12755_v49 = vunpack.c.l.b16 %v1860_v56  ;;  %v2063_v20 = vrot.slane %v12715_v60, 5  ;;  %v4775_v13 = vrot.slane %v4773_v51, 5 }
 0x2ae   : > { %v4766_v44 = vsel %vm11126_vm5, %v4761_v15, %v4765_v57  ;;  %v4770_v59 = vor.u32 %v4769_v11, %v4765_v57  ;;  %v4270_v19 = vor.u32 %v4268_v18, %v4267_v6  ;;  %v4272_v31 = vrot.slane %v4267_v6, 4  ;;  %v12778_v18 = vld [vmem:[%s11052_s22 + $0xc4] sm:$0xf] }
 0x2af   : > { %v4042_v8 = vmax.f32 %v3972_v47, 0.0  ;;  %v2061_v27 = vsel %vm11117_vm4, %v9379_v38, %v2060_v24  ;;  %v2062_v30 = vrot.slane %v2060_v24, 4  ;;  %v6502_v4 = vunpack.c.l.b16 %v4766_v44 }
 0x2b0   : > { %v4771_v25 = vrot.slane %v4770_v59, 4  ;;  %v4271_v15 = vsel %vm12623_vm14, %v4263_v58, %v4270_v19  ;;  %v4564_v53 = vsel %vm12434_vm8, %v4272_v31, %v4563_v1  ;;  %v12768_v56 = vunpack.c.l.b16 %v1870_v37  ;;  %v12772_v58 = vld [vmem:[%s11052_s22 + $0xc0] sm:$0xf]  ;;  %v4566_v19 = vld [vmem:[#allocation2 + $0x30] sm:$0xf] }
 0x2b1   : > { %v4194_v9 = vpack.c.bf16 %v4042_v8, %v4042_v8  ;;  %v12764_v23 = vld [vmem:[#allocation2 + $0x24] sm:$0xf]  ;;  %4562 = vst [vmem:[#allocation2 + $0x28] sm:$0xf] %v4271_v15  ;;  %v3884_v60 = vpop.f32.mrf.mxu3  ;;  %v2617_v38 = vunpack.c.l.b16 %v2061_v27  ;;  %v2064_v6 = vsel %vm11117_vm4, %v2062_v30, %v2063_v20  ;;  %v4097_v59 = vsel %vm12434_vm8, 0, %v4096_v63 }
 0x2b2   : > { %v4776_v51 = vsel %vm11126_vm5, %v4771_v25, %v4775_v13  ;;  %v4778_v57 = vshrl.u32 %v12764_v23, 16  ;;  %4565 = vst [vmem:[#allocation2 + $0x2c] sm:$0x1] %v4564_v53  ;;  %v3885_v34 = vadd.f32 %v3884_v60, %v12158_v61  ;;  %v4781_v44 = vshll.u32 %v12764_v23, 16  ;;  %v12787_v13 = vld [vmem:[%s11052_s22 + $0xc8] sm:$0x1] }
 0x2b3   : > { %v4274_v11 = vshrl.u32 %v4194_v9, 16  ;;  %v6503_v0 = vunpack.c.l.b16 %v4776_v51  ;;  %v4277_v47 = vshll.u32 %v4194_v9, 16  ;;  %v3976_v24 = vpop.f32.mrf.mxu0  ;;  %4098 = vst [vmem:[#allocation2 + $0x48] sm:$0x1] %v4097_v59  ;;  %v1872_v8 = vshrl.u32 %v12772_v58, 16 }
 0x2b4   : > { %v4780_v1 = vrot.slane %v4778_v57, 4  ;;  %v3974_v31 = vadd.f32 %v3973_v3, %v3885_v34  ;;  %v2618_v25 = vunpack.c.l.b16 %v2064_v6  ;;  %v4783_v20 = vrot.slane %v4781_v44, 5 }
 0x2b5   : > { %v12783_v37 = vrot.slane %v4274_v11, 7  ;;  %v6532_v61 = vpack.c.b16 %v6503_v0, %v6502_v4  ;;  %v1875_v27 = vshll.u32 %v12772_v58, 16  ;;  %v1881_v30 = vshll.u32 %v12778_v18, 16 }
 0x2b6   : > { %v12793_v15 = vadd.f32 %v12210_v7, %v12220_v29  ;;  %v4043_v9 = vmax.f32 %v3974_v31, 0.0  ;;  %3926 = vmatmul.bf16.gmra.mxu3 %v2571_v16  ;;  %4015 = vmatmul.bf16.gmra.mxu0 %v12748_v48  ;;  %v1874_v3 = vrot.slane %v1872_v8, 4  ;;  %v4784_v4 = vor.u32 %v4783_v20, %v4780_v1 }
 0x2b7   : > { %v4279_v53 = vor.u32 %v4277_v47, %v12783_v37  ;;  %7697 = vmatmul.bf16.gmra.mxu2 %v6532_v61  ;;  %v1877_v63 = vrot.slane %v1875_v27, 5  ;;  %v1883_v60 = vrot.slane %v1881_v30, 5  ;;  %v1885_v51 = vshrl.u32 %v12778_v18, 16 }
 0x2b8   : > { %v4195_v29 = vpack.c.bf16 %v4043_v9, %v4043_v9  ;;  %v10598_v57 = vld [vmem:[#allocation2 + $0x24] sm:$0xff]  ;;  %v2572_v11 = vpack.c.b16 %v12768_v56, %v12755_v49  ;;  %v1891_v32 = vshll.u32 %v12787_v13, 16  ;;  %v12808_v48 = vpack.c.b16 %v2618_v25, %v2617_v38 }
 0x2b9   : > { %v4567_v7 = vsel %vm12580_vm12, %v4279_v53, %v4566_v19  ;;  %v12805_v34 = vld [vmem:[#allocation2 + $0x28] sm:$0xf]  ;;  %v3887_v16 = vpop.f32.mrf.mxu3  ;;  %v12810_v0 = vld [vmem:[#allocation2 + $0x2c] sm:$0x1]  ;;  %v4785_v6 = vrot.slane %v4784_v4, 4  ;;  %v1878_v1 = vor.u32 %v1877_v63, %v1874_v3  ;;  %7613 = vmatmul.bf16.gmra.mxu1 %v10598_v57  ;;  %v4153_v38 = vsel %vm12457_vm10, 0, %v4152_v62 }
 0x2ba   : > { %4568 = vst [vmem:[#allocation2 + $0x30] sm:$0xf] %v4567_v7  ;;  %v4787_v47 = vshll.u32 %v12805_v34, 16  ;;  %v4282_v44 = vshrl.u32 %v4195_v29, 16  ;;  %v4285_v59 = vshll.u32 %v4195_v29, 16  ;;  %v3888_v19 = vadd.f32 %v3887_v16, %v12180_v12 }
 0x2bb   : > { %v4791_v31 = vshrl.u32 %v12805_v34, 16  ;;  %v3978_v61 = vpop.f32.mrf.mxu0  ;;  %v4797_v20 = vshll.u32 %v12810_v0, 16  ;;  %v1879_v25 = vrot.slane %v1878_v1, 4  ;;  %4154 = vst [vmem:[#allocation2 + $0x50] sm:$0x1] %v4153_v38  ;;  %v1887_v9 = vrot.slane %v1885_v51, 4 }
 0x2bc   : > { %v4789_v8 = vrot.slane %v4787_v47, 5  ;;  %v4284_v27 = vrot.slane %v4282_v44, 7  ;;  %v3977_v30 = vadd.f32 %v3976_v24, %v3888_v19  ;;  %v4280_v3 = vrot.slane %v12783_v37, 4  ;;  %v4570_v4 = vld [vmem:[#allocation2 + $0x38] sm:$0x1]  ;;  %v10664_v1 = vld [vmem:[#allocation3 + $0xa8] sm:$0xff] }
 0x2bd   : > { %v4793_v53 = vrot.slane %v4791_v31, 4  ;;  %v4799_v63 = vrot.slane %v4797_v20, 5  ;;  %v1884_v7 = vsel %vm11126_vm5, %v1879_v25, %v1883_v60  ;;  %v1888_v24 = vor.u32 %v1887_v9, %v1883_v60  ;;  %7770 = vmatpush.bf16.msrb.mxu3 %v10664_v1  ;;  %v10672_v9 = vld [vmem:[#allocation3 + $0xe8] sm:$0xff] }
 0x2be   : > { %v4790_v12 = vsel %vm11126_vm5, %v4785_v6, %v4789_v8  ;;  %v4287_v29 = vor.u32 %v4285_v59, %v4284_v27  ;;  %v4289_v57 = vrot.slane %v4284_v27, 4  ;;  %v4044_v16 = vmax.f32 %v3977_v30, 0.0  ;;  %7859 = vmatpush.bf16.msrb.mxu0 %v10672_v9 }
 0x2bf   : > { %v4794_v62 = vor.u32 %v4793_v53, %v4789_v8  ;;  %v6504_v47 = vunpack.c.l.b16 %v4790_v12  ;;  %v1893_v44 = vrot.slane %v1891_v32, 5  ;;  %v9380_v51 = vrot.slane %v12772_v58, 9  ;;  %v10688_v53 = vld [vmem:[#allocation3 + $0x168] sm:$0xff] }
 0x2c0   : > { %v4288_v37 = vsel %vm12623_vm14, %v4280_v3, %v4287_v29  ;;  %v4571_v6 = vsel %vm12434_vm8, %v4289_v57, %v4570_v4  ;;  %v4196_v19 = vpack.c.bf16 %v4044_v16, %v4044_v16  ;;  %v1889_v8 = vrot.slane %v1888_v24, 4  ;;  %8037 = vmatpush.bf16.msrb.mxu2 %v10688_v53  ;;  %v12849_v16 = vld [vmem:[%s11052_s22 + $0xcc] sm:$0xf] }
 0x2c1   : > { %v4795_v31 = vrot.slane %v4794_v62, 4  ;;  %v12828_v20 = vld [vmem:[#allocation2 + $0x30] sm:$0xf]  ;;  %4569 = vst [vmem:[#allocation2 + $0x34] sm:$0xf] %v4288_v37  ;;  %v3889_v59 = vpop.f32.mrf.mxu3  ;;  %v2067_v38 = vrot.slane %v12778_v18, 5  ;;  %v12836_v30 = vunpack.c.l.b16 %v1884_v7 }
 0x2c2   : > { %v2070_v60 = vrot.slane %v12787_v13, 5  ;;  %v4802_v58 = vshrl.u32 %v12828_v20, 16  ;;  %4572 = vst [vmem:[#allocation2 + $0x38] sm:$0x1] %v4571_v6  ;;  %v4291_v32 = vshrl.u32 %v4196_v19, 16  ;;  %v3890_v25 = vadd.f32 %v3889_v59, %v12653_v40  ;;  %v10663_v37 = vld [vmem:[#allocation3 + $0xa0] sm:$0xff] }
 0x2c3   : > { %v4800_v27 = vsel %vm11126_vm5, %v4795_v31, %v4799_v63  ;;  %v12838_v3 = vpop.f32.mrf.mxu0  ;;  %v1894_v18 = vsel %vm11126_vm5, %v1889_v8, %v1893_v44  ;;  %v2068_v13 = vsel %vm11117_vm4, %v9380_v51, %v2067_v38  ;;  %v2069_v12 = vrot.slane %v2067_v38, 4  ;;  %v4099_v7 = vld [vmem:[#allocation2 + $0x54] sm:$0x1]  ;;  %v4573_v62 = vld [vmem:[#allocation2 + $0x3c] sm:$0xf]  ;;  %7771 = vmatpush.bf16.msrb.mxu3 %v10663_v37 }
 0x2c4   : > { %v6505_v4 = vunpack.c.l.b16 %v4800_v27  ;;  %v12844_v29 = vrot.slane %v4291_v32, 7  ;;  %v4294_v40 = vshll.u32 %v4196_v19, 16  ;;  %v3979_v57 = vadd.f32 %v3978_v61, %v3890_v25  ;;  %v10671_v6 = vld [vmem:[#allocation3 + $0xe0] sm:$0xff]  ;;  %v12872_v25 = vld [vmem:[%s11052_s22 + $0xd0] sm:$0xf] }
 0x2c5   : > { %v12846_v63 = vunpack.c.l.b16 %v1894_v18  ;;  %v2071_v24 = vsel %vm11117_vm4, %v2069_v12, %v2070_v60  ;;  %v4804_v44 = vrot.slane %v4802_v58, 4  ;;  %v4805_v51 = vshll.u32 %v12828_v20, 16  ;;  %v15408_v58 = vld [vmem:[#allocation13_spill] sm:$0xff]  ;;  %7860 = vmatpush.bf16.msrb.mxu0 %v10671_v6  ;;  %v4577_v37 = vld [vmem:[#allocation2 + $0x44] sm:$0x1] }
 0x2c6   : > { %v6533_v1 = vpack.c.b16 %v6505_v4, %v6504_v47  ;;  %v4296_v19 = vor.u32 %v4294_v40, %v12844_v29  ;;  %v4297_v61 = vrot.slane %v12844_v29, 4  ;;  %v4045_v31 = vmax.f32 %v3979_v57, 0.0  ;;  %3931 = vmatmul.bf16.gmra.mxu3 %v2572_v11  ;;  %4020 = vmatmul.bf16.gmra.mxu0 %v12808_v48  ;;  %v15409_v40 = vld [vmem:[#allocation12_spill] sm:$0xff] }
 0x2c7   : > { %v2619_v47 = vunpack.c.l.b16 %v2068_v13  ;;  %v2620_v59 = vunpack.c.l.b16 %v2071_v24  ;;  %v4807_v8 = vrot.slane %v4805_v51, 5  ;;  %v4100_v38 = vsel %vm12434_vm8, 0, %v4099_v7  ;;  %v4155_v24 = vld [vmem:[#allocation2 + $0x5c] sm:$0x1] }
 0x2c8   : > { %7702 = vmatmul.bf16.gmra.mxu2 %v6533_v1  ;;  %v1896_v60 = vshrl.u32 %v12849_v16, 16  ;;  %v12865_v32 = vadd.f32 %v15408_v58, %v12793_v15  ;;  %v4574_v49 = vsel %vm12580_vm12, %v4296_v19, %v4573_v62  ;;  %v4197_v56 = vpack.c.bf16 %v4045_v31, %v4045_v31  ;;  %v10599_v11 = vld [vmem:[#allocation2 + $0x30] sm:$0xff]  ;;  %4101 = vst [vmem:[#allocation2 + $0x54] sm:$0x1] %v4100_v38  ;;  %v10680_v1 = vld [vmem:[#allocation3 + $0x128] sm:$0xff] }
 0x2c9   : > { %v12869_v48 = vld [vmem:[#allocation2 + $0x34] sm:$0xf]  ;;  %v1899_v27 = vshll.u32 %v12849_v16, 16  ;;  %4575 = vst [vmem:[#allocation2 + $0x3c] sm:$0xf] %v4574_v49  ;;  %v3892_v53 = vpop.f32.mrf.mxu3  ;;  %v4808_v4 = vor.u32 %v4807_v8, %v4804_v44  ;;  %7618 = vmatmul.bf16.gmra.mxu1 %v10599_v11  ;;  %v12882_v7 = vpack.c.b16 %v2620_v59, %v2619_v47  ;;  %v4156_v31 = vsel %vm12457_vm10, 0, %v4155_v24 }
 0x2ca   : > { %v12877_v15 = vld [vmem:[#allocation2 + $0x38] sm:$0x1]  ;;  %v4811_v18 = vshll.u32 %v12869_v48, 16  ;;  %v4815_v13 = vshrl.u32 %v12869_v48, 16  ;;  %v4299_v12 = vshrl.u32 %v4197_v56, 16  ;;  %v3893_v57 = vadd.f32 %v3892_v53, %v15409_v40  ;;  %v10662_v8 = vld [vmem:[#allocation3 + $0x98] sm:$0xff]  ;;  %7948 = vmatpush.bf16.msrb.mxu1 %v10680_v1 }
 0x2cb   : > { %v4821_v62 = vshll.u32 %v12877_v15, 16  ;;  %v4302_v51 = vshll.u32 %v4197_v56, 16  ;;  %v3983_v6 = vpop.f32.mrf.mxu0  ;;  %v10670_v38 = vld [vmem:[#allocation3 + $0xd8] sm:$0xff]  ;;  %v4809_v47 = vrot.slane %v4808_v4, 4  ;;  %4157 = vst [vmem:[#allocation2 + $0x5c] sm:$0x1] %v4156_v31  ;;  %7772 = vmatpush.bf16.msrb.mxu3 %v10662_v8 }
 0x2cc   : > { %v4813_v19 = vrot.slane %v4811_v18, 5  ;;  %v4817_v44 = vrot.slane %v4815_v13, 4  ;;  %v4301_v58 = vrot.slane %v4299_v12, 7  ;;  %v3982_v49 = vadd.f32 %v12838_v3, %v3893_v57  ;;  %v12889_v56 = vld [vmem:[%s11052_s22 + $0xd4] sm:$0x1]  ;;  %7861 = vmatpush.bf16.msrb.mxu0 %v10670_v38  ;;  %v10661_v1 = vld [vmem:[#allocation3 + $0x90] sm:$0xff] }
 0x2cd   : > { %v1898_v59 = vrot.slane %v1896_v60, 4  ;;  %v4823_v53 = vrot.slane %v4821_v62, 5  ;;  %v1901_v40 = vrot.slane %v1899_v27, 5  ;;  %v1905_v18 = vshll.u32 %v12872_v25, 16  ;;  %v10669_v31 = vld [vmem:[#allocation3 + $0xd0] sm:$0xff] }
 0x2ce   : > { %v4818_v11 = vor.u32 %v4817_v44, %v4813_v19  ;;  %v4304_v13 = vor.u32 %v4302_v51, %v4301_v58  ;;  %v4306_v24 = vrot.slane %v4301_v58, 4  ;;  %v4046_v9 = vmax.f32 %v3982_v49, 0.0  ;;  %v13624_v39 = vld [vmem:[#allocation2 + $0x38] sm:$0x1] }
 0x2cf   : > { %v4814_v12 = vsel %vm11126_vm5, %v4809_v47, %v4813_v19  ;;  %v1902_v4 = vor.u32 %v1901_v40, %v1898_v59  ;;  %v1907_v57 = vrot.slane %v1905_v18, 5  ;;  %v1909_v60 = vshrl.u32 %v12872_v25, 16  ;;  %7773 = vmatpush.bf16.msrb.mxu3 %v10661_v1  ;;  %v15411_v59 = vld [vmem:[#allocation14_spill] sm:$0xff] }
 0x2d0   : > { %v4819_v3 = vrot.slane %v4818_v11, 4  ;;  %v4305_v27 = vsel %vm12623_vm14, %v4297_v61, %v4304_v13  ;;  %v4578_v62 = vsel %vm12434_vm8, %v4306_v24, %v4577_v37  ;;  %v4198_v51 = vpack.c.bf16 %v4046_v9, %v4046_v9  ;;  %7862 = vmatpush.bf16.msrb.mxu0 %v10669_v31  ;;  %v15410_v9 = vld [vmem:[#allocation17_spill] sm:$0xff]  ;;  %v10660_v24 = vld [vmem:[#allocation3 + $0x88] sm:$0xff] }
 0x2d1   : > { %v1915_v44 = vshll.u32 %v12889_v56, 16  ;;  %4576 = vst [vmem:[#allocation2 + $0x40] sm:$0xf] %v4305_v27  ;;  %v3894_v19 = vpop.f32.mrf.mxu3  ;;  %v1903_v38 = vrot.slane %v1902_v4, 4  ;;  %v1911_v58 = vrot.slane %v1909_v60, 4  ;;  %v9381_v49 = vrot.slane %v12849_v16, 9 }
 0x2d2   : > { %v4824_v8 = vsel %vm11126_vm5, %v4819_v3, %v4823_v53  ;;  %4579 = vst [vmem:[#allocation2 + $0x44] sm:$0x1] %v4578_v62  ;;  %v4308_v29 = vshrl.u32 %v4198_v51, 16  ;;  %v3895_v61 = vadd.f32 %v3894_v19, %v12865_v32  ;;  %v6506_v47 = vunpack.c.l.b16 %v4814_v12  ;;  %v10668_v3 = vld [vmem:[#allocation3 + $0xc8] sm:$0xff]  ;;  %v12911_v27 = vld [vmem:[#allocation2 + $0x3c] sm:$0xf] }
 0x2d3   : > { %v6507_v37 = vunpack.c.l.b16 %v4824_v8  ;;  %v3722_v11 = vadd.f32 %v15411_v59, %v15410_v9  ;;  %v3986_v40 = vpop.f32.mrf.mxu0  ;;  %v1912_v18 = vor.u32 %v1911_v58, %v1907_v57  ;;  %v1917_v13 = vrot.slane %v1915_v44, 5  ;;  %v4580_v32 = vld [vmem:[#allocation2 + $0x48] sm:$0xf]  ;;  %7774 = vmatpush.bf16.msrb.mxu3 %v10660_v24  ;;  %v10659_v58 = vld [vmem:[#allocation3 + $0x80] sm:$0xff] }
 0x2d4   : > { %v2074_v53 = vrot.slane %v12872_v25, 5  ;;  %v12909_v4 = vrot.slane %v4308_v29, 7  ;;  %v4311_v16 = vshll.u32 %v4198_v51, 16  ;;  %v3984_v60 = vadd.f32 %v3983_v6, %v3895_v61  ;;  %7863 = vmatpush.bf16.msrb.mxu0 %v10668_v3  ;;  %v15413_v29 = vld [vmem:[#allocation16_spill] sm:$0xff]  ;;  %v15414_v3 = vld [vmem:[#allocation15_spill] sm:$0xff] }
 0x2d5   : > { %v6534_v1 = vpack.c.b16 %v6507_v37, %v6506_v47  ;;  %v1908_v12 = vsel %vm11126_vm5, %v1903_v38, %v1907_v57  ;;  %v1913_v62 = vrot.slane %v1912_v18, 4  ;;  %v15412_v51 = vpack.c.b16 %v12846_v63, %v12836_v30  ;;  %v4102_v37 = vld [vmem:[#allocation2 + $0x60] sm:$0x1] }
 0x2d6   : > { %v12917_v31 = vsel %vm11117_vm4, %v9381_v49, %v2074_v53  ;;  %v4313_v25 = vor.u32 %v4311_v16, %v12909_v4  ;;  %v4047_v44 = vmax.f32 %v3984_v60, 0.0  ;;  %4025 = vmatmul.bf16.gmra.mxu0 %v12882_v7  ;;  %v2076_v6 = vrot.slane %v2074_v53, 4  ;;  %v10667_v49 = vld [vmem:[#allocation3 + $0xc0] sm:$0xff] }
 0x2d7   : > { %3936 = vmatmul.bf16.gmra.mxu3 %v15412_v51  ;;  %v2077_v19 = vrot.slane %v12889_v56, 5  ;;  %v1918_v57 = vsel %vm11126_vm5, %v1913_v62, %v1917_v13  ;;  %v4826_v8 = vshrl.u32 %v12911_v27, 16  ;;  %v4829_v38 = vshll.u32 %v12911_v27, 16  ;;  %v4584_v51 = vld [vmem:[#allocation2 + $0x50] sm:$0x1] }
 0x2d8   : > { %7707 = vmatmul.bf16.gmra.mxu2 %v6534_v1  ;;  %v3811_v61 = vadd.f32 %v15413_v29, %v3722_v11  ;;  %v4314_v30 = vrot.slane %v12909_v4, 4  ;;  %v4581_v63 = vsel %vm12580_vm12, %v4313_v25, %v4580_v32  ;;  %v4199_v7 = vpack.c.bf16 %v4047_v44, %v4047_v44  ;;  %v10600_v56 = vld [vmem:[#allocation2 + $0x3c] sm:$0xff]  ;;  %7775 = vmatpush.bf16.msrb.mxu3 %v10659_v58  ;;  %v4158_v1 = vld [vmem:[#allocation2 + $0x68] sm:$0x1] }
 0x2d9   : > { %v12933_v47 = vld [vmem:[#allocation2 + $0x40] sm:$0xf]  ;;  %4582 = vst [vmem:[#allocation2 + $0x48] sm:$0xf] %v4581_v63  ;;  %v3897_v9 = vpop.f32.mrf.mxu3  ;;  %v12935_v59 = vunpack.c.l.b16 %v1908_v12  ;;  %v2621_v18 = vunpack.c.l.b16 %v12917_v31  ;;  %v12938_v13 = vld [vmem:[#allocation2 + $0x44] sm:$0x1]  ;;  %7623 = vmatmul.bf16.gmra.mxu1 %v10600_v56  ;;  %v12941_v16 = vunpack.c.l.b16 %v1918_v57  ;;  %v2078_v60 = vsel %vm11117_vm4, %v2076_v6, %v2077_v19  ;;  %7864 = vmatpush.bf16.msrb.mxu0 %v10667_v49 }
 0x2da   : > { %v4828_v53 = vrot.slane %v4826_v8, 4  ;;  %v4831_v11 = vrot.slane %v4829_v38, 5  ;;  %v4316_v24 = vshrl.u32 %v4199_v7, 16  ;;  %v3898_v4 = vadd.f32 %v3897_v9, %v15414_v3 }
 0x2db   : > { %v4319_v32 = vshll.u32 %v4199_v7, 16  ;;  %v3988_v12 = vpop.f32.mrf.mxu0  ;;  %v4835_v31 = vshll.u32 %v12933_v47, 16  ;;  %v4839_v25 = vshrl.u32 %v12933_v47, 16  ;;  %v4845_v38 = vshll.u32 %v12938_v13, 16 }
 0x2dc   : > { %v4832_v62 = vor.u32 %v4831_v11, %v4828_v53  ;;  %v4318_v44 = vrot.slane %v4316_v24, 7  ;;  %v3987_v8 = vadd.f32 %v3986_v40, %v3898_v4  ;;  %v4103_v57 = vsel %vm12434_vm8, 0, %v4102_v37 }
 0x2dd   : > { %v4837_v29 = vrot.slane %v4835_v31, 5  ;;  %v4841_v6 = vrot.slane %v4839_v25, 4  ;;  %4104 = vst [vmem:[#allocation2 + $0x60] sm:$0x1] %v4103_v57  ;;  %v4159_v19 = vsel %vm12457_vm10, 0, %v4158_v1  ;;  %v2622_v9 = vunpack.c.l.b16 %v2078_v60 }
 0x2de   : > { %v4833_v58 = vrot.slane %v4832_v62, 4  ;;  %v4321_v63 = vor.u32 %v4319_v32, %v4318_v44  ;;  %v4323_v7 = vrot.slane %v4318_v44, 4  ;;  %v4048_v56 = vmax.f32 %v3987_v8, 0.0  ;;  %4160 = vst [vmem:[#allocation2 + $0x68] sm:$0x1] %v4159_v19  ;;  %v10687_v44 = vld [vmem:[#allocation3 + $0x160] sm:$0xff] }
 0x2df   : > { %v3727_v40 = vadd.f32 %v12263_v55, %v12271_v54  ;;  %v3732_v49 = vadd.f32 %v12284_v10, %v12292_v17  ;;  %v4842_v53 = vor.u32 %v4841_v6, %v4837_v29  ;;  %v10808_v60 = vld [vmem:[#allocation2 + $0x4] sm:$0xf]  ;;  %v4847_v32 = vrot.slane %v4845_v38, 5  ;;  %v4105_v6 = vld [vmem:[#allocation2 + $0x6c] sm:$0x1]  ;;  %8038 = vmatpush.bf16.msrb.mxu2 %v10687_v44 }
 0x2e0   : > { %v4838_v37 = vsel %vm11126_vm5, %v4833_v58, %v4837_v29  ;;  %v4322_v11 = vsel %vm12623_vm14, %v4314_v30, %v4321_v63  ;;  %v4585_v24 = vsel %vm12434_vm8, %v4323_v7, %v4584_v51  ;;  %v4200_v3 = vpack.c.bf16 %v4048_v56, %v4048_v56  ;;  %v12962_v4 = vld [vmem:[#allocation2 + $0x48] sm:$0xf]  ;;  %v10809_v29 = vld [vmem:[#allocation2] sm:$0xf] }
 0x2e1   : > { %v5139_v1 = vrot.slane %v10808_v60, 5  ;;  %4583 = vst [vmem:[#allocation2 + $0x4c] sm:$0xf] %v4322_v11  ;;  %v3899_v55 = vpop.f32.mrf.mxu3  ;;  %v4843_v54 = vrot.slane %v4842_v53, 4  ;;  %v4850_v10 = vshrl.u32 %v12962_v4, 16  ;;  %v4853_v17 = vshll.u32 %v12962_v4, 16 }
 0x2e2   : > { %4586 = vst [vmem:[#allocation2 + $0x50] sm:$0x1] %v4585_v24  ;;  %v4325_v62 = vshrl.u32 %v4200_v3, 16  ;;  %v3900_v31 = vadd.f32 %v3899_v55, %v3811_v61  ;;  %v2574_v30 = vpack.c.b16 %v12941_v16, %v12935_v59  ;;  %v2638_v25 = vpack.c.b16 %v2622_v9, %v2621_v18  ;;  %v4587_v61 = vld [vmem:[#allocation2 + $0x54] sm:$0xf]  ;;  %v15416_v55 = vld [vmem:[#allocation21_spill] sm:$0xff] }
 0x2e3   : > { %v4328_v51 = vshll.u32 %v4200_v3, 16  ;;  %v3991_v8 = vpop.f32.mrf.mxu0  ;;  %v4848_v57 = vsel %vm11126_vm5, %v4843_v54, %v4847_v32  ;;  %v6508_v58 = vunpack.c.l.b16 %v4838_v37  ;;  %v9862_v38 = vrot.slane %v10809_v29, 9  ;;  %v10810_v18 = vld [vmem:[#allocation2 + $0x8] sm:$0x1] }
 0x2e4   : > { %v12970_v19 = vrot.slane %v4325_v62, 7  ;;  %v3989_v63 = vadd.f32 %v3988_v12, %v3900_v31  ;;  %v6509_v7 = vunpack.c.l.b16 %v4848_v57  ;;  %v5141_v56 = vrot.slane %v5139_v1, 4  ;;  %v15415_v3 = vld [vmem:[#allocation19_spill] sm:$0xff]  ;;  %v15417_v57 = vld [vmem:[#allocation18_spill] sm:$0xff] }
 0x2e5   : > { %v4852_v53 = vrot.slane %v4850_v10, 4  ;;  %v4855_v59 = vrot.slane %v4853_v17, 5  ;;  %v5142_v16 = vrot.slane %v10810_v18, 5  ;;  %v4106_v9 = vsel %vm12434_vm8, 0, %v4105_v6  ;;  %v4161_v6 = vld [vmem:[#allocation2 + $0x74] sm:$0x1] }
 0x2e6   : > { %v4330_v11 = vor.u32 %v4328_v51, %v12970_v19  ;;  %v4049_v37 = vmax.f32 %v3989_v63, 0.0  ;;  %4030 = vmatmul.bf16.gmra.mxu0 %v2638_v25  ;;  %v6535_v24 = vpack.c.b16 %v6509_v7, %v6508_v58  ;;  %4107 = vst [vmem:[#allocation2 + $0x6c] sm:$0x1] %v4106_v9  ;;  %v3816_v12 = vadd.f32 %v15415_v3, %v3727_v40 }
 0x2e7   : > { %3941 = vmatmul.bf16.gmra.mxu3 %v2574_v30  ;;  %v5140_v60 = vsel %vm11117_vm4, %v9862_v38, %v5139_v1  ;;  %v12979_v54 = vadd.f32 %v15416_v55, %v3732_v49  ;;  %v5146_v31 = vrot.slane %v12673_v28, 5  ;;  %v4856_v40 = vor.u32 %v4855_v59, %v4852_v53  ;;  %v10679_v38 = vld [vmem:[#allocation3 + $0x120] sm:$0xff]  ;;  %v10811_v28 = vld [vmem:[#allocation2 + $0xc] sm:$0xf] }
 0x2e8   : > { %v4588_v32 = vsel %vm12580_vm12, %v4330_v11, %v4587_v61  ;;  %v4201_v10 = vpack.c.bf16 %v4049_v37, %v4049_v37  ;;  %7712 = vmatmul.bf16.gmra.mxu2 %v6535_v24  ;;  %v10601_v17 = vld [vmem:[#allocation2 + $0x48] sm:$0xff]  ;;  %v5143_v44 = vsel %vm11117_vm4, %v5141_v56, %v5142_v16  ;;  %v6562_v29 = vunpack.c.l.b16 %v5140_v60  ;;  %7949 = vmatpush.bf16.msrb.mxu1 %v10679_v38  ;;  %v4591_v24 = vld [vmem:[#allocation2 + $0x5c] sm:$0x1] }
 0x2e9   : > { %v12983_v62 = vld [vmem:[#allocation2 + $0x4c] sm:$0xf]  ;;  %4589 = vst [vmem:[#allocation2 + $0x54] sm:$0xf] %v4588_v32  ;;  %v3902_v30 = vpop.f32.mrf.mxu3  ;;  %v12986_v25 = vld [vmem:[#allocation2 + $0x50] sm:$0x1]  ;;  %7628 = vmatmul.bf16.gmra.mxu1 %v10601_v17  ;;  %v6563_v16 = vunpack.c.l.b16 %v5143_v44 }
 0x2ea   : > { %v4859_v1 = vshll.u32 %v12983_v62, 16  ;;  %v4863_v49 = vshrl.u32 %v12983_v62, 16  ;;  %v4333_v51 = vshrl.u32 %v4201_v10, 16  ;;  %v3903_v58 = vadd.f32 %v3902_v30, %v15417_v57 }
 0x2eb   : > { %v9863_v63 = vrot.slane %v10811_v28, 9  ;;  %v3993_v7 = vpop.f32.mrf.mxu0  ;;  %v4869_v53 = vshll.u32 %v12986_v25, 16  ;;  %v4162_v59 = vsel %vm12457_vm10, 0, %v4161_v6  ;;  %v4336_v11 = vshll.u32 %v4201_v10, 16 }
 0x2ec   : > { %v4861_v61 = vrot.slane %v4859_v1, 5  ;;  %v4865_v18 = vrot.slane %v4863_v49, 4  ;;  %v4335_v9 = vrot.slane %v4333_v51, 7  ;;  %v3992_v56 = vadd.f32 %v3991_v8, %v3903_v58  ;;  %4163 = vst [vmem:[#allocation2 + $0x74] sm:$0x1] %v4162_v59  ;;  %v13004_v51 = vpop.f32.mrf.mxu1 }
 0x2ed   : > { %v4331_v37 = vrot.slane %v12970_v19, 4  ;;  %v4857_v3 = vrot.slane %v4856_v40, 4  ;;  %v5148_v55 = vrot.slane %v5146_v31, 4  ;;  %v12999_v1 = vsel %vm11117_vm4, %v9863_v63, %v5146_v31 }
 0x2ee   : > { %v4866_v60 = vor.u32 %v4865_v18, %v4861_v61  ;;  %v4338_v32 = vor.u32 %v4336_v11, %v4335_v9  ;;  %v4340_v17 = vrot.slane %v4335_v9, 4  ;;  %v4050_v30 = vmax.f32 %v3992_v56, 0.0 }
 0x2ef   : > { %v4862_v10 = vsel %vm11126_vm5, %v4857_v3, %v4861_v61  ;;  %v4871_v49 = vrot.slane %v4869_v53, 5  ;;  %v5149_v44 = vrot.slane %v12679_v50, 5  ;;  %v6594_v58 = vpack.c.b16 %v6563_v16, %v6562_v29  ;;  %v4108_v16 = vld [vmem:[#allocation2 + $0x78] sm:$0x1] }
 0x2f0   : > { %v4867_v8 = vrot.slane %v4866_v60, 4  ;;  %v4339_v19 = vsel %vm12623_vm14, %v4331_v37, %v4338_v32  ;;  %v4592_v40 = vsel %vm12434_vm8, %v4340_v17, %v4591_v24  ;;  %v4202_v57 = vpack.c.bf16 %v4050_v30, %v4050_v30  ;;  %v13010_v38 = vld [vmem:[#allocation2 + $0x54] sm:$0xf]  ;;  %v10611_v32 = vld [vmem:[#allocation2 + $0xc] sm:$0xff]  ;;  %v4594_v17 = vld [vmem:[#allocation2 + $0x60] sm:$0xf] }
 0x2f1   : > { %4590 = vst [vmem:[#allocation2 + $0x58] sm:$0xf] %v4339_v19  ;;  %v3904_v31 = vpop.f32.mrf.mxu3  ;;  %v4874_v28 = vshrl.u32 %v13010_v38, 16  ;;  %v4877_v50 = vshll.u32 %v13010_v38, 16  ;;  %v5150_v63 = vsel %vm11117_vm4, %v5148_v55, %v5149_v44  ;;  %v6510_v53 = vunpack.c.l.b16 %v4862_v10 }
 0x2f2   : > { %v4872_v6 = vsel %vm11126_vm5, %v4867_v8, %v4871_v49  ;;  %4593 = vst [vmem:[#allocation2 + $0x5c] sm:$0x1] %v4592_v40  ;;  %v4342_v61 = vshrl.u32 %v4202_v57, 16  ;;  %v3905_v18 = vadd.f32 %v3904_v31, %v3816_v12  ;;  %v13020_v29 = vadd.f32 %v12305_v22, %v12313_v35  ;;  %v13029_v22 = vld [vmem:[%s15348_s4] ss:$0 sm:$0xff] }
 0x2f3   : > { %v6511_v59 = vunpack.c.l.b16 %v4872_v6  ;;  %v3996_v9 = vpop.f32.mrf.mxu0  ;;  %v4876_v11 = vrot.slane %v4874_v28, 4  ;;  %v4879_v56 = vrot.slane %v4877_v50, 5  ;;  %v5153_v37 = vrot.slane %v12734_v45, 5 }
 0x2f4   : > { %v13023_v24 = vrot.slane %v4342_v61, 7  ;;  %v4345_v3 = vshll.u32 %v4202_v57, 16  ;;  %v3994_v60 = vadd.f32 %v3993_v7, %v3905_v18  ;;  %v6564_v30 = vunpack.c.l.b16 %v12999_v1 }
 0x2f5   : > { %v6536_v55 = vpack.c.b16 %v6511_v59, %v6510_v53  ;;  %v4880_v12 = vor.u32 %v4879_v56, %v4876_v11  ;;  %v6565_v10 = vunpack.c.l.b16 %v5150_v63  ;;  %v4109_v35 = vsel %vm12434_vm8, 0, %v4108_v16  ;;  %v13055_v11 = vpop.f32.mrf.mxu2  ;;  %v15418_v16 = vld [vmem:[#allocation20_spill] sm:$0xff] }
 0x2f6   : > { %v4347_v8 = vor.u32 %v4345_v3, %v13023_v24  ;;  %v4051_v49 = vmax.f32 %v3994_v60, 0.0  ;;  %7865 = vmatmul.bf16.vlgmr.msrb.gmra.mxu0 %v10611_v32  ;;  %4110 = vst [vmem:[#allocation2 + $0x78] sm:$0x1] %v4109_v35  ;;  %v9865_v7 = vrot.slane %v12764_v23, 9  ;;  %v5160_v44 = vrot.slane %v12805_v34, 5  ;;  %v7599_v23 = vpop.f32.mrf.mxu1 }
 0x2f7   : > { %7776 = vmatmul.bf16.vlgmr.msrb.gmra.mxu3 %v6594_v58  ;;  %v4348_v1 = vrot.slane %v13023_v24, 4  ;;  %v4881_v19 = vrot.slane %v4880_v12, 4  ;;  %v13039_v40 = vrot.slane %v5153_v37, 4  ;;  %v5163_v57 = vrot.slane %v12810_v0, 5  ;;  %v4164_v60 = vld [vmem:[#allocation2 + $0x80] sm:$0x1] }
 0x2f8   : > { %v4595_v31 = vsel %vm12580_vm12, %v4347_v8, %v4594_v17  ;;  %v4203_v6 = vpack.c.bf16 %v4051_v49, %v4051_v49  ;;  %7717 = vmatmul.bf16.gmra.mxu2 %v6536_v55  ;;  %v10602_v58 = vld [vmem:[#allocation2 + $0x54] sm:$0xff]  ;;  %v5161_v34 = vsel %vm11117_vm4, %v9865_v7, %v5160_v44  ;;  %v5162_v50 = vrot.slane %v5160_v44, 4  ;;  %v4598_v44 = vld [vmem:[#allocation2 + $0x68] sm:$0x1] }
 0x2f9   : > { %v13044_v28 = vld [vmem:[#allocation2 + $0x58] sm:$0xf]  ;;  %4596 = vst [vmem:[#allocation2 + $0x60] sm:$0xf] %v4595_v31  ;;  %v3907_v63 = vpop.f32.mrf.mxu3  ;;  %v13048_v61 = vld [vmem:[#allocation2 + $0x5c] sm:$0x1]  ;;  %v13052_v53 = vpack.c.b16 %v6565_v10, %v6564_v30  ;;  %v7600_v59 = vadd.f32 %v13029_v22, %v7599_v23  ;;  %7633 = vmatmul.bf16.gmra.mxu1 %v10602_v58  ;;  %v6568_v10 = vunpack.c.l.b16 %v5161_v34 }
 0x2fa   : > { %v4883_v18 = vshll.u32 %v13044_v28, 16  ;;  %v4887_v0 = vshrl.u32 %v13044_v28, 16  ;;  %v4350_v56 = vshrl.u32 %v4203_v6, 16  ;;  %v3908_v24 = vadd.f32 %v3907_v63, %v15418_v16 }
 0x2fb   : > { %v4893_v3 = vshll.u32 %v13048_v61, 16  ;;  %v9866_v55 = vrot.slane %v12828_v20, 9  ;;  %v3998_v32 = vpop.f32.mrf.mxu0  ;;  %v4165_v30 = vsel %vm12457_vm10, 0, %v4164_v60  ;;  %v4353_v8 = vshll.u32 %v4203_v6, 16 }
 0x2fc   : > { %v4885_v17 = vrot.slane %v4883_v18, 5  ;;  %v4889_v12 = vrot.slane %v4887_v0, 4  ;;  %v4352_v35 = vrot.slane %v4350_v56, 7  ;;  %v3997_v49 = vadd.f32 %v3996_v9, %v3908_v24  ;;  %4166 = vst [vmem:[#allocation2 + $0x80] sm:$0x1] %v4165_v30 }
 0x2fd   : > { %v5164_v7 = vsel %vm11117_vm4, %v5162_v50, %v5163_v57  ;;  %v4895_v58 = vrot.slane %v4893_v3, 5  ;;  %v5167_v20 = vrot.slane %v12869_v48, 5  ;;  %v5156_v24 = vrot.slane %v12740_v43, 5 }
 0x2fe   : > { %v4890_v31 = vor.u32 %v4889_v12, %v4885_v17  ;;  %v6569_v23 = vunpack.c.l.b16 %v5164_v7  ;;  %v4355_v63 = vor.u32 %v4353_v8, %v4352_v35  ;;  %v4357_v18 = vrot.slane %v4352_v35, 4  ;;  %v7688_v35 = vpop.f32.mrf.mxu2 }
 0x2ff   : > { %v4052_v0 = vmax.f32 %v3997_v49, 0.0  ;;  %v4886_v16 = vsel %vm11126_vm5, %v4881_v19, %v4885_v17  ;;  %v5168_v9 = vsel %vm11117_vm4, %v9866_v55, %v5167_v20  ;;  %v5169_v6 = vrot.slane %v5167_v20, 4 }
 0x300   : > { %v4891_v34 = vrot.slane %v4890_v31, 4  ;;  %v13067_v56 = vpack.c.b16 %v6569_v23, %v6568_v10  ;;  %v4356_v57 = vsel %vm12623_vm14, %v4348_v1, %v4355_v63  ;;  %v4599_v50 = vsel %vm12434_vm8, %v4357_v18, %v4598_v44  ;;  %v13080_v8 = vld [vmem:[#allocation2 + $0x60] sm:$0xf]  ;;  %v10686_v31 = vld [vmem:[#allocation3 + $0x158] sm:$0xff]  ;;  %v4111_v63 = vld [vmem:[#allocation2 + $0x84] sm:$0x1] }
 0x301   : > { %v4204_v48 = vpack.c.bf16 %v4052_v0, %v4052_v0  ;;  %4597 = vst [vmem:[#allocation2 + $0x64] sm:$0xf] %v4356_v57  ;;  %v3909_v3 = vpop.f32.mrf.mxu3  ;;  %v6512_v60 = vunpack.c.l.b16 %v4886_v16  ;;  %v5170_v17 = vrot.slane %v12877_v15, 5  ;;  %v6570_v12 = vunpack.c.l.b16 %v5168_v9  ;;  %v4601_v0 = vld [vmem:[#allocation2 + $0x6c] sm:$0xf]  ;;  %8039 = vmatpush.bf16.msrb.mxu2 %v10686_v31  ;;  %v10678_v31 = vld [vmem:[#allocation3 + $0x118] sm:$0xff] }
 0x302   : > { %v4896_v19 = vsel %vm11126_vm5, %v4891_v34, %v4895_v58  ;;  %4600 = vst [vmem:[#allocation2 + $0x68] sm:$0x1] %v4599_v50  ;;  %v3910_v1 = vadd.f32 %v3909_v3, %v12979_v54  ;;  %v13082_v43 = vadd.f32 %v7688_v35, %v7600_v59  ;;  %v4898_v7 = vshrl.u32 %v13080_v8, 16  ;;  %v10612_v54 = vld [vmem:[#allocation2 + $0x18] sm:$0xff]  ;;  %v15419_v3 = vld [vmem:[#allocation23_spill] sm:$0xff]  ;;  %7950 = vmatpush.bf16.msrb.mxu1 %v10678_v31 }
 0x303   : > { %v4359_v55 = vshrl.u32 %v4204_v48, 16  ;;  %v4362_v30 = vshll.u32 %v4204_v48, 16  ;;  %v6513_v10 = vunpack.c.l.b16 %v4896_v19  ;;  %v4001_v49 = vpop.f32.mrf.mxu0  ;;  %v4901_v44 = vshll.u32 %v13080_v8, 16  ;;  %v10812_v50 = vld [vmem:[#allocation2 + $0x18] sm:$0xf] }
 0x304   : > { %v5171_v15 = vsel %vm11117_vm4, %v5169_v6, %v5170_v17  ;;  %v3999_v23 = vadd.f32 %v3998_v32, %v3910_v1  ;;  %v4900_v16 = vrot.slane %v4898_v7, 4  ;;  %v13093_v59 = vsel %vm11117_vm4, %v13039_v40, %v5156_v24  ;;  %v15420_v7 = vld [vmem:[#allocation22_spill] sm:$0xff] }
 0x305   : > { %v13088_v58 = vrot.slane %v4359_v55, 7  ;;  %v6537_v20 = vpack.c.b16 %v6513_v10, %v6512_v60  ;;  %v6571_v18 = vunpack.c.l.b16 %v5171_v15  ;;  %v4903_v34 = vrot.slane %v4901_v44, 5  ;;  %v4167_v15 = vld [vmem:[#allocation2 + $0x8c] sm:$0x1] }
 0x306   : > { %v4112_v9 = vsel %vm12434_vm8, 0, %v4111_v63  ;;  %v4053_v57 = vmax.f32 %v3999_v23, 0.0  ;;  %7870 = vmatmul.bf16.gmra.mxu0 %v10612_v54  ;;  %v9864_v48 = vrot.slane %v10812_v50, 9  ;;  %v3826_v19 = vadd.f32 %v15419_v3, %v13020_v29 }
 0x307   : > { %v4364_v6 = vor.u32 %v4362_v30, %v13088_v58  ;;  %7781 = vmatmul.bf16.gmra.mxu3 %v13052_v53  ;;  %4113 = vst [vmem:[#allocation2 + $0x84] sm:$0x1] %v4112_v9  ;;  %v13099_v32 = vpack.c.b16 %v6571_v18, %v6570_v12  ;;  %v5174_v55 = vrot.slane %v12933_v47, 5  ;;  %v4904_v12 = vor.u32 %v4903_v34, %v4900_v16  ;;  %v4605_v9 = vld [vmem:[#allocation2 + $0x74] sm:$0x1] }
 0x308   : > { %v4205_v24 = vpack.c.bf16 %v4053_v57, %v4053_v57  ;;  %7722 = vmatmul.bf16.gmra.mxu2 %v6537_v20  ;;  %v10603_v60 = vld [vmem:[#allocation2 + $0x60] sm:$0xff]  ;;  %v5154_v29 = vsel %vm11117_vm4, %v9864_v48, %v5153_v37  ;;  %v6567_v10 = vunpack.c.l.b16 %v13093_v59  ;;  %v9867_v23 = vrot.slane %v12911_v27, 9  ;;  %v13125_v27 = vpop.f32.mrf.mxu1 }
 0x309   : > { %v4602_v40 = vsel %vm12580_vm12, %v4364_v6, %v4601_v0  ;;  %v13105_v17 = vld [vmem:[#allocation2 + $0x64] sm:$0xf]  ;;  %v3912_v53 = vpop.f32.mrf.mxu3  ;;  %v13108_v30 = vld [vmem:[#allocation2 + $0x68] sm:$0x1]  ;;  %7638 = vmatmul.bf16.gmra.mxu1 %v10603_v60  ;;  %v4168_v37 = vsel %vm12457_vm10, 0, %v4167_v15  ;;  %v4365_v59 = vrot.slane %v13088_v58, 4 }
 0x30a   : > { %4603 = vst [vmem:[#allocation2 + $0x6c] sm:$0xf] %v4602_v40  ;;  %v4907_v1 = vshll.u32 %v13105_v17, 16  ;;  %v4367_v35 = vshrl.u32 %v4205_v24, 16  ;;  %v3913_v44 = vadd.f32 %v3912_v53, %v15420_v7  ;;  %v4911_v47 = vshrl.u32 %v13105_v17, 16 }
 0x30b   : > { %v4370_v20 = vshll.u32 %v4205_v24, 16  ;;  %v4003_v54 = vpop.f32.mrf.mxu0  ;;  %v4917_v45 = vshll.u32 %v13108_v30, 16  ;;  %4169 = vst [vmem:[#allocation2 + $0x8c] sm:$0x1] %v4168_v37  ;;  %v5175_v34 = vsel %vm11117_vm4, %v9867_v23, %v5174_v55  ;;  %v4905_v6 = vrot.slane %v4904_v12, 4 }
 0x30c   : > { %v4909_v63 = vrot.slane %v4907_v1, 5  ;;  %v4369_v18 = vrot.slane %v4367_v35, 7  ;;  %v4002_v0 = vadd.f32 %v4001_v49, %v3913_v44  ;;  %v4913_v16 = vrot.slane %v4911_v47, 4  ;;  %15421 = vst [vmem:[#allocation10_spill] sm:$0xff] %v13125_v27 }
 0x30d   : > { %v5176_v57 = vrot.slane %v5174_v55, 4  ;;  %v5177_v50 = vrot.slane %v12938_v13, 5  ;;  %v4919_v60 = vrot.slane %v4917_v45, 5  ;;  %v6566_v53 = vunpack.c.l.b16 %v5154_v29 }
 0x30e   : > { %v4372_v48 = vor.u32 %v4370_v20, %v4369_v18  ;;  %v4374_v3 = vrot.slane %v4369_v18, 4  ;;  %v4054_v40 = vmax.f32 %v4002_v0, 0.0  ;;  %v4914_v24 = vor.u32 %v4913_v16, %v4909_v63  ;;  %v4114_v0 = vld [vmem:[#allocation2 + $0x90] sm:$0x1] }
 0x30f   : > { %v4910_v49 = vsel %vm11126_vm5, %v4905_v6, %v4909_v63  ;;  %v5178_v1 = vsel %vm11117_vm4, %v5176_v57, %v5177_v50  ;;  %v6596_v7 = vpack.c.b16 %v6567_v10, %v6566_v53  ;;  %v6572_v44 = vunpack.c.l.b16 %v5175_v34  ;;  %v4608_v6 = vld [vmem:[#allocation2 + $0x78] sm:$0xf] }
 0x310   : > { %v4373_v58 = vsel %vm12623_vm14, %v4365_v59, %v4372_v48  ;;  %v4606_v55 = vsel %vm12434_vm8, %v4374_v3, %v4605_v9  ;;  %v4206_v12 = vpack.c.bf16 %v4054_v40, %v4054_v40  ;;  %v4915_v13 = vrot.slane %v4914_v24, 4  ;;  %v10613_v9 = vld [vmem:[#allocation2 + $0x24] sm:$0xff] }
 0x311   : > { %4604 = vst [vmem:[#allocation2 + $0x70] sm:$0xf] %v4373_v58  ;;  %v3914_v35 = vpop.f32.mrf.mxu3  ;;  %v6573_v47 = vunpack.c.l.b16 %v5178_v1  ;;  %v6514_v23 = vunpack.c.l.b16 %v4910_v49  ;;  %v13138_v20 = vld [vmem:[#allocation2 + $0x6c] sm:$0xf]  ;;  %v5181_v1 = vrot.slane %v12983_v62, 5 }
 0x312   : > { %4607 = vst [vmem:[#allocation2 + $0x74] sm:$0x1] %v4606_v55  ;;  %v4376_v31 = vshrl.u32 %v4206_v12, 16  ;;  %v3915_v15 = vadd.f32 %v3914_v35, %v3826_v19  ;;  %v4920_v29 = vsel %vm11126_vm5, %v4915_v13, %v4919_v60  ;;  %v4922_v37 = vshrl.u32 %v13138_v20, 16 }
 0x313   : > { %v4006_v63 = vpop.f32.mrf.mxu0  ;;  %v6515_v45 = vunpack.c.l.b16 %v4920_v29  ;;  %v4925_v18 = vshll.u32 %v13138_v20, 16  ;;  %v13142_v16 = vpack.c.b16 %v6573_v47, %v6572_v44  ;;  %v4379_v34 = vshll.u32 %v4206_v12, 16  ;;  %v15422_v44 = vld [vmem:[#allocation24_spill] sm:$0xff]  ;;  %v4170_v29 = vld [vmem:[#allocation2 + $0x98] sm:$0x1] }
 0x314   : > { %v4378_v10 = vrot.slane %v4376_v31, 7  ;;  %v4004_v59 = vadd.f32 %v4003_v54, %v3915_v15  ;;  %v4115_v19 = vsel %vm12434_vm8, 0, %v4114_v0  ;;  %v4924_v50 = vrot.slane %v4922_v37, 4 }
 0x315   : > { %v6538_v57 = vpack.c.b16 %v6515_v45, %v6514_v23  ;;  %v4927_v48 = vrot.slane %v4925_v18, 5  ;;  %4116 = vst [vmem:[#allocation2 + $0x90] sm:$0x1] %v4115_v19  ;;  %v9868_v13 = vrot.slane %v12962_v4, 9  ;;  %v3742_v35 = vadd.f32 %v12326_v14, %v12334_v52 }
 0x316   : > { %v4381_v3 = vor.u32 %v4379_v34, %v4378_v10  ;;  %v4055_v40 = vmax.f32 %v4004_v59, 0.0  ;;  %7875 = vmatmul.bf16.gmra.mxu0 %v10613_v9  ;;  %v13146_v24 = vpop.f32.mrf.mxu1  ;;  %v4382_v62 = vrot.slane %v4378_v10, 4  ;;  %v4171_v37 = vsel %vm12457_vm10, 0, %v4170_v29  ;;  %v4612_v34 = vld [vmem:[#allocation2 + $0x80] sm:$0x1] }
 0x317   : > { %7786 = vmatmul.bf16.gmra.mxu3 %v6596_v7  ;;  %v4928_v55 = vor.u32 %v4927_v48, %v4924_v50  ;;  %v5182_v4 = vsel %vm11117_vm4, %v9868_v13, %v5181_v1  ;;  %4172 = vst [vmem:[#allocation2 + $0x98] sm:$0x1] %v4171_v37  ;;  %v5183_v19 = vrot.slane %v5181_v1, 4  ;;  %v5184_v10 = vrot.slane %v12986_v25, 5 }
 0x318   : > { %v4609_v49 = vsel %vm12580_vm12, %v4381_v3, %v4608_v6  ;;  %v4207_v60 = vpack.c.bf16 %v4055_v40, %v4055_v40  ;;  %7727 = vmatmul.bf16.gmra.mxu2 %v6538_v57  ;;  %v10604_v54 = vld [vmem:[#allocation2 + $0x6c] sm:$0xff]  ;;  %v6574_v13 = vunpack.c.l.b16 %v5182_v4 }
 0x319   : > { %v13150_v53 = vld [vmem:[#allocation2 + $0x70] sm:$0xf]  ;;  %4610 = vst [vmem:[#allocation2 + $0x78] sm:$0xf] %v4609_v49  ;;  %v3917_v58 = vpop.f32.mrf.mxu3  ;;  %7643 = vmatmul.bf16.gmra.mxu1 %v10604_v54  ;;  %v13158_v31 = vld [vmem:[#allocation2 + $0x74] sm:$0x1] }
 0x31a   : > { %v4931_v12 = vshll.u32 %v13150_v53, 16  ;;  %v4384_v7 = vshrl.u32 %v4207_v60, 16  ;;  %v3918_v47 = vadd.f32 %v3917_v58, %v15422_v44  ;;  %v4935_v15 = vshrl.u32 %v13150_v53, 16  ;;  %v15423_v49 = vld [vmem:[#allocation25_spill] sm:$0xff] }
 0x31b   : > { %v4008_v23 = vpop.f32.mrf.mxu0  ;;  %v4387_v14 = vshll.u32 %v4207_v60, 16  ;;  %v4929_v59 = vrot.slane %v4928_v55, 4  ;;  %v4941_v9 = vshll.u32 %v13158_v31, 16  ;;  %v3831_v60 = vadd.f32 %v15423_v49, %v3742_v35 }
 0x31c   : > { %v4933_v45 = vrot.slane %v4931_v12, 5  ;;  %v4386_v18 = vrot.slane %v4384_v7, 7  ;;  %v4007_v52 = vadd.f32 %v4006_v63, %v3918_v47  ;;  %v4937_v0 = vrot.slane %v4935_v15, 4  ;;  %v13178_v47 = vpop.f32.mrf.mxu2 }
 0x31d   : > { %v5185_v63 = vsel %vm11117_vm4, %v5183_v19, %v5184_v10  ;;  %v4943_v12 = vrot.slane %v4941_v9, 5  ;;  %15424 = vst [vmem:[#allocation11_spill] sm:$0xff] %v13178_v47  ;;  %v10614_v9 = vld [vmem:[#allocation2 + $0x30] sm:$0xff]  ;;  %v4117_v19 = vld [vmem:[#allocation2 + $0x9c] sm:$0x1] }
 0x31e   : > { %v4389_v6 = vor.u32 %v4387_v14, %v4386_v18  ;;  %v4391_v57 = vrot.slane %v4386_v18, 4  ;;  %v4056_v50 = vmax.f32 %v4007_v52, 0.0  ;;  %v4938_v48 = vor.u32 %v4937_v0, %v4933_v45  ;;  %v13167_v3 = vpop.f32.mrf.mxu1  ;;  %v10685_v14 = vld [vmem:[#allocation3 + $0x150] sm:$0xff]  ;;  %v4615_v10 = vld [vmem:[#allocation2 + $0x84] sm:$0xf] }
 0x31f   : > { %v4934_v40 = vsel %vm11126_vm5, %v4929_v59, %v4933_v45  ;;  %v6575_v7 = vunpack.c.l.b16 %v5185_v63  ;;  %8040 = vmatpush.bf16.msrb.mxu2 %v10685_v14 }
 0x320   : > { %v4390_v54 = vsel %vm12623_vm14, %v4382_v62, %v4389_v6  ;;  %v4613_v25 = vsel %vm12434_vm8, %v4391_v57, %v4612_v34  ;;  %v4208_v1 = vpack.c.bf16 %v4056_v50, %v4056_v50  ;;  %v4939_v55 = vrot.slane %v4938_v48, 4  ;;  %v4687_v35 = vld [vmem:[#allocation2 + $0x78] sm:$0xf] }
 0x321   : > { %4611 = vst [vmem:[#allocation2 + $0x7c] sm:$0xf] %v4390_v54  ;;  %v3919_v58 = vpop.f32.mrf.mxu3  ;;  %v6516_v29 = vunpack.c.l.b16 %v4934_v40  ;;  %v4946_v37 = vshrl.u32 %v4687_v35, 16  ;;  %v4949_v18 = vshll.u32 %v4687_v35, 16  ;;  %v13182_v52 = vpack.c.b16 %v6575_v7, %v6574_v13 }
 0x322   : > { %4614 = vst [vmem:[#allocation2 + $0x80] sm:$0x1] %v4613_v25  ;;  %v4393_v44 = vshrl.u32 %v4208_v1, 16  ;;  %v3920_v15 = vadd.f32 %v3919_v58, %v3831_v60  ;;  %v4944_v62 = vsel %vm11126_vm5, %v4939_v55, %v4943_v12  ;;  %v4396_v4 = vshll.u32 %v4208_v1, 16 }
 0x323   : > { %v4011_v45 = vpop.f32.mrf.mxu0  ;;  %v6517_v59 = vunpack.c.l.b16 %v4944_v62  ;;  %v4948_v6 = vrot.slane %v4946_v37, 4  ;;  %v4951_v57 = vrot.slane %v4949_v18, 5  ;;  %v4118_v50 = vsel %vm12434_vm8, 0, %v4117_v19 }
 0x324   : > { %v13184_v0 = vrot.slane %v4393_v44, 7  ;;  %v4009_v34 = vadd.f32 %v4008_v23, %v3920_v15  ;;  %4119 = vst [vmem:[#allocation2 + $0x9c] sm:$0x1] %v4118_v50  ;;  %v9869_v58 = vrot.slane %v13010_v38, 9  ;;  %v5188_v55 = vrot.slane %v13044_v28, 5 }
 0x325   : > { %v6539_v63 = vpack.c.b16 %v6517_v59, %v6516_v29  ;;  %v4952_v23 = vor.u32 %v4951_v57, %v4948_v6  ;;  %v7605_v12 = vadd.f32 %v13029_v22, %v13146_v24  ;;  %v5191_v57 = vrot.slane %v13048_v61, 5 }
 0x326   : > { %v4398_v48 = vor.u32 %v4396_v4, %v13184_v0  ;;  %v4057_v40 = vmax.f32 %v4009_v34, 0.0  ;;  %7880 = vmatmul.bf16.gmra.mxu0 %v10614_v9  ;;  %v13190_v49 = vpop.f32.mrf.mxu1  ;;  %v4399_v13 = vrot.slane %v13184_v0, 4  ;;  %v4619_v9 = vld [vmem:[#allocation2 + $0x8c] sm:$0x1]  ;;  %v5190_v6 = vrot.slane %v5188_v55, 4 }
 0x327   : > { %7791 = vmatmul.bf16.gmra.mxu3 %v13067_v56  ;;  %v3747_v56 = vadd.f32 %v12347_v42, %v12355_v21  ;;  %v4953_v28 = vrot.slane %v4952_v23, 4  ;;  %v10677_v42 = vld [vmem:[#allocation3 + $0x110] sm:$0xff]  ;;  %v4173_v21 = vld [vmem:[#allocation2 + $0xa4] sm:$0x1] }
 0x328   : > { %v4616_v60 = vsel %vm12580_vm12, %v4398_v48, %v4615_v10  ;;  %v4209_v54 = vpack.c.bf16 %v4057_v40, %v4057_v40  ;;  %7732 = vmatmul.bf16.gmra.mxu2 %v6539_v63  ;;  %v10605_v25 = vld [vmem:[#allocation2 + $0x78] sm:$0xff]  ;;  %v4174_v0 = vsel %vm12457_vm10, 0, %v4173_v21  ;;  %7951 = vmatpush.bf16.msrb.mxu1 %v10677_v42 }
 0x329   : > { %v13194_v1 = vld [vmem:[#allocation2 + $0x7c] sm:$0xf]  ;;  %4617 = vst [vmem:[#allocation2 + $0x84] sm:$0xf] %v4616_v60  ;;  %v3922_v7 = vpop.f32.mrf.mxu3  ;;  %v13203_v44 = vld [vmem:[#allocation2 + $0x80] sm:$0x1]  ;;  %7648 = vmatmul.bf16.gmra.mxu1 %v10605_v25  ;;  %v5192_v60 = vsel %vm11117_vm4, %v5190_v6, %v5191_v57 }
 0x32a   : > { %v4955_v15 = vshll.u32 %v13194_v1, 16  ;;  %v4401_v29 = vshrl.u32 %v4209_v54, 16  ;;  %v3923_v35 = vadd.f32 %v3922_v7, %v12350_v5  ;;  %v7693_v38 = vpop.f32.mrf.mxu2  ;;  %v4959_v62 = vshrl.u32 %v13194_v1, 16  ;;  %4175 = vst [vmem:[#allocation2 + $0xa4] sm:$0x1] %v4174_v0 }
 0x32b   : > { %v4404_v37 = vshll.u32 %v4209_v54, 16  ;;  %v13208_v24 = vadd.f32 %v7693_v38, %v7605_v12  ;;  %v4013_v18 = vpop.f32.mrf.mxu0  ;;  %v5189_v5 = vsel %vm11117_vm4, %v9869_v58, %v5188_v55  ;;  %v4965_v10 = vshll.u32 %v13203_v44, 16 }
 0x32c   : > { %v4957_v14 = vrot.slane %v4955_v15, 5  ;;  %v4403_v4 = vrot.slane %v4401_v29, 7  ;;  %v4012_v34 = vadd.f32 %v4011_v45, %v3923_v35  ;;  %v4961_v59 = vrot.slane %v4959_v62, 4 }
 0x32d   : > { %v3836_v45 = vadd.f32 %v12353_v2, %v3747_v56  ;;  %v7607_v54 = vadd.f32 %v13029_v22, %v13167_v3  ;;  %v4967_v7 = vrot.slane %v4965_v10, 5  ;;  %v6577_v56 = vunpack.c.l.b16 %v5192_v60 }
 0x32e   : > { %v4958_v19 = vsel %vm11126_vm5, %v4953_v28, %v4957_v14  ;;  %v4406_v50 = vor.u32 %v4404_v37, %v4403_v4  ;;  %v4408_v48 = vrot.slane %v4403_v4, 4  ;;  %v4058_v40 = vmax.f32 %v4012_v34, 0.0  ;;  %v13219_v23 = vpop.f32.mrf.mxu1 }
 0x32f   : > { %v4962_v63 = vor.u32 %v4961_v59, %v4957_v14  ;;  %v6518_v2 = vunpack.c.l.b16 %v4958_v19  ;;  %v6576_v3 = vunpack.c.l.b16 %v5189_v5  ;;  %v4120_v14 = vld [vmem:[#allocation2 + $0xa8] sm:$0x1]  ;;  %v10615_v59 = vld [vmem:[#allocation2 + $0x3c] sm:$0xff]  ;;  %v4622_v5 = vld [vmem:[#allocation2 + $0x90] sm:$0xf] }
 0x330   : > { %v4407_v25 = vsel %vm12623_vm14, %v4399_v13, %v4406_v50  ;;  %v4620_v61 = vsel %vm12434_vm8, %v4408_v48, %v4619_v9  ;;  %v4210_v58 = vpack.c.bf16 %v4058_v40, %v4058_v40  ;;  %v13229_v28 = vld [vmem:[#allocation2 + $0x84] sm:$0xf]  ;;  %v4121_v9 = vsel %vm12434_vm8, 0, %v4120_v14 }
 0x331   : > { %4618 = vst [vmem:[#allocation2 + $0x88] sm:$0xf] %v4407_v25  ;;  %v3924_v55 = vpop.f32.mrf.mxu3  ;;  %v4963_v12 = vrot.slane %v4962_v63, 4  ;;  %v4970_v21 = vshrl.u32 %v13229_v28, 16  ;;  %v4973_v37 = vshll.u32 %v13229_v28, 16  ;;  %v13241_v6 = vpack.c.b16 %v6577_v56, %v6576_v3 }
 0x332   : > { %4621 = vst [vmem:[#allocation2 + $0x8c] sm:$0x1] %v4620_v61  ;;  %v4410_v15 = vshrl.u32 %v4210_v58, 16  ;;  %v4413_v29 = vshll.u32 %v4210_v58, 16  ;;  %v3925_v35 = vadd.f32 %v3924_v55, %v3836_v45  ;;  %v7695_v38 = vpop.f32.mrf.mxu2  ;;  %v9870_v25 = vrot.slane %v13080_v8, 9  ;;  %v15425_v58 = vld [vmem:[#allocation29_spill] sm:$0xff] }
 0x333   : > { %v13231_v62 = vadd.f32 %v7695_v38, %v7607_v54  ;;  %v4016_v13 = vpop.f32.mrf.mxu0  ;;  %v4968_v42 = vsel %vm11126_vm5, %v4963_v12, %v4967_v7  ;;  %v4972_v19 = vrot.slane %v4970_v21, 4  ;;  %v4975_v10 = vrot.slane %v4973_v37, 5  ;;  %4122 = vst [vmem:[#allocation2 + $0xa8] sm:$0x1] %v4121_v9  ;;  %v15426_v55 = vld [vmem:[#allocation26_spill] sm:$0xff] }
 0x334   : > { %v13237_v0 = vrot.slane %v4410_v15, 7  ;;  %v4014_v4 = vadd.f32 %v4013_v18, %v3925_v35  ;;  %v6519_v34 = vunpack.c.l.b16 %v4968_v42  ;;  %v5195_v61 = vrot.slane %v13105_v17, 5  ;;  %v15427_v35 = vld [vmem:[#allocation27_spill] sm:$0xff]  ;;  %v4176_v42 = vld [vmem:[#allocation2 + $0xb0] sm:$0x1] }
 0x335   : > { %v4976_v18 = vor.u32 %v4975_v10, %v4972_v19  ;;  %v3752_v12 = vadd.f32 %v15426_v55, %v15425_v58  ;;  %v7612_v55 = vadd.f32 %v13029_v22, %v13219_v23 }
 0x336   : > { %v4415_v57 = vor.u32 %v4413_v29, %v13237_v0  ;;  %v4059_v50 = vmax.f32 %v4014_v4, 0.0  ;;  %v6540_v48 = vpack.c.b16 %v6519_v34, %v6518_v2  ;;  %7885 = vmatmul.bf16.gmra.mxu0 %v10615_v59  ;;  %v13245_v40 = vpop.f32.mrf.mxu1  ;;  %v4416_v7 = vrot.slane %v13237_v0, 4 }
 0x337   : > { %7796 = vmatmul.bf16.gmra.mxu3 %v13099_v32  ;;  %v7610_v32 = vadd.f32 %v13029_v22, %v13190_v49  ;;  %v4977_v17 = vrot.slane %v4976_v18, 4  ;;  %v4177_v0 = vsel %vm12457_vm10, 0, %v4176_v42  ;;  %v5196_v9 = vsel %vm11117_vm4, %v9870_v25, %v5195_v61 }
 0x338   : > { %v4623_v63 = vsel %vm12580_vm12, %v4415_v57, %v4622_v5  ;;  %v4211_v45 = vpack.c.bf16 %v4059_v50, %v4059_v50  ;;  %7737 = vmatmul.bf16.gmra.mxu2 %v6540_v48  ;;  %v10606_v60 = vld [vmem:[#allocation2 + $0x84] sm:$0xff]  ;;  %4178 = vst [vmem:[#allocation2 + $0xb0] sm:$0x1] %v4177_v0  ;;  %v4626_v5 = vld [vmem:[#allocation2 + $0x98] sm:$0x1]  ;;  %v5197_v57 = vrot.slane %v5195_v61, 4  ;;  %v6578_v23 = vunpack.c.l.b16 %v5196_v9 }
 0x339   : > { %v13249_v54 = vld [vmem:[#allocation2 + $0x88] sm:$0xf]  ;;  %4624 = vst [vmem:[#allocation2 + $0x90] sm:$0xf] %v4623_v63  ;;  %v3927_v2 = vpop.f32.mrf.mxu3  ;;  %v13258_v56 = vld [vmem:[#allocation2 + $0x8c] sm:$0x1]  ;;  %7653 = vmatmul.bf16.gmra.mxu1 %v10606_v60 }
 0x33a   : > { %v4979_v15 = vshll.u32 %v13249_v54, 16  ;;  %v4418_v29 = vshrl.u32 %v4211_v45, 16  ;;  %v3928_v38 = vadd.f32 %v3927_v2, %v15427_v35  ;;  %v7698_v8 = vpop.f32.mrf.mxu2  ;;  %v4983_v3 = vshrl.u32 %v13249_v54, 16  ;;  %v15428_v60 = vld [vmem:[#allocation28_spill] sm:$0xff]  ;;  %v4629_v9 = vld [vmem:[#allocation2 + $0x9c] sm:$0xf] }
 0x33b   : > { %v4421_v21 = vshll.u32 %v4211_v45, 16  ;;  %v13263_v37 = vadd.f32 %v7698_v8, %v7610_v32  ;;  %v4018_v49 = vpop.f32.mrf.mxu0  ;;  %v4989_v10 = vshll.u32 %v13258_v56, 16  ;;  %v5198_v50 = vrot.slane %v13108_v30, 5 }
 0x33c   : > { %v4981_v14 = vrot.slane %v4979_v15, 5  ;;  %v4420_v4 = vrot.slane %v4418_v29, 7  ;;  %v4017_v34 = vadd.f32 %v4016_v13, %v3928_v38  ;;  %v4985_v59 = vrot.slane %v4983_v3, 4 }
 0x33d   : > { %v3841_v13 = vadd.f32 %v15428_v60, %v3752_v12  ;;  %v5199_v25 = vsel %vm11117_vm4, %v5197_v57, %v5198_v50  ;;  %v4991_v29 = vrot.slane %v4989_v10, 5  ;;  %v10616_v10 = vld [vmem:[#allocation2 + $0x48] sm:$0xff]  ;;  %v4123_v57 = vld [vmem:[#allocation2 + $0xb4] sm:$0x1] }
 0x33e   : > { %v4982_v19 = vsel %vm11126_vm5, %v4977_v17, %v4981_v14  ;;  %v4423_v48 = vor.u32 %v4421_v21, %v4420_v4  ;;  %v4425_v18 = vrot.slane %v4420_v4, 4  ;;  %v4060_v63 = vmax.f32 %v4017_v34, 0.0  ;;  %v13274_v58 = vpop.f32.mrf.mxu1  ;;  %v10684_v34 = vld [vmem:[#allocation3 + $0x148] sm:$0xff] }
 0x33f   : > { %v4986_v45 = vor.u32 %v4985_v59, %v4981_v14  ;;  %v6520_v12 = vunpack.c.l.b16 %v4982_v19  ;;  %v6579_v35 = vunpack.c.l.b16 %v5199_v25  ;;  %8041 = vmatpush.bf16.msrb.mxu2 %v10684_v34  ;;  %v10676_v34 = vld [vmem:[#allocation3 + $0x108] sm:$0xff] }
 0x340   : > { %v4424_v32 = vsel %vm12623_vm14, %v4416_v7, %v4423_v48  ;;  %v4627_v30 = vsel %vm12434_vm8, %v4425_v18, %v4626_v5  ;;  %v4212_v61 = vpack.c.bf16 %v4060_v63, %v4060_v63  ;;  %v13284_v42 = vld [vmem:[#allocation2 + $0x90] sm:$0xf]  ;;  %v4124_v63 = vsel %vm12434_vm8, 0, %v4123_v57  ;;  %7952 = vmatpush.bf16.msrb.mxu1 %v10676_v34 }
 0x341   : > { %4625 = vst [vmem:[#allocation2 + $0x94] sm:$0xf] %v4424_v32  ;;  %v3929_v2 = vpop.f32.mrf.mxu3  ;;  %v4987_v15 = vrot.slane %v4986_v45, 4  ;;  %v4994_v0 = vshrl.u32 %v13284_v42, 16  ;;  %v4997_v4 = vshll.u32 %v13284_v42, 16  ;;  %v13294_v50 = vpack.c.b16 %v6579_v35, %v6578_v23 }
 0x342   : > { %4628 = vst [vmem:[#allocation2 + $0x98] sm:$0x1] %v4627_v30  ;;  %v4427_v38 = vshrl.u32 %v4212_v61, 16  ;;  %v4430_v8 = vshll.u32 %v4212_v61, 16  ;;  %v3930_v17 = vadd.f32 %v3929_v2, %v3841_v13  ;;  %v7700_v3 = vpop.f32.mrf.mxu2  ;;  %v9871_v2 = vrot.slane %v13138_v20, 9 }
 0x343   : > { %v13286_v21 = vadd.f32 %v7700_v3, %v7612_v55  ;;  %v4021_v7 = vpop.f32.mrf.mxu0  ;;  %v4992_v14 = vsel %vm11126_vm5, %v4987_v15, %v4991_v29  ;;  %v4996_v48 = vrot.slane %v4994_v0, 4  ;;  %v4999_v18 = vrot.slane %v4997_v4, 5  ;;  %4125 = vst [vmem:[#allocation2 + $0xb4] sm:$0x1] %v4124_v63  ;;  %v15429_v29 = vld [vmem:[#allocation33_spill] sm:$0xff] }
 0x344   : > { %v13292_v59 = vrot.slane %v4427_v38, 7  ;;  %v4019_v5 = vadd.f32 %v4018_v49, %v3930_v17  ;;  %v6521_v19 = vunpack.c.l.b16 %v4992_v14  ;;  %v5202_v15 = vrot.slane %v13150_v53, 5  ;;  %v15431_v14 = vld [vmem:[#allocation31_spill] sm:$0xff] }
 0x345   : > { %v5000_v25 = vor.u32 %v4999_v18, %v4996_v48  ;;  %v7615_v35 = vadd.f32 %v13029_v22, %v13245_v40 }
 0x346   : > { %v4432_v45 = vor.u32 %v4430_v8, %v13292_v59  ;;  %v4061_v60 = vmax.f32 %v4019_v5, 0.0  ;;  %v6541_v13 = vpack.c.b16 %v6521_v19, %v6520_v12  ;;  %7890 = vmatmul.bf16.gmra.mxu0 %v10616_v10  ;;  %v13300_v49 = vpop.f32.mrf.mxu1  ;;  %v15430_v12 = vld [vmem:[#allocation30_spill] sm:$0xff]  ;;  %v4433_v38 = vrot.slane %v13292_v59, 4  ;;  %v4179_v5 = vld [vmem:[#allocation2 + $0xbc] sm:$0x1] }
 0x347   : > { %7801 = vmatmul.bf16.gmra.mxu3 %v13142_v16  ;;  %v3757_v16 = vadd.f32 %v15430_v12, %v15429_v29  ;;  %v5001_v53 = vrot.slane %v5000_v25, 4  ;;  %v4180_v57 = vsel %vm12457_vm10, 0, %v4179_v5  ;;  %v5203_v63 = vsel %vm11117_vm4, %v9871_v2, %v5202_v15 }
 0x348   : > { %v4630_v55 = vsel %vm12580_vm12, %v4432_v45, %v4629_v9  ;;  %v4213_v32 = vpack.c.bf16 %v4061_v60, %v4061_v60  ;;  %7742 = vmatmul.bf16.gmra.mxu2 %v6541_v13  ;;  %v10607_v30 = vld [vmem:[#allocation2 + $0x90] sm:$0xff]  ;;  %4181 = vst [vmem:[#allocation2 + $0xbc] sm:$0x1] %v4180_v57  ;;  %v4633_v45 = vld [vmem:[#allocation2 + $0xa4] sm:$0x1]  ;;  %v5204_v25 = vrot.slane %v5202_v15, 4 }
 0x349   : > { %v13304_v61 = vld [vmem:[#allocation2 + $0x94] sm:$0xf]  ;;  %4631 = vst [vmem:[#allocation2 + $0x9c] sm:$0xf] %v4630_v55  ;;  %v3932_v8 = vpop.f32.mrf.mxu3  ;;  %v13313_v17 = vld [vmem:[#allocation2 + $0x98] sm:$0x1]  ;;  %7658 = vmatmul.bf16.gmra.mxu1 %v10607_v30 }
 0x34a   : > { %v5003_v3 = vshll.u32 %v13304_v61, 16  ;;  %v4435_v23 = vshrl.u32 %v4213_v32, 16  ;;  %v3933_v0 = vadd.f32 %v3932_v8, %v15431_v14  ;;  %v5007_v4 = vshrl.u32 %v13304_v61, 16 }
 0x34b   : > { %v7703_v20 = vpop.f32.mrf.mxu2  ;;  %v4438_v19 = vshll.u32 %v4213_v32, 16  ;;  %v4023_v59 = vpop.f32.mrf.mxu0  ;;  %v5013_v13 = vshll.u32 %v13313_v17, 16  ;;  %v5205_v55 = vrot.slane %v13158_v31, 5 }
 0x34c   : > { %v13318_v40 = vadd.f32 %v7703_v20, %v7615_v35  ;;  %v5005_v10 = vrot.slane %v5003_v3, 5  ;;  %v4437_v9 = vrot.slane %v4435_v23, 7  ;;  %v4022_v48 = vadd.f32 %v4021_v7, %v3933_v0  ;;  %v15432_v7 = vld [vmem:[#allocation32_spill] sm:$0xff] }
 0x34d   : > { %v5009_v18 = vrot.slane %v5007_v4, 4  ;;  %v3846_v35 = vadd.f32 %v15432_v7, %v3757_v16  ;;  %v5206_v2 = vsel %vm11117_vm4, %v5204_v25, %v5205_v55  ;;  %v7617_v3 = vadd.f32 %v13029_v22, %v13274_v58  ;;  %v10617_v25 = vld [vmem:[#allocation2 + $0x54] sm:$0xff] }
 0x34e   : > { %v5006_v60 = vsel %vm11126_vm5, %v5001_v53, %v5005_v10  ;;  %v4440_v32 = vor.u32 %v4438_v19, %v4437_v9  ;;  %v4442_v30 = vrot.slane %v4437_v9, 4  ;;  %v4062_v29 = vmax.f32 %v4022_v48, 0.0  ;;  %v13329_v8 = vpop.f32.mrf.mxu1 }
 0x34f   : > { %v5010_v12 = vor.u32 %v5009_v18, %v5005_v10  ;;  %v5015_v20 = vrot.slane %v5013_v13, 5  ;;  %v6522_v16 = vunpack.c.l.b16 %v5006_v60  ;;  %v6581_v53 = vunpack.c.l.b16 %v5206_v2  ;;  %v4126_v18 = vld [vmem:[#allocation2 + $0xc0] sm:$0x1] }
 0x350   : > { %v4441_v23 = vsel %vm12623_vm14, %v4433_v38, %v4440_v32  ;;  %v4634_v31 = vsel %vm12434_vm8, %v4442_v30, %v4633_v45  ;;  %v4214_v15 = vpack.c.bf16 %v4062_v29, %v4062_v29  ;;  %v13339_v10 = vld [vmem:[#allocation2 + $0x9c] sm:$0xf]  ;;  %v6580_v22 = vunpack.c.l.b16 %v5203_v63  ;;  %v4636_v32 = vld [vmem:[#allocation2 + $0xa8] sm:$0xf] }
 0x351   : > { %4632 = vst [vmem:[#allocation2 + $0xa0] sm:$0xf] %v4441_v23  ;;  %v3934_v14 = vpop.f32.mrf.mxu3  ;;  %v5011_v0 = vrot.slane %v5010_v12, 4  ;;  %v5018_v9 = vshrl.u32 %v13339_v10, 16  ;;  %v5021_v48 = vshll.u32 %v13339_v10, 16  ;;  %v4127_v55 = vsel %vm12434_vm8, 0, %v4126_v18 }
 0x352   : > { %4635 = vst [vmem:[#allocation2 + $0xa4] sm:$0x1] %v4634_v31  ;;  %v4444_v4 = vshrl.u32 %v4214_v15, 16  ;;  %v4447_v34 = vshll.u32 %v4214_v15, 16  ;;  %v3935_v5 = vadd.f32 %v3934_v14, %v3846_v35  ;;  %v13349_v29 = vpack.c.b16 %v6581_v53, %v6580_v22  ;;  %v13361_v15 = vld [vmem:[%s15348_s4] ss:$0 sm:$0xff] }
 0x353   : > { %v7705_v19 = vpop.f32.mrf.mxu2  ;;  %v4026_v38 = vpop.f32.mrf.mxu0  ;;  %v5016_v57 = vsel %vm11126_vm5, %v5011_v0, %v5015_v20  ;;  %v5020_v63 = vrot.slane %v5018_v9, 4  ;;  %v5023_v30 = vrot.slane %v5021_v48, 5  ;;  %4128 = vst [vmem:[#allocation2 + $0xc0] sm:$0x1] %v4127_v55  ;;  %v7620_v14 = vadd.f32 %v13361_v15, %v13300_v49  ;;  %v15433_v53 = vld [vmem:[#allocation36_spill] sm:$0xff]  ;;  %v15435_v9 = vld [vmem:[#allocation37_spill] sm:$0xff] }
 0x354   : > { %v13341_v58 = vadd.f32 %v7705_v19, %v7617_v3  ;;  %v4446_v45 = vrot.slane %v4444_v4, 7  ;;  %v4024_v60 = vadd.f32 %v4023_v59, %v3935_v5  ;;  %v6523_v13 = vunpack.c.l.b16 %v5016_v57  ;;  %v4182_v22 = vld [vmem:[#allocation2 + $0xc8] sm:$0x1] }
 0x355   : > { %v5024_v0 = vor.u32 %v5023_v30, %v5020_v63  ;;  %v15434_v57 = vld [vmem:[#allocation39_spill] sm:$0xff] }
 0x356   : > { %v4449_v12 = vor.u32 %v4447_v34, %v4446_v45  ;;  %v4063_v7 = vmax.f32 %v4024_v60, 0.0  ;;  %v6542_v35 = vpack.c.b16 %v6523_v13, %v6522_v16  ;;  %7895 = vmatmul.bf16.gmra.mxu0 %v10617_v25  ;;  %v13352_v2 = vpop.f32.mrf.mxu1  ;;  %v3762_v48 = vadd.f32 %v15435_v9, %v15434_v57 }
 0x357   : > { %7806 = vmatmul.bf16.gmra.mxu3 %v13182_v52  ;;  %v4183_v13 = vsel %vm12457_vm10, 0, %v4182_v22  ;;  %v4450_v30 = vrot.slane %v4446_v45, 4 }
 0x358   : > { %v4637_v59 = vsel %vm12580_vm12, %v4449_v12, %v4636_v32  ;;  %v4215_v3 = vpack.c.bf16 %v4063_v7, %v4063_v7  ;;  %7747 = vmatmul.bf16.gmra.mxu2 %v6542_v35  ;;  %v10608_v23 = vld [vmem:[#allocation2 + $0x9c] sm:$0xff]  ;;  %4184 = vst [vmem:[#allocation2 + $0xc8] sm:$0x1] %v4183_v13  ;;  %v4640_v12 = vld [vmem:[#allocation2 + $0xb0] sm:$0x1]  ;;  %v5025_v7 = vrot.slane %v5024_v0, 4  ;;  %v7622_v0 = vadd.f32 %v13361_v15, %v13329_v8 }
 0x359   : > { %v13356_v31 = vld [vmem:[#allocation2 + $0xa0] sm:$0xf]  ;;  %4638 = vst [vmem:[#allocation2 + $0xa8] sm:$0xf] %v4637_v59  ;;  %7663 = vmatmul.bf16.gmra.mxu1 %v10608_v23  ;;  %v13367_v5 = vld [vmem:[#allocation2 + $0xa4] sm:$0x1] }
 0x35a   : > { %v3937_v52 = vpop.f32.mrf.mxu3  ;;  %v5027_v20 = vshll.u32 %v13356_v31, 16  ;;  %v4452_v16 = vshrl.u32 %v4215_v3, 16  ;;  %v5031_v19 = vshrl.u32 %v13356_v31, 16  ;;  %v4455_v55 = vshll.u32 %v4215_v3, 16 }
 0x35b   : > { %v3938_v4 = vadd.f32 %v3937_v52, %v15433_v53  ;;  %v7708_v34 = vpop.f32.mrf.mxu2  ;;  %v4028_v49 = vpop.f32.mrf.mxu0  ;;  %v5037_v35 = vshll.u32 %v13367_v5, 16 }
 0x35c   : > { %v13372_v18 = vadd.f32 %v7708_v34, %v7620_v14  ;;  %v5029_v60 = vrot.slane %v5027_v20, 5  ;;  %v4454_v25 = vrot.slane %v4452_v16, 7  ;;  %v5033_v63 = vrot.slane %v5031_v19, 4  ;;  %v15436_v34 = vld [vmem:[#allocation38_spill] sm:$0xff] }
 0x35d   : > { %v4027_v32 = vadd.f32 %v4026_v38, %v3938_v4  ;;  %v3851_v16 = vadd.f32 %v15436_v34, %v3762_v48  ;;  %v5039_v22 = vrot.slane %v5037_v35, 5 }
 0x35e   : > { %v4457_v59 = vor.u32 %v4455_v55, %v4454_v25  ;;  %v4459_v23 = vrot.slane %v4454_v25, 4  ;;  %v5034_v14 = vor.u32 %v5033_v63, %v5029_v60  ;;  %v13377_v53 = vpop.f32.mrf.mxu1  ;;  %v5030_v20 = vsel %vm11126_vm5, %v5025_v7, %v5029_v60 }
 0x35f   : > { %v4064_v52 = vmax.f32 %v4027_v32, 0.0  ;;  %v6524_v13 = vunpack.c.l.b16 %v5030_v20  ;;  %v7627_v47 = vadd.f32 %v13361_v15, %v13377_v53 }
 0x360   : > { %v4458_v38 = vsel %vm12623_vm14, %v4450_v30, %v4457_v59  ;;  %v4641_v45 = vsel %vm12434_vm8, %v4459_v23, %v4640_v12  ;;  %v5035_v19 = vrot.slane %v5034_v14, 4  ;;  %v13388_v48 = vld [vmem:[#allocation2 + $0xa8] sm:$0xf]  ;;  %v10683_v30 = vld [vmem:[#allocation3 + $0x140] sm:$0xff]  ;;  %v4643_v14 = vld [vmem:[#allocation2 + $0xb4] sm:$0xf] }
 0x361   : > { %v4216_v3 = vpack.c.bf16 %v4064_v52, %v4064_v52  ;;  %4639 = vst [vmem:[#allocation2 + $0xac] sm:$0xf] %v4458_v38  ;;  %v5042_v63 = vshrl.u32 %v13388_v48, 16  ;;  %v5045_v8 = vshll.u32 %v13388_v48, 16  ;;  %v10675_v12 = vld [vmem:[#allocation3 + $0x100] sm:$0xff]  ;;  %v10618_v52 = vld [vmem:[#allocation2 + $0x60] sm:$0xff]  ;;  %8042 = vmatpush.bf16.msrb.mxu2 %v10683_v30 }
 0x362   : > { %v3939_v4 = vpop.f32.mrf.mxu3  ;;  %4642 = vst [vmem:[#allocation2 + $0xb0] sm:$0x1] %v4641_v45  ;;  %v5040_v32 = vsel %vm11126_vm5, %v5035_v19, %v5039_v22  ;;  %7953 = vmatpush.bf16.msrb.mxu1 %v10675_v12  ;;  %v13410_v30 = vld [vmem:[#allocation2 + $0x10] sm:$0xf]  ;;  %v15440_v12 = vld [vmem:[#allocation41_spill] sm:$0xff] }
 0x363   : > { %v4461_v57 = vshrl.u32 %v4216_v3, 16  ;;  %v3940_v9 = vadd.f32 %v3939_v4, %v3851_v16  ;;  %v7710_v60 = vpop.f32.mrf.mxu2  ;;  %15437 = vst [vmem:[#allocation13_spill] sm:$0xff] %v13388_v48  ;;  %v4031_v55 = vpop.f32.mrf.mxu0  ;;  %v4464_v35 = vshll.u32 %v4216_v3, 16  ;;  %v6525_v23 = vunpack.c.l.b16 %v5040_v32  ;;  %v10698_v48 = vld [vmem:[#allocation3 + $0x1b8] sm:$0xff] }
 0x364   : > { %v13390_v25 = vadd.f32 %v7710_v60, %v7622_v0  ;;  %v5044_v20 = vrot.slane %v5042_v63, 4  ;;  %v5047_v34 = vrot.slane %v5045_v8, 5  ;;  %v7625_v60 = vadd.f32 %v13361_v15, %v13352_v2  ;;  %8124 = vmatpush.bf16.msra.mxu3 %v10698_v48 }
 0x365   : > { %v4463_v7 = vrot.slane %v4461_v57, 7  ;;  %v4029_v59 = vadd.f32 %v4028_v49, %v3940_v9  ;;  %v6543_v45 = vpack.c.b16 %v6525_v23, %v6524_v13  ;;  %v15438_v13 = vld [vmem:[#allocation40_spill] sm:$0xff] }
 0x366   : > { %7900 = vmatmul.bf16.gmra.mxu0 %v10618_v52  ;;  %v13397_v0 = vpop.f32.mrf.mxu1  ;;  %v5048_v57 = vor.u32 %v5047_v34, %v5044_v20 }
 0x367   : > { %v4466_v16 = vor.u32 %v4464_v35, %v4463_v7  ;;  %v4065_v38 = vmax.f32 %v4029_v59, 0.0  ;;  %7811 = vmatmul.bf16.gmra.mxu3 %v13241_v6  ;;  %v3767_v35 = vadd.f32 %v13004_v51, %v15440_v12 }
 0x368   : > { %7752 = vmatmul.bf16.gmra.mxu2 %v6543_v45  ;;  %v10609_v49 = vld [vmem:[#allocation2 + $0xa8] sm:$0xff]  ;;  %v4467_v45 = vrot.slane %v4463_v7, 4  ;;  %v5311_v7 = vshrl.u32 %v13410_v30, 16 }
 0x369   : > { %v4644_v4 = vsel %vm12580_vm12, %v4466_v16, %v4643_v14  ;;  %v4217_v3 = vpack.c.bf16 %v4065_v38, %v4065_v38  ;;  %v13401_v19 = vld [vmem:[#allocation2 + $0xac] sm:$0xf]  ;;  %7668 = vmatmul.bf16.gmra.mxu1 %v10609_v49  ;;  %v13407_v63 = vld [vmem:[#allocation2 + $0xb0] sm:$0x1]  ;;  %v5049_v49 = vrot.slane %v5048_v57, 4 }
 0x36a   : > { %4645 = vst [vmem:[#allocation2 + $0xb4] sm:$0xf] %v4644_v4  ;;  %v3942_v22 = vpop.f32.mrf.mxu3  ;;  %v5051_v9 = vshll.u32 %v13401_v19, 16  ;;  %v5055_v8 = vshrl.u32 %v13401_v19, 16  ;;  %v13416_v38 = vld [vmem:[#allocation2 + $0xc] sm:$0xf] }
 0x36b   : > { %v4469_v6 = vshrl.u32 %v4217_v3, 16  ;;  %v3943_v32 = vadd.f32 %v3942_v22, %v15438_v13  ;;  %15439 = vst [vmem:[#allocation12_spill] sm:$0xff] %v13407_v63  ;;  %v4472_v59 = vshll.u32 %v4217_v3, 16  ;;  %v7713_v23 = vpop.f32.mrf.mxu2  ;;  %v4033_v52 = vpop.f32.mrf.mxu0  ;;  %v4647_v4 = vld [vmem:[#allocation2 + $0xbc] sm:$0x1]  ;;  %v5061_v22 = vshll.u32 %v13407_v63, 16 }
 0x36c   : > { %v5053_v14 = vrot.slane %v5051_v9, 5  ;;  %v13414_v2 = vadd.f32 %v7713_v23, %v7625_v60  ;;  %v5057_v16 = vrot.slane %v5055_v8, 4  ;;  %v5307_v13 = vshll.u32 %v13410_v30, 16 }
 0x36d   : > { %v4471_v20 = vrot.slane %v4469_v6, 7  ;;  %v4032_v34 = vadd.f32 %v4031_v55, %v3943_v32  ;;  %v3856_v9 = vadd.f32 %v13055_v11, %v3767_v35  ;;  %v5298_v55 = vshrl.u32 %v13416_v38, 16 }
 0x36e   : > { %15441 = vst [vmem:[#allocation17_spill] sm:$0xff] %v13414_v2  ;;  %v5058_v12 = vor.u32 %v5057_v16, %v5053_v14  ;;  %v13421_v6 = vpop.f32.mrf.mxu1  ;;  %v5301_v60 = vshll.u32 %v13416_v38, 16 }
 0x36f   : > { %v4474_v26 = vor.u32 %v4472_v59, %v4471_v20  ;;  %v4476_v51 = vrot.slane %v4471_v20, 4  ;;  %v4066_v3 = vmax.f32 %v4032_v34, 0.0  ;;  %v5054_v59 = vsel %vm11126_vm5, %v5049_v49, %v5053_v14 }
 0x370   : > { %v5059_v35 = vrot.slane %v5058_v12, 4  ;;  %v5063_v20 = vrot.slane %v5061_v22, 5  ;;  %v6526_v49 = vunpack.c.l.b16 %v5054_v59  ;;  %v5313_v12 = vrot.slane %v5311_v7, 4 }
 0x371   : > { %v4475_v57 = vsel %vm12623_vm14, %v4467_v45, %v4474_v26  ;;  %v4648_v32 = vsel %vm12434_vm8, %v4476_v51, %v4647_v4  ;;  %v4218_v8 = vpack.c.bf16 %v4066_v3, %v4066_v3  ;;  %v4702_v23 = vld [vmem:[#allocation2 + $0xb4] sm:$0xf]  ;;  %v13434_v45 = vrot.slane %v5307_v13, 5 }
 0x372   : > { %4646 = vst [vmem:[#allocation2 + $0xb8] sm:$0xf] %v4475_v57  ;;  %v3944_v11 = vpop.f32.mrf.mxu3  ;;  %v5066_v34 = vshrl.u32 %v4702_v23, 16  ;;  %v5069_v16 = vshll.u32 %v4702_v23, 16  ;;  %v5064_v14 = vsel %vm11126_vm5, %v5059_v35, %v5063_v20 }
 0x373   : > { %4649 = vst [vmem:[#allocation2 + $0xbc] sm:$0x1] %v4648_v32  ;;  %v4478_v27 = vshrl.u32 %v4218_v8, 16  ;;  %v3945_v26 = vadd.f32 %v3944_v11, %v3856_v9  ;;  %v4481_v4 = vshll.u32 %v4218_v8, 16  ;;  %v7715_v51 = vpop.f32.mrf.mxu2  ;;  %v13436_v3 = vpop.f32.mrf.mxu0  ;;  %v6527_v53 = vunpack.c.l.b16 %v5064_v14  ;;  %v10619_v32 = vld [vmem:[#allocation2 + $0x6c] sm:$0xff] }
 0x374   : > { %15442 = vst [vmem:[#allocation14_spill] sm:$0xff] %v13436_v3  ;;  %v13442_v23 = vadd.f32 %v7715_v51, %v7627_v47  ;;  %v4650_v9 = vld [vmem:[#allocation2 + $0xc0] sm:$0xf]  ;;  %v5068_v13 = vrot.slane %v5066_v34, 4  ;;  %v5071_v11 = vrot.slane %v5069_v16, 5  ;;  %v5314_v47 = vor.u32 %v5313_v12, %v13434_v45 }
 0x375   : > { %v13440_v22 = vrot.slane %v4478_v27, 7  ;;  %v4034_v57 = vadd.f32 %v4033_v52, %v3945_v26  ;;  %v13444_v8 = vld [vmem:[#allocation2 + $0x14] sm:$0x1]  ;;  %v6544_v2 = vpack.c.b16 %v6527_v53, %v6526_v49  ;;  %v5300_v52 = vrot.slane %v5298_v55, 4 }
 0x376   : > { %7905 = vmatmul.bf16.gmra.mxu0 %v10619_v32  ;;  %v13448_v27 = vpop.f32.mrf.mxu1  ;;  %v5303_v34 = vrot.slane %v5301_v60, 5  ;;  %v5317_v16 = vshll.u32 %v13444_v8, 16  ;;  %v5072_v48 = vor.u32 %v5071_v11, %v5068_v13  ;;  %v10706_v13 = vld [vmem:[#allocation3 + $0x1f8] sm:$0xff]  ;;  %v4654_v11 = vld [vmem:[#allocation2 + $0xc8] sm:$0x1] }
 0x377   : > { %v4483_v3 = vor.u32 %v4481_v4, %v13440_v22  ;;  %v4067_v63 = vmax.f32 %v4034_v57, 0.0  ;;  %7816 = vmatmul.bf16.gmra.mxu3 %v13294_v50  ;;  %v10722_v50 = vld [vmem:[%s15349_s5 + $0x38] sm:$0xff]  ;;  %v5315_v57 = vrot.slane %v5314_v47, 4  ;;  %8213 = vmatpush.bf16.msra.mxu0 %v10706_v13 }
 0x378   : > { %7757 = vmatmul.bf16.gmra.mxu2 %v6544_v2  ;;  %v7630_v2 = vadd.f32 %v13361_v15, %v13397_v0  ;;  %v10714_v0 = vld [vmem:[#allocation3 + $0x238] sm:$0xff] }
 0x379   : > { %v4651_v7 = vsel %vm12580_vm12, %v4483_v3, %v4650_v9  ;;  %v4219_v59 = vpack.c.bf16 %v4067_v63, %v4067_v63  ;;  %v10610_v35 = vld [vmem:[#allocation2 + $0xb4] sm:$0xff]  ;;  %8955 = vmatpush.bf16.msra.mxu2 %v10722_v50  ;;  %v13473_v50 = vld [vmem:[#allocation2 + $0x1c] sm:$0xf]  ;;  %8302 = vmatpush.bf16.msra.mxu1 %v10714_v0 }
 0x37a   : > { %v13453_v20 = vld [vmem:[#allocation2 + $0xb8] sm:$0xf]  ;;  %4652 = vst [vmem:[#allocation2 + $0xc0] sm:$0xf] %v4651_v7  ;;  %v7777_v55 = vpop.f32.mrf.mxu3  ;;  %v13459_v26 = vld [vmem:[#allocation2 + $0xbc] sm:$0x1]  ;;  %7673 = vmatmul.bf16.gmra.mxu1 %v10610_v35 }
 0x37b   : > { %v5075_v46 = vshll.u32 %v13453_v20, 16  ;;  %v5079_v63 = vshrl.u32 %v13453_v20, 16  ;;  %v4486_v4 = vshrl.u32 %v4219_v59, 16  ;;  %v13466_v60 = vadd.f32 %v7777_v55, %v13082_v43  ;;  %v7718_v51 = vpop.f32.mrf.mxu2  ;;  %v13468_v3 = vpop.f32.mrf.mxu0 }
 0x37c   : > { %15443 = vst [vmem:[#allocation16_spill] sm:$0xff] %v13468_v3  ;;  %v5085_v12 = vshll.u32 %v13459_v26, 16  ;;  %v4489_v32 = vshll.u32 %v4219_v59, 16  ;;  %v13471_v9 = vadd.f32 %v7718_v51, %v7630_v2  ;;  %v5073_v7 = vrot.slane %v5072_v48, 4 }
 0x37d   : > { %v5077_v14 = vrot.slane %v5075_v46, 5  ;;  %v5081_v49 = vrot.slane %v5079_v63, 4  ;;  %v4488_v53 = vrot.slane %v4486_v4, 7  ;;  %v5304_v55 = vor.u32 %v5303_v34, %v5300_v52 }
 0x37e   : > { %v5319_v35 = vrot.slane %v5317_v16, 5  ;;  %v4484_v3 = vrot.slane %v13440_v22, 4  ;;  %v13476_v47 = vpop.f32.mrf.mxu1  ;;  %v5087_v4 = vrot.slane %v5085_v12, 5  ;;  %v5331_v34 = vshll.u32 %v13473_v50, 16 }
 0x37f   : > { %v5082_v43 = vor.u32 %v5081_v49, %v5077_v14  ;;  %v4491_v46 = vor.u32 %v4489_v32, %v4488_v53  ;;  %v4493_v63 = vrot.slane %v4488_v53, 4  ;;  %v5078_v59 = vsel %vm11126_vm5, %v5073_v7, %v5077_v14 }
 0x380   : > { %v5320_v48 = vsel %vm11126_vm5, %v5315_v57, %v5319_v35  ;;  %v5335_v16 = vshrl.u32 %v13473_v50, 16  ;;  %v5305_v49 = vrot.slane %v5304_v55, 4  ;;  %v7632_v12 = vadd.f32 %v13361_v15, %v13421_v6  ;;  %v13494_v57 = vld [vmem:[#allocation2 + $0x18] sm:$0xf] }
 0x381   : > { %v5083_v2 = vrot.slane %v5082_v43, 4  ;;  %v4492_v52 = vsel %vm12623_vm14, %v4484_v3, %v4491_v46  ;;  %v4655_v22 = vsel %vm12434_vm8, %v4493_v63, %v4654_v11  ;;  %v6528_v33 = vunpack.c.l.b16 %v5078_v59  ;;  %v10620_v43 = vld [vmem:[#allocation2 + $0x78] sm:$0xff] }
 0x382   : > { %4653 = vst [vmem:[#allocation2 + $0xc4] sm:$0xf] %v4492_v52  ;;  %v13488_v51 = vpop.f32.mrf.mxu3  ;;  %v5310_v13 = vsel %vm11126_vm5, %v5305_v49, %v13434_v45  ;;  %v6691_v0 = vunpack.c.l.b16 %v5320_v48  ;;  %v13503_v55 = vrot.slane %v5331_v34, 5  ;;  %v5337_v6 = vrot.slane %v5335_v16, 4 }
 0x383   : > { %v5088_v14 = vsel %vm11126_vm5, %v5083_v2, %v5087_v4  ;;  %4656 = vst [vmem:[#allocation2 + $0xc8] sm:$0x1] %v4655_v22  ;;  %v7720_v53 = vpop.f32.mrf.mxu2  ;;  %v13496_v32 = vpop.f32.mrf.mxu0  ;;  %v5209_v35 = vrot.slane %v13194_v1, 5  ;;  %v5322_v46 = vshrl.u32 %v13494_v57, 16  ;;  %v5325_v63 = vshll.u32 %v13494_v57, 16 }
 0x384   : > { %v6529_v3 = vunpack.c.l.b16 %v5088_v14  ;;  %15444 = vst [vmem:[#allocation15_spill] sm:$0xff] %v13496_v32  ;;  %v13501_v11 = vadd.f32 %v7720_v53, %v7632_v12  ;;  %v6690_v59 = vunpack.c.l.b16 %v5310_v13  ;;  %v5731_v45 = vrot.slane %v13410_v30, 5  ;;  %v13512_v4 = vld [vmem:[#allocation2 + $0x20] sm:$0x1] }
 0x385   : > { %v5338_v52 = vor.u32 %v5337_v6, %v13503_v55  ;;  %v5211_v1 = vrot.slane %v5209_v35, 4  ;;  %v5324_v34 = vrot.slane %v5322_v46, 4  ;;  %v5327_v16 = vrot.slane %v5325_v63, 5  ;;  %v13530_v46 = vld [vmem:[#allocation2 + $0x28] sm:$0xf] }
 0x386   : > { %v6545_v7 = vpack.c.b16 %v6529_v3, %v6528_v33  ;;  %7910 = vmatmul.bf16.gmra.mxu0 %v10620_v43  ;;  %v13509_v2 = vpop.f32.mrf.mxu1  ;;  %v6722_v48 = vpack.c.b16 %v6691_v0, %v6690_v59  ;;  %v7635_v14 = vadd.f32 %v13361_v15, %v13448_v27  ;;  %v5341_v49 = vshll.u32 %v13512_v4, 16 }
 0x387   : > { %7821 = vmatmul.bf16.gmra.mxu3 %v13349_v29  ;;  %v5212_v33 = vrot.slane %v13203_v44, 5  ;;  %v5733_v3 = vrot.slane %v5731_v45, 4  ;;  %v9878_v13 = vrot.slane %v13416_v38, 9  ;;  %v5339_v0 = vrot.slane %v5338_v52, 4 }
 0x388   : > { %7762 = vmatmul.bf16.gmra.mxu2 %v6545_v7  ;;  %v10814_v7 = vld [vmem:[#allocation2 + $0x78] sm:$0xf]  ;;  %v5734_v27 = vrot.slane %v13444_v8, 5  ;;  %v5328_v6 = vor.u32 %v5327_v16, %v5324_v34  ;;  %v5343_v44 = vrot.slane %v5341_v49, 5  ;;  %v13542_v8 = vld [vmem:[#allocation2 + $0x24] sm:$0xf]  ;;  %v7637_v49 = vadd.f32 %v13361_v15, %v13476_v47 }
 0x389   : > { %v9872_v43 = vrot.slane %v10814_v7, 9  ;;  %v5732_v63 = vsel %vm11117_vm4, %v9878_v13, %v5731_v45  ;;  %v5359_v34 = vshrl.u32 %v13530_v46, 16 }
 0x38a   : > { %v7782_v22 = vpop.f32.mrf.mxu3  ;;  %7954 = vmatmul.bf16.vlgmr.msrb.gmra.mxu1 %v6722_v48  ;;  %v5735_v48 = vsel %vm11117_vm4, %v5733_v3, %v5734_v27  ;;  %v6754_v16 = vunpack.c.l.b16 %v5732_v63 }
 0x38b   : > { %v13518_v29 = vadd.f32 %v7782_v22, %v13208_v24  ;;  %v7723_v30 = vpop.f32.mrf.mxu2  ;;  %v13521_v12 = vpop.f32.mrf.mxu0  ;;  %v5213_v24 = vsel %vm11117_vm4, %v5211_v1, %v5212_v33  ;;  %v5210_v38 = vsel %vm11117_vm4, %v9872_v43, %v5209_v35  ;;  %v5344_v22 = vsel %vm11126_vm5, %v5339_v0, %v5343_v44  ;;  %v10697_v44 = vld [vmem:[#allocation3 + $0x1b0] sm:$0xff] }
 0x38c   : > { %15445 = vst [vmem:[#allocation19_spill] sm:$0xff] %v13521_v12  ;;  %v13524_v53 = vadd.f32 %v7723_v30, %v7635_v14  ;;  %v6583_v52 = vunpack.c.l.b16 %v5213_v24  ;;  %v5355_v1 = vshll.u32 %v13530_v46, 16  ;;  %v5329_v14 = vrot.slane %v5328_v6, 4  ;;  %v10621_v6 = vld [vmem:[#allocation2 + $0x84] sm:$0xff]  ;;  %8125 = vmatpush.bf16.msra.mxu3 %v10697_v44 }
 0x38d   : > { %v6582_v30 = vunpack.c.l.b16 %v5210_v38  ;;  %v6755_v33 = vunpack.c.l.b16 %v5735_v48  ;;  %v6693_v7 = vunpack.c.l.b16 %v5344_v22  ;;  %v5346_v43 = vshrl.u32 %v13542_v8, 16 }
 0x38e   : > { %v13534_v59 = vpop.f32.mrf.mxu1  ;;  %v5334_v0 = vsel %vm11126_vm5, %v5329_v14, %v13503_v55  ;;  %v5349_v24 = vshll.u32 %v13542_v8, 16  ;;  %v5361_v63 = vrot.slane %v5359_v34, 4  ;;  %v5216_v38 = vrot.slane %v13249_v54, 5  ;;  %v13566_v14 = vld [vmem:[#allocation2 + $0x2c] sm:$0x1]  ;;  %v10721_v54 = vld [vmem:[%s15349_s5 + $0x30] sm:$0xff] }
 0x38f   : > { %v6604_v47 = vpack.c.b16 %v6583_v52, %v6582_v30  ;;  %v6786_v48 = vpack.c.b16 %v6755_v33, %v6754_v16  ;;  %v5738_v55 = vrot.slane %v13473_v50, 5  ;;  %v7640_v50 = vadd.f32 %v13361_v15, %v13509_v2  ;;  %8956 = vmatpush.bf16.msra.mxu2 %v10721_v54  ;;  %v10705_v2 = vld [vmem:[#allocation3 + $0x1f0] sm:$0xff]  ;;  %v13588_v54 = vld [vmem:[#allocation2 + $0x34] sm:$0xf] }
 0x390   : > { %v5218_v16 = vrot.slane %v5216_v38, 4  ;;  %8214 = vmatpush.bf16.msra.mxu0 %v10705_v2 }
 0x391   : > { %v5740_v33 = vrot.slane %v5738_v55, 4 }
 0x392   : > { %v7784_v45 = vpop.f32.mrf.mxu3 }
 0x393   : > { %v13549_v35 = vadd.f32 %v7784_v45, %v13231_v62  ;;  %v7725_v3 = vpop.f32.mrf.mxu2  ;;  %v13551_v13 = vpop.f32.mrf.mxu0  ;;  %v13560_v62 = vrot.slane %v5355_v1, 5  ;;  %v6692_v45 = vunpack.c.l.b16 %v5334_v0  ;;  %v5365_v0 = vshll.u32 %v13566_v14, 16 }
 0x394   : > { %15447 = vst [vmem:[#allocation18_spill] sm:$0xff] %v13551_v13  ;;  %v13558_v27 = vadd.f32 %v7725_v3, %v7637_v49  ;;  %v5348_v49 = vrot.slane %v5346_v43, 4  ;;  %v5351_v3 = vrot.slane %v5349_v24, 5  ;;  %v5219_v24 = vrot.slane %v13258_v56, 5 }
 0x395   : > { %15446 = vst [vmem:[#allocation21_spill] sm:$0xff] %v13549_v35  ;;  %v6723_v52 = vpack.c.b16 %v6693_v7, %v6692_v45  ;;  %v5362_v1 = vor.u32 %v5361_v63, %v13560_v62  ;;  %v5741_v63 = vrot.slane %v13512_v4, 5 }
 0x396   : > { %7915 = vmatmul.bf16.gmra.mxu0 %v10621_v6  ;;  %v13564_v22 = vpop.f32.mrf.mxu1  ;;  %v5220_v45 = vsel %vm11117_vm4, %v5218_v16, %v5219_v24  ;;  %v13600_v16 = vld [vmem:[#allocation2 + $0x30] sm:$0xf] }
 0x397   : > { %7826 = vmatmul.bf16.gmra.mxu3 %v6604_v47  ;;  %v5352_v47 = vor.u32 %v5351_v3, %v5348_v49  ;;  %v5363_v44 = vrot.slane %v5362_v1, 4  ;;  %v5742_v56 = vsel %vm11117_vm4, %v5740_v33, %v5741_v63  ;;  %v5367_v49 = vrot.slane %v5365_v0, 5 }
 0x398   : > { %8043 = vmatmul.bf16.vlgmr.msrb.gmra.mxu2 %v6786_v48  ;;  %v10713_v48 = vld [vmem:[#allocation3 + $0x230] sm:$0xff]  ;;  %v5383_v33 = vshrl.u32 %v13588_v54, 16  ;;  %v5745_v63 = vrot.slane %v13530_v46, 5 }
 0x399   : > { %8303 = vmatpush.bf16.msra.mxu1 %v10713_v48  ;;  %v5353_v1 = vrot.slane %v5352_v47, 4 }
 0x39a   : > { %v7787_v34 = vpop.f32.mrf.mxu3  ;;  %7959 = vmatmul.bf16.gmra.mxu1 %v6723_v52  ;;  %v9879_v52 = vrot.slane %v13494_v57, 9  ;;  %v5368_v57 = vsel %vm11126_vm5, %v5363_v44, %v5367_v49  ;;  %v10622_v49 = vld [vmem:[#allocation2 + $0x90] sm:$0xff] }
 0x39b   : > { %v13575_v30 = vadd.f32 %v7787_v34, %v13263_v37  ;;  %v7728_v7 = vpop.f32.mrf.mxu2  ;;  %v13578_v43 = vpop.f32.mrf.mxu0  ;;  %v9873_v37 = vrot.slane %v13229_v28, 9  ;;  %v6585_v34 = vunpack.c.l.b16 %v5220_v45  ;;  %v5370_v45 = vshrl.u32 %v13600_v16, 16 }
 0x39c   : > { %15449 = vst [vmem:[#allocation23_spill] sm:$0xff] %v13578_v43  ;;  %v13581_v6 = vadd.f32 %v7728_v7, %v7640_v50  ;;  %v5739_v28 = vsel %vm11117_vm4, %v9879_v52, %v5738_v55  ;;  %v5379_v50 = vshll.u32 %v13588_v54, 16  ;;  %v6757_v7 = vunpack.c.l.b16 %v5742_v56 }
 0x39d   : > { %15448 = vst [vmem:[#allocation20_spill] sm:$0xff] %v13575_v30  ;;  %v5217_v4 = vsel %vm11117_vm4, %v9873_v37, %v5216_v38  ;;  %v5358_v38 = vsel %vm11126_vm5, %v5353_v1, %v13560_v62  ;;  %v7642_v55 = vadd.f32 %v13361_v15, %v13534_v59  ;;  %v6756_v48 = vunpack.c.l.b16 %v5739_v28 }
 0x39e   : > { %v13592_v3 = vpop.f32.mrf.mxu1  ;;  %v6584_v47 = vunpack.c.l.b16 %v5217_v4  ;;  %v6695_v37 = vunpack.c.l.b16 %v5368_v57  ;;  %v5373_v52 = vshll.u32 %v13600_v16, 16  ;;  %v13619_v59 = vrot.slane %v5379_v50, 5 }
 0x39f   : > { %v6694_v1 = vunpack.c.l.b16 %v5358_v38  ;;  %v5223_v4 = vrot.slane %v13304_v61, 5  ;;  %v6787_v46 = vpack.c.b16 %v6757_v7, %v6756_v48  ;;  %v7645_v7 = vadd.f32 %v13361_v15, %v13564_v22 }
 0x3a0   : > { %v6605_v62 = vpack.c.b16 %v6585_v34, %v6584_v47  ;;  %v5372_v34 = vrot.slane %v5370_v45, 4  ;;  %v5375_v47 = vrot.slane %v5373_v52, 5  ;;  %v5226_v52 = vrot.slane %v13313_v17, 5 }
 0x3a1   : > { %v6724_v57 = vpack.c.b16 %v6695_v37, %v6694_v1  ;;  %v5225_v61 = vrot.slane %v5223_v4, 4  ;;  %v13637_v37 = vld [vmem:[#allocation2 + $0x3c] sm:$0xf] }
 0x3a2   : > { %v7789_v0 = vpop.f32.mrf.mxu3  ;;  %v5397_v17 = vshll.u32 %v13637_v37, 16 }
 0x3a3   : > { %v13610_v24 = vadd.f32 %v7789_v0, %v13286_v21  ;;  %v7730_v44 = vpop.f32.mrf.mxu2  ;;  %v13613_v2 = vpop.f32.mrf.mxu0  ;;  %v5385_v21 = vrot.slane %v5383_v33, 4  ;;  %v5747_v0 = vrot.slane %v5745_v63, 4  ;;  %v13628_v33 = vld [vmem:[#allocation2 + $0x40] sm:$0xf] }
 0x3a4   : > { %15451 = vst [vmem:[#allocation24_spill] sm:$0xff] %v13613_v2  ;;  %v13617_v56 = vadd.f32 %v7730_v44, %v7642_v55  ;;  %v5748_v55 = vrot.slane %v13566_v14, 5  ;;  %v5407_v22 = vshrl.u32 %v13628_v33, 16  ;;  %v5399_v43 = vrot.slane %v5397_v17, 5  ;;  %v10623_v17 = vld [vmem:[#allocation2 + $0x9c] sm:$0xff] }
 0x3a5   : > { %15450 = vst [vmem:[#allocation22_spill] sm:$0xff] %v13610_v24  ;;  %v5386_v50 = vor.u32 %v5385_v21, %v13619_v59 }
 0x3a6   : > { %7920 = vmatmul.bf16.gmra.mxu0 %v10622_v49  ;;  %v13622_v28 = vpop.f32.mrf.mxu1  ;;  %v5749_v48 = vsel %vm11117_vm4, %v5747_v0, %v5748_v55  ;;  %v5403_v49 = vshll.u32 %v13628_v33, 16  ;;  %v9874_v0 = vrot.slane %v13284_v42, 9  ;;  %v5394_v55 = vshrl.u32 %v13637_v37, 16 }
 0x3a7   : > { %7831 = vmatmul.bf16.gmra.mxu3 %v6605_v62  ;;  %v5389_v62 = vshll.u32 %v13624_v39, 16  ;;  %v5387_v1 = vrot.slane %v5386_v50, 4 }
 0x3a8   : > { %8048 = vmatmul.bf16.gmra.mxu2 %v6787_v46  ;;  %v5752_v46 = vrot.slane %v13588_v54, 5  ;;  %v5409_v54 = vrot.slane %v5407_v22, 4  ;;  %v9881_v22 = vrot.slane %v13600_v16, 9 }
 0x3aa   : > { %v7792_v38 = vpop.f32.mrf.mxu3  ;;  %7964 = vmatmul.bf16.gmra.mxu1 %v6724_v57  ;;  %v5227_v57 = vsel %vm11117_vm4, %v5225_v61, %v5226_v52  ;;  %v6759_v61 = vunpack.c.l.b16 %v5749_v48  ;;  %v13683_v16 = vsel %vm11117_vm4, %v9881_v22, %v5752_v46 }
 0x3ab   : > { %v13633_v44 = vadd.f32 %v7792_v38, %v13318_v40  ;;  %v7733_v14 = vpop.f32.mrf.mxu2  ;;  %v13639_v45 = vpop.f32.mrf.mxu0  ;;  %v5376_v40 = vor.u32 %v5375_v47, %v5372_v34  ;;  %v9880_v38 = vrot.slane %v13542_v8, 9  ;;  %v5391_v34 = vrot.slane %v5389_v62, 5 }
 0x3ac   : > { %15453 = vst [vmem:[#allocation29_spill] sm:$0xff] %v13639_v45  ;;  %v13645_v21 = vadd.f32 %v7733_v14, %v7645_v7  ;;  %v5224_v7 = vsel %vm11117_vm4, %v9874_v0, %v5223_v4  ;;  %v13658_v47 = vrot.slane %v5403_v49, 5  ;;  %v6587_v50 = vunpack.c.l.b16 %v5227_v57  ;;  %v13670_v0 = vld [vmem:[#allocation2 + $0x44] sm:$0x1] }
 0x3ad   : > { %15452 = vst [vmem:[#allocation25_spill] sm:$0xff] %v13633_v44  ;;  %v5746_v42 = vsel %vm11117_vm4, %v9880_v38, %v5745_v63  ;;  %v5377_v14 = vrot.slane %v5376_v40, 4  ;;  %v5392_v2 = vsel %vm11126_vm5, %v5387_v1, %v5391_v34  ;;  %v5754_v8 = vrot.slane %v5752_v46, 4 }
 0x3ae   : > { %v13654_v45 = vpop.f32.mrf.mxu1  ;;  %v5396_v44 = vrot.slane %v5394_v55, 4  ;;  %v7647_v4 = vadd.f32 %v13361_v15, %v13592_v3  ;;  %v6586_v49 = vunpack.c.l.b16 %v5224_v7  ;;  %v6758_v40 = vunpack.c.l.b16 %v5746_v42  ;;  %v10696_v7 = vld [vmem:[#allocation3 + $0x1a8] sm:$0xff] }
 0x3af   : > { %v5382_v1 = vsel %vm11126_vm5, %v5377_v14, %v13619_v59  ;;  %v5755_v57 = vrot.slane %v13624_v39, 5  ;;  %v5410_v3 = vor.u32 %v5409_v54, %v13658_v47  ;;  %v6697_v38 = vunpack.c.l.b16 %v5392_v2  ;;  %v13691_v14 = vld [vmem:[#allocation2 + $0x48] sm:$0xf]  ;;  %8126 = vmatpush.bf16.msra.mxu3 %v10696_v7 }
 0x3b0   : > { %v5230_v34 = vrot.slane %v13356_v31, 5  ;;  %v5400_v59 = vor.u32 %v5399_v43, %v5396_v44  ;;  %v5413_v39 = vshll.u32 %v13670_v0, 16  ;;  %v6788_v54 = vpack.c.b16 %v6759_v61, %v6758_v40  ;;  %v13697_v31 = vld [vmem:[#allocation2 + $0x1c] sm:$0xf]  ;;  %v10720_v61 = vld [vmem:[%s15349_s5 + $0x28] sm:$0xff]  ;;  %v10704_v43 = vld [vmem:[#allocation3 + $0x1e8] sm:$0xff] }
 0x3b1   : > { %v13688_v42 = vsel %vm11117_vm4, %v5754_v8, %v5755_v57  ;;  %v5411_v46 = vrot.slane %v5410_v3, 4  ;;  %v5418_v57 = vshrl.u32 %v13691_v14, 16  ;;  %v13710_v3 = vld [vmem:[#allocation2 + $0x20] sm:$0x1]  ;;  %8957 = vmatpush.bf16.msra.mxu2 %v10720_v61  ;;  %v13719_v7 = vld [vmem:[#allocation2 + $0x28] sm:$0xf]  ;;  %8215 = vmatpush.bf16.msra.mxu0 %v10704_v43 }
 0x3b2   : > { %v7794_v52 = vpop.f32.mrf.mxu3  ;;  %v13707_v40 = vrot.slane %v5400_v59, 4  ;;  %v5233_v44 = vrot.slane %v13367_v5, 5 }
 0x3b3   : > { %v13667_v62 = vadd.f32 %v7794_v52, %v13341_v58  ;;  %v7735_v63 = vpop.f32.mrf.mxu2  ;;  %v13672_v48 = vpop.f32.mrf.mxu0  ;;  %v6606_v58 = vpack.c.b16 %v6587_v50, %v6586_v49  ;;  %v6696_v50 = vunpack.c.l.b16 %v5382_v1  ;;  %v13695_v52 = vld [vmem:[#allocation2 + $0x18] sm:$0xf]  ;;  %v13705_v49 = vld [vmem:[#allocation2 + $0x4c] sm:$0xf]  ;;  %v5415_v1 = vrot.slane %v5413_v39, 5 }
 0x3b4   : > { %15455 = vst [vmem:[#allocation27_spill] sm:$0xff] %v13672_v48  ;;  %v13679_v55 = vadd.f32 %v7735_v63, %v7647_v4  ;;  %v5232_v63 = vrot.slane %v5230_v34, 4  ;;  %v9894_v59 = vrot.slane %v13695_v52, 9  ;;  %v6324_v39 = vrot.slane %v13697_v31, 5  ;;  %v10712_v4 = vld [vmem:[#allocation3 + $0x228] sm:$0xff] }
 0x3b5   : > { %15454 = vst [vmem:[#allocation26_spill] sm:$0xff] %v13667_v62  ;;  %v6725_v8 = vpack.c.b16 %v6697_v38, %v6696_v50  ;;  %v13717_v38 = vld [vmem:[#allocation2 + $0x24] sm:$0xf]  ;;  %v13733_v48 = vld [vmem:[#allocation2 + $0x2c] sm:$0x1]  ;;  %v13750_v62 = vrot.slane %v5418_v57, 4  ;;  %8304 = vmatpush.bf16.msra.mxu1 %v10712_v4 }
 0x3b6   : > { %7925 = vmatmul.bf16.gmra.mxu0 %v10623_v17  ;;  %v13693_v2 = vpop.f32.mrf.mxu1  ;;  %v5234_v5 = vsel %vm11117_vm4, %v5232_v63, %v5233_v44  ;;  %v6334_v24 = vrot.slane %v13733_v48, 5  ;;  %v5431_v43 = vshrl.u32 %v13705_v49, 16  ;;  %v13762_v57 = vld [vmem:[#allocation2 + $0x30] sm:$0xf]  ;;  %v13764_v4 = vld [vmem:[#allocation2 + $0x34] sm:$0xf] }
 0x3b7   : > { %7836 = vmatmul.bf16.gmra.mxu3 %v6606_v58  ;;  %v7650_v58 = vadd.f32 %v13361_v15, %v13622_v28  ;;  %v5416_v28 = vsel %vm11126_vm5, %v5411_v46, %v5415_v1  ;;  %v6327_v46 = vrot.slane %v13710_v3, 5  ;;  %v9895_v1 = vrot.slane %v13717_v38, 9 }
 0x3b8   : > { %8053 = vmatmul.bf16.gmra.mxu2 %v6788_v54  ;;  %v6589_v13 = vunpack.c.l.b16 %v5234_v5  ;;  %v7652_v5 = vadd.f32 %v13361_v15, %v13654_v45  ;;  %v10624_v45 = vld [vmem:[#allocation2 + $0xa8] sm:$0xff] }
 0x3ba   : > { %v7797_v22 = vpop.f32.mrf.mxu3  ;;  %7969 = vmatmul.bf16.gmra.mxu1 %v6725_v8  ;;  %v5427_v8 = vshll.u32 %v13705_v49, 16 }
 0x3bb   : > { %v13715_v17 = vadd.f32 %v7797_v22, %v13372_v18  ;;  %v7738_v54 = vpop.f32.mrf.mxu2  ;;  %v13723_v50 = vpop.f32.mrf.mxu0  ;;  %v5421_v18 = vshll.u32 %v13691_v14, 16  ;;  %v9875_v22 = vrot.slane %v13339_v10, 9 }
 0x3bc   : > { %15457 = vst [vmem:[#allocation33_spill] sm:$0xff] %v13723_v50  ;;  %v13730_v61 = vadd.f32 %v7738_v54, %v7650_v58  ;;  %v6325_v50 = vsel %vm11117_vm4, %v9894_v59, %v6324_v39  ;;  %v6331_v58 = vrot.slane %v13719_v7, 5  ;;  %v5406_v54 = vsel %vm11126_vm5, %v13707_v40, %v13658_v47 }
 0x3bd   : > { %15456 = vst [vmem:[#allocation28_spill] sm:$0xff] %v13715_v17  ;;  %v6326_v17 = vrot.slane %v6324_v39, 4  ;;  %v5231_v10 = vsel %vm11117_vm4, %v9875_v22, %v5230_v34  ;;  %v15459_v59 = vrot.slane %v13628_v33, 5  ;;  %v6699_v47 = vunpack.c.l.b16 %v5416_v28 }
 0x3be   : > { %15458 = vst [vmem:[#allocation30_spill] sm:$0xff] %v13730_v61  ;;  %v13752_v44 = vpop.f32.mrf.mxu1  ;;  %v6332_v34 = vsel %vm11117_vm4, %v9895_v1, %v6331_v58  ;;  %v6333_v22 = vrot.slane %v6331_v58, 4  ;;  %v13759_v40 = vrot.slane %v5421_v18, 5  ;;  %v13766_v30 = vrot.slane %v5427_v8, 5  ;;  %v13775_v58 = vld [vmem:[#allocation2 + $0x38] sm:$0x1] }
 0x3bf   : > { %v5761_v39 = vrot.slane %v15459_v59, 4  ;;  %v6328_v63 = vsel %vm11117_vm4, %v6326_v17, %v6327_v46  ;;  %v6946_v17 = vunpack.c.l.b16 %v6325_v50  ;;  %v6588_v18 = vunpack.c.l.b16 %v5231_v10 }
 0x3c0   : > { %v6947_v46 = vunpack.c.l.b16 %v6328_v63  ;;  %v6335_v1 = vsel %vm11117_vm4, %v6333_v22, %v6334_v24  ;;  %v6948_v8 = vunpack.c.l.b16 %v6332_v34  ;;  %v9896_v50 = vrot.slane %v13762_v57, 9  ;;  %v10695_v22 = vld [vmem:[#allocation3 + $0x1a0] sm:$0xff] }
 0x3c1   : > { %v6949_v12 = vunpack.c.l.b16 %v6335_v1  ;;  %v6338_v63 = vrot.slane %v13764_v4, 5  ;;  %v6607_v15 = vpack.c.b16 %v6589_v13, %v6588_v18  ;;  %v5433_v10 = vrot.slane %v5431_v43, 4  ;;  %8127 = vmatpush.bf16.msra.mxu3 %v10695_v22 }
 0x3c2   : > { %v7799_v59 = vpop.f32.mrf.mxu3  ;;  %v13777_v61 = vpack.c.b16 %v6947_v46, %v6946_v17  ;;  %v6341_v46 = vrot.slane %v13775_v58, 5  ;;  %v15465_v13 = vunpack.c.l.b16 %v13688_v42  ;;  %v6698_v18 = vunpack.c.l.b16 %v5406_v54 }
 0x3c3   : > { %v13773_v28 = vadd.f32 %v7799_v59, %v13390_v25  ;;  %v7740_v35 = vpop.f32.mrf.mxu2  ;;  %v13783_v24 = vpop.f32.mrf.mxu0  ;;  %v5237_v25 = vrot.slane %v13401_v19, 5  ;;  %v10703_v59 = vld [vmem:[#allocation3 + $0x1e0] sm:$0xff]  ;;  %v13786_v1 = vpack.c.b16 %v6949_v12, %v6948_v8  ;;  %v6339_v34 = vsel %vm11117_vm4, %v9896_v50, %v6338_v63  ;;  %v13799_v8 = vld [vmem:[#allocation2 + $0x50] sm:$0x1] }
 0x3c4   : > { %15461 = vst [vmem:[#allocation32_spill] sm:$0xff] %v13777_v61  ;;  %v13781_v32 = vadd.f32 %v7740_v35, %v7652_v5  ;;  %v6340_v17 = vrot.slane %v6338_v63, 4  ;;  %v15464_v35 = vunpack.c.l.b16 %v13683_v16  ;;  %v5762_v19 = vrot.slane %v13670_v0, 5  ;;  %8216 = vmatpush.bf16.msra.mxu0 %v10703_v59  ;;  %v10694_v0 = vld [vmem:[#allocation3 + $0x198] sm:$0xff] }
 0x3c5   : > { %15460 = vst [vmem:[#allocation31_spill] sm:$0xff] %v13773_v28  ;;  %v9882_v12 = vrot.slane %v13637_v37, 9  ;;  %v6726_v63 = vpack.c.b16 %v6699_v47, %v6698_v18  ;;  %v5239_v16 = vrot.slane %v5237_v25, 4  ;;  %v5434_v54 = vor.u32 %v5433_v10, %v13766_v30  ;;  %8128 = vmatpush.bf16.msra.mxu3 %v10694_v0 }
 0x3c6   : > { %15462 = vst [vmem:[#allocation36_spill] sm:$0xff] %v13783_v24  ;;  %7930 = vmatmul.bf16.gmra.mxu0 %v10624_v45  ;;  %v6789_v5 = vpack.c.b16 %v15465_v13, %v15464_v35  ;;  %v13796_v43 = vpop.f32.mrf.mxu1  ;;  %v6342_v50 = vsel %vm11117_vm4, %v6340_v17, %v6341_v46  ;;  %v5763_v42 = vsel %vm11117_vm4, %v5761_v39, %v5762_v19  ;;  %v13806_v45 = vld [vmem:[#allocation2 + $0x54] sm:$0xf]  ;;  %v15466_v35 = vrot.slane %v13628_v33, 5  ;;  %v13817_v39 = vld [vmem:[%s15348_s4] ss:$0 sm:$0xff] }
 0x3c7   : > { %15463 = vst [vmem:[#allocation39_spill] sm:$0xff] %v13786_v1  ;;  %7841 = vmatmul.bf16.gmra.mxu3 %v6607_v15  ;;  %v10702_v15 = vld [vmem:[#allocation3 + $0x1d8] sm:$0xff]  ;;  %v5424_v59 = vor.u32 %v13759_v40, %v13750_v62  ;;  %v6950_v47 = vunpack.c.l.b16 %v6339_v34  ;;  %v6951_v17 = vunpack.c.l.b16 %v6342_v50  ;;  %v7655_v10 = vadd.f32 %v13817_v39, %v13693_v2  ;;  %v15467_v46 = vld [vmem:[#allocation17_spill] sm:$0xff]  ;;  %v10701_v1 = vld [vmem:[#allocation3 + $0x1d0] sm:$0xff] }
 0x3c8   : > { %8058 = vmatmul.bf16.gmra.mxu2 %v6789_v5  ;;  %v5760_v22 = vsel %vm11117_vm4, %v9882_v12, %v15466_v35  ;;  %v15469_v33 = vld [vmem:[#allocation12_spill] sm:$0xff]  ;;  %v5437_v18 = vshll.u32 %v13799_v8, 16  ;;  %v13826_v19 = vld [vmem:[#allocation2 + $0x58] sm:$0xf]  ;;  %v6763_v40 = vunpack.c.l.b16 %v5763_v42  ;;  %v5766_v34 = vrot.slane %v13705_v49, 5  ;;  %8217 = vmatpush.bf16.msra.mxu0 %v10702_v15 }
 0x3c9   : > { %v5240_v5 = vrot.slane %v15469_v33, 5  ;;  %v5442_v12 = vshrl.u32 %v13806_v45, 16  ;;  %v13830_v50 = vpack.c.b16 %v6951_v17, %v6950_v47  ;;  %v10693_v33 = vld [vmem:[#allocation3 + $0x190] sm:$0xff]  ;;  %v6762_v61 = vunpack.c.l.b16 %v5760_v22  ;;  %v10692_v22 = vld [vmem:[#allocation3 + $0x188] sm:$0xff] }
 0x3ca   : > { %v7802_v37 = vpop.f32.mrf.mxu3  ;;  %7974 = vmatmul.bf16.gmra.mxu1 %v6726_v63  ;;  %v5445_v42 = vshll.u32 %v13806_v45, 16  ;;  %v5451_v49 = vshll.u32 %v13826_v19, 16  ;;  %v5455_v0 = vshrl.u32 %v13826_v19, 16  ;;  %v5425_v17 = vrot.slane %v5424_v59, 4  ;;  %8129 = vmatpush.bf16.msra.mxu3 %v10693_v33 }
 0x3cb   : > { %v13822_v13 = vadd.f32 %v7802_v37, %v15467_v46  ;;  %v7743_v62 = vpop.f32.mrf.mxu2  ;;  %15470 = vst [vmem:[#allocation38_spill] sm:$0xff] %v13830_v50  ;;  %v15471_v37 = vld [vmem:[#allocation13_spill] sm:$0xff]  ;;  %v5241_v35 = vsel %vm11117_vm4, %v5239_v16, %v5240_v5  ;;  %v5435_v46 = vrot.slane %v5434_v54, 4  ;;  %v13840_v15 = vpop.f32.mrf.mxu0  ;;  %v6790_v5 = vpack.c.b16 %v6763_v40, %v6762_v61  ;;  %v13848_v50 = vld [vmem:[#allocation2 + $0x40] sm:$0xf] }
 0x3cc   : > { %v13832_v2 = vadd.f32 %v7743_v62, %v7655_v10  ;;  %v9876_v63 = vrot.slane %v15471_v37, 9  ;;  %15472 = vst [vmem:[#allocation40_spill] sm:$0xff] %v13840_v15  ;;  %v5439_v10 = vrot.slane %v5437_v18, 5  ;;  %v13844_v62 = vld [vmem:[#allocation2 + $0x3c] sm:$0xf]  ;;  %v6591_v54 = vunpack.c.l.b16 %v5241_v35  ;;  %8218 = vmatpush.bf16.msra.mxu0 %v10701_v1  ;;  %v10700_v37 = vld [vmem:[#allocation3 + $0x1c8] sm:$0xff] }
 0x3cd   : > { %15468 = vst [vmem:[#allocation37_spill] sm:$0xff] %v13822_v13  ;;  %v5430_v15 = vsel %vm11126_vm5, %v5425_v17, %v13766_v30  ;;  %v5768_v59 = vrot.slane %v5766_v34, 4  ;;  %v13855_v18 = vrot.slane %v5442_v12, 4  ;;  %v5447_v35 = vrot.slane %v5445_v42, 5  ;;  %v13859_v40 = vld [vmem:[#allocation2 + $0x44] sm:$0x1] }
 0x3ce   : > { %v5238_v47 = vsel %vm11117_vm4, %v9876_v63, %v5237_v25  ;;  %v13846_v16 = vpop.f32.mrf.mxu1  ;;  %v5440_v25 = vsel %vm11126_vm5, %v5435_v46, %v5439_v10  ;;  %v13857_v61 = vrot.slane %v5451_v49, 5  ;;  %v5457_v1 = vrot.slane %v5455_v0, 4  ;;  %v13870_v0 = vld [vmem:[#allocation2 + $0x5c] sm:$0x1]  ;;  %8130 = vmatpush.bf16.msra.mxu3 %v10692_v22 }
 0x3cf   : > { %v6590_v24 = vunpack.c.l.b16 %v5238_v47  ;;  %v7657_v33 = vadd.f32 %v13817_v39, %v13752_v44  ;;  %v9897_v30 = vrot.slane %v13844_v62, 9  ;;  %v6345_v46 = vrot.slane %v13848_v50, 5  ;;  %v10625_v44 = vld [vmem:[#allocation2 + $0xb4] sm:$0xff] }
 0x3d0   : > { %v6701_v10 = vunpack.c.l.b16 %v5440_v25  ;;  %v9883_v42 = vrot.slane %v13691_v14, 9  ;;  %v5769_v49 = vrot.slane %v13799_v8, 5  ;;  %8219 = vmatpush.bf16.msra.mxu0 %v10700_v37  ;;  %v5244_v14 = vrot.slane %v13453_v20, 5 }
 0x3d1   : > { %v6608_v17 = vpack.c.b16 %v6591_v54, %v6590_v24  ;;  %v6347_v28 = vrot.slane %v6345_v46, 4  ;;  %v6348_v24 = vrot.slane %v13859_v40, 5  ;;  %v6700_v54 = vunpack.c.l.b16 %v5430_v15 }
 0x3d2   : > { %v7804_v63 = vpop.f32.mrf.mxu3  ;;  %v5767_v8 = vsel %vm11117_vm4, %v9883_v42, %v5766_v34  ;;  %v5770_v22 = vsel %vm11117_vm4, %v5768_v59, %v5769_v49  ;;  %v5448_v37 = vor.u32 %v5447_v35, %v13855_v18  ;;  %v5458_v25 = vor.u32 %v5457_v1, %v13857_v61  ;;  %v10719_v42 = vld [vmem:[%s15349_s5 + $0x20] sm:$0xff] }
 0x3d3   : > { %v13864_v13 = vadd.f32 %v7804_v63, %v13442_v23  ;;  %v7745_v12 = vpop.f32.mrf.mxu2  ;;  %v10691_v23 = vld [vmem:[#allocation3 + $0x180] sm:$0xff]  ;;  %v5891_v20 = vshrl.u32 %v13695_v52, 16  ;;  %v5894_v34 = vshll.u32 %v13695_v52, 16  ;;  %v13893_v35 = vpop.f32.mrf.mxu0  ;;  %v6727_v1 = vpack.c.b16 %v6701_v10, %v6700_v54  ;;  %8958 = vmatpush.bf16.msra.mxu2 %v10719_v42 }
 0x3d4   : > { %v13872_v47 = vadd.f32 %v7745_v12, %v7657_v33  ;;  %v10699_v63 = vld [vmem:[#allocation3 + $0x1c0] sm:$0xff]  ;;  %v5461_v33 = vshll.u32 %v13870_v0, 16  ;;  %8131 = vmatpush.bf16.msra.mxu3 %v10691_v23  ;;  %v15474_v12 = vld [vmem:[#allocation10_spill] sm:$0xff]  ;;  %15475 = vst [vmem:[#allocation17_spill] sm:$0xff] %v13893_v35  ;;  %v6765_v23 = vunpack.c.l.b16 %v5770_v22  ;;  %v9884_v52 = vrot.slane %v13806_v45, 9 }
 0x3d5   : > { %15473 = vst [vmem:[#allocation41_spill] sm:$0xff] %v13864_v13  ;;  %v6346_v13 = vsel %vm11117_vm4, %v9897_v30, %v6345_v46  ;;  %v6349_v30 = vsel %vm11117_vm4, %v6347_v28, %v6348_v24  ;;  %8220 = vmatpush.bf16.msra.mxu0 %v10699_v63  ;;  %v7602_v18 = vadd.f32 %v13817_v39, %v15474_v12  ;;  %v5773_v28 = vrot.slane %v13826_v19, 5 }
 0x3d6   : > { %7935 = vmatmul.bf16.gmra.mxu0 %v10625_v44  ;;  %v13887_v15 = vpop.f32.mrf.mxu1  ;;  %v6952_v59 = vunpack.c.l.b16 %v6346_v13  ;;  %v6953_v46 = vunpack.c.l.b16 %v6349_v30  ;;  %v5246_v44 = vrot.slane %v5244_v14, 4  ;;  %v7660_v63 = vadd.f32 %v13817_v39, %v13796_v43 }
 0x3d7   : > { %7846 = vmatmul.bf16.gmra.mxu3 %v6608_v17  ;;  %v6764_v17 = vunpack.c.l.b16 %v5767_v8  ;;  %v5459_v10 = vrot.slane %v5458_v25, 4  ;;  %v5463_v19 = vrot.slane %v5461_v33, 5  ;;  %v5247_v54 = vrot.slane %v13459_v26, 5  ;;  %v10711_v26 = vld [vmem:[#allocation3 + $0x220] sm:$0xff] }
 0x3d8   : > { %8063 = vmatmul.bf16.gmra.mxu2 %v6790_v5  ;;  %v13900_v13 = vpack.c.b16 %v6953_v46, %v6952_v59  ;;  %v5449_v8 = vrot.slane %v5448_v37, 4  ;;  %v5893_v30 = vrot.slane %v5891_v20, 4  ;;  %v5896_v22 = vrot.slane %v5894_v34, 5  ;;  %v15478_v46 = vld [vmem:[#allocation11_spill] sm:$0xff]  ;;  %8305 = vmatpush.bf16.msra.mxu1 %v10711_v26 }
 0x3d9   : > { %v5775_v45 = vrot.slane %v5773_v28, 4  ;;  %v5900_v59 = vshll.u32 %v13697_v31, 16  ;;  %v5904_v43 = vshrl.u32 %v13697_v31, 16  ;;  %v5248_v33 = vsel %vm11117_vm4, %v5246_v44, %v5247_v54  ;;  %v13954_v26 = vld [vmem:[#allocation2 + $0x4c] sm:$0xf] }
 0x3da   : > { %v7807_v49 = vpop.f32.mrf.mxu3  ;;  %15476 = vst [vmem:[#allocation12_spill] sm:$0xff] %v13900_v13  ;;  %7979 = vmatmul.bf16.gmra.mxu1 %v6727_v1  ;;  %v10816_v1 = vld [vmem:[#allocation2 + $0xb4] sm:$0xf]  ;;  %v6791_v42 = vpack.c.b16 %v6765_v23, %v6764_v17  ;;  %v5454_v37 = vsel %vm11126_vm5, %v5449_v8, %v13857_v61  ;;  %v5464_v20 = vsel %vm11126_vm5, %v5459_v10, %v5463_v19  ;;  %v5776_v34 = vrot.slane %v13870_v0, 5  ;;  %v13976_v13 = vld [vmem:[#allocation2 + $0x50] sm:$0x1] }
 0x3db   : > { %v13905_v5 = vadd.f32 %v7807_v49, %v13471_v9  ;;  %v7748_v24 = vpop.f32.mrf.mxu2  ;;  %v13913_v9 = vadd.f32 %v15478_v46, %v7602_v18  ;;  %v9877_v25 = vrot.slane %v10816_v1, 9  ;;  %v13924_v31 = vsel %vm11117_vm4, %v9884_v52, %v5773_v28  ;;  %v13927_v18 = vld [vmem:[#allocation2 + $0x64] sm:$0xf] }
 0x3dc   : > { %v13908_v12 = vadd.f32 %v7748_v24, %v7660_v63  ;;  %v5897_v44 = vor.u32 %v5896_v22, %v5893_v30  ;;  %v5915_v61 = vshrl.u32 %v13717_v38, 16  ;;  %v5918_v23 = vshll.u32 %v13717_v38, 16  ;;  %v13945_v30 = vpop.f32.mrf.mxu0 }
 0x3dd   : > { %15477 = vst [vmem:[#allocation13_spill] sm:$0xff] %v13905_v5  ;;  %v5245_v17 = vsel %vm11117_vm4, %v9877_v25, %v5244_v14  ;;  %v6593_v63 = vunpack.c.l.b16 %v5248_v33  ;;  %v13937_v28 = vsel %vm11117_vm4, %v5775_v45, %v5776_v34  ;;  %v13939_v52 = vrot.slane %v5900_v59, 5  ;;  %v13951_v59 = vld [vmem:[#allocation2 + $0x60] sm:$0xf]  ;;  %v14005_v5 = vld [vmem:[#allocation2 + $0x70] sm:$0xf] }
 0x3de   : > { %v13929_v49 = vpop.f32.mrf.mxu1  ;;  %v5906_v0 = vrot.slane %v5904_v43, 4  ;;  %v6702_v19 = vunpack.c.l.b16 %v5454_v37  ;;  %v6703_v24 = vunpack.c.l.b16 %v5464_v20  ;;  %v5475_v54 = vshll.u32 %v13927_v18, 16  ;;  %15479 = vst [vmem:[#allocation10_spill] sm:$0xff] %v13945_v30  ;;  %v10626_v20 = vld [vmem:[#allocation2 + $0xc0] sm:$0xff] }
 0x3df   : > { %v5479_v14 = vshrl.u32 %v13927_v18, 16  ;;  %v7662_v8 = vadd.f32 %v13817_v39, %v13846_v16  ;;  %v6592_v22 = vunpack.c.l.b16 %v5245_v17  ;;  %v5910_v45 = vshll.u32 %v13710_v3, 16 }
 0x3e0   : > { %v5898_v46 = vrot.slane %v5897_v44, 4  ;;  %v5917_v1 = vrot.slane %v5915_v61, 4  ;;  %v5920_v25 = vrot.slane %v5918_v23, 5  ;;  %v5924_v33 = vshll.u32 %v13719_v7, 16  ;;  %v13964_v61 = vld [vmem:[#allocation2 + $0x48] sm:$0xf] }
 0x3e1   : > { %v6609_v16 = vpack.c.b16 %v6593_v63, %v6592_v22  ;;  %v5928_v34 = vshrl.u32 %v13719_v7, 16  ;;  %v5466_v3 = vshrl.u32 %v13951_v59, 16  ;;  %v5469_v17 = vshll.u32 %v13951_v59, 16 }
 0x3e2   : > { %v7809_v10 = vpop.f32.mrf.mxu3  ;;  %v5481_v44 = vrot.slane %v5479_v14, 4  ;;  %v6728_v23 = vpack.c.b16 %v6703_v24, %v6702_v19  ;;  %v5912_v63 = vrot.slane %v5910_v45, 5  ;;  %v6352_v22 = vrot.slane %v13954_v26, 5  ;;  %v13978_v24 = vld [vmem:[#allocation2 + $0x68] sm:$0x1] }
 0x3e3   : > { %v13948_v38 = vadd.f32 %v7809_v10, %v13501_v11  ;;  %v7750_v43 = vpop.f32.mrf.mxu2  ;;  %v5907_v11 = vor.u32 %v5906_v0, %v13939_v52  ;;  %v13962_v10 = vrot.slane %v5475_v54, 5  ;;  %v5903_v7 = vsel %vm11126_vm5, %v5898_v46, %v13939_v52 }
 0x3e4   : > { %v13956_v37 = vadd.f32 %v7750_v43, %v7662_v8  ;;  %v5921_v43 = vor.u32 %v5920_v25, %v5917_v1  ;;  %v13973_v54 = vrot.slane %v5924_v33, 5  ;;  %v5939_v14 = vshrl.u32 %v13762_v57, 16 }
 0x3e5   : > { %15480 = vst [vmem:[#allocation11_spill] sm:$0xff] %v13948_v38  ;;  %v5908_v19 = vrot.slane %v5907_v11, 4  ;;  %v5930_v45 = vrot.slane %v5928_v34, 4  ;;  %v7665_v8 = vadd.f32 %v13817_v39, %v13887_v15  ;;  %v5468_v46 = vrot.slane %v5466_v3, 4 }
 0x3e6   : > { %7940 = vmatmul.bf16.gmra.mxu0 %v10626_v20  ;;  %v13968_v0 = vpop.f32.mrf.mxu1  ;;  %v9898_v20 = vrot.slane %v13964_v61, 9  ;;  %v5471_v1 = vrot.slane %v5469_v17, 5  ;;  %v5482_v25 = vor.u32 %v5481_v44, %v13962_v10  ;;  %v6354_v11 = vrot.slane %v6352_v22, 4  ;;  %v13995_v44 = vpop.f32.mrf.mxu0 }
 0x3e7   : > { %7851 = vmatmul.bf16.gmra.mxu3 %v6609_v16  ;;  %v5942_v16 = vshll.u32 %v13762_v57, 16  ;;  %v6355_v57 = vrot.slane %v13976_v13, 5  ;;  %v5485_v30 = vshll.u32 %v13978_v24, 16  ;;  %v5934_v15 = vshll.u32 %v13733_v48, 16  ;;  %15482 = vst [vmem:[#allocation43_spill] sm:$0xff] %v13995_v44 }
 0x3e8   : > { %8068 = vmatmul.bf16.gmra.mxu2 %v6791_v42  ;;  %v6353_v42 = vsel %vm11117_vm4, %v9898_v20, %v6352_v22  ;;  %v5948_v3 = vshll.u32 %v13764_v4, 16  ;;  %v5952_v17 = vshrl.u32 %v13764_v4, 16  ;;  %v5931_v22 = vor.u32 %v5930_v45, %v13973_v54 }
 0x3e9   : > { %v6356_v20 = vsel %vm11117_vm4, %v6354_v11, %v6355_v57  ;;  %v5472_v48 = vor.u32 %v5471_v1, %v5468_v46  ;;  %v5483_v38 = vrot.slane %v5482_v25, 4  ;;  %v5922_v35 = vrot.slane %v5921_v43, 4 }
 0x3ea   : > { %v7812_v52 = vpop.f32.mrf.mxu3  ;;  %7984 = vmatmul.bf16.gmra.mxu1 %v6728_v23  ;;  %v5913_v23 = vsel %vm11126_vm5, %v5908_v19, %v5912_v63  ;;  %v5941_v4 = vrot.slane %v5939_v14, 4  ;;  %v5944_v44 = vrot.slane %v5942_v16, 5  ;;  %v5487_v63 = vrot.slane %v5485_v30, 5 }
 0x3eb   : > { %v13986_v33 = vadd.f32 %v7812_v52, %v13524_v53  ;;  %v7753_v34 = vpop.f32.mrf.mxu2  ;;  %v6767_v52 = vunpack.c.l.b16 %v13937_v28  ;;  %v14009_v19 = vrot.slane %v5948_v3, 5  ;;  %v5954_v45 = vrot.slane %v5952_v17, 4 }
 0x3ec   : > { %v13997_v53 = vadd.f32 %v7753_v34, %v7665_v8  ;;  %v6955_v8 = vunpack.c.l.b16 %v6356_v20  ;;  %v5927_v28 = vsel %vm11126_vm5, %v5922_v35, %v13973_v54  ;;  %v14016_v46 = vrot.slane %v5934_v15, 5  ;;  %v14027_v35 = vld [vmem:[#allocation2 + $0x6c] sm:$0xf] }
 0x3ed   : > { %15481 = vst [vmem:[#allocation42_spill] sm:$0xff] %v13986_v33  ;;  %v6882_v33 = vunpack.c.l.b16 %v5903_v7  ;;  %v14014_v7 = vrot.slane %v5931_v22, 4  ;;  %v6954_v43 = vunpack.c.l.b16 %v6353_v42  ;;  %v5473_v14 = vrot.slane %v5472_v48, 4  ;;  %v14036_v22 = vld [vmem:[#allocation2 + $0x58] sm:$0xf] }
 0x3ee   : > { %15483 = vst [vmem:[#allocation44_spill] sm:$0xff] %v13997_v53  ;;  %v14007_v34 = vpop.f32.mrf.mxu1  ;;  %v6883_v53 = vunpack.c.l.b16 %v5913_v23  ;;  %v5488_v16 = vsel %vm11126_vm5, %v5483_v38, %v5487_v63  ;;  %v5499_v25 = vshll.u32 %v14005_v5, 16  ;;  %v5503_v30 = vshrl.u32 %v14005_v5, 16 }
 0x3ef   : > { %v7667_v11 = vadd.f32 %v13817_v39, %v13929_v49  ;;  %v5945_v54 = vor.u32 %v5944_v44, %v5941_v4  ;;  %v14029_v15 = vpack.c.b16 %v6955_v8, %v6954_v43  ;;  %v5478_v38 = vsel %vm11126_vm5, %v5473_v14, %v13962_v10  ;;  %v14046_v8 = vld [vmem:[#allocation2 + $0x54] sm:$0xf] }
 0x3f0   : > { %v6914_v3 = vpack.c.b16 %v6883_v53, %v6882_v33  ;;  %v5955_v17 = vor.u32 %v5954_v45, %v14009_v19  ;;  %v5958_v23 = vshll.u32 %v13775_v58, 16  ;;  %v6705_v20 = vunpack.c.l.b16 %v5488_v16  ;;  %v14048_v58 = vpop.f32.mrf.mxu0 }
 0x3f1   : > { %15484 = vst [vmem:[#allocation45_spill] sm:$0xff] %v14029_v15  ;;  %v5963_v44 = vshrl.u32 %v13844_v62, 16  ;;  %v5966_v48 = vshll.u32 %v13844_v62, 16  ;;  %v5490_v33 = vshrl.u32 %v14027_v35, 16  ;;  %v5493_v53 = vshll.u32 %v14027_v35, 16 }
 0x3f2   : > { %v7814_v1 = vpop.f32.mrf.mxu3  ;;  %v14044_v4 = vrot.slane %v5499_v25, 5  ;;  %v5505_v10 = vrot.slane %v5503_v30, 4  ;;  %v15485_v63 = vunpack.c.l.b16 %v13924_v31  ;;  %v6704_v43 = vunpack.c.l.b16 %v5478_v38 }
 0x3f3   : > { %v14025_v57 = vadd.f32 %v7814_v1, %v13558_v27  ;;  %v7755_v42 = vpop.f32.mrf.mxu2  ;;  %v10627_v27 = vld [vmem:[#allocation2 + $0x18] sm:$0xff]  ;;  %v14052_v1 = vunpack.c.l.b16 %v5927_v28  ;;  %v6359_v62 = vrot.slane %v14036_v22, 5  ;;  %v5780_v16 = vrot.slane %v13927_v18, 5 }
 0x3f4   : > { %v14038_v49 = vadd.f32 %v7755_v42, %v7667_v11  ;;  %v6792_v45 = vpack.c.b16 %v6767_v52, %v15485_v63  ;;  %v5937_v25 = vsel %vm11126_vm5, %v14014_v7, %v14016_v46  ;;  %v5946_v30 = vrot.slane %v5945_v54, 4  ;;  %v14062_v52 = vld [vmem:[#allocation2 + $0x74] sm:$0x1]  ;;  %v10718_v28 = vld [vmem:[%s15349_s5 + $0x18] sm:$0xff] }
 0x3f5   : > { %v5960_v11 = vrot.slane %v5958_v23, 5  ;;  %v6729_v31 = vpack.c.b16 %v6705_v20, %v6704_v43  ;;  %v5956_v42 = vrot.slane %v5955_v17, 4  ;;  %v9899_v38 = vrot.slane %v14046_v8, 9  ;;  %v14069_v46 = vld [vmem:[#allocation2 + $0x5c] sm:$0x1]  ;;  %8959 = vmatpush.bf16.msra.mxu2 %v10718_v28 }
 0x3f6   : > { %8221 = vmatmul.bf16.vlgmr.msra.gmra.mxu0 %v6914_v3  ;;  %v5965_v3 = vrot.slane %v5963_v44, 4  ;;  %v5495_v63 = vrot.slane %v5493_v53, 5  ;;  %v5506_v15 = vor.u32 %v5505_v10, %v14044_v4  ;;  %v5968_v7 = vrot.slane %v5966_v48, 5 }
 0x3f7   : > { %8132 = vmatmul.bf16.vlgmr.msra.gmra.mxu3 %v10627_v27  ;;  %v14055_v14 = vpop.f32.mrf.mxu1  ;;  %v5492_v27 = vrot.slane %v5490_v33, 4  ;;  %v7670_v54 = vadd.f32 %v13817_v39, %v13968_v0  ;;  %v14078_v23 = vsel %vm11117_vm4, %v9899_v38, %v6359_v62  ;;  %v6361_v20 = vrot.slane %v6359_v62, 4 }
 0x3f8   : > { %8073 = vmatmul.bf16.gmra.mxu2 %v6792_v45  ;;  %v5782_v33 = vrot.slane %v5780_v16, 4  ;;  %v5509_v53 = vshll.u32 %v14062_v52, 16  ;;  %v5972_v48 = vshll.u32 %v13848_v50, 16  ;;  %v5976_v10 = vshrl.u32 %v13848_v50, 16  ;;  %v14093_v50 = vld [vmem:[#allocation2 + $0x7c] sm:$0xf] }
 0x3f9   : > { %v6885_v0 = vunpack.c.l.b16 %v5937_v25  ;;  %v6362_v43 = vrot.slane %v14069_v46, 5  ;;  %v5496_v62 = vor.u32 %v5495_v63, %v5492_v27  ;;  %v5507_v28 = vrot.slane %v5506_v15, 4 }
 0x3fa   : > { %v7817_v18 = vpop.f32.mrf.mxu3  ;;  %7989 = vmatmul.bf16.gmra.mxu1 %v6729_v31  ;;  %v5783_v31 = vrot.slane %v13978_v24, 5  ;;  %v5961_v38 = vsel %vm11126_vm5, %v5956_v42, %v5960_v11  ;;  %v5982_v25 = vshll.u32 %v13859_v40, 16  ;;  %v5511_v15 = vrot.slane %v5509_v53, 5 }
 0x3fb   : > { %v14074_v17 = vadd.f32 %v7817_v18, %v13581_v6  ;;  %v7758_v44 = vpop.f32.mrf.mxu2  ;;  %v5951_v6 = vsel %vm11126_vm5, %v5946_v30, %v14009_v19  ;;  %v10710_v18 = vld [vmem:[#allocation3 + $0x218] sm:$0xff]  ;;  %v14098_v19 = vsel %vm11117_vm4, %v6361_v20, %v6362_v43  ;;  %v14104_v11 = vrot.slane %v5972_v48, 5 }
 0x3fc   : > { %v14083_v45 = vadd.f32 %v7758_v44, %v7670_v54  ;;  %v5969_v54 = vor.u32 %v5968_v7, %v5965_v3  ;;  %v5784_v24 = vsel %vm11117_vm4, %v5782_v33, %v5783_v31  ;;  %8306 = vmatpush.bf16.msra.mxu1 %v10710_v18  ;;  %v5978_v42 = vrot.slane %v5976_v10, 4  ;;  %v14110_v3 = vpop.f32.mrf.mxu0 }
 0x3fd   : > { %15486 = vst [vmem:[#allocation46_spill] sm:$0xff] %v14074_v17  ;;  %v9885_v17 = vrot.slane %v13951_v59, 9  ;;  %v14108_v59 = vadd.f32 %v13488_v51, %v13913_v9  ;;  %v6915_v27 = vpack.c.b16 %v6885_v0, %v14052_v1  ;;  %v14115_v63 = vunpack.c.l.b16 %v5951_v6  ;;  %v14128_v1 = vld [vmem:[#allocation2 + $0x78] sm:$0xf] }
 0x3fe   : > { %15487 = vst [vmem:[#allocation47_spill] sm:$0xff] %v14110_v3  ;;  %v5497_v20 = vrot.slane %v5496_v62, 4  ;;  %v5512_v44 = vsel %vm11126_vm5, %v5507_v28, %v5511_v15  ;;  %v5523_v33 = vshll.u32 %v14093_v50, 16  ;;  %v5527_v53 = vshrl.u32 %v14093_v50, 16  ;;  %v10628_v62 = vld [vmem:[#allocation2 + $0x24] sm:$0xff] }
 0x3ff   : > { %v14100_v30 = vpop.f32.mrf.mxu1  ;;  %v5781_v40 = vsel %vm11117_vm4, %v9885_v17, %v5780_v16  ;;  %v7672_v51 = vadd.f32 %v13817_v39, %v14007_v34  ;;  %v6769_v16 = vunpack.c.l.b16 %v5784_v24  ;;  %v14126_v17 = vunpack.c.l.b16 %v5961_v38  ;;  %v14138_v34 = vld [vmem:[#allocation2 + $0x64] sm:$0xf] }
 0x400   : > { %v5502_v10 = vsel %vm11126_vm5, %v5497_v20, %v14044_v4  ;;  %v14133_v0 = vrot.slane %v5969_v54, 4  ;;  %v5979_v6 = vor.u32 %v5978_v42, %v14104_v11  ;;  %v14136_v43 = vrot.slane %v5982_v25, 5  ;;  %v15489_v28 = vld [vmem:[#allocation14_spill] sm:$0xff] }
 0x401   : > { %v6768_v31 = vunpack.c.l.b16 %v5781_v40  ;;  %v7867_v38 = vadd.f32 %v15489_v28, %v13466_v60  ;;  %v6707_v18 = vunpack.c.l.b16 %v5512_v44  ;;  %v5514_v24 = vshrl.u32 %v14128_v1, 16  ;;  %v14148_v42 = vld [vmem:[#allocation2 + $0x60] sm:$0xf] }
 0x402   : > { %v7819_v7 = vpop.f32.mrf.mxu3  ;;  %v5517_v4 = vshll.u32 %v14128_v1, 16  ;;  %v14146_v54 = vrot.slane %v5523_v33, 5  ;;  %v5529_v15 = vrot.slane %v5527_v53, 4  ;;  %v6957_v40 = vunpack.c.l.b16 %v14098_v19 }
 0x403   : > { %v14124_v9 = vadd.f32 %v7819_v7, %v13617_v56  ;;  %v7760_v48 = vpop.f32.mrf.mxu2  ;;  %v6793_v25 = vpack.c.b16 %v6769_v16, %v6768_v31  ;;  %v6706_v7 = vunpack.c.l.b16 %v5502_v10  ;;  %v6366_v20 = vrot.slane %v14138_v34, 5  ;;  %v14157_v16 = vld [vmem:[#allocation2 + $0x80] sm:$0x1] }
 0x404   : > { %v14140_v56 = vadd.f32 %v7760_v48, %v7672_v51  ;;  %v5787_v60 = vrot.slane %v14005_v5, 5  ;;  %v5980_v44 = vrot.slane %v5979_v6, 4  ;;  %v5987_v48 = vshrl.u32 %v13964_v61, 16 }
 0x405   : > { %15488 = vst [vmem:[#allocation48_spill] sm:$0xff] %v14124_v9  ;;  %v5990_v33 = vshll.u32 %v13964_v61, 16  ;;  %v6730_v28 = vpack.c.b16 %v6707_v18, %v6706_v7  ;;  %v9900_v19 = vrot.slane %v14148_v42, 9  ;;  %v5516_v31 = vrot.slane %v5514_v24, 4  ;;  %v14163_v9 = vld [vmem:[#allocation2 + $0x68] sm:$0x1] }
 0x406   : > { %8226 = vmatmul.bf16.gmra.mxu0 %v6915_v27  ;;  %v6956_v27 = vunpack.c.l.b16 %v14078_v23  ;;  %v5530_v5 = vor.u32 %v5529_v15, %v14146_v54  ;;  %v5996_v6 = vshll.u32 %v13954_v26, 16  ;;  %v7675_v61 = vadd.f32 %v13817_v39, %v14055_v14 }
 0x407   : > { %8137 = vmatmul.bf16.gmra.mxu3 %v10628_v62  ;;  %v7955_v51 = vpop.f32.mrf.mxu1  ;;  %v5519_v62 = vrot.slane %v5517_v4, 5  ;;  %v14176_v24 = vsel %vm11117_vm4, %v9900_v19, %v6366_v20  ;;  %v5789_v15 = vrot.slane %v5787_v60, 4  ;;  %v6000_v7 = vshrl.u32 %v13954_v26, 16  ;;  %v15493_v26 = vld [vmem:[#allocation16_spill] sm:$0xff] }
 0x408   : > { %8078 = vmatmul.bf16.gmra.mxu2 %v6793_v25  ;;  %v14155_v53 = vadd.f32 %v7955_v51, %v7867_v38  ;;  %v14167_v38 = vpop.f32.mrf.mxu0  ;;  %v14172_v23 = vpack.c.b16 %v6957_v40, %v6956_v27  ;;  %v5533_v25 = vshll.u32 %v14157_v16, 16  ;;  %v6368_v51 = vrot.slane %v6366_v20, 4 }
 0x409   : > { %15490 = vst [vmem:[#allocation14_spill] sm:$0xff] %v14167_v38  ;;  %v5985_v40 = vsel %vm11126_vm5, %v5980_v44, %v14136_v43  ;;  %v5790_v27 = vrot.slane %v14062_v52, 5  ;;  %v5520_v19 = vor.u32 %v5519_v62, %v5516_v31  ;;  %v7869_v20 = vadd.f32 %v15493_v26, %v14108_v59  ;;  %v14230_v26 = vld [vmem:[#allocation2 + $0x70] sm:$0xf]  ;;  %v14340_v38 = vld [vmem:[#allocation2 + $0x80] sm:$0x1] }
 0x40a   : > { %v7822_v10 = vpop.f32.mrf.mxu3  ;;  %7994 = vmatmul.bf16.gmra.mxu1 %v6730_v28  ;;  %15492 = vst [vmem:[#allocation50_spill] sm:$0xff] %v14172_v23  ;;  %v6369_v28 = vrot.slane %v14163_v9, 5  ;;  %v5989_v23 = vrot.slane %v5987_v48, 4  ;;  %v5535_v52 = vrot.slane %v5533_v25, 5  ;;  %v14202_v44 = vrot.slane %v5996_v6, 5 }
 0x40b   : > { %v14170_v18 = vadd.f32 %v7822_v10, %v13645_v21  ;;  %v7763_v4 = vpop.f32.mrf.mxu2  ;;  %v5975_v21 = vsel %vm11126_vm5, %v14133_v0, %v14104_v11  ;;  %v5531_v10 = vrot.slane %v5530_v5, 4  ;;  %v5791_v43 = vsel %vm11117_vm4, %v5789_v15, %v5790_v27 }
 0x40c   : > { %v14180_v14 = vadd.f32 %v7763_v4, %v7675_v61  ;;  %v9886_v61 = vrot.slane %v14027_v35, 9  ;;  %v14194_v4 = vld [vmem:[#allocation2 + $0x88] sm:$0xf]  ;;  %v14198_v11 = vsel %vm11117_vm4, %v6368_v51, %v6369_v28  ;;  %v6002_v48 = vrot.slane %v6000_v7, 4 }
 0x40d   : > { %15491 = vst [vmem:[#allocation49_spill] sm:$0xff] %v14170_v18  ;;  %v5992_v18 = vrot.slane %v5990_v33, 5  ;;  %v6916_v59 = vpack.c.b16 %v14126_v17, %v14115_v63  ;;  %v14210_v33 = vunpack.c.l.b16 %v5975_v21  ;;  %v5521_v5 = vrot.slane %v5520_v19, 4  ;;  %v14223_v63 = vld [vmem:[#allocation2 + $0x84] sm:$0xf] }
 0x40e   : > { %v5788_v35 = vsel %vm11117_vm4, %v9886_v61, %v5787_v60  ;;  %v5536_v51 = vsel %vm11126_vm5, %v5531_v10, %v5535_v52  ;;  %v5547_v15 = vshll.u32 %v14194_v4, 16  ;;  %v5551_v6 = vshrl.u32 %v14194_v4, 16 }
 0x40f   : > { %v7957_v0 = vpop.f32.mrf.mxu1  ;;  %v7677_v25 = vadd.f32 %v13817_v39, %v14100_v30  ;;  %v6771_v60 = vunpack.c.l.b16 %v5791_v43  ;;  %v14221_v28 = vunpack.c.l.b16 %v5985_v40  ;;  %v5526_v21 = vsel %vm11126_vm5, %v5521_v5, %v14146_v54  ;;  %v10629_v40 = vld [vmem:[#allocation2 + $0x30] sm:$0xff] }
 0x410   : > { %v14204_v31 = vadd.f32 %v7957_v0, %v7869_v20  ;;  %v5993_v27 = vor.u32 %v5992_v18, %v5989_v23  ;;  %v6003_v19 = vor.u32 %v6002_v48, %v14202_v44  ;;  %v6006_v10 = vshll.u32 %v13976_v13, 16  ;;  %v14232_v39 = vpop.f32.mrf.mxu0  ;;  %v15496_v20 = vld [vmem:[#allocation15_spill] sm:$0xff] }
 0x411   : > { %15495 = vst [vmem:[#allocation51_spill] sm:$0xff] %v14232_v39  ;;  %v6770_v30 = vunpack.c.l.b16 %v5788_v35  ;;  %v7872_v61 = vadd.f32 %v15496_v20, %v13518_v29  ;;  %v6709_v0 = vunpack.c.l.b16 %v5536_v51  ;;  %v5538_v43 = vshrl.u32 %v14223_v63, 16  ;;  %v14242_v13 = vld [vmem:[#allocation2 + $0x6c] sm:$0xf]  ;;  %v14259_v20 = vld [vmem:[#allocation2 + $0x74] sm:$0x1] }
 0x412   : > { %v7824_v62 = vpop.f32.mrf.mxu3  ;;  %v5541_v54 = vshll.u32 %v14223_v63, 16  ;;  %v14240_v18 = vrot.slane %v5547_v15, 5  ;;  %v5553_v23 = vrot.slane %v5551_v6, 4  ;;  %v6708_v48 = vunpack.c.l.b16 %v5526_v21  ;;  %v14283_v51 = vld [vmem:[#allocation2 + $0x94] sm:$0xf] }
 0x413   : > { %v14219_v7 = vadd.f32 %v7824_v62, %v13679_v55  ;;  %v7765_v17 = vpop.f32.mrf.mxu2  ;;  %v6794_v52 = vpack.c.b16 %v6771_v60, %v6770_v30  ;;  %v6959_v35 = vunpack.c.l.b16 %v14198_v11  ;;  %v6373_v62 = vrot.slane %v14230_v26, 5  ;;  %v14337_v39 = vld [vmem:[#allocation2 + $0x98] sm:$0x1] }
 0x414   : > { %v14234_v55 = vadd.f32 %v7765_v17, %v7677_v25  ;;  %v5794_v29 = vrot.slane %v14093_v50, 5  ;;  %v5994_v25 = vrot.slane %v5993_v27, 4  ;;  %v6731_v6 = vpack.c.b16 %v6709_v0, %v6708_v48  ;;  %v14251_v17 = vld [vmem:[#allocation2 + $0x8c] sm:$0x1] }
 0x415   : > { %15494 = vst [vmem:[#allocation16_spill] sm:$0xff] %v14219_v7  ;;  %v6958_v11 = vunpack.c.l.b16 %v14176_v24  ;;  %v9901_v60 = vrot.slane %v14242_v13, 9  ;;  %v5540_v50 = vrot.slane %v5538_v43, 4  ;;  %v5543_v30 = vrot.slane %v5541_v54, 5 }
 0x416   : > { %8231 = vmatmul.bf16.gmra.mxu0 %v6916_v59  ;;  %v10717_v59 = vld [vmem:[%s15349_s5 + $0x10] sm:$0xff]  ;;  %v6004_v27 = vrot.slane %v6003_v19, 4  ;;  %v5796_v43 = vrot.slane %v5794_v29, 4  ;;  %v5557_v54 = vshll.u32 %v14251_v17, 16  ;;  %v5999_v19 = vsel %vm11126_vm5, %v5994_v25, %v14202_v44  ;;  %v10709_v44 = vld [vmem:[#allocation3 + $0x210] sm:$0xff] }
 0x417   : > { %8142 = vmatmul.bf16.gmra.mxu3 %v10629_v40  ;;  %v7960_v5 = vpop.f32.mrf.mxu1  ;;  %v5554_v40 = vor.u32 %v5553_v23, %v14240_v18  ;;  %8960 = vmatpush.bf16.msra.mxu2 %v10717_v59  ;;  %v14264_v48 = vpack.c.b16 %v6959_v35, %v6958_v11  ;;  %v14268_v24 = vsel %vm11117_vm4, %v9901_v60, %v6373_v62  ;;  %v6375_v23 = vrot.slane %v6373_v62, 4  ;;  %v15502_v25 = vld [vmem:[#allocation19_spill] sm:$0xff] }
 0x418   : > { %8083 = vmatmul.bf16.gmra.mxu2 %v6794_v52  ;;  %v14249_v15 = vadd.f32 %v7960_v5, %v7872_v61  ;;  %v15497_v61 = vld [vmem:[#allocation30_spill] sm:$0xff]  ;;  %v6008_v52 = vrot.slane %v6006_v10, 5  ;;  %v6011_v10 = vshrl.u32 %v14046_v8, 16  ;;  %v6014_v35 = vshll.u32 %v14046_v8, 16  ;;  %v14285_v62 = vpop.f32.mrf.mxu0  ;;  %8307 = vmatpush.bf16.msra.mxu1 %v10709_v44  ;;  %v14311_v44 = vld [vmem:[#allocation2 + $0x90] sm:$0xf] }
 0x419   : > { %15499 = vst [vmem:[#allocation30_spill] sm:$0xff] %v14264_v48  ;;  %v5797_v59 = vrot.slane %v14157_v16, 5  ;;  %v5544_v11 = vor.u32 %v5543_v30, %v5540_v50  ;;  %v5555_v60 = vrot.slane %v5554_v40, 4  ;;  %v9887_v48 = vrot.slane %v14128_v1, 9 }
 0x41a   : > { %v7827_v21 = vpop.f32.mrf.mxu3  ;;  %7999 = vmatmul.bf16.gmra.mxu1 %v6731_v6  ;;  %v6376_v6 = vrot.slane %v14259_v20, 5  ;;  %15500 = vst [vmem:[#allocation52_spill] sm:$0xff] %v14285_v62  ;;  %v6020_v8 = vshll.u32 %v14036_v22, 16  ;;  %v5559_v40 = vrot.slane %v5557_v54, 5  ;;  %v5801_v7 = vrot.slane %v14194_v4, 5 }
 0x41b   : > { %v14262_v0 = vadd.f32 %v7827_v21, %v15497_v61  ;;  %v8044_v5 = vpop.f32.mrf.mxu2  ;;  %v6009_v61 = vsel %vm11126_vm5, %v6004_v27, %v6008_v52  ;;  %v5798_v30 = vsel %vm11117_vm4, %v5796_v43, %v5797_v59  ;;  %v14295_v27 = vunpack.c.l.b16 %v5999_v19 }
 0x41c   : > { %v14275_v21 = vadd.f32 %v8044_v5, %v14155_v53  ;;  %v15501_v53 = vld [vmem:[#allocation21_spill] sm:$0xff]  ;;  %v6377_v16 = vsel %vm11117_vm4, %v6375_v23, %v6376_v6  ;;  %v6024_v52 = vshrl.u32 %v14036_v22, 16  ;;  %v5795_v1 = vsel %vm11117_vm4, %v9887_v48, %v5794_v29 }
 0x41d   : > { %15498 = vst [vmem:[#allocation15_spill] sm:$0xff] %v14262_v0  ;;  %v7874_v5 = vadd.f32 %v15502_v25, %v15501_v53  ;;  %v5571_v53 = vshll.u32 %v14283_v51, 16  ;;  %v5575_v25 = vshrl.u32 %v14283_v51, 16  ;;  %v5545_v6 = vrot.slane %v5544_v11, 4  ;;  %v14315_v48 = vld [vmem:[#allocation2 + $0x7c] sm:$0xf] }
 0x41e   : > { %v5560_v43 = vsel %vm11126_vm5, %v5555_v60, %v5559_v40  ;;  %v14306_v54 = vunpack.c.l.b16 %v6009_v61  ;;  %v6013_v19 = vrot.slane %v6011_v10, 4  ;;  %v6773_v22 = vunpack.c.l.b16 %v5798_v30 }
 0x41f   : > { %v7962_v50 = vpop.f32.mrf.mxu1  ;;  %v14313_v29 = vrot.slane %v6020_v8, 5  ;;  %v6772_v62 = vunpack.c.l.b16 %v5795_v1  ;;  %v5550_v11 = vsel %vm11126_vm5, %v5545_v6, %v14240_v18  ;;  %v6026_v60 = vrot.slane %v6024_v52, 4  ;;  %v14325_v8 = vld [vmem:[#allocation2 + $0x78] sm:$0xf] }
 0x420   : > { %v14298_v0 = vadd.f32 %v7962_v50, %v7874_v5  ;;  %v6016_v5 = vrot.slane %v6014_v35, 5  ;;  %v6961_v61 = vunpack.c.l.b16 %v6377_v16  ;;  %v6711_v30 = vunpack.c.l.b16 %v5560_v43  ;;  %v15505_v16 = vld [vmem:[#allocation20_spill] sm:$0xff] }
 0x421   : > { %v14323_v40 = vrot.slane %v5571_v53, 5  ;;  %v5577_v35 = vrot.slane %v5575_v25, 4  ;;  %v5565_v1 = vshll.u32 %v14311_v44, 16  ;;  %v6380_v18 = vrot.slane %v14315_v48, 5  ;;  %v15506_v53 = vld [vmem:[#allocation18_spill] sm:$0xff] }
 0x422   : > { %v7829_v23 = vpop.f32.mrf.mxu3  ;;  %v6795_v52 = vpack.c.b16 %v6773_v22, %v6772_v62  ;;  %v7877_v6 = vadd.f32 %v15506_v53, %v15505_v16  ;;  %v6710_v25 = vunpack.c.l.b16 %v5550_v11  ;;  %v6017_v43 = vor.u32 %v6016_v5, %v6013_v19 }
 0x423   : > { %v14309_v59 = vadd.f32 %v7829_v23, %v13781_v32  ;;  %v8046_v50 = vpop.f32.mrf.mxu2  ;;  %v10630_v32 = vld [vmem:[#allocation2 + $0x3c] sm:$0xff]  ;;  %v5562_v23 = vshrl.u32 %v14311_v44, 16  ;;  %v9902_v22 = vrot.slane %v14325_v8, 9  ;;  %v5578_v19 = vor.u32 %v5577_v35, %v14323_v40 }
 0x424   : > { %v14321_v10 = vadd.f32 %v8046_v50, %v14204_v31  ;;  %v15504_v31 = vpack.c.b16 %v14221_v28, %v14210_v33  ;;  %v14345_v33 = vpop.f32.mrf.mxu0  ;;  %v6732_v11 = vpack.c.b16 %v6711_v30, %v6710_v25  ;;  %v6030_v4 = vshll.u32 %v14069_v46, 16 }
 0x425   : > { %15503 = vst [vmem:[#allocation21_spill] sm:$0xff] %v14309_v59  ;;  %v6960_v59 = vunpack.c.l.b16 %v14268_v24  ;;  %v6027_v24 = vor.u32 %v6026_v60, %v14313_v29  ;;  %v6381_v60 = vsel %vm11117_vm4, %v9902_v22, %v6380_v18  ;;  %v6383_v16 = vrot.slane %v14340_v38, 5 }
 0x426   : > { %8236 = vmatmul.bf16.gmra.mxu0 %v15504_v31  ;;  %15508 = vst [vmem:[#allocation20_spill] sm:$0xff] %v14345_v33  ;;  %v5567_v31 = vrot.slane %v5565_v1, 5  ;;  %v5803_v53 = vrot.slane %v5801_v7, 4  ;;  %v6918_v46 = vpack.c.b16 %v14306_v54, %v14295_v27  ;;  %v5579_v1 = vrot.slane %v5578_v19, 4  ;;  %v15511_v27 = vld [vmem:[#allocation22_spill] sm:$0xff]  ;;  %v15512_v54 = vld [vmem:[#allocation23_spill] sm:$0xff] }
 0x427   : > { %8147 = vmatmul.bf16.gmra.mxu3 %v10630_v32  ;;  %v7965_v50 = vpop.f32.mrf.mxu1  ;;  %v14342_v62 = vpack.c.b16 %v6961_v61, %v6960_v59  ;;  %v5564_v32 = vrot.slane %v5562_v23, 4  ;;  %v6382_v59 = vrot.slane %v6380_v18, 4  ;;  %v14360_v35 = vrot.slane %v6027_v24, 4 }
 0x428   : > { %8088 = vmatmul.bf16.gmra.mxu2 %v6795_v52  ;;  %v14347_v28 = vadd.f32 %v7965_v50, %v7877_v6  ;;  %v5581_v52 = vshll.u32 %v14337_v39, 16  ;;  %v14365_v18 = vrot.slane %v6017_v43, 4  ;;  %v9888_v6 = vrot.slane %v14223_v63, 9 }
 0x429   : > { %15507 = vst [vmem:[#allocation19_spill] sm:$0xff] %v14342_v62  ;;  %v5804_v25 = vrot.slane %v14251_v17, 5  ;;  %v5568_v50 = vor.u32 %v5567_v31, %v5564_v32  ;;  %v14371_v22 = vrot.slane %v6030_v4, 5  ;;  %v7879_v24 = vadd.f32 %v15512_v54, %v15511_v27  ;;  %v14386_v32 = vld [vmem:[#allocation2 + $0x88] sm:$0xf] }
 0x42a   : > { %v7832_v5 = vpop.f32.mrf.mxu3  ;;  %8004 = vmatmul.bf16.gmra.mxu1 %v6732_v11  ;;  %v14373_v11 = vld [vmem:[#allocation2 + $0xa0] sm:$0xf]  ;;  %v6035_v4 = vshrl.u32 %v14148_v42, 16  ;;  %v6044_v27 = vshll.u32 %v14138_v34, 16 }
 0x42b   : > { %v14354_v61 = vadd.f32 %v7832_v5, %v13832_v2  ;;  %v8049_v30 = vpop.f32.mrf.mxu2  ;;  %v6384_v2 = vsel %vm11117_vm4, %v6382_v59, %v6383_v16  ;;  %v6962_v5 = vunpack.c.l.b16 %v6381_v60  ;;  %v5805_v63 = vsel %vm11117_vm4, %v5803_v53, %v5804_v25 }
 0x42c   : > { %v14363_v23 = vadd.f32 %v8049_v30, %v14249_v15  ;;  %v5583_v15 = vrot.slane %v5581_v52, 5  ;;  %v6963_v19 = vunpack.c.l.b16 %v6384_v2  ;;  %v5802_v30 = vsel %vm11117_vm4, %v9888_v6, %v5801_v7  ;;  %v14393_v7 = vld [vmem:[#allocation2 + $0x84] sm:$0xf]  ;;  %v14397_v2 = vld [vmem:[#allocation2 + $0x9c] sm:$0xf]  ;;  %v14402_v54 = vpop.f32.mrf.mxu0 }
 0x42d   : > { %15509 = vst [vmem:[#allocation18_spill] sm:$0xff] %v14354_v61  ;;  %v5595_v59 = vshll.u32 %v14373_v11, 16  ;;  %v5569_v53 = vrot.slane %v5568_v50, 4  ;;  %v5599_v6 = vshrl.u32 %v14373_v11, 16  ;;  %v6038_v25 = vshll.u32 %v14148_v42, 16 }
 0x42e   : > { %15510 = vst [vmem:[#allocation53_spill] sm:$0xff] %v14363_v23  ;;  %v5584_v60 = vsel %vm11126_vm5, %v5579_v1, %v5583_v15  ;;  %v14395_v52 = vpack.c.b16 %v6963_v19, %v6962_v5  ;;  %v6048_v15 = vshrl.u32 %v14138_v34, 16  ;;  %v14408_v5 = vld [vmem:[#allocation2 + $0x8c] sm:$0x1]  ;;  %v6387_v50 = vrot.slane %v14386_v32, 5 }
 0x42f   : > { %v7967_v43 = vpop.f32.mrf.mxu1  ;;  %15514 = vst [vmem:[#allocation23_spill] sm:$0xff] %v14402_v54  ;;  %v5574_v42 = vsel %vm11126_vm5, %v5569_v53, %v14323_v40  ;;  %v6713_v17 = vunpack.c.l.b16 %v5584_v60  ;;  %v5589_v34 = vshll.u32 %v14397_v2, 16  ;;  %v6390_v40 = vrot.slane %v14408_v5, 5  ;;  %v15517_v53 = vld [vmem:[#allocation25_spill] sm:$0xff] }
 0x430   : > { %v14388_v31 = vadd.f32 %v7967_v43, %v7879_v24  ;;  %15513 = vst [vmem:[#allocation22_spill] sm:$0xff] %v14395_v52  ;;  %v6775_v24 = vunpack.c.l.b16 %v5805_v63  ;;  %v6774_v43 = vunpack.c.l.b16 %v5802_v30  ;;  %v9903_v52 = vrot.slane %v14393_v7, 9 }
 0x431   : > { %v5586_v63 = vshrl.u32 %v14397_v2, 16  ;;  %v6389_v61 = vrot.slane %v6387_v50, 4  ;;  %v6712_v54 = vunpack.c.l.b16 %v5574_v42  ;;  %v6037_v33 = vrot.slane %v6035_v4, 4  ;;  %v10716_v4 = vld [vmem:[%s15349_s5 + $0x8] sm:$0xff] }
 0x432   : > { %v7834_v16 = vpop.f32.mrf.mxu3  ;;  %v6388_v30 = vsel %vm11117_vm4, %v9903_v52, %v6387_v50  ;;  %v6796_v60 = vpack.c.b16 %v6775_v24, %v6774_v43  ;;  %v5808_v23 = vrot.slane %v14283_v51, 5  ;;  %v14428_v3 = vrot.slane %v6044_v27, 5  ;;  %v14434_v50 = vld [vmem:[#allocation2 + $0xa4] sm:$0x1]  ;;  %8961 = vmatpush.bf16.msra.mxu2 %v10716_v4 }
 0x433   : > { %v14405_v1 = vadd.f32 %v7834_v16, %v13872_v47  ;;  %v8051_v19 = vpop.f32.mrf.mxu2  ;;  %v10631_v47 = vld [vmem:[#allocation2 + $0x48] sm:$0xff]  ;;  %v14420_v16 = vrot.slane %v5595_v59, 5  ;;  %v6040_v59 = vrot.slane %v6038_v25, 5  ;;  %v6391_v52 = vsel %vm11117_vm4, %v6389_v61, %v6390_v40 }
 0x434   : > { %v14416_v62 = vadd.f32 %v8051_v19, %v14298_v0  ;;  %v15518_v0 = vld [vmem:[#allocation24_spill] sm:$0xff]  ;;  %v6733_v24 = vpack.c.b16 %v6713_v17, %v6712_v54  ;;  %v5591_v43 = vrot.slane %v5589_v34, 5  ;;  %v6050_v25 = vrot.slane %v6048_v15, 4 }
 0x435   : > { %15515 = vst [vmem:[#allocation54_spill] sm:$0xff] %v14405_v1  ;;  %v5601_v1 = vrot.slane %v5599_v6, 4  ;;  %v7882_v19 = vadd.f32 %v15518_v0, %v15517_v53  ;;  %v6964_v27 = vunpack.c.l.b16 %v6388_v30  ;;  %v5810_v17 = vrot.slane %v5808_v23, 4 }
 0x436   : > { %15516 = vst [vmem:[#allocation55_spill] sm:$0xff] %v14416_v62  ;;  %8241 = vmatmul.bf16.gmra.mxu0 %v6918_v46  ;;  %v5588_v46 = vrot.slane %v5586_v63, 4  ;;  %v6023_v54 = vsel %vm11126_vm5, %v14365_v18, %v14313_v29  ;;  %v5605_v63 = vshll.u32 %v14434_v50, 16  ;;  %v5811_v29 = vrot.slane %v14337_v39, 5 }
 0x437   : > { %8152 = vmatmul.bf16.gmra.mxu3 %v10631_v47  ;;  %v7970_v62 = vpop.f32.mrf.mxu1  ;;  %v5602_v51 = vor.u32 %v5601_v1, %v14420_v16  ;;  %v6965_v47 = vunpack.c.l.b16 %v6391_v52  ;;  %v14450_v1 = vpop.f32.mrf.mxu0  ;;  %v6041_v53 = vor.u32 %v6040_v59, %v6037_v33  ;;  %v6051_v0 = vor.u32 %v6050_v25, %v14428_v3  ;;  %v15522_v52 = vld [vmem:[#allocation26_spill] sm:$0xff]  ;;  %v14474_v25 = vld [vmem:[#allocation2 + $0xa8] sm:$0xf] }
 0x438   : > { %8093 = vmatmul.bf16.gmra.mxu2 %v6796_v60  ;;  %v14432_v6 = vadd.f32 %v7970_v62, %v7882_v19  ;;  %v5592_v40 = vor.u32 %v5591_v43, %v5588_v46  ;;  %v14460_v60 = vld [vmem:[#allocation2 + $0xac] sm:$0xf]  ;;  %v10708_v19 = vld [vmem:[#allocation3 + $0x208] sm:$0xff]  ;;  %v9889_v4 = vrot.slane %v14311_v44, 9  ;;  %v5607_v46 = vrot.slane %v5605_v63, 5 }
 0x439   : > { %v14448_v34 = vpack.c.b16 %v6965_v47, %v6964_v27  ;;  %v5603_v18 = vrot.slane %v5602_v51, 4  ;;  %v6054_v27 = vshll.u32 %v14163_v9, 16  ;;  %v5619_v39 = vshll.u32 %v14460_v60, 16  ;;  %8308 = vmatpush.bf16.msra.mxu1 %v10708_v19 }
 0x43a   : > { %v7837_v42 = vpop.f32.mrf.mxu3  ;;  %8009 = vmatmul.bf16.gmra.mxu1 %v6733_v24  ;;  %v15523_v24 = vld [vmem:[#allocation29_spill] sm:$0xff]  ;;  %v5623_v33 = vshrl.u32 %v14460_v60, 16  ;;  %v5593_v51 = vrot.slane %v5592_v40, 4  ;;  %v5809_v9 = vsel %vm11117_vm4, %v9889_v4, %v5808_v23  ;;  %v14486_v40 = vld [vmem:[#allocation2 + $0x94] sm:$0xf]  ;;  %v5610_v19 = vshrl.u32 %v14474_v25, 16 }
 0x43b   : > { %v14441_v61 = vadd.f32 %v7837_v42, %v13908_v12  ;;  %v8054_v62 = vpop.f32.mrf.mxu2  ;;  %15520 = vst [vmem:[#allocation24_spill] sm:$0xff] %v14448_v34  ;;  %v15521_v12 = vsel %vm11126_vm5, %v14360_v35, %v14371_v22  ;;  %v6892_v42 = vunpack.c.l.b16 %v6023_v54  ;;  %v5812_v22 = vsel %vm11117_vm4, %v5810_v17, %v5811_v29 }
 0x43c   : > { %v14453_v15 = vadd.f32 %v8054_v62, %v14347_v28  ;;  %v6893_v30 = vunpack.c.l.b16 %v15521_v12  ;;  %v7884_v28 = vadd.f32 %v15523_v24, %v15522_v52  ;;  %v5608_v47 = vsel %vm11126_vm5, %v5603_v18, %v5607_v46  ;;  %v15525_v46 = vld [vmem:[#allocation28_spill] sm:$0xff] }
 0x43d   : > { %15519 = vst [vmem:[#allocation25_spill] sm:$0xff] %v14441_v61  ;;  %v6042_v62 = vrot.slane %v6041_v53, 4  ;;  %v6052_v17 = vrot.slane %v6051_v0, 4  ;;  %v6777_v63 = vunpack.c.l.b16 %v5812_v22  ;;  %v5598_v12 = vsel %vm11126_vm5, %v5593_v51, %v14420_v16  ;;  %v10632_v0 = vld [vmem:[#allocation2 + $0x54] sm:$0xff]  ;;  %v14617_v61 = vld [vmem:[#allocation2 + $0xc4] sm:$0xf] }
 0x43e   : > { %v6919_v43 = vpack.c.b16 %v6893_v30, %v6892_v42  ;;  %v6056_v30 = vrot.slane %v6054_v27, 5  ;;  %v5613_v23 = vshll.u32 %v14474_v25, 16  ;;  %v14490_v52 = vrot.slane %v5619_v39, 5  ;;  %v15526_v39 = vld [vmem:[#allocation27_spill] sm:$0xff] }
 0x43f   : > { %v7972_v35 = vpop.f32.mrf.mxu1  ;;  %v5625_v18 = vrot.slane %v5623_v33, 4  ;;  %v6715_v24 = vunpack.c.l.b16 %v5608_v47  ;;  %v6047_v16 = vsel %vm11126_vm5, %v6042_v62, %v14428_v3  ;;  %v6059_v42 = vshrl.u32 %v14242_v13, 16 }
 0x440   : > { %v14472_v59 = vadd.f32 %v7972_v35, %v7884_v28  ;;  %v14498_v28 = vld [vmem:[#allocation2 + $0x90] sm:$0xf]  ;;  %v6057_v4 = vsel %vm11126_vm5, %v6052_v17, %v6056_v30  ;;  %v6062_v27 = vshll.u32 %v14242_v13, 16  ;;  %v6394_v35 = vrot.slane %v14486_v40, 5 }
 0x441   : > { %v7887_v33 = vadd.f32 %v15526_v39, %v15525_v46  ;;  %v6714_v3 = vunpack.c.l.b16 %v5598_v12  ;;  %v5815_v51 = vrot.slane %v14373_v11, 5  ;;  %v5612_v47 = vrot.slane %v5610_v19, 4 }
 0x442   : > { %v7839_v44 = vpop.f32.mrf.mxu3  ;;  %v5615_v62 = vrot.slane %v5613_v23, 5  ;;  %v5626_v13 = vor.u32 %v5625_v18, %v14490_v52  ;;  %v9904_v17 = vrot.slane %v14498_v28, 9  ;;  %v15527_v23 = vld [vmem:[#allocation44_spill] sm:$0xff]  ;;  %v6064_v46 = vrot.slane %v6062_v27, 5 }
 0x443   : > { %v14481_v54 = vadd.f32 %v7839_v44, %v13956_v37  ;;  %v8056_v29 = vpop.f32.mrf.mxu2  ;;  %v6776_v37 = vunpack.c.l.b16 %v5809_v9  ;;  %v14510_v44 = vld [vmem:[#allocation2 + $0xb0] sm:$0x1] }
 0x444   : > { %v14493_v53 = vadd.f32 %v8056_v29, %v14388_v31  ;;  %v14505_v31 = vpop.f32.mrf.mxu0  ;;  %v6068_v29 = vshll.u32 %v14230_v26, 16  ;;  %v5629_v11 = vshll.u32 %v14510_v44, 16  ;;  %v6395_v19 = vsel %vm11117_vm4, %v9904_v17, %v6394_v35 }
 0x445   : > { %15524 = vst [vmem:[#allocation26_spill] sm:$0xff] %v14481_v54  ;;  %v6797_v22 = vpack.c.b16 %v6777_v63, %v6776_v37  ;;  %v6734_v63 = vpack.c.b16 %v6715_v24, %v6714_v3  ;;  %v6072_v37 = vshrl.u32 %v14230_v26, 16  ;;  %v5616_v39 = vor.u32 %v5615_v62, %v5612_v47  ;;  %v14526_v3 = vld [vmem:[#allocation2 + $0x98] sm:$0x1]  ;;  %v15529_v47 = vld [vmem:[#allocation31_spill] sm:$0xff] }
 0x446   : > { %8246 = vmatmul.bf16.gmra.mxu0 %v6919_v43  ;;  %v14516_v43 = vunpack.c.l.b16 %v6057_v4  ;;  %v5817_v4 = vrot.slane %v5815_v51, 4  ;;  %v14532_v34 = vrot.slane %v6068_v29, 5  ;;  %v6396_v17 = vrot.slane %v6394_v35, 4  ;;  %v15530_v62 = vld [vmem:[#allocation33_spill] sm:$0xff] }
 0x447   : > { %8157 = vmatmul.bf16.gmra.mxu3 %v10632_v0  ;;  %v7975_v9 = vpop.f32.mrf.mxu1  ;;  %v6894_v0 = vunpack.c.l.b16 %v6047_v16  ;;  %v5818_v16 = vrot.slane %v14434_v50, 5  ;;  %v6074_v27 = vrot.slane %v6072_v37, 4  ;;  %v5617_v50 = vrot.slane %v5616_v39, 4 }
 0x448   : > { %8098 = vmatmul.bf16.gmra.mxu2 %v6797_v22  ;;  %v14514_v30 = vadd.f32 %v7975_v9, %v7887_v33  ;;  %v6061_v22 = vrot.slane %v6059_v42, 4  ;;  %v5627_v33 = vrot.slane %v5626_v13, 4  ;;  %v5631_v42 = vrot.slane %v5629_v11, 5 }
 0x449   : > { %v6920_v26 = vpack.c.b16 %v14516_v43, %v6894_v0  ;;  %v7889_v13 = vadd.f32 %v15530_v62, %v15529_v47  ;;  %v14552_v0 = vld [vmem:[#allocation2 + $0xb4] sm:$0xf]  ;;  %v6083_v39 = vshrl.u32 %v14325_v8, 16  ;;  %v5622_v47 = vsel %vm11126_vm5, %v5617_v50, %v14490_v52 }
 0x44a   : > { %v7842_v12 = vpop.f32.mrf.mxu3  ;;  %8014 = vmatmul.bf16.gmra.mxu1 %v6734_v63  ;;  %v14536_v63 = vld [vmem:[#allocation2 + $0xb8] sm:$0xf]  ;;  %v5632_v29 = vsel %vm11126_vm5, %v5627_v33, %v5631_v42  ;;  %v6086_v62 = vshll.u32 %v14325_v8, 16 }
 0x44b   : > { %v14524_v18 = vadd.f32 %v7842_v12, %v15527_v23  ;;  %v8059_v24 = vpop.f32.mrf.mxu2  ;;  %v9890_v12 = vrot.slane %v14397_v2, 9  ;;  %v6065_v23 = vor.u32 %v6064_v46, %v6061_v22  ;;  %v5819_v2 = vsel %vm11117_vm4, %v5817_v4, %v5818_v16 }
 0x44c   : > { %v14529_v9 = vadd.f32 %v8059_v24, %v14432_v6  ;;  %v6078_v6 = vshll.u32 %v14259_v20, 16  ;;  %v6397_v24 = vrot.slane %v14526_v3, 5  ;;  %v14548_v11 = vpop.f32.mrf.mxu0  ;;  %v5643_v20 = vshll.u32 %v14536_v63, 16 }
 0x44d   : > { %15528 = vst [vmem:[#allocation29_spill] sm:$0xff] %v14524_v18  ;;  %v5816_v35 = vsel %vm11117_vm4, %v9890_v12, %v5815_v51  ;;  %v5647_v22 = vshrl.u32 %v14536_v63, 16  ;;  %v6075_v4 = vor.u32 %v6074_v27, %v14532_v34  ;;  %v6966_v12 = vunpack.c.l.b16 %v6395_v19 }
 0x44e   : > { %15531 = vst [vmem:[#allocation28_spill] sm:$0xff] %v14548_v11  ;;  %v6398_v51 = vsel %vm11117_vm4, %v6396_v17, %v6397_v24  ;;  %v6779_v42 = vunpack.c.l.b16 %v5819_v2  ;;  %v6717_v17 = vunpack.c.l.b16 %v5632_v29  ;;  %v5634_v24 = vshrl.u32 %v14552_v0, 16  ;;  %v15535_v29 = vld [vmem:[#allocation36_spill] sm:$0xff] }
 0x44f   : > { %v7977_v43 = vpop.f32.mrf.mxu1  ;;  %v6967_v33 = vunpack.c.l.b16 %v6398_v51  ;;  %v10633_v51 = vld [vmem:[#allocation2 + $0x60] sm:$0xff]  ;;  %v14574_v2 = vrot.slane %v5643_v20, 5  ;;  %v6066_v52 = vrot.slane %v6065_v23, 4  ;;  %v6076_v50 = vrot.slane %v6075_v4, 4 }
 0x450   : > { %v14550_v37 = vadd.f32 %v7977_v43, %v7889_v13  ;;  %v6778_v43 = vunpack.c.l.b16 %v5816_v35  ;;  %v6080_v8 = vrot.slane %v6078_v6, 5  ;;  %v15534_v35 = vld [vmem:[#allocation37_spill] sm:$0xff]  ;;  %v6092_v23 = vshll.u32 %v14315_v48, 16 }
 0x451   : > { %v14568_v27 = vpack.c.b16 %v6967_v33, %v6966_v12  ;;  %v7892_v12 = vadd.f32 %v15535_v29, %v15534_v35  ;;  %v6085_v33 = vrot.slane %v6083_v39, 4  ;;  %v6096_v6 = vshrl.u32 %v14315_v48, 16  ;;  %v14606_v35 = vld [vmem:[#allocation2 + $0xa4] sm:$0x1] }
 0x452   : > { %v7844_v46 = vpop.f32.mrf.mxu3  ;;  %v6798_v18 = vpack.c.b16 %v6779_v42, %v6778_v43  ;;  %v5636_v4 = vrot.slane %v5634_v24, 4 }
 0x453   : > { %v14561_v16 = vadd.f32 %v7844_v46, %v14038_v49  ;;  %v8061_v13 = vpop.f32.mrf.mxu2  ;;  %15533 = vst [vmem:[#allocation44_spill] sm:$0xff] %v14568_v27  ;;  %v5637_v49 = vshll.u32 %v14552_v0, 16  ;;  %v5649_v46 = vrot.slane %v5647_v22, 4  ;;  %v6088_v27 = vrot.slane %v6086_v62, 5  ;;  %v10715_v62 = vld [vmem:[%s15349_s5] sm:$0xff] }
 0x454   : > { %v14571_v19 = vadd.f32 %v8061_v13, %v14472_v59  ;;  %v14578_v59 = vld [vmem:[#allocation2 + $0x9c] sm:$0xf]  ;;  %v14580_v13 = vld [vmem:[#allocation2 + $0xa0] sm:$0xf]  ;;  %v5822_v22 = vrot.slane %v14460_v60, 5  ;;  %v6071_v60 = vsel %vm11126_vm5, %v6066_v52, %v14532_v34  ;;  %8962 = vmatpush.bf16.msra.mxu2 %v10715_v62  ;;  %v6094_v34 = vrot.slane %v6092_v23, 5 }
 0x455   : > { %15532 = vst [vmem:[#allocation27_spill] sm:$0xff] %v14561_v16  ;;  %v6716_v16 = vunpack.c.l.b16 %v5622_v47  ;;  %v14583_v47 = vld [vmem:[#allocation2 + $0xbc] sm:$0x1]  ;;  %v5639_v39 = vrot.slane %v5637_v49, 5  ;;  %v5650_v42 = vor.u32 %v5649_v46, %v14574_v2  ;;  %v9905_v43 = vrot.slane %v14578_v59, 9 }
 0x456   : > { %8251 = vmatmul.bf16.gmra.mxu0 %v6920_v26  ;;  %v6401_v48 = vrot.slane %v14580_v13, 5  ;;  %v5653_v24 = vshll.u32 %v14583_v47, 16  ;;  %v5824_v46 = vrot.slane %v5822_v22, 4  ;;  %v6098_v52 = vrot.slane %v6096_v6, 4  ;;  %v10707_v62 = vld [vmem:[#allocation3 + $0x200] sm:$0xff]  ;;  %v15540_v6 = vld [vmem:[#allocation40_spill] sm:$0xff] }
 0x457   : > { %8162 = vmatmul.bf16.gmra.mxu3 %v10633_v51  ;;  %v7980_v54 = vpop.f32.mrf.mxu1  ;;  %v6735_v20 = vpack.c.b16 %v6717_v17, %v6716_v16  ;;  %v6081_v17 = vsel %vm11126_vm5, %v6076_v50, %v6080_v8  ;;  %v6089_v51 = vor.u32 %v6088_v27, %v6085_v33  ;;  %v9891_v50 = vrot.slane %v14474_v25, 9  ;;  %v15539_v23 = vld [vmem:[#allocation41_spill] sm:$0xff]  ;;  %8309 = vmatpush.bf16.msra.mxu1 %v10707_v62 }
 0x458   : > { %8103 = vmatmul.bf16.gmra.mxu2 %v6798_v18  ;;  %v14587_v26 = vadd.f32 %v7980_v54, %v7892_v12  ;;  %v14598_v18 = vpop.f32.mrf.mxu0  ;;  %v6402_v29 = vsel %vm11117_vm4, %v9905_v43, %v6401_v48  ;;  %v5640_v12 = vor.u32 %v5639_v39, %v5636_v4  ;;  %v5825_v27 = vrot.slane %v14510_v44, 5 }
 0x459   : > { %15536 = vst [vmem:[#allocation31_spill] sm:$0xff] %v14598_v18  ;;  %v6896_v8 = vunpack.c.l.b16 %v6071_v60  ;;  %v6897_v33 = vunpack.c.l.b16 %v6081_v17  ;;  %v5655_v18 = vrot.slane %v5653_v24, 5  ;;  %v6090_v11 = vrot.slane %v6089_v51, 4  ;;  %v14631_v51 = vld [vmem:[#allocation2 + $0xc0] sm:$0xf] }
 0x45a   : > { %v7847_v16 = vpop.f32.mrf.mxu3  ;;  %8019 = vmatmul.bf16.gmra.mxu1 %v6735_v20  ;;  %v5651_v20 = vrot.slane %v5650_v42, 4  ;;  %v5823_v4 = vsel %vm11117_vm4, %v9891_v50, %v5822_v22  ;;  %v5826_v25 = vsel %vm11117_vm4, %v5824_v46, %v5825_v27  ;;  %v6099_v44 = vor.u32 %v6098_v52, %v6094_v34 }
 0x45b   : > { %v14601_v54 = vadd.f32 %v7847_v16, %v14083_v45  ;;  %v8064_v49 = vpop.f32.mrf.mxu2  ;;  %v6403_v16 = vrot.slane %v6401_v48, 4  ;;  %v6102_v39 = vshll.u32 %v14340_v38, 16  ;;  %v5641_v60 = vrot.slane %v5640_v12, 4 }
 0x45c   : > { %v14611_v45 = vadd.f32 %v8064_v49, %v14514_v30  ;;  %v6404_v30 = vrot.slane %v14606_v35, 5  ;;  %v5656_v48 = vsel %vm11126_vm5, %v5651_v20, %v5655_v18  ;;  %v5667_v22 = vshll.u32 %v14617_v61, 16 }
 0x45d   : > { %15537 = vst [vmem:[#allocation33_spill] sm:$0xff] %v14601_v54  ;;  %v7894_v54 = vadd.f32 %v15540_v6, %v15539_v23  ;;  %v5671_v49 = vshrl.u32 %v14617_v61, 16  ;;  %v6968_v46 = vunpack.c.l.b16 %v6402_v29  ;;  %v6921_v12 = vpack.c.b16 %v6897_v33, %v6896_v8  ;;  %v10634_v23 = vld [vmem:[#allocation2 + $0x6c] sm:$0xff] }
 0x45e   : > { %15538 = vst [vmem:[#allocation37_spill] sm:$0xff] %v14611_v45  ;;  %v6405_v17 = vsel %vm11117_vm4, %v6403_v16, %v6404_v30  ;;  %v5646_v18 = vsel %vm11126_vm5, %v5641_v60, %v14574_v2  ;;  %v6095_v20 = vsel %vm11126_vm5, %v6090_v11, %v6094_v34  ;;  %v6100_v16 = vrot.slane %v6099_v44, 4  ;;  %v15543_v34 = vld [vmem:[#allocation13_spill] sm:$0xff] }
 0x45f   : > { %v7982_v43 = vpop.f32.mrf.mxu1  ;;  %v6969_v52 = vunpack.c.l.b16 %v6405_v17  ;;  %v6719_v6 = vunpack.c.l.b16 %v5656_v48  ;;  %v5658_v8 = vshrl.u32 %v14631_v51, 16  ;;  %v6104_v33 = vrot.slane %v6102_v39, 5  ;;  %v14659_v48 = vld [vmem:[#allocation2 + $0xac] sm:$0xf] }
 0x460   : > { %v14625_v42 = vadd.f32 %v7982_v43, %v7894_v54  ;;  %v6781_v54 = vunpack.c.l.b16 %v5826_v25  ;;  %v14645_v62 = vpop.f32.mrf.mxu0  ;;  %v5661_v30 = vshll.u32 %v14631_v51, 16  ;;  %v14652_v2 = vrot.slane %v5667_v22, 5  ;;  %v15544_v25 = vld [vmem:[#allocation17_spill] sm:$0xff] }
 0x461   : > { %v14643_v27 = vpack.c.b16 %v6969_v52, %v6968_v46  ;;  %v5673_v43 = vrot.slane %v5671_v49, 4  ;;  %v7897_v44 = vadd.f32 %v15544_v25, %v15543_v34  ;;  %v6718_v60 = vunpack.c.l.b16 %v5646_v18  ;;  %v14667_v46 = vld [vmem:[#allocation2 + $0xc8] sm:$0x1] }
 0x462   : > { %v7849_v24 = vpop.f32.mrf.mxu3  ;;  %v14661_v39 = vunpack.c.l.b16 %v6095_v20  ;;  %v6105_v49 = vsel %vm11126_vm5, %v6100_v16, %v6104_v33  ;;  %v5660_v52 = vrot.slane %v5658_v8, 4  ;;  %v6408_v20 = vrot.slane %v14659_v48, 5 }
 0x463   : > { %v14636_v38 = vadd.f32 %v7849_v24, %v14140_v56  ;;  %v8066_v50 = vpop.f32.mrf.mxu2  ;;  %15541 = vst [vmem:[#allocation36_spill] sm:$0xff] %v14643_v27  ;;  %v6780_v56 = vunpack.c.l.b16 %v5823_v4  ;;  %v14657_v4 = vld [vmem:[#allocation2 + $0xa8] sm:$0xf]  ;;  %v6736_v22 = vpack.c.b16 %v6719_v6, %v6718_v60  ;;  %v6116_v16 = vshll.u32 %v14386_v32, 16 }
 0x464   : > { %v14648_v29 = vadd.f32 %v8066_v50, %v14550_v37  ;;  %v5829_v37 = vrot.slane %v14536_v63, 5  ;;  %v5674_v50 = vor.u32 %v5673_v43, %v14652_v2  ;;  %v9906_v18 = vrot.slane %v14657_v4, 9 }
 0x465   : > { %v6799_v11 = vpack.c.b16 %v6781_v54, %v6780_v56  ;;  %v14669_v54 = vld [vmem:[#allocation2 + $0xb0] sm:$0x1]  ;;  %v6120_v6 = vshrl.u32 %v14386_v32, 16  ;;  %v5677_v33 = vshll.u32 %v14667_v46, 16  ;;  %v6410_v43 = vrot.slane %v6408_v20, 4 }
 0x466   : > { %15542 = vst [vmem:[#allocation41_spill] sm:$0xff] %v14648_v29  ;;  %8256 = vmatmul.bf16.gmra.mxu0 %v6921_v12  ;;  %v5663_v12 = vrot.slane %v5661_v30, 5  ;;  %v6409_v30 = vsel %vm11117_vm4, %v9906_v18, %v6408_v20  ;;  %v6107_v25 = vshrl.u32 %v14393_v7, 16  ;;  %v5832_v60 = vrot.slane %v14583_v47, 5  ;;  %v15546_v18 = vld [vmem:[#allocation11_spill] sm:$0xff]  ;;  %v15547_v20 = vld [vmem:[#allocation10_spill] sm:$0xff] }
 0x467   : > { %8167 = vmatmul.bf16.gmra.mxu3 %v10634_v23  ;;  %v7985_v17 = vpop.f32.mrf.mxu1  ;;  %v5831_v23 = vrot.slane %v5829_v37, 4  ;;  %v7899_v29 = vadd.f32 %v15547_v20, %v15546_v18  ;;  %v14695_v45 = vrot.slane %v6116_v16, 5  ;;  %v5679_v47 = vrot.slane %v5677_v33, 5  ;;  %v14710_v18 = vld [vmem:[#allocation2 + $0xb8] sm:$0xf] }
 0x468   : > { %8108 = vmatmul.bf16.gmra.mxu2 %v6799_v11  ;;  %v14663_v24 = vadd.f32 %v7985_v17, %v7897_v44  ;;  %v6411_v11 = vrot.slane %v14669_v54, 5  ;;  %v6110_v44 = vshll.u32 %v14393_v7, 16  ;;  %v5664_v32 = vor.u32 %v5663_v12, %v5660_v52 }
 0x469   : > { %v5675_v17 = vrot.slane %v5674_v50, 4  ;;  %v5833_v7 = vsel %vm11117_vm4, %v5831_v23, %v5832_v60  ;;  %v6122_v52 = vrot.slane %v6120_v6, 4  ;;  %v6109_v50 = vrot.slane %v6107_v25, 4 }
 0x46a   : > { %v7852_v63 = vpop.f32.mrf.mxu3  ;;  %8024 = vmatmul.bf16.gmra.mxu1 %v6736_v22  ;;  %v6412_v22 = vsel %vm11117_vm4, %v6410_v43, %v6411_v11  ;;  %v6112_v43 = vrot.slane %v6110_v44, 5  ;;  %v14702_v11 = vld [vmem:[#allocation2 + $0xb4] sm:$0xf] }
 0x46b   : > { %v14675_v56 = vadd.f32 %v7852_v63, %v14180_v14  ;;  %v8069_v8 = vpop.f32.mrf.mxu2  ;;  %v6899_v14 = vunpack.c.l.b16 %v6105_v49  ;;  %v14691_v63 = vpop.f32.mrf.mxu0  ;;  %v6971_v49 = vunpack.c.l.b16 %v6412_v22  ;;  %v5665_v22 = vrot.slane %v5664_v32, 4 }
 0x46c   : > { %v14684_v34 = vadd.f32 %v8069_v8, %v14587_v26  ;;  %v6970_v26 = vunpack.c.l.b16 %v6409_v30  ;;  %v6123_v44 = vor.u32 %v6122_v52, %v14695_v45  ;;  %v6113_v20 = vor.u32 %v6112_v43, %v6109_v50 }
 0x46d   : > { %v6922_v6 = vpack.c.b16 %v6899_v14, %v14661_v39  ;;  %v5670_v25 = vsel %vm11126_vm5, %v5665_v22, %v14652_v2  ;;  %v6126_v39 = vshll.u32 %v14408_v5, 16  ;;  %v10390_v22 = vld [vmem:[%s11052_s22 + $0xc] sm:$0xf] }
 0x46e   : > { %15545 = vst [vmem:[#allocation40_spill] sm:$0xff] %v14684_v34  ;;  %v9892_v34 = vrot.slane %v14552_v0, 9  ;;  %v14704_v27 = vpack.c.b16 %v6971_v49, %v6970_v26  ;;  %v5680_v0 = vsel %vm11126_vm5, %v5675_v17, %v5679_v47  ;;  %v15549_v26 = vld [vmem:[#allocation42_spill] sm:$0xff]  ;;  %v15550_v49 = vld [vmem:[#allocation43_spill] sm:$0xff]  ;;  %v6124_v52 = vrot.slane %v6123_v44, 4 }
 0x46f   : > { %v7987_v8 = vpop.f32.mrf.mxu1  ;;  %v6721_v17 = vunpack.c.l.b16 %v5680_v0  ;;  %v6144_v44 = vshrl.u32 %v14486_v40, 16 }
 0x470   : > { %v14700_v12 = vadd.f32 %v7987_v8, %v7899_v29  ;;  %v5830_v30 = vsel %vm11117_vm4, %v9892_v34, %v5829_v37  ;;  %v6783_v29 = vunpack.c.l.b16 %v5833_v7  ;;  %v9907_v37 = vrot.slane %v14702_v11, 9 }
 0x471   : > { %v6415_v34 = vrot.slane %v14710_v18, 5  ;;  %v6782_v32 = vunpack.c.l.b16 %v5830_v30  ;;  %v7902_v8 = vadd.f32 %v15550_v49, %v15549_v26  ;;  %v6720_v7 = vunpack.c.l.b16 %v5670_v25 }
 0x472   : > { %v7854_v16 = vpop.f32.mrf.mxu3  ;;  %v6114_v30 = vrot.slane %v6113_v20, 4  ;;  %v8440_v20 = vshrl.u32 %v10390_v22, 16  ;;  %v6134_v26 = vshll.u32 %v14498_v28, 16 }
 0x473   : > { %v14713_v23 = vadd.f32 %v7854_v16, %v14234_v55  ;;  %v8071_v33 = vpop.f32.mrf.mxu2  ;;  %v10635_v55 = vld [vmem:[#allocation2 + $0x78] sm:$0xff]  ;;  %v6416_v14 = vsel %vm11117_vm4, %v9907_v37, %v6415_v34  ;;  %v6800_v2 = vpack.c.b16 %v6783_v29, %v6782_v32  ;;  %v14733_v50 = vpop.f32.mrf.mxu0  ;;  %v6737_v43 = vpack.c.b16 %v6721_v17, %v6720_v7  ;;  %v10391_v37 = vld [vmem:[%s11052_s22 + $0x10] sm:$0xf] }
 0x474   : > { %v14723_v60 = vadd.f32 %v8071_v33, %v14625_v42  ;;  %v5836_v42 = vrot.slane %v14617_v61, 5  ;;  %v14731_v16 = vld [vmem:[#allocation2 + $0xbc] sm:$0x1]  ;;  %v6417_v0 = vrot.slane %v6415_v34, 4  ;;  %v6140_v33 = vshll.u32 %v14486_v40, 16 }
 0x475   : > { %v6119_v61 = vsel %vm11126_vm5, %v6114_v30, %v14695_v45  ;;  %v6418_v32 = vrot.slane %v14731_v16, 5  ;;  %v5839_v45 = vrot.slane %v14667_v46, 5  ;;  %v8453_v7 = vshrl.u32 %v10391_v37, 16 }
 0x476   : > { %15548 = vst [vmem:[#allocation13_spill] sm:$0xff] %v14723_v60  ;;  %8261 = vmatmul.bf16.gmra.mxu0 %v6922_v6  ;;  %v6128_v6 = vrot.slane %v6126_v39, 5  ;;  %v5838_v17 = vrot.slane %v5836_v42, 4  ;;  %v8443_v39 = vshll.u32 %v10390_v22, 16  ;;  %v14758_v49 = vrot.slane %v6140_v33, 5 }
 0x477   : > { %8172 = vmatmul.bf16.gmra.mxu3 %v10635_v55  ;;  %v7990_v47 = vpop.f32.mrf.mxu1  ;;  %v6419_v40 = vsel %vm11117_vm4, %v6417_v0, %v6418_v32  ;;  %v8442_v22 = vrot.slane %v8440_v20, 4  ;;  %v6972_v0 = vunpack.c.l.b16 %v6416_v14  ;;  %v6900_v46 = vunpack.c.l.b16 %v6119_v61  ;;  %v14767_v32 = vld [vmem:[#allocation2 + $0xc0] sm:$0xf] }
 0x478   : > { %8113 = vmatmul.bf16.gmra.mxu2 %v6800_v2  ;;  %v14735_v5 = vadd.f32 %v7990_v47, %v7902_v8  ;;  %v6129_v34 = vsel %vm11126_vm5, %v6124_v52, %v6128_v6  ;;  %v6131_v2 = vshrl.u32 %v14498_v28, 16  ;;  %v8449_v8 = vshll.u32 %v10391_v37, 16 }
 0x479   : > { %v7904_v47 = vadd.f32 %v14048_v58, %v14025_v57  ;;  %v9893_v52 = vrot.slane %v14631_v51, 9  ;;  %v5840_v28 = vsel %vm11117_vm4, %v5838_v17, %v5839_v45  ;;  %v6901_v33 = vunpack.c.l.b16 %v6129_v34 }
 0x47a   : > { %v8133_v29 = vpop.f32.mrf.mxu3  ;;  %8029 = vmatmul.bf16.gmra.mxu1 %v6737_v43  ;;  %v6973_v43 = vunpack.c.l.b16 %v6419_v40  ;;  %v6133_v37 = vrot.slane %v6131_v2, 4  ;;  %v14771_v51 = vrot.slane %v8449_v8, 5  ;;  %v6785_v61 = vunpack.c.l.b16 %v5840_v28  ;;  %v10392_v2 = vld [vmem:[%s11052_s22 + $0x14] sm:$0x1] }
 0x47b   : > { %v14740_v25 = vadd.f32 %v8133_v29, %v14275_v21  ;;  %v8074_v55 = vpop.f32.mrf.mxu2  ;;  %v8445_v29 = vrot.slane %v8443_v39, 5  ;;  %v5837_v58 = vsel %vm11117_vm4, %v9893_v52, %v5836_v42  ;;  %v14777_v14 = vpop.f32.mrf.mxu0  ;;  %v6136_v34 = vrot.slane %v6134_v26, 5  ;;  %v10636_v52 = vld [vmem:[#allocation2 + $0x84] sm:$0xff] }
 0x47c   : > { %v14751_v21 = vadd.f32 %v8074_v55, %v14663_v24  ;;  %v6146_v24 = vrot.slane %v6144_v44, 4  ;;  %v8455_v44 = vrot.slane %v8453_v7, 4  ;;  %v14773_v55 = vld [vmem:[#allocation2 + $0xc4] sm:$0xf]  ;;  %v14775_v17 = vpack.c.b16 %v6973_v43, %v6972_v0 }
 0x47d   : > { %v8446_v45 = vor.u32 %v8445_v29, %v8442_v22  ;;  %v9908_v42 = vrot.slane %v14767_v32, 9  ;;  %v6422_v8 = vrot.slane %v14773_v55, 5  ;;  %v6923_v43 = vpack.c.b16 %v6901_v33, %v6900_v46  ;;  %v15553_v22 = vld [vmem:[#allocation46_spill] sm:$0xff]  ;;  %v15554_v29 = vld [vmem:[#allocation47_spill] sm:$0xff] }
 0x47e   : > { %15551 = vst [vmem:[#allocation17_spill] sm:$0xff] %v14751_v21  ;;  %v6147_v39 = vor.u32 %v6146_v24, %v14758_v49  ;;  %v8459_v26 = vshll.u32 %v10392_v2, 16  ;;  %v7907_v0 = vadd.f32 %v15554_v29, %v15553_v22  ;;  %v15560_v21 = vld [vmem:[#allocation55_spill] sm:$0xff] }
 0x47f   : > { %v7992_v30 = vpop.f32.mrf.mxu1  ;;  %v6423_v24 = vsel %vm11117_vm4, %v9908_v42, %v6422_v8  ;;  %v6424_v33 = vrot.slane %v6422_v8, 4  ;;  %v10394_v8 = vld [vmem:[%s11052_s22 + $0x1c] sm:$0xf] }
 0x480   : > { %v14765_v6 = vadd.f32 %v7992_v30, %v7904_v47  ;;  %v6784_v47 = vunpack.c.l.b16 %v5837_v58  ;;  %v8456_v30 = vor.u32 %v8455_v44, %v14771_v51  ;;  %v14795_v58 = vld [vmem:[#allocation2 + $0xc8] sm:$0x1]  ;;  %v8461_v42 = vrot.slane %v8459_v26, 5 }
 0x481   : > { %v6974_v29 = vunpack.c.l.b16 %v6423_v24 }
 0x482   : > { %v8135_v57 = vpop.f32.mrf.mxu3  ;;  %v6801_v28 = vpack.c.b16 %v6785_v61, %v6784_v47  ;;  %v8457_v61 = vrot.slane %v8456_v30, 4  ;;  %v10393_v47 = vld [vmem:[%s11052_s22 + $0x18] sm:$0xf]  ;;  %v6168_v30 = vshrl.u32 %v14580_v13, 16 }
 0x483   : > { %v14780_v20 = vadd.f32 %v8135_v57, %v14321_v10  ;;  %v8076_v40 = vpop.f32.mrf.mxu2  ;;  %v6150_v10 = vshll.u32 %v14526_v3, 16  ;;  %v6148_v57 = vrot.slane %v6147_v39, 4  ;;  %v8447_v3 = vrot.slane %v8446_v45, 4 }
 0x484   : > { %v14787_v7 = vadd.f32 %v8076_v40, %v14700_v12  ;;  %v6137_v12 = vor.u32 %v6136_v34, %v6133_v37  ;;  %v15556_v37 = vld [vmem:[#allocation32_spill] sm:$0xff]  ;;  %v6164_v45 = vshll.u32 %v14580_v13, 16  ;;  %v8473_v13 = vshll.u32 %v10394_v8, 16 }
 0x485   : > { %v6152_v2 = vrot.slane %v6150_v10, 5  ;;  %v8452_v10 = vsel %vm11126_vm5, %v8447_v3, %v14771_v51  ;;  %v8462_v51 = vsel %vm11126_vm5, %v8457_v61, %v8461_v42  ;;  %v8477_v3 = vshrl.u32 %v10394_v8, 16 }
 0x486   : > { %15552 = vst [vmem:[#allocation11_spill] sm:$0xff] %v14787_v7  ;;  %8266 = vmatmul.bf16.gmra.mxu0 %v6923_v43  ;;  %v15555_v43 = vld [vmem:[#allocation53_spill] sm:$0xff]  ;;  %v6138_v34 = vrot.slane %v6137_v12, 4  ;;  %v8844_v61 = vunpack.c.l.b16 %v8462_v51 }
 0x487   : > { %8177 = vmatmul.bf16.gmra.mxu3 %v10636_v52  ;;  %v7995_v46 = vpop.f32.mrf.mxu1  ;;  %v6425_v52 = vrot.slane %v14795_v58, 5  ;;  %v6153_v39 = vsel %vm11126_vm5, %v6148_v57, %v6152_v2  ;;  %v8464_v57 = vshrl.u32 %v10393_v47, 16 }
 0x488   : > { %8118 = vmatmul.bf16.gmra.mxu2 %v6801_v28  ;;  %v14797_v44 = vadd.f32 %v7995_v46, %v7907_v0  ;;  %v14815_v0 = vpop.f32.mrf.mxu0  ;;  %v8467_v46 = vshll.u32 %v10393_v47, 16 }
 0x489   : > { %v6426_v26 = vsel %vm11117_vm4, %v6424_v33, %v6425_v52  ;;  %v15559_v33 = vld [vmem:[#allocation14_spill] sm:$0xff]  ;;  %v6155_v52 = vshrl.u32 %v14578_v59, 16  ;;  %v8466_v42 = vrot.slane %v8464_v57, 4 }
 0x48a   : > { %v8138_v40 = vpop.f32.mrf.mxu3  ;;  %8310 = vmatmul.bf16.vlgmr.msra.gmra.mxu1 %v15556_v37  ;;  %v6975_v2 = vunpack.c.l.b16 %v6426_v26  ;;  %v8843_v26 = vunpack.c.l.b16 %v8452_v10  ;;  %v8469_v8 = vrot.slane %v8467_v46, 5 }
 0x48b   : > { %v14802_v22 = vadd.f32 %v8138_v40, %v15555_v43  ;;  %v8079_v28 = vpop.f32.mrf.mxu2  ;;  %v6143_v40 = vsel %vm11126_vm5, %v6138_v34, %v14758_v49  ;;  %v15558_v43 = vld [vmem:[#allocation48_spill] sm:$0xff]  ;;  %v6170_v49 = vrot.slane %v6168_v30, 4  ;;  %v6157_v60 = vrot.slane %v6155_v52, 4 }
 0x48c   : > { %v14818_v12 = vadd.f32 %v8079_v28, %v14735_v5  ;;  %v7909_v24 = vadd.f32 %v15559_v33, %v15558_v43  ;;  %v6158_v5 = vshll.u32 %v14578_v59, 16  ;;  %v14829_v37 = vpack.c.b16 %v6975_v2, %v6974_v29  ;;  %v10395_v29 = vld [vmem:[%s11052_s22 + $0x20] sm:$0x1]  ;;  %v10637_v30 = vld [vmem:[#allocation2 + $0x90] sm:$0xff] }
 0x48d   : > { %v6903_v28 = vunpack.c.l.b16 %v6153_v39  ;;  %v8475_v43 = vrot.slane %v8473_v13, 5  ;;  %v8479_v33 = vrot.slane %v8477_v3, 4  ;;  %v6902_v59 = vunpack.c.l.b16 %v6143_v40  ;;  %v15561_v40 = vld [vmem:[#allocation49_spill] sm:$0xff] }
 0x48e   : > { %15557 = vst [vmem:[#allocation10_spill] sm:$0xff] %v14818_v12  ;;  %v14831_v12 = vrot.slane %v6164_v45, 5  ;;  %v6160_v39 = vrot.slane %v6158_v5, 5  ;;  %v8875_v57 = vpack.c.b16 %v8844_v61, %v8843_v26  ;;  %v8470_v46 = vor.u32 %v8469_v8, %v8466_v42  ;;  %v10396_v8 = vld [vmem:[%s11052_s22 + $0x24] sm:$0xf] }
 0x48f   : > { %v7997_v47 = vpop.f32.mrf.mxu1  ;;  %v6924_v51 = vpack.c.b16 %v6903_v28, %v6902_v59  ;;  %v6174_v13 = vshll.u32 %v14606_v35, 16  ;;  %v8480_v3 = vor.u32 %v8479_v33, %v8475_v43  ;;  %v15563_v59 = vld [vmem:[#allocation39_spill] sm:$0xff] }
 0x490   : > { %v14833_v34 = vadd.f32 %v7997_v47, %v7909_v24  ;;  %v6171_v45 = vor.u32 %v6170_v49, %v14831_v12  ;;  %v15562_v24 = vld [vmem:[#allocation51_spill] sm:$0xff]  ;;  %v8471_v26 = vrot.slane %v8470_v46, 4  ;;  %v8491_v46 = vshll.u32 %v10396_v8, 16 }
 0x491   : > { %v7912_v52 = vadd.f32 %v15562_v24, %v15561_v40  ;;  %v6176_v35 = vrot.slane %v6174_v13, 5  ;;  %v8481_v61 = vrot.slane %v8480_v3, 4  ;;  %v15564_v40 = vld [vmem:[#allocation16_spill] sm:$0xff] }
 0x492   : > { %v8140_v7 = vpop.f32.mrf.mxu3  ;;  %v6172_v47 = vrot.slane %v6171_v45, 4  ;;  %v6192_v45 = vshrl.u32 %v14659_v48, 16  ;;  %v15565_v24 = vld [vmem:[#allocation52_spill] sm:$0xff] }
 0x493   : > { %v14836_v36 = vadd.f32 %v8140_v7, %v15560_v21  ;;  %v8081_v2 = vpop.f32.mrf.mxu2  ;;  %v8483_v21 = vshll.u32 %v10395_v29, 16  ;;  %v14844_v7 = vpop.f32.mrf.mxu0  ;;  %v10397_v29 = vld [vmem:[%s11052_s22 + $0x28] sm:$0xf] }
 0x494   : > { %v14841_v10 = vadd.f32 %v8081_v2, %v14765_v6  ;;  %v6161_v6 = vor.u32 %v6160_v39, %v6157_v60  ;;  %v6177_v60 = vsel %vm11126_vm5, %v6172_v47, %v6176_v35  ;;  %v6188_v39 = vshll.u32 %v14659_v48, 16 }
 0x495   : > { %v8485_v42 = vrot.slane %v8483_v21, 5  ;;  %v8497_v3 = vshll.u32 %v10397_v29, 16  ;;  %v8501_v21 = vshrl.u32 %v10397_v29, 16 }
 0x496   : > { %8271 = vmatmul.bf16.gmra.mxu0 %v6924_v51 }
 0x497   : > { %8182 = vmatmul.bf16.gmra.mxu3 %v10637_v30  ;;  %v8000_v5 = vpop.f32.mrf.mxu1  ;;  %v6162_v30 = vrot.slane %v6161_v6, 4  ;;  %v8486_v13 = vsel %vm11126_vm5, %v8481_v61, %v8485_v42  ;;  %v6905_v6 = vunpack.c.l.b16 %v6177_v60 }
 0x498   : > { %8963 = vmatmul.bf16.vlgmr.msra.gmra.mxu2 %v8875_v57  ;;  %v14848_v28 = vadd.f32 %v8000_v5, %v7912_v52  ;;  %v8476_v57 = vsel %vm11126_vm5, %v8471_v26, %v8475_v43  ;;  %v7914_v52 = vadd.f32 %v15565_v24, %v15564_v40  ;;  %v6182_v5 = vshll.u32 %v14657_v4, 16  ;;  %v10398_v40 = vld [vmem:[%s11052_s22 + $0x2c] sm:$0x1] }
 0x499   : > { %v6167_v48 = vsel %vm11126_vm5, %v6162_v30, %v14831_v12  ;;  %v8845_v47 = vunpack.c.l.b16 %v8476_v57  ;;  %v14874_v26 = vrot.slane %v6188_v39, 5  ;;  %v8846_v42 = vunpack.c.l.b16 %v8486_v13 }
 0x49a   : > { %v8143_v49 = vpop.f32.mrf.mxu3  ;;  %8315 = vmatmul.bf16.gmra.mxu1 %v15563_v59  ;;  %v8493_v59 = vrot.slane %v8491_v46, 5  ;;  %v8499_v12 = vrot.slane %v8497_v3, 5  ;;  %v6184_v39 = vrot.slane %v6182_v5, 5  ;;  %v6198_v3 = vshll.u32 %v14669_v54, 16 }
 0x49b   : > { %v14852_v33 = vadd.f32 %v8143_v49, %v14453_v15  ;;  %v8084_v2 = vpop.f32.mrf.mxu2  ;;  %v8488_v15 = vshrl.u32 %v10396_v8, 16  ;;  %v6194_v49 = vrot.slane %v6192_v45, 4  ;;  %v14876_v35 = vpop.f32.mrf.mxu0 }
 0x49c   : > { %v14861_v51 = vadd.f32 %v8084_v2, %v14797_v44  ;;  %v6179_v44 = vshrl.u32 %v14657_v4, 16  ;;  %v8503_v2 = vrot.slane %v8501_v21, 4  ;;  %v6904_v4 = vunpack.c.l.b16 %v6167_v48  ;;  %v15567_v48 = vld [vmem:[#allocation15_spill] sm:$0xff] }
 0x49d   : > { %v8490_v8 = vrot.slane %v8488_v15, 4  ;;  %v6195_v45 = vor.u32 %v6194_v49, %v14874_v26  ;;  %v8876_v15 = vpack.c.b16 %v8846_v42, %v8845_v47  ;;  %v6200_v42 = vrot.slane %v6198_v3, 5 }
 0x49e   : > { %v6181_v57 = vrot.slane %v6179_v44, 4  ;;  %v6925_v13 = vpack.c.b16 %v6905_v6, %v6904_v4  ;;  %v8504_v21 = vor.u32 %v8503_v2, %v8499_v12 }
 0x49f   : > { %v8002_v43 = vpop.f32.mrf.mxu1  ;;  %v8494_v46 = vor.u32 %v8493_v59, %v8490_v8  ;;  %v10399_v59 = vld [vmem:[%s11052_s22 + $0x30] sm:$0xf] }
 0x4a0   : > { %v14878_v61 = vadd.f32 %v8002_v43, %v7914_v52  ;;  %v10638_v52 = vld [vmem:[#allocation2 + $0x9c] sm:$0xff]  ;;  %v15568_v43 = vld [vmem:[#allocation20_spill] sm:$0xff]  ;;  %v6185_v49 = vor.u32 %v6184_v39, %v6181_v57  ;;  %v8505_v8 = vrot.slane %v8504_v21, 4  ;;  %v6216_v57 = vshrl.u32 %v14710_v18, 16 }
 0x4a1   : > { %v7917_v44 = vadd.f32 %v15568_v43, %v15567_v48  ;;  %v8495_v6 = vrot.slane %v8494_v46, 4  ;;  %v10400_v39 = vld [vmem:[%s11052_s22 + $0x34] sm:$0xf]  ;;  %v6206_v46 = vshll.u32 %v14702_v11, 16  ;;  %v8512_v21 = vshrl.u32 %v10399_v59, 16 }
 0x4a2   : > { %v8145_v29 = vpop.f32.mrf.mxu3  ;;  %v8521_v48 = vshll.u32 %v10400_v39, 16  ;;  %v8525_v43 = vshrl.u32 %v10400_v39, 16 }
 0x4a3   : > { %v14881_v30 = vadd.f32 %v8145_v29, %v14493_v53  ;;  %v8086_v60 = vpop.f32.mrf.mxu2  ;;  %v8507_v53 = vshll.u32 %v10398_v40, 16  ;;  %v6196_v29 = vrot.slane %v6195_v45, 4  ;;  %v14894_v2 = vpop.f32.mrf.mxu0  ;;  %v15569_v40 = vld [vmem:[#allocation38_spill] sm:$0xff] }
 0x4a4   : > { %v14886_v24 = vadd.f32 %v8086_v60, %v14833_v34  ;;  %v6212_v60 = vshll.u32 %v14710_v18, 16 }
 0x4a5   : > { %v8509_v54 = vrot.slane %v8507_v53, 5  ;;  %v8515_v53 = vshll.u32 %v10399_v59, 16  ;;  %v6208_v59 = vrot.slane %v6206_v46, 5  ;;  %v10639_v46 = vld [vmem:[#allocation2 + $0xa8] sm:$0xff] }
 0x4a6   : > { %15566 = vst [vmem:[#allocation42_spill] sm:$0xff] %v14886_v24  ;;  %8276 = vmatmul.bf16.gmra.mxu0 %v6925_v13  ;;  %v6201_v13 = vsel %vm11126_vm5, %v6196_v29, %v6200_v42  ;;  %v6214_v29 = vrot.slane %v6212_v60, 5  ;;  %v10401_v60 = vld [vmem:[%s11052_s22 + $0x38] sm:$0x1] }
 0x4a7   : > { %8187 = vmatmul.bf16.gmra.mxu3 %v10638_v52  ;;  %v8005_v5 = vpop.f32.mrf.mxu1  ;;  %v6186_v52 = vrot.slane %v6185_v49, 4  ;;  %v8510_v18 = vsel %vm11126_vm5, %v8505_v8, %v8509_v54  ;;  %v6907_v42 = vunpack.c.l.b16 %v6201_v13  ;;  %v8514_v54 = vrot.slane %v8512_v21, 4 }
 0x4a8   : > { %8968 = vmatmul.bf16.gmra.mxu2 %v8876_v15  ;;  %v14891_v34 = vadd.f32 %v8005_v5, %v7917_v44  ;;  %v6203_v15 = vshrl.u32 %v14702_v11, 16  ;;  %v15571_v44 = vld [vmem:[#allocation21_spill] sm:$0xff]  ;;  %v15572_v5 = vld [vmem:[#allocation23_spill] sm:$0xff]  ;;  %v8848_v8 = vunpack.c.l.b16 %v8510_v18  ;;  %v8517_v39 = vrot.slane %v8515_v53, 5 }
 0x4a9   : > { %v7919_v49 = vadd.f32 %v15572_v5, %v15571_v44  ;;  %v6191_v11 = vsel %vm11126_vm5, %v6186_v52, %v14874_v26  ;;  %v8523_v44 = vrot.slane %v8521_v48, 5  ;;  %v8527_v5 = vrot.slane %v8525_v43, 4  ;;  %v15574_v43 = vld [vmem:[#allocation18_spill] sm:$0xff] }
 0x4aa   : > { %v8148_v47 = vpop.f32.mrf.mxu3  ;;  %8320 = vmatmul.bf16.gmra.mxu1 %v15569_v40  ;;  %v6222_v53 = vshll.u32 %v14731_v16, 16  ;;  %v8518_v18 = vor.u32 %v8517_v39, %v8514_v54  ;;  %v6236_v39 = vshll.u32 %v14773_v55, 16 }
 0x4ab   : > { %v14897_v4 = vadd.f32 %v8148_v47, %v14529_v9  ;;  %v8089_v45 = vpop.f32.mrf.mxu2  ;;  %v8500_v9 = vsel %vm11126_vm5, %v8495_v6, %v8499_v12  ;;  %v6205_v6 = vrot.slane %v6203_v15, 4  ;;  %v8528_v48 = vor.u32 %v8527_v5, %v8523_v44 }
 0x4ac   : > { %v14908_v3 = vadd.f32 %v8089_v45, %v14848_v28  ;;  %v6218_v28 = vrot.slane %v6216_v57, 4  ;;  %v8847_v12 = vunpack.c.l.b16 %v8500_v9  ;;  %v14925_v9 = vpop.f32.mrf.mxu0 }
 0x4ad   : > { %v6209_v13 = vor.u32 %v6208_v59, %v6205_v6  ;;  %v8529_v6 = vrot.slane %v8528_v48, 4  ;;  %v10403_v59 = vld [vmem:[%s11052_s22 + $0x40] sm:$0xf] }
 0x4ae   : > { %15570 = vst [vmem:[#allocation43_spill] sm:$0xff] %v14908_v3  ;;  %v6906_v3 = vunpack.c.l.b16 %v6191_v11  ;;  %v6219_v26 = vor.u32 %v6218_v28, %v6214_v29  ;;  %v8877_v21 = vpack.c.b16 %v8848_v8, %v8847_v12  ;;  %v10402_v12 = vld [vmem:[%s11052_s22 + $0x3c] sm:$0xf]  ;;  %v15575_v8 = vld [vmem:[#allocation12_spill] sm:$0xff] }
 0x4af   : > { %v8007_v47 = vpop.f32.mrf.mxu1 }
 0x4b0   : > { %v14919_v40 = vadd.f32 %v8007_v47, %v7919_v49  ;;  %v6926_v52 = vpack.c.b16 %v6907_v42, %v6906_v3  ;;  %v7922_v3 = vadd.f32 %v14450_v1, %v15574_v43  ;;  %v6220_v49 = vrot.slane %v6219_v26, 4 }
 0x4b1   : > { %v6224_v47 = vrot.slane %v6222_v53, 5  ;;  %v8519_v42 = vrot.slane %v8518_v18, 4  ;;  %v8536_v26 = vshrl.u32 %v10402_v12, 16 }
 0x4b2   : > { %v8150_v45 = vpop.f32.mrf.mxu3 }
 0x4b3   : > { %v14922_v24 = vadd.f32 %v8150_v45, %v14571_v19  ;;  %v8091_v57 = vpop.f32.mrf.mxu2  ;;  %v8531_v19 = vshll.u32 %v10401_v60, 16  ;;  %v6225_v1 = vsel %vm11126_vm5, %v6220_v49, %v6224_v47  ;;  %v6240_v45 = vshrl.u32 %v14773_v55, 16  ;;  %v15577_v55 = vld [vmem:[#allocation54_spill] sm:$0xff] }
 0x4b4   : > { %v14928_v15 = vadd.f32 %v8091_v57, %v14878_v61  ;;  %v6210_v61 = vrot.slane %v6209_v13, 4  ;;  %v8539_v60 = vshll.u32 %v10402_v12, 16  ;;  %v8545_v13 = vshll.u32 %v10403_v59, 16  ;;  %v14951_v18 = vpop.f32.mrf.mxu0 }
 0x4b5   : > { %v8533_v16 = vrot.slane %v8531_v19, 5  ;;  %v7924_v48 = vadd.f32 %v14505_v31, %v15577_v55  ;;  %v6227_v19 = vshrl.u32 %v14767_v32, 16  ;;  %v6242_v43 = vrot.slane %v6240_v45, 4 }
 0x4b6   : > { %15573 = vst [vmem:[#allocation46_spill] sm:$0xff] %v14928_v15  ;;  %8281 = vmatmul.bf16.gmra.mxu0 %v6926_v52  ;;  %v6215_v54 = vsel %vm11126_vm5, %v6210_v61, %v6214_v29  ;;  %v8524_v52 = vsel %vm11126_vm5, %v8519_v42, %v8523_v44  ;;  %v6909_v29 = vunpack.c.l.b16 %v6225_v1  ;;  %v6230_v49 = vshll.u32 %v14767_v32, 16  ;;  %v10640_v32 = vld [vmem:[#allocation2 + $0xb4] sm:$0xff] }
 0x4b7   : > { %8192 = vmatmul.bf16.gmra.mxu3 %v10639_v46  ;;  %v8010_v11 = vpop.f32.mrf.mxu1  ;;  %v8549_v46 = vshrl.u32 %v10403_v59, 16  ;;  %v8534_v53 = vsel %vm11126_vm5, %v8529_v6, %v8533_v16  ;;  %v8849_v44 = vunpack.c.l.b16 %v8524_v52  ;;  %v8541_v61 = vrot.slane %v8539_v60, 5  ;;  %v10404_v16 = vld [vmem:[%s11052_s22 + $0x44] sm:$0x1] }
 0x4b8   : > { %8973 = vmatmul.bf16.gmra.mxu2 %v8877_v21  ;;  %v14933_v28 = vadd.f32 %v8010_v11, %v7922_v3  ;;  %v6908_v21 = vunpack.c.l.b16 %v6215_v54  ;;  %v8538_v11 = vrot.slane %v8536_v26, 4  ;;  %v8850_v42 = vunpack.c.l.b16 %v8534_v53  ;;  %v4129_v53 = vld [vmem:[#allocation2 + $0xcc] sm:$0x1] }
 0x4b9   : > { %v8547_v12 = vrot.slane %v8545_v13, 5  ;;  %v8551_v6 = vrot.slane %v8549_v46, 4  ;;  %v6229_v54 = vrot.slane %v6227_v19, 4  ;;  %v6232_v1 = vrot.slane %v6230_v49, 5  ;;  %v15585_v13 = vld [vmem:[#allocation31_spill] sm:$0xff] }
 0x4ba   : > { %8325 = vmatmul.bf16.gmra.mxu1 %v15575_v8  ;;  %v6927_v59 = vpack.c.b16 %v6909_v29, %v6908_v21  ;;  %v8542_v45 = vor.u32 %v8541_v61, %v8538_v11  ;;  %v8878_v26 = vpack.c.b16 %v8850_v42, %v8849_v44  ;;  %v8555_v52 = vshll.u32 %v10404_v16, 16  ;;  %v15580_v21 = vld [vmem:[#allocation25_spill] sm:$0xff]  ;;  %v15581_v29 = vld [vmem:[#allocation28_spill] sm:$0xff]  ;;  %v10405_v61 = vld [vmem:[%s11052_s22 + $0x48] sm:$0xf] }
 0x4bb   : > { %v8094_v5 = vpop.f32.mrf.mxu2  ;;  %v8552_v60 = vor.u32 %v8551_v6, %v8547_v12  ;;  %v4130_v46 = vsel %vm12434_vm8, 0, %v4129_v53  ;;  %v7927_v55 = vadd.f32 %v15581_v29, %v15580_v21  ;;  %v10406_v42 = vld [vmem:[%s11052_s22 + $0x4c] sm:$0xf]  ;;  %v15582_v6 = vld [vmem:[#allocation45_spill] sm:$0xff]  ;;  %v15584_v53 = vld [vmem:[#allocation26_spill] sm:$0xff] }
 0x4bc   : > { %v14945_v57 = vadd.f32 %v8094_v5, %v14891_v34  ;;  %v14956_v34 = vrot.slane %v6236_v39, 5  ;;  %v6246_v39 = vshll.u32 %v14795_v58, 16  ;;  %4131 = vst [vmem:[#allocation2 + $0xcc] sm:$0x1] %v4130_v46  ;;  %v8543_v19 = vrot.slane %v8542_v45, 4 }
 0x4bd   : > { %v8553_v49 = vrot.slane %v8552_v60, 4  ;;  %v8557_v11 = vrot.slane %v8555_v52, 5  ;;  %v4185_v60 = vld [vmem:[#allocation2 + $0xd4] sm:$0x1]  ;;  %v14987_v52 = vld [vmem:[#allocation2 + $0xd0] sm:$0xf]  ;;  %v7929_v46 = vadd.f32 %v15585_v13, %v15584_v53 }
 0x4be   : > { %15576 = vst [vmem:[#allocation47_spill] sm:$0xff] %v14945_v57  ;;  %v6243_v31 = vor.u32 %v6242_v43, %v14956_v34  ;;  %v14971_v43 = vpop.f32.mrf.mxu0  ;;  %v6248_v44 = vrot.slane %v6246_v39, 5 }
 0x4bf   : > { %v8012_v3 = vpop.f32.mrf.mxu1  ;;  %v8558_v39 = vsel %vm11126_vm5, %v8553_v49, %v8557_v11 }
 0x4c0   : > { %v14959_v47 = vadd.f32 %v8012_v3, %v7924_v48  ;;  %v6244_v58 = vrot.slane %v6243_v31, 4  ;;  %v8852_v11 = vunpack.c.l.b16 %v8558_v39 }
 0x4c2   : > { %v6249_v16 = vsel %vm11126_vm5, %v6244_v58, %v6248_v44 }
 0x4c3   : > { %v8096_v8 = vpop.f32.mrf.mxu2  ;;  %v6911_v21 = vunpack.c.l.b16 %v6249_v16 }
 0x4c4   : > { %v14965_v5 = vadd.f32 %v8096_v8, %v14919_v40  ;;  %v6233_v40 = vor.u32 %v6232_v1, %v6229_v54  ;;  %v8548_v8 = vsel %vm11126_vm5, %v8543_v19, %v8547_v12  ;;  %v8560_v54 = vshrl.u32 %v10405_v61, 16 }
 0x4c5   : > { %v8563_v1 = vshll.u32 %v10405_v61, 16  ;;  %v6264_v19 = vshrl.u32 %v14987_v52, 16  ;;  %v8851_v49 = vunpack.c.l.b16 %v8548_v8 }
 0x4c6   : > { %15578 = vst [vmem:[#allocation53_spill] sm:$0xff] %v14965_v5  ;;  %8286 = vmatmul.bf16.gmra.mxu0 %v6927_v59  ;;  %v6234_v31 = vrot.slane %v6233_v40, 4  ;;  %v6260_v40 = vshll.u32 %v14987_v52, 16  ;;  %v8562_v61 = vrot.slane %v8560_v54, 4 }
 0x4c7   : > { %8197 = vmatmul.bf16.gmra.mxu3 %v10640_v32  ;;  %v8015_v48 = vpop.f32.mrf.mxu1  ;;  %v8569_v32 = vshll.u32 %v10406_v42, 16  ;;  %v6266_v29 = vrot.slane %v6264_v19, 4  ;;  %v8879_v39 = vpack.c.b16 %v8852_v11, %v8851_v49 }
 0x4c8   : > { %8978 = vmatmul.bf16.gmra.mxu2 %v8878_v26  ;;  %v14973_v3 = vadd.f32 %v8015_v48, %v7927_v55  ;;  %v8573_v26 = vshrl.u32 %v10406_v42, 16  ;;  %v6239_v12 = vsel %vm11126_vm5, %v6234_v31, %v14956_v34  ;;  %v14996_v55 = vld [vmem:[#allocation2 + $0xcc] sm:$0xf]  ;;  %v8565_v34 = vrot.slane %v8563_v1, 5  ;;  %v10641_v1 = vld [vmem:[#allocation2 + $0xc0] sm:$0xff] }
 0x4c9   : > { %v6251_v58 = vshrl.u32 %v14996_v55, 16  ;;  %v6254_v48 = vshll.u32 %v14996_v55, 16  ;;  %v8571_v16 = vrot.slane %v8569_v32, 5  ;;  %v6262_v13 = vrot.slane %v6260_v40, 5 }
 0x4ca   : > { %8330 = vmatmul.bf16.gmra.mxu1 %v15582_v6  ;;  %v10407_v6 = vld [vmem:[%s11052_s22 + $0x50] sm:$0x1] }
 0x4cb   : > { %v8099_v59 = vpop.f32.mrf.mxu2  ;;  %v6253_v31 = vrot.slane %v6251_v58, 4  ;;  %v6256_v53 = vrot.slane %v6254_v48, 5  ;;  %v8579_v57 = vshll.u32 %v10407_v6, 16  ;;  %v6267_v8 = vor.u32 %v6266_v29, %v6262_v13  ;;  %v10409_v6 = vld [vmem:[%s11052_s22 + $0x58] sm:$0xf] }
 0x4cc   : > { %v14983_v45 = vadd.f32 %v8099_v59, %v14933_v28  ;;  %v4186_v28 = vsel %vm12457_vm10, 0, %v4185_v60  ;;  %v8575_v59 = vrot.slane %v8573_v26, 4  ;;  %v6910_v60 = vunpack.c.l.b16 %v6239_v12  ;;  %v15587_v12 = vld [vmem:[#allocation29_spill] sm:$0xff] }
 0x4cd   : > { %4187 = vst [vmem:[#allocation2 + $0xd4] sm:$0x1] %v4186_v28  ;;  %v15005_v28 = vpop.f32.mrf.mxu0  ;;  %v6257_v15 = vor.u32 %v6256_v53, %v6253_v31  ;;  %v7932_v58 = vadd.f32 %v14645_v62, %v15587_v12  ;;  %v8581_v40 = vrot.slane %v8579_v57, 5 }
 0x4ce   : > { %15583 = vst [vmem:[#allocation32_spill] sm:$0xff] %v14983_v45  ;;  %v6928_v5 = vpack.c.b16 %v6911_v21, %v6910_v60  ;;  %v8576_v32 = vor.u32 %v8575_v59, %v8571_v16 }
 0x4cf   : > { %v8017_v44 = vpop.f32.mrf.mxu1  ;;  %v6258_v19 = vrot.slane %v6257_v15, 4 }
 0x4d0   : > { %v15002_v42 = vadd.f32 %v8017_v44, %v7929_v46  ;;  %v8566_v46 = vor.u32 %v8565_v34, %v8562_v61  ;;  %v8577_v49 = vrot.slane %v8576_v32, 4  ;;  %v15588_v61 = vld [vmem:[#allocation50_spill] sm:$0xff]  ;;  %v10408_v34 = vld [vmem:[%s11052_s22 + $0x54] sm:$0xf] }
 0x4d1   : > { %v8584_v53 = vshrl.u32 %v10408_v34, 16  ;;  %v8587_v29 = vshll.u32 %v10408_v34, 16 }
 0x4d2   : > { %v8567_v44 = vrot.slane %v8566_v46, 4  ;;  %v8582_v60 = vsel %vm11126_vm5, %v8577_v49, %v8581_v40  ;;  %v10410_v49 = vld [vmem:[%s11052_s22 + $0x5c] sm:$0x1] }
 0x4d3   : > { %v8101_v45 = vpop.f32.mrf.mxu2 }
 0x4d4   : > { %v15008_v54 = vadd.f32 %v8101_v45, %v14959_v47  ;;  %v15010_v26 = vld [vmem:[#allocation2 + $0xd4] sm:$0x1]  ;;  %v6268_v47 = vrot.slane %v6267_v8, 4  ;;  %v8572_v57 = vsel %vm11126_vm5, %v8567_v44, %v8571_v16  ;;  %v8593_v8 = vshll.u32 %v10409_v6, 16  ;;  %v10642_v44 = vld [vmem:[#allocation2 + $0xcc] sm:$0xff] }
 0x4d5   : > { %v6270_v21 = vshll.u32 %v15010_v26, 16  ;;  %v15022_v31 = vpop.f32.mrf.mxu0 }
 0x4d6   : > { %8291 = vmatmul.bf16.gmra.mxu0 %v6928_v5  ;;  %v6263_v5 = vsel %vm11126_vm5, %v6258_v19, %v6262_v13  ;;  %v15589_v13 = vld [vmem:[#allocation27_spill] sm:$0xff]  ;;  %v8589_v19 = vrot.slane %v8587_v29, 5  ;;  %v8595_v16 = vrot.slane %v8593_v8, 5  ;;  %v10411_v29 = vld [vmem:[%s11052_s22 + $0x60] sm:$0xf] }
 0x4d7   : > { %8202 = vmatmul.bf16.gmra.mxu3 %v10641_v1  ;;  %v8020_v48 = vpop.f32.mrf.mxu1  ;;  %v6272_v11 = vrot.slane %v6270_v21, 5  ;;  %v8597_v1 = vshrl.u32 %v10409_v6, 16  ;;  %v6912_v46 = vunpack.c.l.b16 %v6263_v5  ;;  %v8854_v21 = vunpack.c.l.b16 %v8582_v60  ;;  %v10412_v8 = vld [vmem:[%s11052_s22 + $0x64] sm:$0xf] }
 0x4d8   : > { %8983 = vmatmul.bf16.gmra.mxu2 %v8879_v39  ;;  %v8021_v45 = vadd.f32 %v8020_v48, %v7932_v58  ;;  %v7934_v39 = vadd.f32 %v14691_v63, %v15589_v13  ;;  %v8586_v48 = vrot.slane %v8584_v53, 4 }
 0x4d9   : > { %v6273_v62 = vsel %vm11126_vm5, %v6268_v47, %v6272_v11  ;;  %v8599_v47 = vrot.slane %v8597_v1, 4 }
 0x4da   : > { %8335 = vmatmul.bf16.gmra.mxu1 %v15588_v61  ;;  %v6913_v32 = vunpack.c.l.b16 %v6273_v62  ;;  %v8590_v34 = vor.u32 %v8589_v19, %v8586_v48  ;;  %v15590_v62 = vld [vmem:[#allocation33_spill] sm:$0xff] }
 0x4db   : > { %v8104_v59 = vpop.f32.mrf.mxu2  ;;  %v8600_v6 = vor.u32 %v8599_v47, %v8595_v16  ;;  %v7939_v47 = vadd.f32 %v14777_v14, %v14636_v38  ;;  %v7942_v38 = vadd.f32 %v14815_v0, %v14675_v56 }
 0x4dc   : > { %v15025_v15 = vadd.f32 %v8104_v59, %v14973_v3  ;;  %v8853_v3 = vunpack.c.l.b16 %v8572_v57  ;;  %v6929_v40 = vpack.c.b16 %v6913_v32, %v6912_v46  ;;  %v8603_v59 = vshll.u32 %v10410_v49, 16 }
 0x4dd   : > { %v15037_v5 = vpop.f32.mrf.mxu0  ;;  %v7937_v57 = vadd.f32 %v14733_v50, %v15590_v62  ;;  %v8591_v1 = vrot.slane %v8590_v34, 4  ;;  %v8601_v13 = vrot.slane %v8600_v6, 4  ;;  %v8608_v32 = vshrl.u32 %v10411_v29, 16 }
 0x4de   : > { %v8880_v63 = vpack.c.b16 %v8854_v21, %v8853_v3  ;;  %v8617_v3 = vshll.u32 %v10412_v8, 16  ;;  %v8621_v21 = vshrl.u32 %v10412_v8, 16 }
 0x4df   : > { %v8022_v12 = vpop.f32.mrf.mxu1  ;;  %v8596_v50 = vsel %vm11126_vm5, %v8591_v1, %v8595_v16 }
 0x4e0   : > { %v8023_v58 = vadd.f32 %v8022_v12, %v7934_v39  ;;  %v15591_v39 = vld [vmem:[#allocation30_spill] sm:$0xff]  ;;  %v8611_v12 = vshll.u32 %v10411_v29, 16  ;;  %v8855_v6 = vunpack.c.l.b16 %v8596_v50 }
 0x4e2   : > { %v8613_v49 = vrot.slane %v8611_v12, 5  ;;  %v15592_v12 = vld [vmem:[#allocation19_spill] sm:$0xff] }
 0x4e3   : > { %v8106_v11 = vpop.f32.mrf.mxu2 }
 0x4e4   : > { %v15035_v61 = vadd.f32 %v8106_v11, %v15002_v42  ;;  %v8605_v42 = vrot.slane %v8603_v59, 5  ;;  %v8619_v11 = vrot.slane %v8617_v3, 5 }
 0x4e6   : > { %8296 = vmatmul.bf16.gmra.mxu0 %v6929_v40  ;;  %v8606_v19 = vsel %vm11126_vm5, %v8601_v13, %v8605_v42  ;;  %v8610_v40 = vrot.slane %v8608_v32, 4  ;;  %v10415_v32 = vld [vmem:[%s11052_s22 + $0x70] sm:$0xf] }
 0x4e7   : > { %8207 = vmatmul.bf16.gmra.mxu3 %v10642_v44  ;;  %v8025_v60 = vpop.f32.mrf.mxu1  ;;  %v8856_v59 = vunpack.c.l.b16 %v8606_v19  ;;  %v8641_v19 = vshll.u32 %v10415_v32, 16 }
 0x4e8   : > { %8988 = vmatmul.bf16.gmra.mxu2 %v8880_v63  ;;  %v8026_v53 = vadd.f32 %v8025_v60, %v7937_v57  ;;  %v8623_v63 = vrot.slane %v8621_v21, 4  ;;  %v8614_v57 = vor.u32 %v8613_v49, %v8610_v40 }
 0x4e9   : > { %v8881_v8 = vpack.c.b16 %v8856_v59, %v8855_v6 }
 0x4ea   : > { %8340 = vmatmul.bf16.gmra.mxu1 %v15591_v39  ;;  %v8624_v16 = vor.u32 %v8623_v63, %v8619_v11  ;;  %v8615_v1 = vrot.slane %v8614_v57, 4  ;;  %v10416_v57 = vld [vmem:[%s11052_s22 + $0x74] sm:$0x1] }
 0x4eb   : > { %v8109_v46 = vpop.f32.mrf.mxu2 }
 0x4ec   : > { %v15044_v48 = vadd.f32 %v8109_v46, %v8021_v45  ;;  %v10413_v45 = vld [vmem:[%s11052_s22 + $0x68] sm:$0x1]  ;;  %v8625_v13 = vrot.slane %v8624_v16, 4  ;;  %v10414_v46 = vld [vmem:[%s11052_s22 + $0x6c] sm:$0xf]  ;;  %v8620_v21 = vsel %vm11126_vm5, %v8615_v1, %v8619_v11  ;;  %v8643_v11 = vrot.slane %v8641_v19, 5 }
 0x4ed   : > { %v8627_v60 = vshll.u32 %v10413_v45, 16  ;;  %v8632_v50 = vshrl.u32 %v10414_v46, 16  ;;  %v8635_v0 = vshll.u32 %v10414_v46, 16  ;;  %v8857_v49 = vunpack.c.l.b16 %v8620_v21  ;;  %v10417_v46 = vld [vmem:[%s11052_s22 + $0x78] sm:$0xf] }
 0x4ef   : > { %v8027_v44 = vpop.f32.mrf.mxu1  ;;  %v8629_v42 = vrot.slane %v8627_v60, 5  ;;  %v8634_v6 = vrot.slane %v8632_v50, 4  ;;  %v8637_v45 = vrot.slane %v8635_v0, 5  ;;  %v8659_v50 = vshll.u32 %v10417_v46, 16 }
 0x4f0   : > { %v8028_v34 = vadd.f32 %v8027_v44, %v7939_v47  ;;  %v8645_v47 = vshrl.u32 %v10415_v32, 16  ;;  %v7944_v44 = vadd.f32 %v14844_v7, %v14713_v23  ;;  %v10418_v32 = vld [vmem:[%s11052_s22 + $0x7c] sm:$0xf] }
 0x4f1   : > { %v8665_v0 = vshll.u32 %v10418_v32, 16  ;;  %v8669_v19 = vshrl.u32 %v10418_v32, 16  ;;  %v10421_v32 = vld [vmem:[%s11052_s22 + $0x88] sm:$0xf] }
 0x4f3   : > { %v8111_v62 = vpop.f32.mrf.mxu2 }
 0x4f4   : > { %v15053_v29 = vadd.f32 %v8111_v62, %v8023_v58  ;;  %v8630_v58 = vsel %vm11126_vm5, %v8625_v13, %v8629_v42  ;;  %v8647_v62 = vrot.slane %v8645_v47, 4  ;;  %v15593_v42 = vld [vmem:[#allocation22_spill] sm:$0xff] }
 0x4f5   : > { %v8858_v63 = vunpack.c.l.b16 %v8630_v58  ;;  %v8656_v58 = vshrl.u32 %v10417_v46, 16  ;;  %v10420_v46 = vld [vmem:[%s11052_s22 + $0x84] sm:$0xf] }
 0x4f7   : > { %v8030_v14 = vpop.f32.mrf.mxu1 }
 0x4f8   : > { %8993 = vmatmul.bf16.gmra.mxu2 %v8881_v8  ;;  %v8031_v39 = vadd.f32 %v8030_v14, %v7942_v38  ;;  %v8638_v8 = vor.u32 %v8637_v45, %v8634_v6  ;;  %v8648_v38 = vor.u32 %v8647_v62, %v8643_v11  ;;  %v8651_v14 = vshll.u32 %v10416_v57, 16 }
 0x4f9   : > { %v8667_v6 = vrot.slane %v8665_v0, 5  ;;  %v8671_v45 = vrot.slane %v8669_v19, 4 }
 0x4fa   : > { %8345 = vmatmul.bf16.gmra.mxu1 %v15592_v12  ;;  %v8639_v23 = vrot.slane %v8638_v8, 4  ;;  %v8649_v7 = vrot.slane %v8648_v38, 4  ;;  %v8653_v13 = vrot.slane %v8651_v14, 5  ;;  %v15086_v14 = vld [vmem:[%s15350_s6] ss:$0 sm:$0xff] }
 0x4fb   : > { %v8114_v3 = vpop.f32.mrf.mxu2 }
 0x4fc   : > { %v15064_v56 = vadd.f32 %v8114_v3, %v8026_v53  ;;  %v8882_v53 = vpack.c.b16 %v8858_v63, %v8857_v49  ;;  %v8654_v21 = vsel %vm11126_vm5, %v8649_v7, %v8653_v13  ;;  %v8658_v49 = vrot.slane %v8656_v58, 4 }
 0x4fd   : > { %v8661_v63 = vrot.slane %v8659_v50, 5  ;;  %v8689_v58 = vshll.u32 %v10421_v32, 16  ;;  %v8693_v50 = vshrl.u32 %v10421_v32, 16 }
 0x4ff   : > { %v8032_v40 = vpop.f32.mrf.mxu1 }
 0x500   : > { %v8033_v59 = vadd.f32 %v8032_v40, %v7944_v44  ;;  %v8860_v40 = vunpack.c.l.b16 %v8654_v21  ;;  %v8683_v21 = vshll.u32 %v10420_v46, 16 }
 0x503   : > { %v8116_v16 = vpop.f32.mrf.mxu2 }
 0x504   : > { %v15069_v60 = vadd.f32 %v8116_v16, %v8028_v34  ;;  %v8644_v34 = vsel %vm11126_vm5, %v8639_v23, %v8643_v11  ;;  %v8662_v16 = vor.u32 %v8661_v63, %v8658_v49  ;;  %v8685_v63 = vrot.slane %v8683_v21, 5 }
 0x505   : > { %v8859_v44 = vunpack.c.l.b16 %v8644_v34  ;;  %v8680_v34 = vshrl.u32 %v10420_v46, 16  ;;  %v15108_v46 = vpop.f32.mrf.mxu3 }
 0x506   : > { %v8663_v23 = vrot.slane %v8662_v16, 4 }
 0x507   : > { %v8311_v1 = vpop.f32.mrf.mxu1  ;;  %v8883_v57 = vpack.c.b16 %v8860_v40, %v8859_v44  ;;  %v8682_v49 = vrot.slane %v8680_v34, 4 }
 0x508   : > { %8998 = vmatmul.bf16.gmra.mxu2 %v8882_v53  ;;  %v8672_v53 = vor.u32 %v8671_v45, %v8667_v6  ;;  %v8668_v44 = vsel %vm11126_vm5, %v8663_v23, %v8667_v6  ;;  %v8691_v45 = vrot.slane %v8689_v58, 5  ;;  %v8228_v58 = vadd.f32 %v14925_v9, %v14802_v22 }
 0x50a   : > { %8350 = vmatmul.bf16.gmra.mxu1 %v15593_v42  ;;  %v8673_v7 = vrot.slane %v8672_v53, 4  ;;  %v15594_v42 = vld [vmem:[#allocation24_spill] sm:$0xff]  ;;  %v8225_v53 = vadd.f32 %v14894_v2, %v14780_v20 }
 0x50b   : > { %v8119_v12 = vpop.f32.mrf.mxu2 }
 0x50c   : > { %v15074_v3 = vadd.f32 %v8119_v12, %v8031_v39  ;;  %v10419_v39 = vld [vmem:[%s11052_s22 + $0x80] sm:$0x1] }
 0x50d   : > { %v8675_v8 = vshll.u32 %v10419_v39, 16  ;;  %v8695_v39 = vrot.slane %v8693_v50, 4  ;;  %v15112_v50 = vpop.f32.mrf.mxu0 }
 0x50f   : > { %v8313_v47 = vpop.f32.mrf.mxu1  ;;  %v8677_v13 = vrot.slane %v8675_v8, 5  ;;  %v8686_v8 = vor.u32 %v8685_v63, %v8682_v49  ;;  %v8696_v23 = vor.u32 %v8695_v39, %v8691_v45 }
 0x511   : > { %v8687_v20 = vrot.slane %v8686_v8, 4  ;;  %v8697_v2 = vrot.slane %v8696_v23, 4 }
 0x513   : > { %v8121_v62 = vpop.f32.mrf.mxu2 }
 0x514   : > { %v15081_v11 = vadd.f32 %v8121_v62, %v8033_v59  ;;  %v8223_v59 = vadd.f32 %v14876_v35, %v14740_v25  ;;  %v8678_v25 = vsel %vm11126_vm5, %v8673_v7, %v8677_v13  ;;  %v8314_v13 = vadd.f32 %v8313_v47, %v8225_v53  ;;  %v15595_v47 = vld [vmem:[#allocation44_spill] sm:$0xff] }
 0x515   : > { %v8862_v16 = vunpack.c.l.b16 %v8678_v25 }
 0x516   : > { %v8312_v0 = vadd.f32 %v8311_v1, %v8223_v59  ;;  %v10422_v1 = vld [vmem:[%s11052_s22 + $0x8c] sm:$0x1] }
 0x517   : > { %v8316_v38 = vpop.f32.mrf.mxu1  ;;  %v8699_v7 = vshll.u32 %v10422_v1, 16 }
 0x518   : > { %9003 = vmatmul.bf16.gmra.mxu2 %v8883_v57  ;;  %v8861_v57 = vunpack.c.l.b16 %v8668_v44  ;;  %v8317_v44 = vadd.f32 %v8316_v38, %v8228_v58 }
 0x519   : > { %v8701_v34 = vrot.slane %v8699_v7, 5 }
 0x51a   : > { %8355 = vmatmul.bf16.gmra.mxu1 %v15594_v42  ;;  %v8884_v42 = vpack.c.b16 %v8862_v16, %v8861_v57  ;;  %v15123_v16 = vpop.f32.mrf.mxu3 }
 0x51b   : > { %v8964_v12 = vpop.f32.mrf.mxu2  ;;  %v8702_v49 = vsel %vm11126_vm5, %v8697_v2, %v8701_v34  ;;  %v15129_v2 = vpop.f32.mrf.mxu0 }
 0x51c   : > { %v8965_v19 = vadd.f32 %v15086_v14, %v8964_v12  ;;  %v8864_v53 = vunpack.c.l.b16 %v8702_v49  ;;  %v15596_v49 = vld [vmem:[#allocation36_spill] sm:$0xff] }
 0x51e   : > { %v9044_v35 = vadd.f32 %v8965_v19, %v8312_v0  ;;  %v10423_v0 = vld [vmem:[%s11052_s22 + $0x90] sm:$0xf]  ;;  %v10424_v19 = vld [vmem:[%s11052_s22 + $0x94] sm:$0xf] }
 0x51f   : > { %v8318_v40 = vpop.f32.mrf.mxu1  ;;  %v8704_v63 = vshrl.u32 %v10423_v0, 16  ;;  %v8707_v22 = vshll.u32 %v10423_v0, 16  ;;  %v8713_v9 = vshll.u32 %v10424_v19, 16 }
 0x520   : > { %v9076_v62 = vmax.f32 %v9044_v35, 0.0  ;;  %v8692_v35 = vsel %vm11126_vm5, %v8687_v20, %v8691_v45 }
 0x521   : > { %v8863_v38 = vunpack.c.l.b16 %v8692_v35  ;;  %v8709_v45 = vrot.slane %v8707_v22, 5  ;;  %v8715_v23 = vrot.slane %v8713_v9, 5  ;;  %v8233_v35 = vadd.f32 %v14971_v43, %v14852_v33 }
 0x522   : > { %9108 = vst [vmem:[%s15104_s15] sm:$0xff] %v9076_v62  ;;  %v8717_v62 = vshrl.u32 %v10424_v19, 16 }
 0x523   : > { %v8966_v6 = vpop.f32.mrf.mxu2  ;;  %v8885_v20 = vpack.c.b16 %v8864_v53, %v8863_v38 }
 0x524   : > { %v8967_v59 = vadd.f32 %v15086_v14, %v8966_v6  ;;  %v8706_v6 = vrot.slane %v8704_v63, 4  ;;  %v8719_v7 = vrot.slane %v8717_v62, 4  ;;  %v10426_v63 = vld [vmem:[%s11052_s22 + $0x9c] sm:$0xf] }
 0x525   : > { %v8728_v53 = vshrl.u32 %v10426_v63, 16 }
 0x526   : > { %v9045_v32 = vadd.f32 %v8967_v59, %v8314_v13  ;;  %v8230_v13 = vadd.f32 %v14951_v18, %v14836_v36  ;;  %v10425_v59 = vld [vmem:[%s11052_s22 + $0x98] sm:$0x1]  ;;  %v8720_v58 = vor.u32 %v8719_v7, %v8715_v23 }
 0x527   : > { %v8321_v12 = vpop.f32.mrf.mxu1 }
 0x528   : > { %v9077_v21 = vmax.f32 %v9045_v32, 0.0  ;;  %9008 = vmatmul.bf16.gmra.mxu2 %v8884_v42  ;;  %v8319_v42 = vadd.f32 %v8318_v40, %v8230_v13  ;;  %v8721_v18 = vrot.slane %v8720_v58, 4  ;;  %v15132_v40 = vpop.f32.mrf.mxu3  ;;  %v8322_v9 = vadd.f32 %v8321_v12, %v8233_v35 }
 0x52a   : > { %9109 = vst [vmem:[%s15104_s15 + $0x8] sm:$0xff] %v9077_v21  ;;  %8360 = vmatmul.bf16.gmra.mxu1 %v15595_v47  ;;  %v8710_v21 = vor.u32 %v8709_v45, %v8706_v6  ;;  %v8723_v47 = vshll.u32 %v10425_v59, 16  ;;  %v8731_v6 = vshll.u32 %v10426_v63, 16 }
 0x52b   : > { %v8969_v25 = vpop.f32.mrf.mxu2 }
 0x52c   : > { %v8970_v39 = vadd.f32 %v15086_v14, %v8969_v25  ;;  %v8711_v36 = vrot.slane %v8710_v21, 4  ;;  %v8725_v25 = vrot.slane %v8723_v47, 5  ;;  %v10428_v21 = vld [vmem:[%s11052_s22 + $0xa4] sm:$0x1] }
 0x52d   : > { %v8747_v35 = vshll.u32 %v10428_v21, 16 }
 0x52e   : > { %v9046_v57 = vadd.f32 %v8970_v39, %v8317_v44  ;;  %v10427_v39 = vld [vmem:[%s11052_s22 + $0xa0] sm:$0xf]  ;;  %v8726_v38 = vsel %vm11126_vm5, %v8721_v18, %v8725_v25 }
 0x52f   : > { %v8323_v1 = vpop.f32.mrf.mxu1  ;;  %v8737_v33 = vshll.u32 %v10427_v39, 16  ;;  %v8741_v43 = vshrl.u32 %v10427_v39, 16  ;;  %v8866_v59 = vunpack.c.l.b16 %v8726_v38 }
 0x530   : > { %v9078_v8 = vmax.f32 %v9046_v57, 0.0  ;;  %v8716_v57 = vsel %vm11126_vm5, %v8711_v36, %v8715_v23  ;;  %v15151_v58 = vpop.f32.mrf.mxu3 }
 0x531   : > { %v8865_v12 = vunpack.c.l.b16 %v8716_v57  ;;  %v8743_v23 = vrot.slane %v8741_v43, 4  ;;  %v10430_v57 = vld [vmem:[%s11052_s22 + $0xac] sm:$0xf] }
 0x532   : > { %9110 = vst [vmem:[%s15104_s15 + $0x10] sm:$0xff] %v9078_v8  ;;  %v15145_v8 = vpop.f32.mrf.mxu0  ;;  %v8765_v43 = vshrl.u32 %v10430_v57, 16 }
 0x533   : > { %v8971_v32 = vpop.f32.mrf.mxu2  ;;  %v8886_v36 = vpack.c.b16 %v8866_v59, %v8865_v12 }
 0x534   : > { %v8972_v34 = vadd.f32 %v15086_v14, %v8971_v32  ;;  %v8733_v32 = vrot.slane %v8731_v6, 5 }
 0x536   : > { %v9047_v0 = vadd.f32 %v8972_v34, %v8319_v42  ;;  %v8730_v42 = vrot.slane %v8728_v53, 4  ;;  %v8235_v34 = vadd.f32 %v15005_v28, %v14881_v30 }
 0x537   : > { %v8326_v19 = vpop.f32.mrf.mxu1 }
 0x538   : > { %v9079_v44 = vmax.f32 %v9047_v0, 0.0  ;;  %9013 = vmatmul.bf16.gmra.mxu2 %v8885_v20  ;;  %v8739_v20 = vrot.slane %v8737_v33, 5  ;;  %v8324_v0 = vadd.f32 %v8323_v1, %v8235_v34  ;;  %v8734_v18 = vor.u32 %v8733_v32, %v8730_v42  ;;  %v15163_v12 = vpop.f32.mrf.mxu3 }
 0x539   : > { %v8238_v1 = vadd.f32 %v15022_v31, %v14897_v4  ;;  %v8761_v33 = vshll.u32 %v10430_v57, 16  ;;  %v8767_v34 = vrot.slane %v8765_v43, 4 }
 0x53a   : > { %9111 = vst [vmem:[%s15104_s15 + $0x18] sm:$0xff] %v9079_v44  ;;  %8365 = vmatmul.bf16.gmra.mxu1 %v15596_v49  ;;  %v8744_v25 = vor.u32 %v8743_v23, %v8739_v20  ;;  %v15154_v39 = vpop.f32.mrf.mxu0  ;;  %v8735_v28 = vrot.slane %v8734_v18, 4 }
 0x53b   : > { %v8974_v22 = vpop.f32.mrf.mxu2  ;;  %v8763_v23 = vrot.slane %v8761_v33, 5  ;;  %v10433_v33 = vld [vmem:[%s11052_s22 + $0xb8] sm:$0xf] }
 0x53c   : > { %v8975_v62 = vadd.f32 %v15086_v14, %v8974_v22  ;;  %v8745_v22 = vrot.slane %v8744_v25, 4  ;;  %v8740_v4 = vsel %vm11126_vm5, %v8735_v28, %v8739_v20 }
 0x53d   : > { %v8768_v25 = vor.u32 %v8767_v34, %v8763_v23 }
 0x53e   : > { %v9048_v45 = vadd.f32 %v8975_v62, %v8322_v9  ;;  %v8749_v9 = vrot.slane %v8747_v35, 5  ;;  %v10429_v62 = vld [vmem:[%s11052_s22 + $0xa8] sm:$0xf] }
 0x53f   : > { %v8328_v7 = vpop.f32.mrf.mxu1  ;;  %v8752_v53 = vshrl.u32 %v10429_v62, 16  ;;  %v8755_v6 = vshll.u32 %v10429_v62, 16 }
 0x540   : > { %v9080_v13 = vmax.f32 %v9048_v45, 0.0  ;;  %v8327_v45 = vadd.f32 %v8326_v19, %v8238_v1  ;;  %v15178_v62 = vpop.f32.mrf.mxu3 }
 0x541   : > { %v8754_v42 = vrot.slane %v8752_v53, 4  ;;  %v8757_v32 = vrot.slane %v8755_v6, 5 }
 0x542   : > { %9112 = vst [vmem:[%s15104_s15 + $0x20] sm:$0xff] %v9080_v13 }
 0x543   : > { %v8976_v47 = vpop.f32.mrf.mxu2  ;;  %v8758_v18 = vor.u32 %v8757_v32, %v8754_v42  ;;  %v8785_v42 = vshll.u32 %v10433_v33, 16  ;;  %v15598_v32 = vld [vmem:[#allocation41_spill] sm:$0xff] }
 0x544   : > { %v8977_v44 = vadd.f32 %v15086_v14, %v8976_v47  ;;  %v8867_v47 = vunpack.c.l.b16 %v8740_v4 }
 0x546   : > { %v9049_v49 = vadd.f32 %v8977_v44, %v8324_v0  ;;  %v10431_v0 = vld [vmem:[%s11052_s22 + $0xb0] sm:$0x1]  ;;  %v15170_v44 = vpop.f32.mrf.mxu0 }
 0x547   : > { %v8331_v63 = vpop.f32.mrf.mxu1  ;;  %v8771_v35 = vshll.u32 %v10431_v0, 16 }
 0x548   : > { %v9081_v30 = vmax.f32 %v9049_v49, 0.0  ;;  %9018 = vmatmul.bf16.gmra.mxu2 %v8886_v36  ;;  %v8240_v36 = vadd.f32 %v15037_v5, %v14922_v24  ;;  %v8759_v24 = vrot.slane %v8758_v18, 4  ;;  %v8769_v5 = vrot.slane %v8768_v25, 4  ;;  %v15196_v25 = vpop.f32.mrf.mxu3 }
 0x54a   : > { %9113 = vst [vmem:[%s15104_s15 + $0x28] sm:$0xff] %v9081_v30  ;;  %8370 = vmatmul.bf16.gmra.mxu1 %v14704_v27  ;;  %v8750_v27 = vsel %vm11126_vm5, %v8745_v22, %v8749_v9  ;;  %v8329_v49 = vadd.f32 %v8328_v7, %v8240_v36  ;;  %v15597_v22 = vld [vmem:[#allocation37_spill] sm:$0xff]  ;;  %v10432_v7 = vld [vmem:[%s11052_s22 + $0xb4] sm:$0xf] }
 0x54b   : > { %v8979_v38 = vpop.f32.mrf.mxu2  ;;  %v8868_v19 = vunpack.c.l.b16 %v8750_v27  ;;  %v8154_v9 = vadd.f32 %v15108_v46, %v15597_v22  ;;  %v8764_v46 = vsel %vm11126_vm5, %v8759_v24, %v8763_v23  ;;  %v8776_v4 = vshrl.u32 %v10432_v7, 16 }
 0x54c   : > { %v8980_v13 = vadd.f32 %v15086_v14, %v8979_v38  ;;  %v8773_v38 = vrot.slane %v8771_v35, 5  ;;  %v8869_v23 = vunpack.c.l.b16 %v8764_v46 }
 0x54d   : > { %v8887_v28 = vpack.c.b16 %v8868_v19, %v8867_v47  ;;  %v8243_v6 = vadd.f32 %v15112_v50, %v8154_v9  ;;  %v8779_v50 = vshll.u32 %v10432_v7, 16  ;;  %v8778_v19 = vrot.slane %v8776_v4, 4  ;;  %v10436_v4 = vld [vmem:[%s11052_s22 + $0xc4] sm:$0xf] }
 0x54e   : > { %v9050_v31 = vadd.f32 %v8980_v13, %v8327_v45  ;;  %v8774_v13 = vsel %vm11126_vm5, %v8769_v5, %v8773_v38  ;;  %v15189_v27 = vpop.f32.mrf.mxu0  ;;  %v15599_v5 = vld [vmem:[#allocation40_spill] sm:$0xff] }
 0x54f   : > { %v8333_v59 = vpop.f32.mrf.mxu1  ;;  %v8332_v43 = vadd.f32 %v8331_v63, %v8243_v6  ;;  %v8156_v63 = vadd.f32 %v15123_v16, %v15598_v32  ;;  %v8870_v47 = vunpack.c.l.b16 %v8774_v13  ;;  %v8781_v36 = vrot.slane %v8779_v50, 5  ;;  %v10435_v13 = vld [vmem:[%s11052_s22 + $0xc0] sm:$0xf] }
 0x550   : > { %v9082_v21 = vmax.f32 %v9050_v31, 0.0  ;;  %v8159_v38 = vadd.f32 %v15132_v40, %v15599_v5  ;;  %v15214_v40 = vpop.f32.mrf.mxu3  ;;  %v9909_v50 = vrot.slane %v14996_v55, 9  ;;  %v10437_v5 = vld [vmem:[%s11052_s22 + $0xc8] sm:$0x1] }
 0x551   : > { %v8245_v35 = vadd.f32 %v15129_v2, %v8156_v63  ;;  %v8888_v22 = vpack.c.b16 %v8870_v47, %v8869_v23  ;;  %v8782_v9 = vor.u32 %v8781_v36, %v8778_v19  ;;  %v8809_v23 = vshll.u32 %v10436_v4, 16  ;;  %v15600_v19 = vld [vmem:[#allocation13_spill] sm:$0xff] }
 0x552   : > { %9114 = vst [vmem:[%s15104_s15 + $0x30] sm:$0xff] %v9082_v21  ;;  %v8248_v46 = vadd.f32 %v15145_v8, %v8159_v38  ;;  %v8813_v47 = vshrl.u32 %v10436_v4, 16  ;;  %v8161_v55 = vadd.f32 %v15151_v58, %v15600_v19 }
 0x553   : > { %v8981_v20 = vpop.f32.mrf.mxu2 }
 0x554   : > { %v8982_v30 = vadd.f32 %v15086_v14, %v8981_v20  ;;  %v8787_v20 = vrot.slane %v8785_v42, 5  ;;  %v8250_v58 = vadd.f32 %v15154_v39, %v8161_v55 }
 0x556   : > { %v9051_v1 = vadd.f32 %v8982_v30, %v8329_v49  ;;  %v10434_v49 = vld [vmem:[%s11052_s22 + $0xbc] sm:$0x1]  ;;  %v8334_v30 = vadd.f32 %v8333_v59, %v8245_v35  ;;  %v6429_v59 = vrot.slane %v14987_v52, 5  ;;  %v6432_v52 = vrot.slane %v15010_v26, 5  ;;  %s10723_s22 = sshll.u32 %s10982_s28, 8  ;;  %s9141_s28 = scalar_lea.sflag [#allocation5], %s286_s14 }
 0x557   : > { %v8336_v57 = vpop.f32.mrf.mxu1  ;;  %v8795_v24 = vshll.u32 %v10434_v49, 16  ;;  %s9152_s18 = scalar_lea.hbm %s15351_s7, %s10723_s22 }
 0x558   : > { %v9083_v53 = vmax.f32 %v9051_v1, 0.0  ;;  %9023 = vmatmul.bf16.gmra.mxu2 %v8887_v28  ;;  %v6431_v42 = vrot.slane %v6429_v59, 4  ;;  %v6430_v36 = vsel %vm11117_vm4, %v9909_v50, %v6429_v59  ;;  %s9155_s20 = sshll.u32 %s9152_s18, 4  ;;  %s9156_s20 = int_to_ptr.hbm [resolvable:$true] %s9155_s20 }
 0x559   : > { %s10861_s21 = sshra.s32 %s9156_s20, 4  ;;  %s10862_s21 = int_to_ptr.hbm [resolvable:$true] %s10861_s21 }
 0x55a   : > { %9115 = vst [vmem:[%s15104_s15 + $0x38] sm:$0xff] %v9083_v53  ;;  %8375 = vmatmul.bf16.gmra.mxu1 %v14775_v17  ;;  %v8789_v17 = vshrl.u32 %v10433_v33, 16  ;;  %v15204_v53 = vpop.f32.mrf.mxu0  ;;  %v8783_v33 = vrot.slane %v8782_v9, 4  ;;  %v8815_v9 = vrot.slane %v8813_v47, 4  ;;  %v15603_v47 = vld [vmem:[#allocation11_spill] sm:$0xff]  ;;  %s10863_s23 = scalar_lea.hbm %s10862_s21, 256  ;;  %p10868_p3 = scmp.lt.s32.totalorder %s10862_s21, %s15351_s7 }
 0x55b   : > { %v8984_v45 = vpop.f32.mrf.mxu2  ;;  %v8166_v19 = vadd.f32 %v15178_v62, %v15603_v47  ;;  %p10864_p0 = scmp.ne.s32.totalorder %s10862_s21, %s10863_s23  ;;  %p10869_p4 = scmp.lt.s32.totalorder %s10867_s9, %s10863_s23 }
 0x55c   : > { %v8985_v31 = vadd.f32 %v15086_v14, %v8984_v45  ;;  %v8791_v18 = vrot.slane %v8789_v17, 4  ;;  %v8797_v45 = vrot.slane %v8795_v24, 5  ;;  %v8337_v17 = vadd.f32 %v8336_v57, %v8248_v46 }
 0x55d   : > { %v8788_v63 = vsel %vm11126_vm5, %v8783_v33, %v8787_v20  ;;  %v8173_v33 = vpop.f32.mrf.mxu3  ;;  %v8819_v46 = vshll.u32 %v10437_v5, 16  ;;  %p10865_p1 = pnand %p10864_p0, %p10999_p5  ;;  %p10870_p7 = por %p10869_p4, %p10868_p3 }
 0x55e   : > { %v9052_v34 = vadd.f32 %v8985_v31, %v8332_v43  ;;  %v8792_v1 = vor.u32 %v8791_v18, %v8787_v20  ;;  %v6433_v20 = vsel %vm11117_vm4, %v6431_v42, %v6432_v52  ;;  %v8871_v49 = vunpack.c.l.b16 %v8788_v63 }
 0x55f   : > { %v15194_v21 = vpop.f32.mrf.mxu1  ;;  %v6977_v24 = vunpack.c.l.b16 %v6433_v20  ;;  %p10866_p2 = pneg %p10865_p1 }
 0x560   : > { %v9084_v0 = vmax.f32 %v9052_v34, 0.0  ;;  %v8793_v43 = vrot.slane %v8792_v1, 4  ;;  %v8803_v34 = vshll.u32 %v10435_v13, 16  ;;  %v6976_v1 = vunpack.c.l.b16 %v6430_v36 }
 0x561   : > { %p10871_p8 = pnand %p10870_p7, %p10866_p2 }
 0x562   : > { %9116 = vst [vmem:[%s15104_s15 + $0x40] sm:$0xff] %v9084_v0  ;;  %v8798_v8 = vsel %vm11126_vm5, %v8793_v43, %v8797_v45  ;;  %v15229_v18 = vpop.f32.mrf.mxu0  ;;  %v6993_v39 = vpack.c.b16 %v6977_v24, %v6976_v1 }
 0x563   : > { %v8986_v28 = vpop.f32.mrf.mxu2 }
 0x564   : > { %v8987_v16 = vadd.f32 %v15086_v14, %v8986_v28 }
 0x566   : > { %v9053_v6 = vadd.f32 %v8987_v16, %v8334_v30  ;;  %v8872_v30 = vunpack.c.l.b16 %v8798_v8  ;;  %v8811_v16 = vrot.slane %v8809_v23, 5 }
 0x567   : > { %v15206_v2 = vpop.f32.mrf.mxu1 }
 0x568   : > { %v9085_v7 = vmax.f32 %v9053_v6, 0.0  ;;  %9028 = vmatmul.bf16.gmra.mxu2 %v8888_v22  ;;  %v8805_v22 = vrot.slane %v8803_v34, 5  ;;  %v8339_v6 = vadd.f32 %v15194_v21, %v8250_v58  ;;  %v8816_v45 = vor.u32 %v8815_v9, %v8811_v16 }
 0x56a   : > { %9117 = vst [vmem:[%s15104_s15 + $0x48] sm:$0xff] %v9085_v7  ;;  %8380 = vmatmul.bf16.gmra.mxu1 %v14829_v37  ;;  %v8800_v37 = vshrl.u32 %v10435_v13, 16  ;;  %v8889_v7 = vpack.c.b16 %v8872_v30, %v8871_v49  ;;  %v15602_v13 = vld [vmem:[#allocation17_spill] sm:$0xff]  ;;  %v8262_v21 = vpop.f32.mrf.mxu0 }
 0x56b   : > { %v8989_v31 = vpop.f32.mrf.mxu2  ;;  %v8164_v4 = vadd.f32 %v15163_v12, %v15602_v13 }
 0x56c   : > { %v8990_v32 = vadd.f32 %v15086_v14, %v8989_v31  ;;  %v8802_v28 = vrot.slane %v8800_v37, 4 }
 0x56d   : > { %v8253_v63 = vadd.f32 %v15170_v44, %v8164_v4  ;;  %v8174_v4 = vadd.f32 %v8173_v33, %v14861_v51 }
 0x56e   : > { %v9054_v0 = vadd.f32 %v8990_v32, %v8337_v17  ;;  %v8806_v43 = vor.u32 %v8805_v22, %v8802_v28  ;;  %v8817_v17 = vrot.slane %v8816_v45, 4  ;;  %v8821_v32 = vrot.slane %v8819_v46, 5  ;;  %v15604_v22 = vld [vmem:[#allocation10_spill] sm:$0xff] }
 0x56f   : > { %v8343_v26 = vpop.f32.mrf.mxu1  ;;  %v8342_v37 = vadd.f32 %v15206_v2, %v8253_v63  ;;  %v8255_v2 = vadd.f32 %v15189_v27, %v8166_v19 }
 0x570   : > { %v9086_v35 = vmax.f32 %v9054_v0, 0.0  ;;  %v8807_v52 = vrot.slane %v8806_v43, 4  ;;  %v8822_v23 = vsel %vm11126_vm5, %v8817_v17, %v8821_v32  ;;  %v8175_v0 = vpop.f32.mrf.mxu3  ;;  %v15605_v32 = vld [vmem:[#allocation42_spill] sm:$0xff] }
 0x571   : > { %v8874_v20 = vunpack.c.l.b16 %v8822_v23  ;;  %v8344_v30 = vadd.f32 %v8343_v26, %v8255_v2  ;;  %v8171_v26 = vadd.f32 %v15214_v40, %v14841_v10  ;;  %v8263_v40 = vadd.f32 %v8262_v21, %v8174_v4  ;;  %v15606_v21 = vld [vmem:[#allocation43_spill] sm:$0xff] }
 0x572   : > { %9118 = vst [vmem:[%s15104_s15 + $0x50] sm:$0xff] %v9086_v35  ;;  %v8812_v12 = vsel %vm11126_vm5, %v8807_v52, %v8811_v16  ;;  %v8264_v49 = vpop.f32.mrf.mxu0  ;;  %v8169_v16 = vadd.f32 %v15196_v25, %v15604_v22  ;;  %v8176_v63 = vadd.f32 %v8175_v0, %v15605_v32 }
 0x573   : > { %v8991_v38 = vpop.f32.mrf.mxu2  ;;  %v8873_v36 = vunpack.c.l.b16 %v8812_v12  ;;  %v8260_v43 = vadd.f32 %v15229_v18, %v8171_v26 }
 0x574   : > { %v8992_v59 = vadd.f32 %v15086_v14, %v8991_v38  ;;  %v8258_v24 = vadd.f32 %v15204_v53, %v8169_v16  ;;  %v8265_v51 = vadd.f32 %v8264_v49, %v8176_v63  ;;  %v15607_v49 = vld [vmem:[#allocation46_spill] sm:$0xff] }
 0x575   : > { %v8890_v41 = vpack.c.b16 %v8874_v20, %v8873_v36 }
 0x576   : > { %v9055_v31 = vadd.f32 %v8992_v59, %v8339_v6 }
 0x577   : > { %v8346_v50 = vpop.f32.mrf.mxu1 }
 0x578   : > { %v9087_v42 = vmax.f32 %v9055_v31, 0.0  ;;  %9033 = vmatmul.bf16.gmra.mxu2 %v8889_v7  ;;  %v8178_v1 = vpop.f32.mrf.mxu3  ;;  %v8347_v5 = vadd.f32 %v8346_v50, %v8258_v24 }
 0x579   : > { %v8179_v19 = vadd.f32 %v8178_v1, %v15606_v21 }
 0x57a   : > { %9119 = vst [vmem:[%s15104_s15 + $0x58] sm:$0xff] %v9087_v42  ;;  %8385 = vmatmul.bf16.gmra.mxu1 %v6993_v39  ;;  %v8267_v6 = vpop.f32.mrf.mxu0 }
 0x57b   : > { %v8994_v8 = vpop.f32.mrf.mxu2  ;;  %v8268_v20 = vadd.f32 %v8267_v6, %v8179_v19 }
 0x57c   : > { %v8995_v34 = vadd.f32 %v15086_v14, %v8994_v8 }
 0x57e   : > { %v9056_v55 = vadd.f32 %v8995_v34, %v8342_v37 }
 0x57f   : > { %v8348_v44 = vpop.f32.mrf.mxu1 }
 0x580   : > { %v9088_v57 = vmax.f32 %v9056_v55, 0.0  ;;  %v8180_v45 = vpop.f32.mrf.mxu3  ;;  %v8349_v13 = vadd.f32 %v8348_v44, %v8260_v43 }
 0x582   : > { %9120 = vst [vmem:[%s15104_s15 + $0x60] sm:$0xff] %v9088_v57  ;;  %v8269_v50 = vpop.f32.mrf.mxu0 }
 0x583   : > { %v8996_v35 = vpop.f32.mrf.mxu2 }
 0x584   : > { %v8997_v28 = vadd.f32 %v15086_v14, %v8996_v35 }
 0x586   : > { %v9057_v62 = vadd.f32 %v8997_v28, %v8344_v30  ;;  %v8181_v28 = vadd.f32 %v8180_v45, %v15607_v49 }
 0x587   : > { %v8351_v9 = vpop.f32.mrf.mxu1 }
 0x588   : > { %v9089_v58 = vmax.f32 %v9057_v62, 0.0  ;;  %9038 = vmatmul.bf16.gmra.mxu2 %v8890_v41  ;;  %v8352_v52 = vadd.f32 %v8351_v9, %v8263_v40  ;;  %v8183_v18 = vpop.f32.mrf.mxu3  ;;  %v8270_v9 = vadd.f32 %v8269_v50, %v8181_v28 }
 0x58a   : > { %9121 = vst [vmem:[%s15104_s15 + $0x68] sm:$0xff] %v9089_v58  ;;  %v8272_v12 = vpop.f32.mrf.mxu0 }
 0x58b   : > { %v8999_v27 = vpop.f32.mrf.mxu2 }
 0x58c   : > { %v9000_v38 = vadd.f32 %v15086_v14, %v8999_v27  ;;  %v15608_v27 = vld [vmem:[#allocation47_spill] sm:$0xff] }
 0x58e   : > { %v9058_v59 = vadd.f32 %v9000_v38, %v8347_v5  ;;  %v8184_v5 = vadd.f32 %v8183_v18, %v15608_v27  ;;  %v15610_v18 = vld [vmem:[#allocation32_spill] sm:$0xff] }
 0x58f   : > { %v8353_v25 = vpop.f32.mrf.mxu1 }
 0x590   : > { %v9090_v7 = vmax.f32 %v9058_v59, 0.0  ;;  %v8354_v23 = vadd.f32 %v8353_v25, %v8265_v51  ;;  %v8185_v44 = vpop.f32.mrf.mxu3  ;;  %v8273_v25 = vadd.f32 %v8272_v12, %v8184_v5 }
 0x592   : > { %9122 = vst [vmem:[%s15104_s15 + $0x70] sm:$0xff] %v9090_v7  ;;  %v8274_v2 = vpop.f32.mrf.mxu0 }
 0x593   : > { %v9001_v46 = vpop.f32.mrf.mxu2 }
 0x594   : > { %v9002_v53 = vadd.f32 %v15086_v14, %v9001_v46 }
 0x596   : > { %v9059_v31 = vadd.f32 %v9002_v53, %v8349_v13  ;;  %v15609_v13 = vld [vmem:[#allocation53_spill] sm:$0xff] }
 0x597   : > { %v8356_v39 = vpop.f32.mrf.mxu1  ;;  %v8186_v53 = vadd.f32 %v8185_v44, %v15609_v13 }
 0x598   : > { %v9091_v10 = vmax.f32 %v9059_v31, 0.0  ;;  %v8357_v35 = vadd.f32 %v8356_v39, %v8268_v20  ;;  %v8188_v62 = vpop.f32.mrf.mxu3 }
 0x599   : > { %v8189_v32 = vadd.f32 %v8188_v62, %v15610_v18 }
 0x59a   : > { %9123 = vst [vmem:[%s15104_s15 + $0x78] sm:$0xff] %v9091_v10  ;;  %v8277_v38 = vpop.f32.mrf.mxu0  ;;  %v8275_v10 = vadd.f32 %v8274_v2, %v8186_v53 }
 0x59b   : > { %v9004_v42 = vpop.f32.mrf.mxu2 }
 0x59c   : > { %v9005_v17 = vadd.f32 %v15086_v14, %v9004_v42 }
 0x59e   : > { %v9060_v8 = vadd.f32 %v9005_v17, %v8352_v52 }
 0x59f   : > { %v8358_v37 = vpop.f32.mrf.mxu1 }
 0x5a0   : > { %v9092_v34 = vmax.f32 %v9060_v8, 0.0  ;;  %v8359_v1 = vadd.f32 %v8358_v37, %v8270_v9  ;;  %v8190_v7 = vpop.f32.mrf.mxu3 }
 0x5a2   : > { %9124 = vst [vmem:[%s15104_s15 + $0x80] sm:$0xff] %v9092_v34  ;;  %v8279_v31 = vpop.f32.mrf.mxu0  ;;  %v8278_v34 = vadd.f32 %v8277_v38, %v8189_v32 }
 0x5a3   : > { %v9006_v33 = vpop.f32.mrf.mxu2 }
 0x5a4   : > { %v9007_v47 = vadd.f32 %v15086_v14, %v9006_v33 }
 0x5a6   : > { %v9061_v55 = vadd.f32 %v9007_v47, %v8354_v23  ;;  %v8191_v47 = vadd.f32 %v8190_v7, %v15008_v54 }
 0x5a7   : > { %v8361_v57 = vpop.f32.mrf.mxu1 }
 0x5a8   : > { %v9093_v36 = vmax.f32 %v9061_v55, 0.0  ;;  %v8362_v45 = vadd.f32 %v8361_v57, %v8273_v25  ;;  %v8193_v17 = vpop.f32.mrf.mxu3  ;;  %v8280_v44 = vadd.f32 %v8279_v31, %v8191_v47 }
 0x5aa   : > { %9125 = vst [vmem:[%s15104_s15 + $0x88] sm:$0xff] %v9093_v36  ;;  %v8282_v37 = vpop.f32.mrf.mxu0 }
 0x5ab   : > { %v9009_v0 = vpop.f32.mrf.mxu2 }
 0x5ac   : > { %v9010_v30 = vadd.f32 %v15086_v14, %v9009_v0 }
 0x5ae   : > { %v9062_v41 = vadd.f32 %v9010_v30, %v8357_v35  ;;  %v8194_v35 = vadd.f32 %v8193_v17, %v15025_v15 }
 0x5af   : > { %v8363_v22 = vpop.f32.mrf.mxu1 }
 0x5b0   : > { %v9094_v16 = vmax.f32 %v9062_v41, 0.0  ;;  %v8364_v42 = vadd.f32 %v8363_v22, %v8275_v10  ;;  %v8195_v19 = vpop.f32.mrf.mxu3  ;;  %v8283_v41 = vadd.f32 %v8282_v37, %v8194_v35 }
 0x5b1   : > { %v8196_v62 = vadd.f32 %v8195_v19, %v15035_v61 }
 0x5b2   : > { %9126 = vst [vmem:[%s15104_s15 + $0x90] sm:$0xff] %v9094_v16  ;;  %v8284_v36 = vpop.f32.mrf.mxu0 }
 0x5b3   : > { %v9011_v58 = vpop.f32.mrf.mxu2  ;;  %v8285_v27 = vadd.f32 %v8284_v36, %v8196_v62 }
 0x5b4   : > { %v9012_v24 = vadd.f32 %v15086_v14, %v9011_v58 }
 0x5b6   : > { %v9063_v26 = vadd.f32 %v9012_v24, %v8359_v1 }
 0x5b7   : > { %v8366_v6 = vpop.f32.mrf.mxu1 }
 0x5b8   : > { %v9095_v59 = vmax.f32 %v9063_v26, 0.0  ;;  %v8367_v33 = vadd.f32 %v8366_v6, %v8278_v34  ;;  %v8198_v28 = vpop.f32.mrf.mxu3 }
 0x5b9   : > { %v8199_v6 = vadd.f32 %v8198_v28, %v15044_v48 }
 0x5ba   : > { %9127 = vst [vmem:[%s15104_s15 + $0x98] sm:$0xff] %v9095_v59  ;;  %v8287_v9 = vpop.f32.mrf.mxu0 }
 0x5bb   : > { %v9014_v43 = vpop.f32.mrf.mxu2  ;;  %v8288_v61 = vadd.f32 %v8287_v9, %v8199_v6 }
 0x5bc   : > { %v9015_v46 = vadd.f32 %v15086_v14, %v9014_v43 }
 0x5be   : > { %v9064_v4 = vadd.f32 %v9015_v46, %v8362_v45 }
 0x5bf   : > { %v8368_v50 = vpop.f32.mrf.mxu1 }
 0x5c0   : > { %v9096_v39 = vmax.f32 %v9064_v4, 0.0  ;;  %v8369_v20 = vadd.f32 %v8368_v50, %v8280_v44  ;;  %v8200_v5 = vpop.f32.mrf.mxu3 }
 0x5c1   : > { %v8201_v4 = vadd.f32 %v8200_v5, %v15053_v29 }
 0x5c2   : > { %9128 = vst [vmem:[%s15104_s15 + $0xa0] sm:$0xff] %v9096_v39  ;;  %v8289_v25 = vpop.f32.mrf.mxu0 }
 0x5c3   : > { %v9016_v40 = vpop.f32.mrf.mxu2  ;;  %v8290_v10 = vadd.f32 %v8289_v25, %v8201_v4 }
 0x5c4   : > { %v9017_v52 = vadd.f32 %v15086_v14, %v9016_v40 }
 0x5c6   : > { %v9065_v63 = vadd.f32 %v9017_v52, %v8364_v42 }
 0x5c7   : > { %v8371_v12 = vpop.f32.mrf.mxu1 }
 0x5c8   : > { %v9097_v8 = vmax.f32 %v9065_v63, 0.0  ;;  %v8372_v22 = vadd.f32 %v8371_v12, %v8283_v41  ;;  %v8203_v53 = vpop.f32.mrf.mxu3 }
 0x5c9   : > { %v8204_v17 = vadd.f32 %v8203_v53, %v15064_v56 }
 0x5ca   : > { %9129 = vst [vmem:[%s15104_s15 + $0xa8] sm:$0xff] %v9097_v8  ;;  %v8292_v50 = vpop.f32.mrf.mxu0 }
 0x5cb   : > { %v9019_v51 = vpop.f32.mrf.mxu2  ;;  %v8293_v8 = vadd.f32 %v8292_v50, %v8204_v17 }
 0x5cc   : > { %v9020_v23 = vadd.f32 %v15086_v14, %v9019_v51 }
 0x5ce   : > { %v9066_v21 = vadd.f32 %v9020_v23, %v8367_v33 }
 0x5cf   : > { %v8373_v2 = vpop.f32.mrf.mxu1 }
 0x5d0   : > { %v9098_v55 = vmax.f32 %v9066_v21, 0.0  ;;  %v8374_v38 = vadd.f32 %v8373_v2, %v8285_v27  ;;  %v8205_v32 = vpop.f32.mrf.mxu3 }
 0x5d1   : > { %v8206_v33 = vadd.f32 %v8205_v32, %v15069_v60 }
 0x5d2   : > { %9130 = vst [vmem:[%s15104_s15 + $0xb0] sm:$0xff] %v9098_v55  ;;  %v8294_v12 = vpop.f32.mrf.mxu0 }
 0x5d3   : > { %v9021_v57 = vpop.f32.mrf.mxu2  ;;  %v8295_v19 = vadd.f32 %v8294_v12, %v8206_v33 }
 0x5d4   : > { %v9022_v0 = vadd.f32 %v15086_v14, %v9021_v57 }
 0x5d6   : > { %v9067_v30 = vadd.f32 %v9022_v0, %v8369_v20 }
 0x5d7   : > { %v8376_v1 = vpop.f32.mrf.mxu1 }
 0x5d8   : > { %v9099_v49 = vmax.f32 %v9067_v30, 0.0  ;;  %v8377_v46 = vadd.f32 %v8376_v1, %v8288_v61  ;;  %v8208_v21 = vpop.f32.mrf.mxu3 }
 0x5d9   : > { %v8209_v36 = vadd.f32 %v8208_v21, %v15074_v3 }
 0x5da   : > { %9131 = vst [vmem:[%s15104_s15 + $0xb8] sm:$0xff] %v9099_v49  ;;  %v8297_v57 = vpop.f32.mrf.mxu0 }
 0x5db   : > { %v9024_v54 = vpop.f32.mrf.mxu2  ;;  %v8298_v35 = vadd.f32 %v8297_v57, %v8209_v36 }
 0x5dc   : > { %v9025_v16 = vadd.f32 %v15086_v14, %v9024_v54 }
 0x5de   : > { %v9068_v58 = vadd.f32 %v9025_v16, %v8372_v22 }
 0x5df   : > { %v8378_v43 = vpop.f32.mrf.mxu1 }
 0x5e0   : > { %v9100_v24 = vmax.f32 %v9068_v58, 0.0  ;;  %v8379_v42 = vadd.f32 %v8378_v43, %v8290_v10  ;;  %v8210_v60 = vpop.f32.mrf.mxu3 }
 0x5e1   : > { %v8211_v41 = vadd.f32 %v8210_v60, %v15081_v11 }
 0x5e2   : > { %9132 = vst [vmem:[%s15104_s15 + $0xc0] sm:$0xff] %v9100_v24  ;;  %v8299_v22 = vpop.f32.mrf.mxu0 }
 0x5e3   : > { %v9026_v15 = vpop.f32.mrf.mxu2  ;;  %v8300_v62 = vadd.f32 %v8299_v22, %v8211_v41 }
 0x5e4   : > { %v9027_v26 = vadd.f32 %v15086_v14, %v9026_v15 }
 0x5e6   : > { %v9069_v59 = vadd.f32 %v9027_v26, %v8374_v38 }
 0x5e7   : > { %v8381_v48 = vpop.f32.mrf.mxu1 }
 0x5e8   : > { %v9101_v7 = vmax.f32 %v9069_v59, 0.0  ;;  %v8382_v29 = vadd.f32 %v8381_v48, %v8293_v8 }
 0x5ea   : > { %9133 = vst [vmem:[%s15104_s15 + $0xc8] sm:$0xff] %v9101_v7 }
 0x5eb   : > { %v9029_v45 = vpop.f32.mrf.mxu2 }
 0x5ec   : > { %v9030_v13 = vadd.f32 %v15086_v14, %v9029_v45 }
 0x5ee   : > { %v9070_v31 = vadd.f32 %v9030_v13, %v8377_v46 }
 0x5ef   : > { %v8383_v51 = vpop.f32.mrf.mxu1 }
 0x5f0   : > { %v9102_v39 = vmax.f32 %v9070_v31, 0.0  ;;  %v8384_v55 = vadd.f32 %v8383_v51, %v8295_v19 }
 0x5f2   : > { %9134 = vst [vmem:[%s15104_s15 + $0xd0] sm:$0xff] %v9102_v39 }
 0x5f3   : > { %v9031_v40 = vpop.f32.mrf.mxu2 }
 0x5f4   : > { %v9032_v52 = vadd.f32 %v15086_v14, %v9031_v40 }
 0x5f6   : > { %v9071_v18 = vadd.f32 %v9032_v52, %v8379_v42 }
 0x5f7   : > { %v8386_v0 = vpop.f32.mrf.mxu1 }
 0x5f8   : > { %v9103_v63 = vmax.f32 %v9071_v18, 0.0  ;;  %v8387_v49 = vadd.f32 %v8386_v0, %v8298_v35 }
 0x5fa   : > { %9135 = vst [vmem:[%s15104_s15 + $0xd8] sm:$0xff] %v9103_v63 }
 0x5fb   : > { %v9034_v37 = vpop.f32.mrf.mxu2 }
 0x5fc   : > { %v9035_v34 = vadd.f32 %v15086_v14, %v9034_v37 }
 0x5fe   : > { %v9072_v23 = vadd.f32 %v9035_v34, %v8382_v29 }
 0x5ff   : > { %v8388_v16 = vpop.f32.mrf.mxu1 }
 0x600   : > { %v9104_v47 = vmax.f32 %v9072_v23, 0.0  ;;  %v8389_v58 = vadd.f32 %v8388_v16, %v8300_v62 }
 0x602   : > { %9136 = vst [vmem:[%s15104_s15 + $0xe0] sm:$0xff] %v9104_v47 }
 0x603   : > { %v9036_v56 = vpop.f32.mrf.mxu2 }
 0x604   : > { %v9037_v44 = vadd.f32 %v15086_v14, %v9036_v56 }
 0x606   : > { %v9073_v20 = vadd.f32 %v9037_v44, %v8384_v55 }
 0x608   : > { %v9105_v2 = vmax.f32 %v9073_v20, 0.0 }
 0x60a   : > { %9137 = vst [vmem:[%s15104_s15 + $0xe8] sm:$0xff] %v9105_v2 }
 0x60b   : > { %v9039_v30 = vpop.f32.mrf.mxu2 }
 0x60c   : > { %v9040_v28 = vadd.f32 %v15086_v14, %v9039_v30 }
 0x60e   : > { %v9074_v54 = vadd.f32 %v9040_v28, %v8387_v49 }
 0x610   : > { %v9106_v3 = vmax.f32 %v9074_v54, 0.0 }
 0x612   : > { %9138 = vst [vmem:[%s15104_s15 + $0xf0] sm:$0xff] %v9106_v3 }
 0x613   : > { %v9041_v9 = vpop.f32.mrf.mxu2 }
 0x614   : > { %v9042_v1 = vadd.f32 %v15086_v14, %v9041_v9 }
 0x616   : > { %v9075_v11 = vadd.f32 %v9042_v1, %v8389_v58 }
 0x618   : > { %v9107_v24 = vmax.f32 %v9075_v11, 0.0 }
 0x61a   : > { %9139 = vst [vmem:[%s15104_s15 + $0xf8] sm:$0xff] %v9107_v24 }
 0x61b   : > { %10874 = shalt.err (!%p10871_p8)
}
 0x61c   : > { %s10919_s14 = smov 128   ;;  %s10920_s15 = smov 8  }
 0x61d   : > { %10753 = dma.vmem_to_hbm [thread:$0]  (%p10999_p5), %s9154_s19, 4096, %s9156_s20, %s9141_s28, %s10919_s14, %s10919_s14, %s10920_s15  }
 0x61e PF: > { %p10765_p9 = scmp.ge.s32.totalorder %s10913_s27, 2  ;;  %s9170_s16 = sand.u32 1, %s10901_s24  }
 0x61f   : > { %s9171_s17 = scalar_lea.sflag [#allocation5], %s9170_s16 }
 0x620   : > { %p10760_p10 = pnand %p10765_p9, %p11003_p6 }
 0x622   : > { %p10761_p11 = pneg %p10760_p10 }
 0x624   : > { %10896 = dma.done.wait (%p10761_p11), %s9171_s17, 4096  }
 0x625   : > { %10898 = vsyncadd (%p10761_p11), %s9171_s17, 4294963200  ;;  %p18_p12 = scmp.ge.s32.totalorder %s10986_s30, 4   ;;  %s15611_s24 = smov %s10905_s25 }
 0x626   : > { %s15612_s25 = smov %s10909_s26  ;;  %s15613_s26 = smov %s10997_s10 }
 0x627   : > { %s15614_s27 = smov %s10986_s30  ;;  %20 = sbr.rel (!%p18_p12) target bundleno = 4 (0x4), region = 93 }
 0x62c   :  { %9177 = vsyncpa [#allocation4], 1 }
 0x62d   :  { %9179 = vsyncpa [#allocation4 + $0x1], 1 }
 0x62e   :  { %9180 = vsyncpa [#allocation5], 1 }
 0x62f   :  { %9182 = vsyncpa [#allocation5 + $0x1], 1 }

</bundles_post_ra>
